<compile_context>
chip_gen: v7x
topology: tpu7x:2x2x1
jax: 0.10.0
libtpu: 0.0.40
codegen_flags: <defaults>
</compile_context>

<pallas_src>
import math
import functools

import jax
import jax.numpy as jnp
from jax.experimental import pallas as pl
from jax.experimental.pallas import tpu as pltpu

# ------------------------- tiny T5 configuration -------------------------
VOCAB = 64          # token_embeddings_size
D_MODEL = 32
D_KV = 8
N_HEADS = 4
INNER = N_HEADS * D_KV
D_FF = 64
N_LAYERS = 2
NUM_BUCKETS = 8
MAX_DISTANCE = 16
LN_EPS = 1e-6
NEG_INF = -1e9


# ------------------------------ in-kernel helpers ------------------------------
def _rms(x, w):
    # T5LayerNorm: no mean subtraction, f32 variance.  w: (1, D) broadcasts over rows.
    var = jnp.mean(x * x, axis=-1, keepdims=True)
    return x * jax.lax.rsqrt(var + LN_EPS) * w


def _mm(x, w):
    # f32 activations x bf16 weights -> f32 accumulation on the MXU.
    return jnp.dot(x.astype(jnp.bfloat16), w, preferred_element_type=jnp.float32)


def _bcast_heads(x):
    # (T, D) f32 -> (H, T, D) bf16, broadcast once per use site (JAX does not CSE it).
    return jnp.broadcast_to(x.astype(jnp.bfloat16)[None], (N_HEADS,) + x.shape)


def _mha(xq_h, xkv_h, bias, wq, wk, wv, wo):
    """Head-batched attention for one batch element.

    xq_h : (H, Tq, D) bf16  broadcast query-side activations
    xkv_h: (H, Tk, D) bf16  broadcast key/value-side activations
    bias : broadcastable to (H, Tq, Tk) f32 (relative-position + mask, pre-summed)
    wq/wk/wv: (H, D, dk) bf16 head-major projection weights
    wo      : (H, dk, D) bf16 head-major output projection
    returns (Tq, D) f32 with heads merged through the output projection.
    """
    bf16 = jnp.bfloat16
    dn_proj = (((2,), (1,)), ((0,), (0,)))     # 'hqd,hdk->hqk'
    q = jax.lax.dot_general(xq_h, wq, dn_proj, preferred_element_type=jnp.float32)
    k = jax.lax.dot_general(xkv_h, wk, dn_proj, preferred_element_type=jnp.float32)
    v = jax.lax.dot_general(xkv_h, wv, dn_proj, preferred_element_type=jnp.float32)

    s = jax.lax.dot_general(q.astype(bf16), k.astype(bf16),
                            (((2,), (2,)), ((0,), (0,))),        # 'hqe,hke->hqk'
                            preferred_element_type=jnp.float32)
    s = s + bias                                                  # T5: unscaled logits
    m = jnp.max(s, axis=-1, keepdims=True)
    p = jnp.exp(s - m)
    p = p * pl.reciprocal(jnp.sum(p, axis=-1, keepdims=True), approx=True)

    ctx = jax.lax.dot_general(p.astype(bf16), v.astype(bf16),
                              (((2,), (1,)), ((0,), (0,))),       # 'hqk,hkd->hqd'
                              preferred_element_type=jnp.float32)
    o = jax.lax.dot_general(ctx.astype(bf16), wo, dn_proj,        # 'hqd,hdD->hqD'
                            preferred_element_type=jnp.float32)
    out = o[0]
    for hh in range(1, o.shape[0]):                               # head merge (leading-dim sum)
        out = out + o[hh]
    return out


# ------------------------------ the single fused kernel ------------------------------
def _writer_kernel(enc_emb_ref, dec_emb_ref, enc_pos_ref, dec_pos_ref,
                   src_mask_ref, tgt_mask_ref, labels_ref, shared_ref,
                   enc_lns_ref, enc_qkv_ref, enc_o_ref, enc_wi_ref, enc_wff_ref,
                   dec_lns_ref, dec_sa_qkv_ref, dec_sa_o_ref,
                   dec_ca_q_ref, dec_ca_kv_ref, dec_ca_o_ref, dec_wi_ref, dec_wff_ref,
                   loss_ref, *, B, Ts, Tt):
    f32, bf16 = jnp.float32, jnp.bfloat16

    # ---- attention biases built ONCE in VMEM (never a (B,H,T,T) HBM tensor) ----
    src_m = src_mask_ref[...]                      # (B, Ts) f32
    tgt_m = tgt_mask_ref[...]                      # (B, Tt) f32
    enc_pos = enc_pos_ref[...]                     # (H, Ts, Ts) f32
    dec_pos = dec_pos_ref[...]                     # (H, Tt, Tt) f32
    ri = jax.lax.broadcasted_iota(jnp.int32, (Tt, Tt), 0)
    ci = jax.lax.broadcasted_iota(jnp.int32, (Tt, Tt), 1)
    causal = (ci <= ri).astype(f32)                # (Tt, Tt)

    enc_bias, self_bias, cross_bias = [], [], []
    for b in range(B):
        eneg = (1.0 - src_m[b:b + 1, :]) * NEG_INF             # (1, Ts)
        enc_bias.append(enc_pos + eneg[None])                  # (H, Ts, Ts)
        keep = causal * tgt_m[b:b + 1, :]                      # (Tt, Tt)
        self_bias.append(dec_pos + ((1.0 - keep) * NEG_INF)[None])  # (H, Tt, Tt)
        cross_bias.append(eneg[None])                          # (1, 1, Ts) -> broadcasts

    # ---- encoder (layer loop unrolled, activations resident) ----
    h = enc_emb_ref[...]                                        # (B*Ts, D) f32
    for li in range(N_LAYERS):
        n = _rms(h, enc_lns_ref[2 * li])                        # self-attn LN, (1, D)
        rows = []
        for b in range(B):
            xh = _bcast_heads(n[b * Ts:(b + 1) * Ts, :])
            rows.append(_mha(xh, xh, enc_bias[b],
                             enc_qkv_ref[3 * li], enc_qkv_ref[3 * li + 1],
                             enc_qkv_ref[3 * li + 2], enc_o_ref[li]))
        h = h + jnp.concatenate(rows, axis=0)

        n = _rms(h, enc_lns_ref[2 * li + 1])                    # FFN LN
        ff = jnp.maximum(_mm(n, enc_wi_ref[li]), 0.0)           # ReLU
        h = h + _mm(ff, enc_wff_ref[li])
    h = _rms(h, enc_lns_ref[2 * N_LAYERS])                      # encoder final RMSNorm
    enc_h = [_bcast_heads(h[b * Ts:(b + 1) * Ts, :]) for b in range(B)]  # reused by all dec layers

    # ---- decoder ----
    d = dec_emb_ref[...]                                        # (B*Tt, D) f32
    for li in range(N_LAYERS):
        # causal self-attention
        n = _rms(d, dec_lns_ref[3 * li])
        rows = []
        for b in range(B):
            xh = _bcast_heads(n[b * Tt:(b + 1) * Tt, :])
            rows.append(_mha(xh, xh, self_bias[b],
                             dec_sa_qkv_ref[3 * li], dec_sa_qkv_ref[3 * li + 1],
                             dec_sa_qkv_ref[3 * li + 2], dec_sa_o_ref[li]))
        d = d + jnp.concatenate(rows, axis=0)

        # cross-attention (K/V from encoder output, no position bias)
        n = _rms(d, dec_lns_ref[3 * li + 1])
        rows = []
        for b in range(B):
            xh = _bcast_heads(n[b * Tt:(b + 1) * Tt, :])
            rows.append(_mha(xh, enc_h[b], cross_bias[b],
                             dec_ca_q_ref[li], dec_ca_kv_ref[2 * li],
                             dec_ca_kv_ref[2 * li + 1], dec_ca_o_ref[li]))
        d = d + jnp.concatenate(rows, axis=0)

        # FFN (ReLU)
        n = _rms(d, dec_lns_ref[3 * li + 2])
        ff = jnp.maximum(_mm(n, dec_wi_ref[li]), 0.0)
        d = d + _mm(ff, dec_wff_ref[li])

    # ---- decoder final LN + tied lm-head (d_model**-0.5) + cross-entropy ----
    x = _rms(d, dec_lns_ref[3 * N_LAYERS]) * (D_MODEL ** -0.5)          # (N, D) f32
    logits = jax.lax.dot_general(x.astype(bf16), shared_ref[...],
                                 (((1,), (1,)), ((), ())),
                                 preferred_element_type=f32)            # (N, V)
    labels = labels_ref[...]                                            # (N, 1) int32
    m = jnp.max(logits, axis=-1, keepdims=True)
    lse = jnp.log(jnp.sum(jnp.exp(logits - m), axis=-1, keepdims=True)) + m
    col = jax.lax.broadcasted_iota(jnp.int32, logits.shape, 1)
    # NOTE: labels outside [0, VOCAB) other than -100 contribute 0 (no bounds check).
    picked = jnp.sum(jnp.where(col == labels, logits, 0.0), axis=-1, keepdims=True)
    valid = (labels != -100).astype(f32)
    # NOTE: all-ignored batch yields 0 (PyTorch mean-CE would give NaN); intentional guard.
    loss_ref[0, 0] = jnp.sum((lse - picked) * valid) / jnp.maximum(jnp.sum(valid), 1.0)


# ------------------------------ glue (plain JAX) ------------------------------
def relative_position_bucket(relative_position, bidirectional, num_buckets, max_distance):
    relative_buckets = jnp.zeros_like(relative_position)
    if bidirectional:
        num_buckets = num_buckets // 2
        relative_buckets = relative_buckets + \
            (relative_position > 0).astype(jnp.int32) * num_buckets
        relative_position = jnp.abs(relative_position)
    else:
        relative_position = -jnp.minimum(relative_position, 0)
    max_exact = num_buckets // 2
    is_small = relative_position < max_exact
    rp_float = jnp.maximum(relative_position, 1).astype(jnp.float32)
    rp_if_large = max_exact + (
        jnp.log(rp_float / max_exact) / math.log(max_distance / max_exact)
        * (num_buckets - max_exact)
    ).astype(jnp.int32)
    rp_if_large = jnp.minimum(rp_if_large, num_buckets - 1)
    relative_buckets = relative_buckets + jnp.where(is_small, relative_position, rp_if_large)
    return relative_buckets


def compute_position_bias(rel_emb, Tq, Tk, bidirectional):
    ctx = jnp.arange(Tq, dtype=jnp.int32)[:, None]
    mem = jnp.arange(Tk, dtype=jnp.int32)[None, :]
    buckets = relative_position_bucket(mem - ctx, bidirectional, NUM_BUCKETS, MAX_DISTANCE)
    values = rel_emb[buckets]                  # (Tq, Tk, H) embedding gather
    return values.transpose(2, 0, 1)           # (H, Tq, Tk) -- no unit batch dim


def shift_right(labels, decoder_start_token_id=0, pad_token_id=0):
    B = labels.shape[0]
    start = jnp.full((B, 1), decoder_start_token_id, dtype=labels.dtype)
    shifted = jnp.concatenate([start, labels[:, :-1]], axis=1)
    return jnp.where(shifted == -100, pad_token_id, shifted)


def writer_forward(params, input_ids, src_mask, labels, tgt_mask):
    """Equivalent of Writer.forward: returns the T5 seq2seq CE loss (scalar)."""
    B, Ts = input_ids.shape
    Tt = labels.shape[1]
    shared = params['shared']                                  # (V, D) f32

    enc_pos = compute_position_bias(params['enc_rel_bias'], Ts, Ts, True)   # (H, Ts, Ts)
    dec_pos = compute_position_bias(params['dec_rel_bias'], Tt, Tt, False)  # (H, Tt, Tt)

    enc_emb = shared[input_ids].reshape(B * Ts, D_MODEL)       # embedding gathers (plain JAX)
    dec_ids = shift_right(labels)
    dec_emb = shared[dec_ids].reshape(B * Tt, D_MODEL)

    enc_p, dec_p = params['enc'], params['dec']
    args = (enc_emb, dec_emb, enc_pos, dec_pos,
            src_mask.astype(jnp.float32), tgt_mask.astype(jnp.float32),
            labels.reshape(B * Tt, 1).astype(jnp.int32),
            shared.astype(jnp.bfloat16),
            enc_p['lns'], enc_p['qkv'], enc_p['o'], enc_p['wi'], enc_p['wff'],
            dec_p['lns'], dec_p['sa_qkv'], dec_p['sa_o'],
            dec_p['ca_q'], dec_p['ca_kv'], dec_p['ca_o'], dec_p['wi'], dec_p['wff'])

    loss = pl.pallas_call(
        functools.partial(_writer_kernel, B=B, Ts=Ts, Tt=Tt),
        out_shape=jax.ShapeDtypeStruct((1, 1), jnp.float32),
        in_specs=[pl.BlockSpec(memory_space=pltpu.MemorySpace.VMEM)] * len(args),
        out_specs=pl.BlockSpec(memory_space=pltpu.MemorySpace.SMEM),
    )(*args)
    return loss[0, 0]


# ------------------------------ parameters (kernel-ready layout) ------------------------------
def init_params(key):
    ks = iter(jax.random.split(key, 32))
    bf = jnp.bfloat16

    def nrm(shape, scale, dtype=jnp.float32):
        return (jax.random.normal(next(ks), shape, jnp.float32) * scale).astype(dtype)

    enc = {
        # [sa_ln, ff_ln] per layer + final encoder RMSNorm, each (1, D) so the kernel
        # indexes the leading dim only (no sub-sublane slicing).
        'lns': jnp.ones((2 * N_LAYERS + 1, 1, D_MODEL), jnp.float32),
        'qkv': nrm((3 * N_LAYERS, N_HEADS, D_MODEL, D_KV), 0.05, bf),   # head-major q|k|v
        'o':   nrm((N_LAYERS, N_HEADS, D_KV, D_MODEL), 0.05, bf),
        'wi':  nrm((N_LAYERS, D_MODEL, D_FF), 0.05, bf),
        'wff': nrm((N_LAYERS, D_FF, D_MODEL), 0.05, bf),
    }
    dec = {
        # [sa_ln, ca_ln, ff_ln] per layer + final decoder RMSNorm.
        'lns': jnp.ones((3 * N_LAYERS + 1, 1, D_MODEL), jnp.float32),
        'sa_qkv': nrm((3 * N_LAYERS, N_HEADS, D_MODEL, D_KV), 0.05, bf),
        'sa_o':   nrm((N_LAYERS, N_HEADS, D_KV, D_MODEL), 0.05, bf),
        'ca_q':   nrm((N_LAYERS, N_HEADS, D_MODEL, D_KV), 0.05, bf),
        'ca_kv':  nrm((2 * N_LAYERS, N_HEADS, D_MODEL, D_KV), 0.05, bf),  # head-major k|v
        'ca_o':   nrm((N_LAYERS, N_HEADS, D_KV, D_MODEL), 0.05, bf),
        'wi':  nrm((N_LAYERS, D_MODEL, D_FF), 0.05, bf),
        'wff': nrm((N_LAYERS, D_FF, D_MODEL), 0.05, bf),
    }
    return {
        'shared': nrm((VOCAB, D_MODEL), 1.0),
        'enc_rel_bias': nrm((NUM_BUCKETS, N_HEADS), 0.5),
        'dec_rel_bias': nrm((NUM_BUCKETS, N_HEADS), 0.5),
        'enc': enc,
        'dec': dec,
    }


# ------------------------------ main ------------------------------
if __name__ == "__main__":
    key = jax.random.PRNGKey(0)
    pkey, ikey, lkey = jax.random.split(key, 3)
    params = init_params(pkey)

    B, TS, TT = 2, 8, 8
    input_ids = jax.random.randint(ikey, (B, TS), 1, VOCAB, dtype=jnp.int32)
    labels = jax.random.randint(lkey, (B, TT), 1, VOCAB, dtype=jnp.int32)

    src_mask = jnp.ones((B, TS), jnp.int32).at[1, 6:].set(0)
    tgt_mask = jnp.ones((B, TT), jnp.int32).at[1, 6:].set(0)
    input_ids = jnp.where(src_mask == 0, 0, input_ids)       # pad masked src tokens
    labels = jnp.where(tgt_mask == 0, -100, labels)          # ignore padded targets

    loss_fn = jax.jit(writer_forward)
    loss = jax.block_until_ready(loss_fn(params, input_ids, src_mask, labels, tgt_mask))
    assert loss.shape == () and bool(jnp.isfinite(loss))
    print("KERNEL_OK")
</pallas_src>

<mosaic_0001>
module attributes {stable_mosaic.version = 11 : i64} {
  func.func @_writer_kernel(%arg0: memref<16x32xf32, #tpu.memory_space<vmem>>, %arg1: memref<16x32xf32, #tpu.memory_space<vmem>>, %arg2: memref<4x8x8xf32, #tpu.memory_space<vmem>>, %arg3: memref<4x8x8xf32, #tpu.memory_space<vmem>>, %arg4: memref<2x8xf32, #tpu.memory_space<vmem>>, %arg5: memref<2x8xf32, #tpu.memory_space<vmem>>, %arg6: memref<16x1xi32, #tpu.memory_space<vmem>>, %arg7: memref<64x32xbf16, #tpu.memory_space<vmem>>, %arg8: memref<5x1x32xf32, #tpu.memory_space<vmem>>, %arg9: memref<6x4x32x8xbf16, #tpu.memory_space<vmem>>, %arg10: memref<2x4x8x32xbf16, #tpu.memory_space<vmem>>, %arg11: memref<2x32x64xbf16, #tpu.memory_space<vmem>>, %arg12: memref<2x64x32xbf16, #tpu.memory_space<vmem>>, %arg13: memref<7x1x32xf32, #tpu.memory_space<vmem>>, %arg14: memref<6x4x32x8xbf16, #tpu.memory_space<vmem>>, %arg15: memref<2x4x8x32xbf16, #tpu.memory_space<vmem>>, %arg16: memref<2x4x32x8xbf16, #tpu.memory_space<vmem>>, %arg17: memref<4x4x32x8xbf16, #tpu.memory_space<vmem>>, %arg18: memref<2x4x8x32xbf16, #tpu.memory_space<vmem>>, %arg19: memref<2x32x64xbf16, #tpu.memory_space<vmem>>, %arg20: memref<2x64x32xbf16, #tpu.memory_space<vmem>>, %arg21: memref<1x1xf32, #tpu.memory_space<smem>>) attributes {dimension_semantics = [], scalar_prefetch = 0 : i64, scratch_operands = 0 : i64, tpu.core_type = #tpu.core_type<tc>} {
    %c0 = arith.constant 0 : index
    %c0_0 = arith.constant 0 : index
    %0 = vector.load %arg4[%c0, %c0_0] : memref<2x8xf32, #tpu.memory_space<vmem>>, vector<2x8xf32>
    %c0_1 = arith.constant 0 : index
    %c0_2 = arith.constant 0 : index
    %1 = vector.load %arg5[%c0_1, %c0_2] : memref<2x8xf32, #tpu.memory_space<vmem>>, vector<2x8xf32>
    %c0_3 = arith.constant 0 : index
    %c0_4 = arith.constant 0 : index
    %c0_5 = arith.constant 0 : index
    %2 = vector.load %arg2[%c0_3, %c0_4, %c0_5] : memref<4x8x8xf32, #tpu.memory_space<vmem>>, vector<4x8x8xf32>
    %c0_6 = arith.constant 0 : index
    %c0_7 = arith.constant 0 : index
    %c0_8 = arith.constant 0 : index
    %3 = vector.load %arg3[%c0_6, %c0_7, %c0_8] : memref<4x8x8xf32, #tpu.memory_space<vmem>>, vector<4x8x8xf32>
    %4 = tpu.iota {dimensions = array<i32: 0>} : vector<8x8xi32>
    %5 = tpu.iota {dimensions = array<i32: 1>} : vector<8x8xi32>
    %6 = arith.cmpi sle, %5, %4 : vector<8x8xi32>
    %7 = arith.extui %6 : vector<8x8xi1> to vector<8x8xi32>
    %8 = arith.sitofp %7 : vector<8x8xi32> to vector<8x8xf32>
    %9 = vector.extract_strided_slice %0 {offsets = [0, 0], sizes = [1, 8], strides = [1, 1]} : vector<2x8xf32> to vector<1x8xf32>
    %cst = arith.constant 1.000000e+00 : f32
    %10 = vector.broadcast %cst : f32 to vector<1x8xf32>
    %11 = arith.subf %10, %9 : vector<1x8xf32>
    %cst_9 = arith.constant -1.000000e+09 : f32
    %12 = vector.broadcast %cst_9 : f32 to vector<1x8xf32>
    %13 = arith.mulf %11, %12 : vector<1x8xf32>
    %14 = vector.shape_cast %13 : vector<1x8xf32> to vector<1x1x8xf32>
    %15 = vector.broadcast %14 : vector<1x1x8xf32> to vector<4x8x8xf32>
    %16 = arith.addf %2, %15 : vector<4x8x8xf32>
    %17 = vector.extract_strided_slice %1 {offsets = [0, 0], sizes = [1, 8], strides = [1, 1]} : vector<2x8xf32> to vector<1x8xf32>
    %18 = vector.broadcast %17 : vector<1x8xf32> to vector<8x8xf32>
    %19 = arith.mulf %8, %18 : vector<8x8xf32>
    %cst_10 = arith.constant 1.000000e+00 : f32
    %20 = vector.broadcast %cst_10 : f32 to vector<8x8xf32>
    %21 = arith.subf %20, %19 : vector<8x8xf32>
    %cst_11 = arith.constant -1.000000e+09 : f32
    %22 = vector.broadcast %cst_11 : f32 to vector<8x8xf32>
    %23 = arith.mulf %21, %22 : vector<8x8xf32>
    %24 = vector.shape_cast %23 : vector<8x8xf32> to vector<1x8x8xf32>
    %25 = vector.broadcast %24 : vector<1x8x8xf32> to vector<4x8x8xf32>
    %26 = arith.addf %3, %25 : vector<4x8x8xf32>
    %27 = vector.shape_cast %13 : vector<1x8xf32> to vector<1x1x8xf32>
    %28 = vector.extract_strided_slice %0 {offsets = [1, 0], sizes = [1, 8], strides = [1, 1]} : vector<2x8xf32> to vector<1x8xf32>
    %cst_12 = arith.constant 1.000000e+00 : f32
    %29 = vector.broadcast %cst_12 : f32 to vector<1x8xf32>
    %30 = arith.subf %29, %28 : vector<1x8xf32>
    %cst_13 = arith.constant -1.000000e+09 : f32
    %31 = vector.broadcast %cst_13 : f32 to vector<1x8xf32>
    %32 = arith.mulf %30, %31 : vector<1x8xf32>
    %33 = vector.shape_cast %32 : vector<1x8xf32> to vector<1x1x8xf32>
    %34 = vector.broadcast %33 : vector<1x1x8xf32> to vector<4x8x8xf32>
    %35 = arith.addf %2, %34 : vector<4x8x8xf32>
    %36 = vector.extract_strided_slice %1 {offsets = [1, 0], sizes = [1, 8], strides = [1, 1]} : vector<2x8xf32> to vector<1x8xf32>
    %37 = vector.broadcast %36 : vector<1x8xf32> to vector<8x8xf32>
    %38 = arith.mulf %8, %37 : vector<8x8xf32>
    %cst_14 = arith.constant 1.000000e+00 : f32
    %39 = vector.broadcast %cst_14 : f32 to vector<8x8xf32>
    %40 = arith.subf %39, %38 : vector<8x8xf32>
    %cst_15 = arith.constant -1.000000e+09 : f32
    %41 = vector.broadcast %cst_15 : f32 to vector<8x8xf32>
    %42 = arith.mulf %40, %41 : vector<8x8xf32>
    %43 = vector.shape_cast %42 : vector<8x8xf32> to vector<1x8x8xf32>
    %44 = vector.broadcast %43 : vector<1x8x8xf32> to vector<4x8x8xf32>
    %45 = arith.addf %3, %44 : vector<4x8x8xf32>
    %46 = vector.shape_cast %32 : vector<1x8xf32> to vector<1x1x8xf32>
    %c0_16 = arith.constant 0 : index
    %c0_17 = arith.constant 0 : index
    %47 = vector.load %arg0[%c0_16, %c0_17] : memref<16x32xf32, #tpu.memory_space<vmem>>, vector<16x32xf32>
    %c0_18 = arith.constant 0 : index
    %c0_19 = arith.constant 0 : index
    %c0_20 = arith.constant 0 : index
    %48 = vector.load %arg8[%c0_18, %c0_19, %c0_20] : memref<5x1x32xf32, #tpu.memory_space<vmem>>, vector<1x1x32xf32>
    %49 = vector.shape_cast %48 : vector<1x1x32xf32> to vector<1x32xf32>
    %50 = arith.mulf %47, %47 : vector<16x32xf32>
    %cst_21 = arith.constant dense<0.000000e+00> : vector<16xf32>
    %51 = vector.multi_reduction <add>, %50, %cst_21 [1] : vector<16x32xf32> to vector<16xf32>
    %52 = vector.shape_cast %51 : vector<16xf32> to vector<16x1xf32>
    %cst_22 = arith.constant 3.200000e+01 : f32
    %53 = vector.broadcast %cst_22 : f32 to vector<16x1xf32>
    %54 = arith.divf %52, %53 : vector<16x1xf32>
    %cst_23 = arith.constant 9.99999997E-7 : f32
    %55 = vector.broadcast %cst_23 : f32 to vector<16x1xf32>
    %56 = arith.addf %54, %55 : vector<16x1xf32>
    %57 = math.rsqrt %56 : vector<16x1xf32>
    %58 = vector.broadcast %57 : vector<16x1xf32> to vector<16x32xf32>
    %59 = arith.mulf %47, %58 : vector<16x32xf32>
    %60 = vector.broadcast %49 : vector<1x32xf32> to vector<16x32xf32>
    %61 = arith.mulf %59, %60 : vector<16x32xf32>
    %62 = vector.extract_strided_slice %61 {offsets = [0, 0], sizes = [8, 32], strides = [1, 1]} : vector<16x32xf32> to vector<8x32xf32>
    %63 = arith.truncf %62 : vector<8x32xf32> to vector<8x32xbf16>
    %64 = vector.shape_cast %63 : vector<8x32xbf16> to vector<1x8x32xbf16>
    %65 = vector.shape_cast %64 : vector<1x8x32xbf16> to vector<1x8x32xbf16>
    %66 = vector.broadcast %65 : vector<1x8x32xbf16> to vector<4x8x32xbf16>
    %c0_24 = arith.constant 0 : index
    %c0_25 = arith.constant 0 : index
    %c0_26 = arith.constant 0 : index
    %c0_27 = arith.constant 0 : index
    %67 = vector.load %arg9[%c0_24, %c0_25, %c0_26, %c0_27] : memref<6x4x32x8xbf16, #tpu.memory_space<vmem>>, vector<1x4x32x8xbf16>
    %68 = vector.shape_cast %67 : vector<1x4x32x8xbf16> to vector<4x32x8xbf16>
    %c1 = arith.constant 1 : index
    %c0_28 = arith.constant 0 : index
    %c0_29 = arith.constant 0 : index
    %c0_30 = arith.constant 0 : index
    %69 = vector.load %arg9[%c1, %c0_28, %c0_29, %c0_30] : memref<6x4x32x8xbf16, #tpu.memory_space<vmem>>, vector<1x4x32x8xbf16>
    %70 = vector.shape_cast %69 : vector<1x4x32x8xbf16> to vector<4x32x8xbf16>
    %c2 = arith.constant 2 : index
    %c0_31 = arith.constant 0 : index
    %c0_32 = arith.constant 0 : index
    %c0_33 = arith.constant 0 : index
    %71 = vector.load %arg9[%c2, %c0_31, %c0_32, %c0_33] : memref<6x4x32x8xbf16, #tpu.memory_space<vmem>>, vector<1x4x32x8xbf16>
    %72 = vector.shape_cast %71 : vector<1x4x32x8xbf16> to vector<4x32x8xbf16>
    %c0_34 = arith.constant 0 : index
    %c0_35 = arith.constant 0 : index
    %c0_36 = arith.constant 0 : index
    %c0_37 = arith.constant 0 : index
    %73 = vector.load %arg10[%c0_34, %c0_35, %c0_36, %c0_37] : memref<2x4x8x32xbf16, #tpu.memory_space<vmem>>, vector<1x4x8x32xbf16>
    %74 = vector.shape_cast %73 : vector<1x4x8x32xbf16> to vector<4x8x32xbf16>
    %cst_38 = arith.constant dense<0.000000e+00> : vector<4x8x8xf32>
    %75 = tpu.matmul %66, %68, %cst_38 {dimension_numbers = #tpu.dot_dimension_numbers<[2], [1], [1], [2], [0, 0, 0, 1, 1, 2], [0], [0]>} : vector<4x8x32xbf16>, vector<4x32x8xbf16>, vector<4x8x8xf32> -> vector<4x8x8xf32>
    %cst_39 = arith.constant dense<0.000000e+00> : vector<4x8x8xf32>
    %76 = tpu.matmul %66, %70, %cst_39 {dimension_numbers = #tpu.dot_dimension_numbers<[2], [1], [1], [2], [0, 0, 0, 1, 1, 2], [0], [0]>} : vector<4x8x32xbf16>, vector<4x32x8xbf16>, vector<4x8x8xf32> -> vector<4x8x8xf32>
    %cst_40 = arith.constant dense<0.000000e+00> : vector<4x8x8xf32>
    %77 = tpu.matmul %66, %72, %cst_40 {dimension_numbers = #tpu.dot_dimension_numbers<[2], [1], [1], [2], [0, 0, 0, 1, 1, 2], [0], [0]>} : vector<4x8x32xbf16>, vector<4x32x8xbf16>, vector<4x8x8xf32> -> vector<4x8x8xf32>
    %78 = arith.truncf %75 : vector<4x8x8xf32> to vector<4x8x8xbf16>
    %79 = arith.truncf %76 : vector<4x8x8xf32> to vector<4x8x8xbf16>
    %cst_41 = arith.constant dense<0.000000e+00> : vector<4x8x8xf32>
    %80 = tpu.matmul %78, %79, %cst_41 {dimension_numbers = #tpu.dot_dimension_numbers<[2], [2], [1], [1], [0, 0, 0, 1, 1, 1], [0], [0]>} : vector<4x8x8xbf16>, vector<4x8x8xbf16>, vector<4x8x8xf32> -> vector<4x8x8xf32>
    %81 = arith.addf %80, %16 : vector<4x8x8xf32>
    %cst_42 = arith.constant dense<0xFF800000> : vector<4x8xf32>
    %82 = vector.multi_reduction <maximumf>, %81, %cst_42 [2] : vector<4x8x8xf32> to vector<4x8xf32>
    %83 = vector.shape_cast %82 : vector<4x8xf32> to vector<4x8x1xf32>
    %84 = vector.broadcast %83 : vector<4x8x1xf32> to vector<4x8x8xf32>
    %85 = arith.subf %81, %84 : vector<4x8x8xf32>
    %86 = math.exp %85 : vector<4x8x8xf32>
    %cst_43 = arith.constant dense<0.000000e+00> : vector<4x8xf32>
    %87 = vector.multi_reduction <add>, %86, %cst_43 [2] : vector<4x8x8xf32> to vector<4x8xf32>
    %88 = vector.shape_cast %87 : vector<4x8xf32> to vector<4x8x1xf32>
    %89 = tpu.reciprocal %88 {approx = true} : vector<4x8x1xf32> -> vector<4x8x1xf32>
    %90 = vector.broadcast %89 : vector<4x8x1xf32> to vector<4x8x8xf32>
    %91 = arith.mulf %86, %90 : vector<4x8x8xf32>
    %92 = arith.truncf %91 : vector<4x8x8xf32> to vector<4x8x8xbf16>
    %93 = arith.truncf %77 : vector<4x8x8xf32> to vector<4x8x8xbf16>
    %cst_44 = arith.constant dense<0.000000e+00> : vector<4x8x8xf32>
    %94 = tpu.matmul %92, %93, %cst_44 {dimension_numbers = #tpu.dot_dimension_numbers<[2], [1], [1], [2], [0, 0, 0, 1, 1, 2], [0], [0]>} : vector<4x8x8xbf16>, vector<4x8x8xbf16>, vector<4x8x8xf32> -> vector<4x8x8xf32>
    %95 = arith.truncf %94 : vector<4x8x8xf32> to vector<4x8x8xbf16>
    %cst_45 = arith.constant dense<0.000000e+00> : vector<4x8x32xf32>
    %96 = tpu.matmul %95, %74, %cst_45 {dimension_numbers = #tpu.dot_dimension_numbers<[2], [1], [1], [2], [0, 0, 0, 1, 1, 2], [0], [0]>} : vector<4x8x8xbf16>, vector<4x8x32xbf16>, vector<4x8x32xf32> -> vector<4x8x32xf32>
    %97 = vector.extract_strided_slice %96 {offsets = [0, 0, 0], sizes = [1, 8, 32], strides = [1, 1, 1]} : vector<4x8x32xf32> to vector<1x8x32xf32>
    %98 = vector.shape_cast %97 : vector<1x8x32xf32> to vector<8x32xf32>
    %99 = vector.extract_strided_slice %96 {offsets = [1, 0, 0], sizes = [1, 8, 32], strides = [1, 1, 1]} : vector<4x8x32xf32> to vector<1x8x32xf32>
    %100 = vector.shape_cast %99 : vector<1x8x32xf32> to vector<8x32xf32>
    %101 = arith.addf %98, %100 : vector<8x32xf32>
    %102 = vector.extract_strided_slice %96 {offsets = [2, 0, 0], sizes = [1, 8, 32], strides = [1, 1, 1]} : vector<4x8x32xf32> to vector<1x8x32xf32>
    %103 = vector.shape_cast %102 : vector<1x8x32xf32> to vector<8x32xf32>
    %104 = arith.addf %101, %103 : vector<8x32xf32>
    %105 = vector.extract_strided_slice %96 {offsets = [3, 0, 0], sizes = [1, 8, 32], strides = [1, 1, 1]} : vector<4x8x32xf32> to vector<1x8x32xf32>
    %106 = vector.shape_cast %105 : vector<1x8x32xf32> to vector<8x32xf32>
    %107 = arith.addf %104, %106 : vector<8x32xf32>
    %108 = vector.extract_strided_slice %61 {offsets = [8, 0], sizes = [8, 32], strides = [1, 1]} : vector<16x32xf32> to vector<8x32xf32>
    %109 = arith.truncf %108 : vector<8x32xf32> to vector<8x32xbf16>
    %110 = vector.shape_cast %109 : vector<8x32xbf16> to vector<1x8x32xbf16>
    %111 = vector.shape_cast %110 : vector<1x8x32xbf16> to vector<1x8x32xbf16>
    %112 = vector.broadcast %111 : vector<1x8x32xbf16> to vector<4x8x32xbf16>
    %c0_46 = arith.constant 0 : index
    %c0_47 = arith.constant 0 : index
    %c0_48 = arith.constant 0 : index
    %c0_49 = arith.constant 0 : index
    %113 = vector.load %arg9[%c0_46, %c0_47, %c0_48, %c0_49] : memref<6x4x32x8xbf16, #tpu.memory_space<vmem>>, vector<1x4x32x8xbf16>
    %114 = vector.shape_cast %113 : vector<1x4x32x8xbf16> to vector<4x32x8xbf16>
    %c1_50 = arith.constant 1 : index
    %c0_51 = arith.constant 0 : index
    %c0_52 = arith.constant 0 : index
    %c0_53 = arith.constant 0 : index
    %115 = vector.load %arg9[%c1_50, %c0_51, %c0_52, %c0_53] : memref<6x4x32x8xbf16, #tpu.memory_space<vmem>>, vector<1x4x32x8xbf16>
    %116 = vector.shape_cast %115 : vector<1x4x32x8xbf16> to vector<4x32x8xbf16>
    %c2_54 = arith.constant 2 : index
    %c0_55 = arith.constant 0 : index
    %c0_56 = arith.constant 0 : index
    %c0_57 = arith.constant 0 : index
    %117 = vector.load %arg9[%c2_54, %c0_55, %c0_56, %c0_57] : memref<6x4x32x8xbf16, #tpu.memory_space<vmem>>, vector<1x4x32x8xbf16>
    %118 = vector.shape_cast %117 : vector<1x4x32x8xbf16> to vector<4x32x8xbf16>
    %c0_58 = arith.constant 0 : index
    %c0_59 = arith.constant 0 : index
    %c0_60 = arith.constant 0 : index
    %c0_61 = arith.constant 0 : index
    %119 = vector.load %arg10[%c0_58, %c0_59, %c0_60, %c0_61] : memref<2x4x8x32xbf16, #tpu.memory_space<vmem>>, vector<1x4x8x32xbf16>
    %120 = vector.shape_cast %119 : vector<1x4x8x32xbf16> to vector<4x8x32xbf16>
    %cst_62 = arith.constant dense<0.000000e+00> : vector<4x8x8xf32>
    %121 = tpu.matmul %112, %114, %cst_62 {dimension_numbers = #tpu.dot_dimension_numbers<[2], [1], [1], [2], [0, 0, 0, 1, 1, 2], [0], [0]>} : vector<4x8x32xbf16>, vector<4x32x8xbf16>, vector<4x8x8xf32> -> vector<4x8x8xf32>
    %cst_63 = arith.constant dense<0.000000e+00> : vector<4x8x8xf32>
    %122 = tpu.matmul %112, %116, %cst_63 {dimension_numbers = #tpu.dot_dimension_numbers<[2], [1], [1], [2], [0, 0, 0, 1, 1, 2], [0], [0]>} : vector<4x8x32xbf16>, vector<4x32x8xbf16>, vector<4x8x8xf32> -> vector<4x8x8xf32>
    %cst_64 = arith.constant dense<0.000000e+00> : vector<4x8x8xf32>
    %123 = tpu.matmul %112, %118, %cst_64 {dimension_numbers = #tpu.dot_dimension_numbers<[2], [1], [1], [2], [0, 0, 0, 1, 1, 2], [0], [0]>} : vector<4x8x32xbf16>, vector<4x32x8xbf16>, vector<4x8x8xf32> -> vector<4x8x8xf32>
    %124 = arith.truncf %121 : vector<4x8x8xf32> to vector<4x8x8xbf16>
    %125 = arith.truncf %122 : vector<4x8x8xf32> to vector<4x8x8xbf16>
    %cst_65 = arith.constant dense<0.000000e+00> : vector<4x8x8xf32>
    %126 = tpu.matmul %124, %125, %cst_65 {dimension_numbers = #tpu.dot_dimension_numbers<[2], [2], [1], [1], [0, 0, 0, 1, 1, 1], [0], [0]>} : vector<4x8x8xbf16>, vector<4x8x8xbf16>, vector<4x8x8xf32> -> vector<4x8x8xf32>
    %127 = arith.addf %126, %35 : vector<4x8x8xf32>
    %cst_66 = arith.constant dense<0xFF800000> : vector<4x8xf32>
    %128 = vector.multi_reduction <maximumf>, %127, %cst_66 [2] : vector<4x8x8xf32> to vector<4x8xf32>
    %129 = vector.shape_cast %128 : vector<4x8xf32> to vector<4x8x1xf32>
    %130 = vector.broadcast %129 : vector<4x8x1xf32> to vector<4x8x8xf32>
    %131 = arith.subf %127, %130 : vector<4x8x8xf32>
    %132 = math.exp %131 : vector<4x8x8xf32>
    %cst_67 = arith.constant dense<0.000000e+00> : vector<4x8xf32>
    %133 = vector.multi_reduction <add>, %132, %cst_67 [2] : vector<4x8x8xf32> to vector<4x8xf32>
    %134 = vector.shape_cast %133 : vector<4x8xf32> to vector<4x8x1xf32>
    %135 = tpu.reciprocal %134 {approx = true} : vector<4x8x1xf32> -> vector<4x8x1xf32>
    %136 = vector.broadcast %135 : vector<4x8x1xf32> to vector<4x8x8xf32>
    %137 = arith.mulf %132, %136 : vector<4x8x8xf32>
    %138 = arith.truncf %137 : vector<4x8x8xf32> to vector<4x8x8xbf16>
    %139 = arith.truncf %123 : vector<4x8x8xf32> to vector<4x8x8xbf16>
    %cst_68 = arith.constant dense<0.000000e+00> : vector<4x8x8xf32>
    %140 = tpu.matmul %138, %139, %cst_68 {dimension_numbers = #tpu.dot_dimension_numbers<[2], [1], [1], [2], [0, 0, 0, 1, 1, 2], [0], [0]>} : vector<4x8x8xbf16>, vector<4x8x8xbf16>, vector<4x8x8xf32> -> vector<4x8x8xf32>
    %141 = arith.truncf %140 : vector<4x8x8xf32> to vector<4x8x8xbf16>
    %cst_69 = arith.constant dense<0.000000e+00> : vector<4x8x32xf32>
    %142 = tpu.matmul %141, %120, %cst_69 {dimension_numbers = #tpu.dot_dimension_numbers<[2], [1], [1], [2], [0, 0, 0, 1, 1, 2], [0], [0]>} : vector<4x8x8xbf16>, vector<4x8x32xbf16>, vector<4x8x32xf32> -> vector<4x8x32xf32>
    %143 = vector.extract_strided_slice %142 {offsets = [0, 0, 0], sizes = [1, 8, 32], strides = [1, 1, 1]} : vector<4x8x32xf32> to vector<1x8x32xf32>
    %144 = vector.shape_cast %143 : vector<1x8x32xf32> to vector<8x32xf32>
    %145 = vector.extract_strided_slice %142 {offsets = [1, 0, 0], sizes = [1, 8, 32], strides = [1, 1, 1]} : vector<4x8x32xf32> to vector<1x8x32xf32>
    %146 = vector.shape_cast %145 : vector<1x8x32xf32> to vector<8x32xf32>
    %147 = arith.addf %144, %146 : vector<8x32xf32>
    %148 = vector.extract_strided_slice %142 {offsets = [2, 0, 0], sizes = [1, 8, 32], strides = [1, 1, 1]} : vector<4x8x32xf32> to vector<1x8x32xf32>
    %149 = vector.shape_cast %148 : vector<1x8x32xf32> to vector<8x32xf32>
    %150 = arith.addf %147, %149 : vector<8x32xf32>
    %151 = vector.extract_strided_slice %142 {offsets = [3, 0, 0], sizes = [1, 8, 32], strides = [1, 1, 1]} : vector<4x8x32xf32> to vector<1x8x32xf32>
    %152 = vector.shape_cast %151 : vector<1x8x32xf32> to vector<8x32xf32>
    %153 = arith.addf %150, %152 : vector<8x32xf32>
    %154 = tpu.concatenate %107, %153 in 0 : vector<8x32xf32>, vector<8x32xf32> -> vector<16x32xf32>
    %155 = arith.addf %47, %154 : vector<16x32xf32>
    %c1_70 = arith.constant 1 : index
    %c0_71 = arith.constant 0 : index
    %c0_72 = arith.constant 0 : index
    %156 = vector.load %arg8[%c1_70, %c0_71, %c0_72] : memref<5x1x32xf32, #tpu.memory_space<vmem>>, vector<1x1x32xf32>
    %157 = vector.shape_cast %156 : vector<1x1x32xf32> to vector<1x32xf32>
    %158 = arith.mulf %155, %155 : vector<16x32xf32>
    %cst_73 = arith.constant dense<0.000000e+00> : vector<16xf32>
    %159 = vector.multi_reduction <add>, %158, %cst_73 [1] : vector<16x32xf32> to vector<16xf32>
    %160 = vector.shape_cast %159 : vector<16xf32> to vector<16x1xf32>
    %cst_74 = arith.constant 3.200000e+01 : f32
    %161 = vector.broadcast %cst_74 : f32 to vector<16x1xf32>
    %162 = arith.divf %160, %161 : vector<16x1xf32>
    %cst_75 = arith.constant 9.99999997E-7 : f32
    %163 = vector.broadcast %cst_75 : f32 to vector<16x1xf32>
    %164 = arith.addf %162, %163 : vector<16x1xf32>
    %165 = math.rsqrt %164 : vector<16x1xf32>
    %166 = vector.broadcast %165 : vector<16x1xf32> to vector<16x32xf32>
    %167 = arith.mulf %155, %166 : vector<16x32xf32>
    %168 = vector.broadcast %157 : vector<1x32xf32> to vector<16x32xf32>
    %169 = arith.mulf %167, %168 : vector<16x32xf32>
    %c0_76 = arith.constant 0 : index
    %c0_77 = arith.constant 0 : index
    %c0_78 = arith.constant 0 : index
    %170 = vector.load %arg11[%c0_76, %c0_77, %c0_78] : memref<2x32x64xbf16, #tpu.memory_space<vmem>>, vector<1x32x64xbf16>
    %171 = vector.shape_cast %170 : vector<1x32x64xbf16> to vector<32x64xbf16>
    %172 = arith.truncf %169 : vector<16x32xf32> to vector<16x32xbf16>
    %cst_79 = arith.constant dense<0.000000e+00> : vector<16x64xf32>
    %173 = tpu.matmul %172, %171, %cst_79 {dimension_numbers = #tpu.dot_dimension_numbers<[1], [0], [0], [1], [0, 0, 1, 1], [], []>} : vector<16x32xbf16>, vector<32x64xbf16>, vector<16x64xf32> -> vector<16x64xf32>
    %cst_80 = arith.constant 0.000000e+00 : f32
    %174 = vector.broadcast %cst_80 : f32 to vector<16x64xf32>
    %175 = arith.maximumf %173, %174 : vector<16x64xf32>
    %c0_81 = arith.constant 0 : index
    %c0_82 = arith.constant 0 : index
    %c0_83 = arith.constant 0 : index
    %176 = vector.load %arg12[%c0_81, %c0_82, %c0_83] : memref<2x64x32xbf16, #tpu.memory_space<vmem>>, vector<1x64x32xbf16>
    %177 = vector.shape_cast %176 : vector<1x64x32xbf16> to vector<64x32xbf16>
    %178 = arith.truncf %175 : vector<16x64xf32> to vector<16x64xbf16>
    %cst_84 = arith.constant dense<0.000000e+00> : vector<16x32xf32>
    %179 = tpu.matmul %178, %177, %cst_84 {dimension_numbers = #tpu.dot_dimension_numbers<[1], [0], [0], [1], [0, 0, 1, 1], [], []>} : vector<16x64xbf16>, vector<64x32xbf16>, vector<16x32xf32> -> vector<16x32xf32>
    %180 = arith.addf %155, %179 : vector<16x32xf32>
    %c2_85 = arith.constant 2 : index
    %c0_86 = arith.constant 0 : index
    %c0_87 = arith.constant 0 : index
    %181 = vector.load %arg8[%c2_85, %c0_86, %c0_87] : memref<5x1x32xf32, #tpu.memory_space<vmem>>, vector<1x1x32xf32>
    %182 = vector.shape_cast %181 : vector<1x1x32xf32> to vector<1x32xf32>
    %183 = arith.mulf %180, %180 : vector<16x32xf32>
    %cst_88 = arith.constant dense<0.000000e+00> : vector<16xf32>
    %184 = vector.multi_reduction <add>, %183, %cst_88 [1] : vector<16x32xf32> to vector<16xf32>
    %185 = vector.shape_cast %184 : vector<16xf32> to vector<16x1xf32>
    %cst_89 = arith.constant 3.200000e+01 : f32
    %186 = vector.broadcast %cst_89 : f32 to vector<16x1xf32>
    %187 = arith.divf %185, %186 : vector<16x1xf32>
    %cst_90 = arith.constant 9.99999997E-7 : f32
    %188 = vector.broadcast %cst_90 : f32 to vector<16x1xf32>
    %189 = arith.addf %187, %188 : vector<16x1xf32>
    %190 = math.rsqrt %189 : vector<16x1xf32>
    %191 = vector.broadcast %190 : vector<16x1xf32> to vector<16x32xf32>
    %192 = arith.mulf %180, %191 : vector<16x32xf32>
    %193 = vector.broadcast %182 : vector<1x32xf32> to vector<16x32xf32>
    %194 = arith.mulf %192, %193 : vector<16x32xf32>
    %195 = vector.extract_strided_slice %194 {offsets = [0, 0], sizes = [8, 32], strides = [1, 1]} : vector<16x32xf32> to vector<8x32xf32>
    %196 = arith.truncf %195 : vector<8x32xf32> to vector<8x32xbf16>
    %197 = vector.shape_cast %196 : vector<8x32xbf16> to vector<1x8x32xbf16>
    %198 = vector.shape_cast %197 : vector<1x8x32xbf16> to vector<1x8x32xbf16>
    %199 = vector.broadcast %198 : vector<1x8x32xbf16> to vector<4x8x32xbf16>
    %c3 = arith.constant 3 : index
    %c0_91 = arith.constant 0 : index
    %c0_92 = arith.constant 0 : index
    %c0_93 = arith.constant 0 : index
    %200 = vector.load %arg9[%c3, %c0_91, %c0_92, %c0_93] : memref<6x4x32x8xbf16, #tpu.memory_space<vmem>>, vector<1x4x32x8xbf16>
    %201 = vector.shape_cast %200 : vector<1x4x32x8xbf16> to vector<4x32x8xbf16>
    %c4 = arith.constant 4 : index
    %c0_94 = arith.constant 0 : index
    %c0_95 = arith.constant 0 : index
    %c0_96 = arith.constant 0 : index
    %202 = vector.load %arg9[%c4, %c0_94, %c0_95, %c0_96] : memref<6x4x32x8xbf16, #tpu.memory_space<vmem>>, vector<1x4x32x8xbf16>
    %203 = vector.shape_cast %202 : vector<1x4x32x8xbf16> to vector<4x32x8xbf16>
    %c5 = arith.constant 5 : index
    %c0_97 = arith.constant 0 : index
    %c0_98 = arith.constant 0 : index
    %c0_99 = arith.constant 0 : index
    %204 = vector.load %arg9[%c5, %c0_97, %c0_98, %c0_99] : memref<6x4x32x8xbf16, #tpu.memory_space<vmem>>, vector<1x4x32x8xbf16>
    %205 = vector.shape_cast %204 : vector<1x4x32x8xbf16> to vector<4x32x8xbf16>
    %c1_100 = arith.constant 1 : index
    %c0_101 = arith.constant 0 : index
    %c0_102 = arith.constant 0 : index
    %c0_103 = arith.constant 0 : index
    %206 = vector.load %arg10[%c1_100, %c0_101, %c0_102, %c0_103] : memref<2x4x8x32xbf16, #tpu.memory_space<vmem>>, vector<1x4x8x32xbf16>
    %207 = vector.shape_cast %206 : vector<1x4x8x32xbf16> to vector<4x8x32xbf16>
    %cst_104 = arith.constant dense<0.000000e+00> : vector<4x8x8xf32>
    %208 = tpu.matmul %199, %201, %cst_104 {dimension_numbers = #tpu.dot_dimension_numbers<[2], [1], [1], [2], [0, 0, 0, 1, 1, 2], [0], [0]>} : vector<4x8x32xbf16>, vector<4x32x8xbf16>, vector<4x8x8xf32> -> vector<4x8x8xf32>
    %cst_105 = arith.constant dense<0.000000e+00> : vector<4x8x8xf32>
    %209 = tpu.matmul %199, %203, %cst_105 {dimension_numbers = #tpu.dot_dimension_numbers<[2], [1], [1], [2], [0, 0, 0, 1, 1, 2], [0], [0]>} : vector<4x8x32xbf16>, vector<4x32x8xbf16>, vector<4x8x8xf32> -> vector<4x8x8xf32>
    %cst_106 = arith.constant dense<0.000000e+00> : vector<4x8x8xf32>
    %210 = tpu.matmul %199, %205, %cst_106 {dimension_numbers = #tpu.dot_dimension_numbers<[2], [1], [1], [2], [0, 0, 0, 1, 1, 2], [0], [0]>} : vector<4x8x32xbf16>, vector<4x32x8xbf16>, vector<4x8x8xf32> -> vector<4x8x8xf32>
    %211 = arith.truncf %208 : vector<4x8x8xf32> to vector<4x8x8xbf16>
    %212 = arith.truncf %209 : vector<4x8x8xf32> to vector<4x8x8xbf16>
    %cst_107 = arith.constant dense<0.000000e+00> : vector<4x8x8xf32>
    %213 = tpu.matmul %211, %212, %cst_107 {dimension_numbers = #tpu.dot_dimension_numbers<[2], [2], [1], [1], [0, 0, 0, 1, 1, 1], [0], [0]>} : vector<4x8x8xbf16>, vector<4x8x8xbf16>, vector<4x8x8xf32> -> vector<4x8x8xf32>
    %214 = arith.addf %213, %16 : vector<4x8x8xf32>
    %cst_108 = arith.constant dense<0xFF800000> : vector<4x8xf32>
    %215 = vector.multi_reduction <maximumf>, %214, %cst_108 [2] : vector<4x8x8xf32> to vector<4x8xf32>
    %216 = vector.shape_cast %215 : vector<4x8xf32> to vector<4x8x1xf32>
    %217 = vector.broadcast %216 : vector<4x8x1xf32> to vector<4x8x8xf32>
    %218 = arith.subf %214, %217 : vector<4x8x8xf32>
    %219 = math.exp %218 : vector<4x8x8xf32>
    %cst_109 = arith.constant dense<0.000000e+00> : vector<4x8xf32>
    %220 = vector.multi_reduction <add>, %219, %cst_109 [2] : vector<4x8x8xf32> to vector<4x8xf32>
    %221 = vector.shape_cast %220 : vector<4x8xf32> to vector<4x8x1xf32>
    %222 = tpu.reciprocal %221 {approx = true} : vector<4x8x1xf32> -> vector<4x8x1xf32>
    %223 = vector.broadcast %222 : vector<4x8x1xf32> to vector<4x8x8xf32>
    %224 = arith.mulf %219, %223 : vector<4x8x8xf32>
    %225 = arith.truncf %224 : vector<4x8x8xf32> to vector<4x8x8xbf16>
    %226 = arith.truncf %210 : vector<4x8x8xf32> to vector<4x8x8xbf16>
    %cst_110 = arith.constant dense<0.000000e+00> : vector<4x8x8xf32>
    %227 = tpu.matmul %225, %226, %cst_110 {dimension_numbers = #tpu.dot_dimension_numbers<[2], [1], [1], [2], [0, 0, 0, 1, 1, 2], [0], [0]>} : vector<4x8x8xbf16>, vector<4x8x8xbf16>, vector<4x8x8xf32> -> vector<4x8x8xf32>
    %228 = arith.truncf %227 : vector<4x8x8xf32> to vector<4x8x8xbf16>
    %cst_111 = arith.constant dense<0.000000e+00> : vector<4x8x32xf32>
    %229 = tpu.matmul %228, %207, %cst_111 {dimension_numbers = #tpu.dot_dimension_numbers<[2], [1], [1], [2], [0, 0, 0, 1, 1, 2], [0], [0]>} : vector<4x8x8xbf16>, vector<4x8x32xbf16>, vector<4x8x32xf32> -> vector<4x8x32xf32>
    %230 = vector.extract_strided_slice %229 {offsets = [0, 0, 0], sizes = [1, 8, 32], strides = [1, 1, 1]} : vector<4x8x32xf32> to vector<1x8x32xf32>
    %231 = vector.shape_cast %230 : vector<1x8x32xf32> to vector<8x32xf32>
    %232 = vector.extract_strided_slice %229 {offsets = [1, 0, 0], sizes = [1, 8, 32], strides = [1, 1, 1]} : vector<4x8x32xf32> to vector<1x8x32xf32>
    %233 = vector.shape_cast %232 : vector<1x8x32xf32> to vector<8x32xf32>
    %234 = arith.addf %231, %233 : vector<8x32xf32>
    %235 = vector.extract_strided_slice %229 {offsets = [2, 0, 0], sizes = [1, 8, 32], strides = [1, 1, 1]} : vector<4x8x32xf32> to vector<1x8x32xf32>
    %236 = vector.shape_cast %235 : vector<1x8x32xf32> to vector<8x32xf32>
    %237 = arith.addf %234, %236 : vector<8x32xf32>
    %238 = vector.extract_strided_slice %229 {offsets = [3, 0, 0], sizes = [1, 8, 32], strides = [1, 1, 1]} : vector<4x8x32xf32> to vector<1x8x32xf32>
    %239 = vector.shape_cast %238 : vector<1x8x32xf32> to vector<8x32xf32>
    %240 = arith.addf %237, %239 : vector<8x32xf32>
    %241 = vector.extract_strided_slice %194 {offsets = [8, 0], sizes = [8, 32], strides = [1, 1]} : vector<16x32xf32> to vector<8x32xf32>
    %242 = arith.truncf %241 : vector<8x32xf32> to vector<8x32xbf16>
    %243 = vector.shape_cast %242 : vector<8x32xbf16> to vector<1x8x32xbf16>
    %244 = vector.shape_cast %243 : vector<1x8x32xbf16> to vector<1x8x32xbf16>
    %245 = vector.broadcast %244 : vector<1x8x32xbf16> to vector<4x8x32xbf16>
    %c3_112 = arith.constant 3 : index
    %c0_113 = arith.constant 0 : index
    %c0_114 = arith.constant 0 : index
    %c0_115 = arith.constant 0 : index
    %246 = vector.load %arg9[%c3_112, %c0_113, %c0_114, %c0_115] : memref<6x4x32x8xbf16, #tpu.memory_space<vmem>>, vector<1x4x32x8xbf16>
    %247 = vector.shape_cast %246 : vector<1x4x32x8xbf16> to vector<4x32x8xbf16>
    %c4_116 = arith.constant 4 : index
    %c0_117 = arith.constant 0 : index
    %c0_118 = arith.constant 0 : index
    %c0_119 = arith.constant 0 : index
    %248 = vector.load %arg9[%c4_116, %c0_117, %c0_118, %c0_119] : memref<6x4x32x8xbf16, #tpu.memory_space<vmem>>, vector<1x4x32x8xbf16>
    %249 = vector.shape_cast %248 : vector<1x4x32x8xbf16> to vector<4x32x8xbf16>
    %c5_120 = arith.constant 5 : index
    %c0_121 = arith.constant 0 : index
    %c0_122 = arith.constant 0 : index
    %c0_123 = arith.constant 0 : index
    %250 = vector.load %arg9[%c5_120, %c0_121, %c0_122, %c0_123] : memref<6x4x32x8xbf16, #tpu.memory_space<vmem>>, vector<1x4x32x8xbf16>
    %251 = vector.shape_cast %250 : vector<1x4x32x8xbf16> to vector<4x32x8xbf16>
    %c1_124 = arith.constant 1 : index
    %c0_125 = arith.constant 0 : index
    %c0_126 = arith.constant 0 : index
    %c0_127 = arith.constant 0 : index
    %252 = vector.load %arg10[%c1_124, %c0_125, %c0_126, %c0_127] : memref<2x4x8x32xbf16, #tpu.memory_space<vmem>>, vector<1x4x8x32xbf16>
    %253 = vector.shape_cast %252 : vector<1x4x8x32xbf16> to vector<4x8x32xbf16>
    %cst_128 = arith.constant dense<0.000000e+00> : vector<4x8x8xf32>
    %254 = tpu.matmul %245, %247, %cst_128 {dimension_numbers = #tpu.dot_dimension_numbers<[2], [1], [1], [2], [0, 0, 0, 1, 1, 2], [0], [0]>} : vector<4x8x32xbf16>, vector<4x32x8xbf16>, vector<4x8x8xf32> -> vector<4x8x8xf32>
    %cst_129 = arith.constant dense<0.000000e+00> : vector<4x8x8xf32>
    %255 = tpu.matmul %245, %249, %cst_129 {dimension_numbers = #tpu.dot_dimension_numbers<[2], [1], [1], [2], [0, 0, 0, 1, 1, 2], [0], [0]>} : vector<4x8x32xbf16>, vector<4x32x8xbf16>, vector<4x8x8xf32> -> vector<4x8x8xf32>
    %cst_130 = arith.constant dense<0.000000e+00> : vector<4x8x8xf32>
    %256 = tpu.matmul %245, %251, %cst_130 {dimension_numbers = #tpu.dot_dimension_numbers<[2], [1], [1], [2], [0, 0, 0, 1, 1, 2], [0], [0]>} : vector<4x8x32xbf16>, vector<4x32x8xbf16>, vector<4x8x8xf32> -> vector<4x8x8xf32>
    %257 = arith.truncf %254 : vector<4x8x8xf32> to vector<4x8x8xbf16>
    %258 = arith.truncf %255 : vector<4x8x8xf32> to vector<4x8x8xbf16>
    %cst_131 = arith.constant dense<0.000000e+00> : vector<4x8x8xf32>
    %259 = tpu.matmul %257, %258, %cst_131 {dimension_numbers = #tpu.dot_dimension_numbers<[2], [2], [1], [1], [0, 0, 0, 1, 1, 1], [0], [0]>} : vector<4x8x8xbf16>, vector<4x8x8xbf16>, vector<4x8x8xf32> -> vector<4x8x8xf32>
    %260 = arith.addf %259, %35 : vector<4x8x8xf32>
    %cst_132 = arith.constant dense<0xFF800000> : vector<4x8xf32>
    %261 = vector.multi_reduction <maximumf>, %260, %cst_132 [2] : vector<4x8x8xf32> to vector<4x8xf32>
    %262 = vector.shape_cast %261 : vector<4x8xf32> to vector<4x8x1xf32>
    %263 = vector.broadcast %262 : vector<4x8x1xf32> to vector<4x8x8xf32>
    %264 = arith.subf %260, %263 : vector<4x8x8xf32>
    %265 = math.exp %264 : vector<4x8x8xf32>
    %cst_133 = arith.constant dense<0.000000e+00> : vector<4x8xf32>
    %266 = vector.multi_reduction <add>, %265, %cst_133 [2] : vector<4x8x8xf32> to vector<4x8xf32>
    %267 = vector.shape_cast %266 : vector<4x8xf32> to vector<4x8x1xf32>
    %268 = tpu.reciprocal %267 {approx = true} : vector<4x8x1xf32> -> vector<4x8x1xf32>
    %269 = vector.broadcast %268 : vector<4x8x1xf32> to vector<4x8x8xf32>
    %270 = arith.mulf %265, %269 : vector<4x8x8xf32>
    %271 = arith.truncf %270 : vector<4x8x8xf32> to vector<4x8x8xbf16>
    %272 = arith.truncf %256 : vector<4x8x8xf32> to vector<4x8x8xbf16>
    %cst_134 = arith.constant dense<0.000000e+00> : vector<4x8x8xf32>
    %273 = tpu.matmul %271, %272, %cst_134 {dimension_numbers = #tpu.dot_dimension_numbers<[2], [1], [1], [2], [0, 0, 0, 1, 1, 2], [0], [0]>} : vector<4x8x8xbf16>, vector<4x8x8xbf16>, vector<4x8x8xf32> -> vector<4x8x8xf32>
    %274 = arith.truncf %273 : vector<4x8x8xf32> to vector<4x8x8xbf16>
    %cst_135 = arith.constant dense<0.000000e+00> : vector<4x8x32xf32>
    %275 = tpu.matmul %274, %253, %cst_135 {dimension_numbers = #tpu.dot_dimension_numbers<[2], [1], [1], [2], [0, 0, 0, 1, 1, 2], [0], [0]>} : vector<4x8x8xbf16>, vector<4x8x32xbf16>, vector<4x8x32xf32> -> vector<4x8x32xf32>
    %276 = vector.extract_strided_slice %275 {offsets = [0, 0, 0], sizes = [1, 8, 32], strides = [1, 1, 1]} : vector<4x8x32xf32> to vector<1x8x32xf32>
    %277 = vector.shape_cast %276 : vector<1x8x32xf32> to vector<8x32xf32>
    %278 = vector.extract_strided_slice %275 {offsets = [1, 0, 0], sizes = [1, 8, 32], strides = [1, 1, 1]} : vector<4x8x32xf32> to vector<1x8x32xf32>
    %279 = vector.shape_cast %278 : vector<1x8x32xf32> to vector<8x32xf32>
    %280 = arith.addf %277, %279 : vector<8x32xf32>
    %281 = vector.extract_strided_slice %275 {offsets = [2, 0, 0], sizes = [1, 8, 32], strides = [1, 1, 1]} : vector<4x8x32xf32> to vector<1x8x32xf32>
    %282 = vector.shape_cast %281 : vector<1x8x32xf32> to vector<8x32xf32>
    %283 = arith.addf %280, %282 : vector<8x32xf32>
    %284 = vector.extract_strided_slice %275 {offsets = [3, 0, 0], sizes = [1, 8, 32], strides = [1, 1, 1]} : vector<4x8x32xf32> to vector<1x8x32xf32>
    %285 = vector.shape_cast %284 : vector<1x8x32xf32> to vector<8x32xf32>
    %286 = arith.addf %283, %285 : vector<8x32xf32>
    %287 = tpu.concatenate %240, %286 in 0 : vector<8x32xf32>, vector<8x32xf32> -> vector<16x32xf32>
    %288 = arith.addf %180, %287 : vector<16x32xf32>
    %c3_136 = arith.constant 3 : index
    %c0_137 = arith.constant 0 : index
    %c0_138 = arith.constant 0 : index
    %289 = vector.load %arg8[%c3_136, %c0_137, %c0_138] : memref<5x1x32xf32, #tpu.memory_space<vmem>>, vector<1x1x32xf32>
    %290 = vector.shape_cast %289 : vector<1x1x32xf32> to vector<1x32xf32>
    %291 = arith.mulf %288, %288 : vector<16x32xf32>
    %cst_139 = arith.constant dense<0.000000e+00> : vector<16xf32>
    %292 = vector.multi_reduction <add>, %291, %cst_139 [1] : vector<16x32xf32> to vector<16xf32>
    %293 = vector.shape_cast %292 : vector<16xf32> to vector<16x1xf32>
    %cst_140 = arith.constant 3.200000e+01 : f32
    %294 = vector.broadcast %cst_140 : f32 to vector<16x1xf32>
    %295 = arith.divf %293, %294 : vector<16x1xf32>
    %cst_141 = arith.constant 9.99999997E-7 : f32
    %296 = vector.broadcast %cst_141 : f32 to vector<16x1xf32>
    %297 = arith.addf %295, %296 : vector<16x1xf32>
    %298 = math.rsqrt %297 : vector<16x1xf32>
    %299 = vector.broadcast %298 : vector<16x1xf32> to vector<16x32xf32>
    %300 = arith.mulf %288, %299 : vector<16x32xf32>
    %301 = vector.broadcast %290 : vector<1x32xf32> to vector<16x32xf32>
    %302 = arith.mulf %300, %301 : vector<16x32xf32>
    %c1_142 = arith.constant 1 : index
    %c0_143 = arith.constant 0 : index
    %c0_144 = arith.constant 0 : index
    %303 = vector.load %arg11[%c1_142, %c0_143, %c0_144] : memref<2x32x64xbf16, #tpu.memory_space<vmem>>, vector<1x32x64xbf16>
    %304 = vector.shape_cast %303 : vector<1x32x64xbf16> to vector<32x64xbf16>
    %305 = arith.truncf %302 : vector<16x32xf32> to vector<16x32xbf16>
    %cst_145 = arith.constant dense<0.000000e+00> : vector<16x64xf32>
    %306 = tpu.matmul %305, %304, %cst_145 {dimension_numbers = #tpu.dot_dimension_numbers<[1], [0], [0], [1], [0, 0, 1, 1], [], []>} : vector<16x32xbf16>, vector<32x64xbf16>, vector<16x64xf32> -> vector<16x64xf32>
    %cst_146 = arith.constant 0.000000e+00 : f32
    %307 = vector.broadcast %cst_146 : f32 to vector<16x64xf32>
    %308 = arith.maximumf %306, %307 : vector<16x64xf32>
    %c1_147 = arith.constant 1 : index
    %c0_148 = arith.constant 0 : index
    %c0_149 = arith.constant 0 : index
    %309 = vector.load %arg12[%c1_147, %c0_148, %c0_149] : memref<2x64x32xbf16, #tpu.memory_space<vmem>>, vector<1x64x32xbf16>
    %310 = vector.shape_cast %309 : vector<1x64x32xbf16> to vector<64x32xbf16>
    %311 = arith.truncf %308 : vector<16x64xf32> to vector<16x64xbf16>
    %cst_150 = arith.constant dense<0.000000e+00> : vector<16x32xf32>
    %312 = tpu.matmul %311, %310, %cst_150 {dimension_numbers = #tpu.dot_dimension_numbers<[1], [0], [0], [1], [0, 0, 1, 1], [], []>} : vector<16x64xbf16>, vector<64x32xbf16>, vector<16x32xf32> -> vector<16x32xf32>
    %313 = arith.addf %288, %312 : vector<16x32xf32>
    %c4_151 = arith.constant 4 : index
    %c0_152 = arith.constant 0 : index
    %c0_153 = arith.constant 0 : index
    %314 = vector.load %arg8[%c4_151, %c0_152, %c0_153] : memref<5x1x32xf32, #tpu.memory_space<vmem>>, vector<1x1x32xf32>
    %315 = vector.shape_cast %314 : vector<1x1x32xf32> to vector<1x32xf32>
    %316 = arith.mulf %313, %313 : vector<16x32xf32>
    %cst_154 = arith.constant dense<0.000000e+00> : vector<16xf32>
    %317 = vector.multi_reduction <add>, %316, %cst_154 [1] : vector<16x32xf32> to vector<16xf32>
    %318 = vector.shape_cast %317 : vector<16xf32> to vector<16x1xf32>
    %cst_155 = arith.constant 3.200000e+01 : f32
    %319 = vector.broadcast %cst_155 : f32 to vector<16x1xf32>
    %320 = arith.divf %318, %319 : vector<16x1xf32>
    %cst_156 = arith.constant 9.99999997E-7 : f32
    %321 = vector.broadcast %cst_156 : f32 to vector<16x1xf32>
    %322 = arith.addf %320, %321 : vector<16x1xf32>
    %323 = math.rsqrt %322 : vector<16x1xf32>
    %324 = vector.broadcast %323 : vector<16x1xf32> to vector<16x32xf32>
    %325 = arith.mulf %313, %324 : vector<16x32xf32>
    %326 = vector.broadcast %315 : vector<1x32xf32> to vector<16x32xf32>
    %327 = arith.mulf %325, %326 : vector<16x32xf32>
    %328 = vector.extract_strided_slice %327 {offsets = [0, 0], sizes = [8, 32], strides = [1, 1]} : vector<16x32xf32> to vector<8x32xf32>
    %329 = arith.truncf %328 : vector<8x32xf32> to vector<8x32xbf16>
    %330 = vector.shape_cast %329 : vector<8x32xbf16> to vector<1x8x32xbf16>
    %331 = vector.shape_cast %330 : vector<1x8x32xbf16> to vector<1x8x32xbf16>
    %332 = vector.broadcast %331 : vector<1x8x32xbf16> to vector<4x8x32xbf16>
    %333 = vector.extract_strided_slice %327 {offsets = [8, 0], sizes = [8, 32], strides = [1, 1]} : vector<16x32xf32> to vector<8x32xf32>
    %334 = arith.truncf %333 : vector<8x32xf32> to vector<8x32xbf16>
    %335 = vector.shape_cast %334 : vector<8x32xbf16> to vector<1x8x32xbf16>
    %336 = vector.shape_cast %335 : vector<1x8x32xbf16> to vector<1x8x32xbf16>
    %337 = vector.broadcast %336 : vector<1x8x32xbf16> to vector<4x8x32xbf16>
    %c0_157 = arith.constant 0 : index
    %c0_158 = arith.constant 0 : index
    %338 = vector.load %arg1[%c0_157, %c0_158] : memref<16x32xf32, #tpu.memory_space<vmem>>, vector<16x32xf32>
    %c0_159 = arith.constant 0 : index
    %c0_160 = arith.constant 0 : index
    %c0_161 = arith.constant 0 : index
    %339 = vector.load %arg13[%c0_159, %c0_160, %c0_161] : memref<7x1x32xf32, #tpu.memory_space<vmem>>, vector<1x1x32xf32>
    %340 = vector.shape_cast %339 : vector<1x1x32xf32> to vector<1x32xf32>
    %341 = arith.mulf %338, %338 : vector<16x32xf32>
    %cst_162 = arith.constant dense<0.000000e+00> : vector<16xf32>
    %342 = vector.multi_reduction <add>, %341, %cst_162 [1] : vector<16x32xf32> to vector<16xf32>
    %343 = vector.shape_cast %342 : vector<16xf32> to vector<16x1xf32>
    %cst_163 = arith.constant 3.200000e+01 : f32
    %344 = vector.broadcast %cst_163 : f32 to vector<16x1xf32>
    %345 = arith.divf %343, %344 : vector<16x1xf32>
    %cst_164 = arith.constant 9.99999997E-7 : f32
    %346 = vector.broadcast %cst_164 : f32 to vector<16x1xf32>
    %347 = arith.addf %345, %346 : vector<16x1xf32>
    %348 = math.rsqrt %347 : vector<16x1xf32>
    %349 = vector.broadcast %348 : vector<16x1xf32> to vector<16x32xf32>
    %350 = arith.mulf %338, %349 : vector<16x32xf32>
    %351 = vector.broadcast %340 : vector<1x32xf32> to vector<16x32xf32>
    %352 = arith.mulf %350, %351 : vector<16x32xf32>
    %353 = vector.extract_strided_slice %352 {offsets = [0, 0], sizes = [8, 32], strides = [1, 1]} : vector<16x32xf32> to vector<8x32xf32>
    %354 = arith.truncf %353 : vector<8x32xf32> to vector<8x32xbf16>
    %355 = vector.shape_cast %354 : vector<8x32xbf16> to vector<1x8x32xbf16>
    %356 = vector.shape_cast %355 : vector<1x8x32xbf16> to vector<1x8x32xbf16>
    %357 = vector.broadcast %356 : vector<1x8x32xbf16> to vector<4x8x32xbf16>
    %c0_165 = arith.constant 0 : index
    %c0_166 = arith.constant 0 : index
    %c0_167 = arith.constant 0 : index
    %c0_168 = arith.constant 0 : index
    %358 = vector.load %arg14[%c0_165, %c0_166, %c0_167, %c0_168] : memref<6x4x32x8xbf16, #tpu.memory_space<vmem>>, vector<1x4x32x8xbf16>
    %359 = vector.shape_cast %358 : vector<1x4x32x8xbf16> to vector<4x32x8xbf16>
    %c1_169 = arith.constant 1 : index
    %c0_170 = arith.constant 0 : index
    %c0_171 = arith.constant 0 : index
    %c0_172 = arith.constant 0 : index
    %360 = vector.load %arg14[%c1_169, %c0_170, %c0_171, %c0_172] : memref<6x4x32x8xbf16, #tpu.memory_space<vmem>>, vector<1x4x32x8xbf16>
    %361 = vector.shape_cast %360 : vector<1x4x32x8xbf16> to vector<4x32x8xbf16>
    %c2_173 = arith.constant 2 : index
    %c0_174 = arith.constant 0 : index
    %c0_175 = arith.constant 0 : index
    %c0_176 = arith.constant 0 : index
    %362 = vector.load %arg14[%c2_173, %c0_174, %c0_175, %c0_176] : memref<6x4x32x8xbf16, #tpu.memory_space<vmem>>, vector<1x4x32x8xbf16>
    %363 = vector.shape_cast %362 : vector<1x4x32x8xbf16> to vector<4x32x8xbf16>
    %c0_177 = arith.constant 0 : index
    %c0_178 = arith.constant 0 : index
    %c0_179 = arith.constant 0 : index
    %c0_180 = arith.constant 0 : index
    %364 = vector.load %arg15[%c0_177, %c0_178, %c0_179, %c0_180] : memref<2x4x8x32xbf16, #tpu.memory_space<vmem>>, vector<1x4x8x32xbf16>
    %365 = vector.shape_cast %364 : vector<1x4x8x32xbf16> to vector<4x8x32xbf16>
    %cst_181 = arith.constant dense<0.000000e+00> : vector<4x8x8xf32>
    %366 = tpu.matmul %357, %359, %cst_181 {dimension_numbers = #tpu.dot_dimension_numbers<[2], [1], [1], [2], [0, 0, 0, 1, 1, 2], [0], [0]>} : vector<4x8x32xbf16>, vector<4x32x8xbf16>, vector<4x8x8xf32> -> vector<4x8x8xf32>
    %cst_182 = arith.constant dense<0.000000e+00> : vector<4x8x8xf32>
    %367 = tpu.matmul %357, %361, %cst_182 {dimension_numbers = #tpu.dot_dimension_numbers<[2], [1], [1], [2], [0, 0, 0, 1, 1, 2], [0], [0]>} : vector<4x8x32xbf16>, vector<4x32x8xbf16>, vector<4x8x8xf32> -> vector<4x8x8xf32>
    %cst_183 = arith.constant dense<0.000000e+00> : vector<4x8x8xf32>
    %368 = tpu.matmul %357, %363, %cst_183 {dimension_numbers = #tpu.dot_dimension_numbers<[2], [1], [1], [2], [0, 0, 0, 1, 1, 2], [0], [0]>} : vector<4x8x32xbf16>, vector<4x32x8xbf16>, vector<4x8x8xf32> -> vector<4x8x8xf32>
    %369 = arith.truncf %366 : vector<4x8x8xf32> to vector<4x8x8xbf16>
    %370 = arith.truncf %367 : vector<4x8x8xf32> to vector<4x8x8xbf16>
    %cst_184 = arith.constant dense<0.000000e+00> : vector<4x8x8xf32>
    %371 = tpu.matmul %369, %370, %cst_184 {dimension_numbers = #tpu.dot_dimension_numbers<[2], [2], [1], [1], [0, 0, 0, 1, 1, 1], [0], [0]>} : vector<4x8x8xbf16>, vector<4x8x8xbf16>, vector<4x8x8xf32> -> vector<4x8x8xf32>
    %372 = arith.addf %371, %26 : vector<4x8x8xf32>
    %cst_185 = arith.constant dense<0xFF800000> : vector<4x8xf32>
    %373 = vector.multi_reduction <maximumf>, %372, %cst_185 [2] : vector<4x8x8xf32> to vector<4x8xf32>
    %374 = vector.shape_cast %373 : vector<4x8xf32> to vector<4x8x1xf32>
    %375 = vector.broadcast %374 : vector<4x8x1xf32> to vector<4x8x8xf32>
    %376 = arith.subf %372, %375 : vector<4x8x8xf32>
    %377 = math.exp %376 : vector<4x8x8xf32>
    %cst_186 = arith.constant dense<0.000000e+00> : vector<4x8xf32>
    %378 = vector.multi_reduction <add>, %377, %cst_186 [2] : vector<4x8x8xf32> to vector<4x8xf32>
    %379 = vector.shape_cast %378 : vector<4x8xf32> to vector<4x8x1xf32>
    %380 = tpu.reciprocal %379 {approx = true} : vector<4x8x1xf32> -> vector<4x8x1xf32>
    %381 = vector.broadcast %380 : vector<4x8x1xf32> to vector<4x8x8xf32>
    %382 = arith.mulf %377, %381 : vector<4x8x8xf32>
    %383 = arith.truncf %382 : vector<4x8x8xf32> to vector<4x8x8xbf16>
    %384 = arith.truncf %368 : vector<4x8x8xf32> to vector<4x8x8xbf16>
    %cst_187 = arith.constant dense<0.000000e+00> : vector<4x8x8xf32>
    %385 = tpu.matmul %383, %384, %cst_187 {dimension_numbers = #tpu.dot_dimension_numbers<[2], [1], [1], [2], [0, 0, 0, 1, 1, 2], [0], [0]>} : vector<4x8x8xbf16>, vector<4x8x8xbf16>, vector<4x8x8xf32> -> vector<4x8x8xf32>
    %386 = arith.truncf %385 : vector<4x8x8xf32> to vector<4x8x8xbf16>
    %cst_188 = arith.constant dense<0.000000e+00> : vector<4x8x32xf32>
    %387 = tpu.matmul %386, %365, %cst_188 {dimension_numbers = #tpu.dot_dimension_numbers<[2], [1], [1], [2], [0, 0, 0, 1, 1, 2], [0], [0]>} : vector<4x8x8xbf16>, vector<4x8x32xbf16>, vector<4x8x32xf32> -> vector<4x8x32xf32>
    %388 = vector.extract_strided_slice %387 {offsets = [0, 0, 0], sizes = [1, 8, 32], strides = [1, 1, 1]} : vector<4x8x32xf32> to vector<1x8x32xf32>
    %389 = vector.shape_cast %388 : vector<1x8x32xf32> to vector<8x32xf32>
    %390 = vector.extract_strided_slice %387 {offsets = [1, 0, 0], sizes = [1, 8, 32], strides = [1, 1, 1]} : vector<4x8x32xf32> to vector<1x8x32xf32>
    %391 = vector.shape_cast %390 : vector<1x8x32xf32> to vector<8x32xf32>
    %392 = arith.addf %389, %391 : vector<8x32xf32>
    %393 = vector.extract_strided_slice %387 {offsets = [2, 0, 0], sizes = [1, 8, 32], strides = [1, 1, 1]} : vector<4x8x32xf32> to vector<1x8x32xf32>
    %394 = vector.shape_cast %393 : vector<1x8x32xf32> to vector<8x32xf32>
    %395 = arith.addf %392, %394 : vector<8x32xf32>
    %396 = vector.extract_strided_slice %387 {offsets = [3, 0, 0], sizes = [1, 8, 32], strides = [1, 1, 1]} : vector<4x8x32xf32> to vector<1x8x32xf32>
    %397 = vector.shape_cast %396 : vector<1x8x32xf32> to vector<8x32xf32>
    %398 = arith.addf %395, %397 : vector<8x32xf32>
    %399 = vector.extract_strided_slice %352 {offsets = [8, 0], sizes = [8, 32], strides = [1, 1]} : vector<16x32xf32> to vector<8x32xf32>
    %400 = arith.truncf %399 : vector<8x32xf32> to vector<8x32xbf16>
    %401 = vector.shape_cast %400 : vector<8x32xbf16> to vector<1x8x32xbf16>
    %402 = vector.shape_cast %401 : vector<1x8x32xbf16> to vector<1x8x32xbf16>
    %403 = vector.broadcast %402 : vector<1x8x32xbf16> to vector<4x8x32xbf16>
    %c0_189 = arith.constant 0 : index
    %c0_190 = arith.constant 0 : index
    %c0_191 = arith.constant 0 : index
    %c0_192 = arith.constant 0 : index
    %404 = vector.load %arg14[%c0_189, %c0_190, %c0_191, %c0_192] : memref<6x4x32x8xbf16, #tpu.memory_space<vmem>>, vector<1x4x32x8xbf16>
    %405 = vector.shape_cast %404 : vector<1x4x32x8xbf16> to vector<4x32x8xbf16>
    %c1_193 = arith.constant 1 : index
    %c0_194 = arith.constant 0 : index
    %c0_195 = arith.constant 0 : index
    %c0_196 = arith.constant 0 : index
    %406 = vector.load %arg14[%c1_193, %c0_194, %c0_195, %c0_196] : memref<6x4x32x8xbf16, #tpu.memory_space<vmem>>, vector<1x4x32x8xbf16>
    %407 = vector.shape_cast %406 : vector<1x4x32x8xbf16> to vector<4x32x8xbf16>
    %c2_197 = arith.constant 2 : index
    %c0_198 = arith.constant 0 : index
    %c0_199 = arith.constant 0 : index
    %c0_200 = arith.constant 0 : index
    %408 = vector.load %arg14[%c2_197, %c0_198, %c0_199, %c0_200] : memref<6x4x32x8xbf16, #tpu.memory_space<vmem>>, vector<1x4x32x8xbf16>
    %409 = vector.shape_cast %408 : vector<1x4x32x8xbf16> to vector<4x32x8xbf16>
    %c0_201 = arith.constant 0 : index
    %c0_202 = arith.constant 0 : index
    %c0_203 = arith.constant 0 : index
    %c0_204 = arith.constant 0 : index
    %410 = vector.load %arg15[%c0_201, %c0_202, %c0_203, %c0_204] : memref<2x4x8x32xbf16, #tpu.memory_space<vmem>>, vector<1x4x8x32xbf16>
    %411 = vector.shape_cast %410 : vector<1x4x8x32xbf16> to vector<4x8x32xbf16>
    %cst_205 = arith.constant dense<0.000000e+00> : vector<4x8x8xf32>
    %412 = tpu.matmul %403, %405, %cst_205 {dimension_numbers = #tpu.dot_dimension_numbers<[2], [1], [1], [2], [0, 0, 0, 1, 1, 2], [0], [0]>} : vector<4x8x32xbf16>, vector<4x32x8xbf16>, vector<4x8x8xf32> -> vector<4x8x8xf32>
    %cst_206 = arith.constant dense<0.000000e+00> : vector<4x8x8xf32>
    %413 = tpu.matmul %403, %407, %cst_206 {dimension_numbers = #tpu.dot_dimension_numbers<[2], [1], [1], [2], [0, 0, 0, 1, 1, 2], [0], [0]>} : vector<4x8x32xbf16>, vector<4x32x8xbf16>, vector<4x8x8xf32> -> vector<4x8x8xf32>
    %cst_207 = arith.constant dense<0.000000e+00> : vector<4x8x8xf32>
    %414 = tpu.matmul %403, %409, %cst_207 {dimension_numbers = #tpu.dot_dimension_numbers<[2], [1], [1], [2], [0, 0, 0, 1, 1, 2], [0], [0]>} : vector<4x8x32xbf16>, vector<4x32x8xbf16>, vector<4x8x8xf32> -> vector<4x8x8xf32>
    %415 = arith.truncf %412 : vector<4x8x8xf32> to vector<4x8x8xbf16>
    %416 = arith.truncf %413 : vector<4x8x8xf32> to vector<4x8x8xbf16>
    %cst_208 = arith.constant dense<0.000000e+00> : vector<4x8x8xf32>
    %417 = tpu.matmul %415, %416, %cst_208 {dimension_numbers = #tpu.dot_dimension_numbers<[2], [2], [1], [1], [0, 0, 0, 1, 1, 1], [0], [0]>} : vector<4x8x8xbf16>, vector<4x8x8xbf16>, vector<4x8x8xf32> -> vector<4x8x8xf32>
    %418 = arith.addf %417, %45 : vector<4x8x8xf32>
    %cst_209 = arith.constant dense<0xFF800000> : vector<4x8xf32>
    %419 = vector.multi_reduction <maximumf>, %418, %cst_209 [2] : vector<4x8x8xf32> to vector<4x8xf32>
    %420 = vector.shape_cast %419 : vector<4x8xf32> to vector<4x8x1xf32>
    %421 = vector.broadcast %420 : vector<4x8x1xf32> to vector<4x8x8xf32>
    %422 = arith.subf %418, %421 : vector<4x8x8xf32>
    %423 = math.exp %422 : vector<4x8x8xf32>
    %cst_210 = arith.constant dense<0.000000e+00> : vector<4x8xf32>
    %424 = vector.multi_reduction <add>, %423, %cst_210 [2] : vector<4x8x8xf32> to vector<4x8xf32>
    %425 = vector.shape_cast %424 : vector<4x8xf32> to vector<4x8x1xf32>
    %426 = tpu.reciprocal %425 {approx = true} : vector<4x8x1xf32> -> vector<4x8x1xf32>
    %427 = vector.broadcast %426 : vector<4x8x1xf32> to vector<4x8x8xf32>
    %428 = arith.mulf %423, %427 : vector<4x8x8xf32>
    %429 = arith.truncf %428 : vector<4x8x8xf32> to vector<4x8x8xbf16>
    %430 = arith.truncf %414 : vector<4x8x8xf32> to vector<4x8x8xbf16>
    %cst_211 = arith.constant dense<0.000000e+00> : vector<4x8x8xf32>
    %431 = tpu.matmul %429, %430, %cst_211 {dimension_numbers = #tpu.dot_dimension_numbers<[2], [1], [1], [2], [0, 0, 0, 1, 1, 2], [0], [0]>} : vector<4x8x8xbf16>, vector<4x8x8xbf16>, vector<4x8x8xf32> -> vector<4x8x8xf32>
    %432 = arith.truncf %431 : vector<4x8x8xf32> to vector<4x8x8xbf16>
    %cst_212 = arith.constant dense<0.000000e+00> : vector<4x8x32xf32>
    %433 = tpu.matmul %432, %411, %cst_212 {dimension_numbers = #tpu.dot_dimension_numbers<[2], [1], [1], [2], [0, 0, 0, 1, 1, 2], [0], [0]>} : vector<4x8x8xbf16>, vector<4x8x32xbf16>, vector<4x8x32xf32> -> vector<4x8x32xf32>
    %434 = vector.extract_strided_slice %433 {offsets = [0, 0, 0], sizes = [1, 8, 32], strides = [1, 1, 1]} : vector<4x8x32xf32> to vector<1x8x32xf32>
    %435 = vector.shape_cast %434 : vector<1x8x32xf32> to vector<8x32xf32>
    %436 = vector.extract_strided_slice %433 {offsets = [1, 0, 0], sizes = [1, 8, 32], strides = [1, 1, 1]} : vector<4x8x32xf32> to vector<1x8x32xf32>
    %437 = vector.shape_cast %436 : vector<1x8x32xf32> to vector<8x32xf32>
    %438 = arith.addf %435, %437 : vector<8x32xf32>
    %439 = vector.extract_strided_slice %433 {offsets = [2, 0, 0], sizes = [1, 8, 32], strides = [1, 1, 1]} : vector<4x8x32xf32> to vector<1x8x32xf32>
    %440 = vector.shape_cast %439 : vector<1x8x32xf32> to vector<8x32xf32>
    %441 = arith.addf %438, %440 : vector<8x32xf32>
    %442 = vector.extract_strided_slice %433 {offsets = [3, 0, 0], sizes = [1, 8, 32], strides = [1, 1, 1]} : vector<4x8x32xf32> to vector<1x8x32xf32>
    %443 = vector.shape_cast %442 : vector<1x8x32xf32> to vector<8x32xf32>
    %444 = arith.addf %441, %443 : vector<8x32xf32>
    %445 = tpu.concatenate %398, %444 in 0 : vector<8x32xf32>, vector<8x32xf32> -> vector<16x32xf32>
    %446 = arith.addf %338, %445 : vector<16x32xf32>
    %c1_213 = arith.constant 1 : index
    %c0_214 = arith.constant 0 : index
    %c0_215 = arith.constant 0 : index
    %447 = vector.load %arg13[%c1_213, %c0_214, %c0_215] : memref<7x1x32xf32, #tpu.memory_space<vmem>>, vector<1x1x32xf32>
    %448 = vector.shape_cast %447 : vector<1x1x32xf32> to vector<1x32xf32>
    %449 = arith.mulf %446, %446 : vector<16x32xf32>
    %cst_216 = arith.constant dense<0.000000e+00> : vector<16xf32>
    %450 = vector.multi_reduction <add>, %449, %cst_216 [1] : vector<16x32xf32> to vector<16xf32>
    %451 = vector.shape_cast %450 : vector<16xf32> to vector<16x1xf32>
    %cst_217 = arith.constant 3.200000e+01 : f32
    %452 = vector.broadcast %cst_217 : f32 to vector<16x1xf32>
    %453 = arith.divf %451, %452 : vector<16x1xf32>
    %cst_218 = arith.constant 9.99999997E-7 : f32
    %454 = vector.broadcast %cst_218 : f32 to vector<16x1xf32>
    %455 = arith.addf %453, %454 : vector<16x1xf32>
    %456 = math.rsqrt %455 : vector<16x1xf32>
    %457 = vector.broadcast %456 : vector<16x1xf32> to vector<16x32xf32>
    %458 = arith.mulf %446, %457 : vector<16x32xf32>
    %459 = vector.broadcast %448 : vector<1x32xf32> to vector<16x32xf32>
    %460 = arith.mulf %458, %459 : vector<16x32xf32>
    %461 = vector.extract_strided_slice %460 {offsets = [0, 0], sizes = [8, 32], strides = [1, 1]} : vector<16x32xf32> to vector<8x32xf32>
    %462 = arith.truncf %461 : vector<8x32xf32> to vector<8x32xbf16>
    %463 = vector.shape_cast %462 : vector<8x32xbf16> to vector<1x8x32xbf16>
    %464 = vector.shape_cast %463 : vector<1x8x32xbf16> to vector<1x8x32xbf16>
    %465 = vector.broadcast %464 : vector<1x8x32xbf16> to vector<4x8x32xbf16>
    %c0_219 = arith.constant 0 : index
    %c0_220 = arith.constant 0 : index
    %c0_221 = arith.constant 0 : index
    %c0_222 = arith.constant 0 : index
    %466 = vector.load %arg16[%c0_219, %c0_220, %c0_221, %c0_222] : memref<2x4x32x8xbf16, #tpu.memory_space<vmem>>, vector<1x4x32x8xbf16>
    %467 = vector.shape_cast %466 : vector<1x4x32x8xbf16> to vector<4x32x8xbf16>
    %c0_223 = arith.constant 0 : index
    %c0_224 = arith.constant 0 : index
    %c0_225 = arith.constant 0 : index
    %c0_226 = arith.constant 0 : index
    %468 = vector.load %arg17[%c0_223, %c0_224, %c0_225, %c0_226] : memref<4x4x32x8xbf16, #tpu.memory_space<vmem>>, vector<1x4x32x8xbf16>
    %469 = vector.shape_cast %468 : vector<1x4x32x8xbf16> to vector<4x32x8xbf16>
    %c1_227 = arith.constant 1 : index
    %c0_228 = arith.constant 0 : index
    %c0_229 = arith.constant 0 : index
    %c0_230 = arith.constant 0 : index
    %470 = vector.load %arg17[%c1_227, %c0_228, %c0_229, %c0_230] : memref<4x4x32x8xbf16, #tpu.memory_space<vmem>>, vector<1x4x32x8xbf16>
    %471 = vector.shape_cast %470 : vector<1x4x32x8xbf16> to vector<4x32x8xbf16>
    %c0_231 = arith.constant 0 : index
    %c0_232 = arith.constant 0 : index
    %c0_233 = arith.constant 0 : index
    %c0_234 = arith.constant 0 : index
    %472 = vector.load %arg18[%c0_231, %c0_232, %c0_233, %c0_234] : memref<2x4x8x32xbf16, #tpu.memory_space<vmem>>, vector<1x4x8x32xbf16>
    %473 = vector.shape_cast %472 : vector<1x4x8x32xbf16> to vector<4x8x32xbf16>
    %cst_235 = arith.constant dense<0.000000e+00> : vector<4x8x8xf32>
    %474 = tpu.matmul %465, %467, %cst_235 {dimension_numbers = #tpu.dot_dimension_numbers<[2], [1], [1], [2], [0, 0, 0, 1, 1, 2], [0], [0]>} : vector<4x8x32xbf16>, vector<4x32x8xbf16>, vector<4x8x8xf32> -> vector<4x8x8xf32>
    %cst_236 = arith.constant dense<0.000000e+00> : vector<4x8x8xf32>
    %475 = tpu.matmul %332, %469, %cst_236 {dimension_numbers = #tpu.dot_dimension_numbers<[2], [1], [1], [2], [0, 0, 0, 1, 1, 2], [0], [0]>} : vector<4x8x32xbf16>, vector<4x32x8xbf16>, vector<4x8x8xf32> -> vector<4x8x8xf32>
    %cst_237 = arith.constant dense<0.000000e+00> : vector<4x8x8xf32>
    %476 = tpu.matmul %332, %471, %cst_237 {dimension_numbers = #tpu.dot_dimension_numbers<[2], [1], [1], [2], [0, 0, 0, 1, 1, 2], [0], [0]>} : vector<4x8x32xbf16>, vector<4x32x8xbf16>, vector<4x8x8xf32> -> vector<4x8x8xf32>
    %477 = arith.truncf %474 : vector<4x8x8xf32> to vector<4x8x8xbf16>
    %478 = arith.truncf %475 : vector<4x8x8xf32> to vector<4x8x8xbf16>
    %cst_238 = arith.constant dense<0.000000e+00> : vector<4x8x8xf32>
    %479 = tpu.matmul %477, %478, %cst_238 {dimension_numbers = #tpu.dot_dimension_numbers<[2], [2], [1], [1], [0, 0, 0, 1, 1, 1], [0], [0]>} : vector<4x8x8xbf16>, vector<4x8x8xbf16>, vector<4x8x8xf32> -> vector<4x8x8xf32>
    %480 = vector.broadcast %27 : vector<1x1x8xf32> to vector<4x8x8xf32>
    %481 = arith.addf %479, %480 : vector<4x8x8xf32>
    %cst_239 = arith.constant dense<0xFF800000> : vector<4x8xf32>
    %482 = vector.multi_reduction <maximumf>, %481, %cst_239 [2] : vector<4x8x8xf32> to vector<4x8xf32>
    %483 = vector.shape_cast %482 : vector<4x8xf32> to vector<4x8x1xf32>
    %484 = vector.broadcast %483 : vector<4x8x1xf32> to vector<4x8x8xf32>
    %485 = arith.subf %481, %484 : vector<4x8x8xf32>
    %486 = math.exp %485 : vector<4x8x8xf32>
    %cst_240 = arith.constant dense<0.000000e+00> : vector<4x8xf32>
    %487 = vector.multi_reduction <add>, %486, %cst_240 [2] : vector<4x8x8xf32> to vector<4x8xf32>
    %488 = vector.shape_cast %487 : vector<4x8xf32> to vector<4x8x1xf32>
    %489 = tpu.reciprocal %488 {approx = true} : vector<4x8x1xf32> -> vector<4x8x1xf32>
    %490 = vector.broadcast %489 : vector<4x8x1xf32> to vector<4x8x8xf32>
    %491 = arith.mulf %486, %490 : vector<4x8x8xf32>
    %492 = arith.truncf %491 : vector<4x8x8xf32> to vector<4x8x8xbf16>
    %493 = arith.truncf %476 : vector<4x8x8xf32> to vector<4x8x8xbf16>
    %cst_241 = arith.constant dense<0.000000e+00> : vector<4x8x8xf32>
    %494 = tpu.matmul %492, %493, %cst_241 {dimension_numbers = #tpu.dot_dimension_numbers<[2], [1], [1], [2], [0, 0, 0, 1, 1, 2], [0], [0]>} : vector<4x8x8xbf16>, vector<4x8x8xbf16>, vector<4x8x8xf32> -> vector<4x8x8xf32>
    %495 = arith.truncf %494 : vector<4x8x8xf32> to vector<4x8x8xbf16>
    %cst_242 = arith.constant dense<0.000000e+00> : vector<4x8x32xf32>
    %496 = tpu.matmul %495, %473, %cst_242 {dimension_numbers = #tpu.dot_dimension_numbers<[2], [1], [1], [2], [0, 0, 0, 1, 1, 2], [0], [0]>} : vector<4x8x8xbf16>, vector<4x8x32xbf16>, vector<4x8x32xf32> -> vector<4x8x32xf32>
    %497 = vector.extract_strided_slice %496 {offsets = [0, 0, 0], sizes = [1, 8, 32], strides = [1, 1, 1]} : vector<4x8x32xf32> to vector<1x8x32xf32>
    %498 = vector.shape_cast %497 : vector<1x8x32xf32> to vector<8x32xf32>
    %499 = vector.extract_strided_slice %496 {offsets = [1, 0, 0], sizes = [1, 8, 32], strides = [1, 1, 1]} : vector<4x8x32xf32> to vector<1x8x32xf32>
    %500 = vector.shape_cast %499 : vector<1x8x32xf32> to vector<8x32xf32>
    %501 = arith.addf %498, %500 : vector<8x32xf32>
    %502 = vector.extract_strided_slice %496 {offsets = [2, 0, 0], sizes = [1, 8, 32], strides = [1, 1, 1]} : vector<4x8x32xf32> to vector<1x8x32xf32>
    %503 = vector.shape_cast %502 : vector<1x8x32xf32> to vector<8x32xf32>
    %504 = arith.addf %501, %503 : vector<8x32xf32>
    %505 = vector.extract_strided_slice %496 {offsets = [3, 0, 0], sizes = [1, 8, 32], strides = [1, 1, 1]} : vector<4x8x32xf32> to vector<1x8x32xf32>
    %506 = vector.shape_cast %505 : vector<1x8x32xf32> to vector<8x32xf32>
    %507 = arith.addf %504, %506 : vector<8x32xf32>
    %508 = vector.extract_strided_slice %460 {offsets = [8, 0], sizes = [8, 32], strides = [1, 1]} : vector<16x32xf32> to vector<8x32xf32>
    %509 = arith.truncf %508 : vector<8x32xf32> to vector<8x32xbf16>
    %510 = vector.shape_cast %509 : vector<8x32xbf16> to vector<1x8x32xbf16>
    %511 = vector.shape_cast %510 : vector<1x8x32xbf16> to vector<1x8x32xbf16>
    %512 = vector.broadcast %511 : vector<1x8x32xbf16> to vector<4x8x32xbf16>
    %c0_243 = arith.constant 0 : index
    %c0_244 = arith.constant 0 : index
    %c0_245 = arith.constant 0 : index
    %c0_246 = arith.constant 0 : index
    %513 = vector.load %arg16[%c0_243, %c0_244, %c0_245, %c0_246] : memref<2x4x32x8xbf16, #tpu.memory_space<vmem>>, vector<1x4x32x8xbf16>
    %514 = vector.shape_cast %513 : vector<1x4x32x8xbf16> to vector<4x32x8xbf16>
    %c0_247 = arith.constant 0 : index
    %c0_248 = arith.constant 0 : index
    %c0_249 = arith.constant 0 : index
    %c0_250 = arith.constant 0 : index
    %515 = vector.load %arg17[%c0_247, %c0_248, %c0_249, %c0_250] : memref<4x4x32x8xbf16, #tpu.memory_space<vmem>>, vector<1x4x32x8xbf16>
    %516 = vector.shape_cast %515 : vector<1x4x32x8xbf16> to vector<4x32x8xbf16>
    %c1_251 = arith.constant 1 : index
    %c0_252 = arith.constant 0 : index
    %c0_253 = arith.constant 0 : index
    %c0_254 = arith.constant 0 : index
    %517 = vector.load %arg17[%c1_251, %c0_252, %c0_253, %c0_254] : memref<4x4x32x8xbf16, #tpu.memory_space<vmem>>, vector<1x4x32x8xbf16>
    %518 = vector.shape_cast %517 : vector<1x4x32x8xbf16> to vector<4x32x8xbf16>
    %c0_255 = arith.constant 0 : index
    %c0_256 = arith.constant 0 : index
    %c0_257 = arith.constant 0 : index
    %c0_258 = arith.constant 0 : index
    %519 = vector.load %arg18[%c0_255, %c0_256, %c0_257, %c0_258] : memref<2x4x8x32xbf16, #tpu.memory_space<vmem>>, vector<1x4x8x32xbf16>
    %520 = vector.shape_cast %519 : vector<1x4x8x32xbf16> to vector<4x8x32xbf16>
    %cst_259 = arith.constant dense<0.000000e+00> : vector<4x8x8xf32>
    %521 = tpu.matmul %512, %514, %cst_259 {dimension_numbers = #tpu.dot_dimension_numbers<[2], [1], [1], [2], [0, 0, 0, 1, 1, 2], [0], [0]>} : vector<4x8x32xbf16>, vector<4x32x8xbf16>, vector<4x8x8xf32> -> vector<4x8x8xf32>
    %cst_260 = arith.constant dense<0.000000e+00> : vector<4x8x8xf32>
    %522 = tpu.matmul %337, %516, %cst_260 {dimension_numbers = #tpu.dot_dimension_numbers<[2], [1], [1], [2], [0, 0, 0, 1, 1, 2], [0], [0]>} : vector<4x8x32xbf16>, vector<4x32x8xbf16>, vector<4x8x8xf32> -> vector<4x8x8xf32>
    %cst_261 = arith.constant dense<0.000000e+00> : vector<4x8x8xf32>
    %523 = tpu.matmul %337, %518, %cst_261 {dimension_numbers = #tpu.dot_dimension_numbers<[2], [1], [1], [2], [0, 0, 0, 1, 1, 2], [0], [0]>} : vector<4x8x32xbf16>, vector<4x32x8xbf16>, vector<4x8x8xf32> -> vector<4x8x8xf32>
    %524 = arith.truncf %521 : vector<4x8x8xf32> to vector<4x8x8xbf16>
    %525 = arith.truncf %522 : vector<4x8x8xf32> to vector<4x8x8xbf16>
    %cst_262 = arith.constant dense<0.000000e+00> : vector<4x8x8xf32>
    %526 = tpu.matmul %524, %525, %cst_262 {dimension_numbers = #tpu.dot_dimension_numbers<[2], [2], [1], [1], [0, 0, 0, 1, 1, 1], [0], [0]>} : vector<4x8x8xbf16>, vector<4x8x8xbf16>, vector<4x8x8xf32> -> vector<4x8x8xf32>
    %527 = vector.broadcast %46 : vector<1x1x8xf32> to vector<4x8x8xf32>
    %528 = arith.addf %526, %527 : vector<4x8x8xf32>
    %cst_263 = arith.constant dense<0xFF800000> : vector<4x8xf32>
    %529 = vector.multi_reduction <maximumf>, %528, %cst_263 [2] : vector<4x8x8xf32> to vector<4x8xf32>
    %530 = vector.shape_cast %529 : vector<4x8xf32> to vector<4x8x1xf32>
    %531 = vector.broadcast %530 : vector<4x8x1xf32> to vector<4x8x8xf32>
    %532 = arith.subf %528, %531 : vector<4x8x8xf32>
    %533 = math.exp %532 : vector<4x8x8xf32>
    %cst_264 = arith.constant dense<0.000000e+00> : vector<4x8xf32>
    %534 = vector.multi_reduction <add>, %533, %cst_264 [2] : vector<4x8x8xf32> to vector<4x8xf32>
    %535 = vector.shape_cast %534 : vector<4x8xf32> to vector<4x8x1xf32>
    %536 = tpu.reciprocal %535 {approx = true} : vector<4x8x1xf32> -> vector<4x8x1xf32>
    %537 = vector.broadcast %536 : vector<4x8x1xf32> to vector<4x8x8xf32>
    %538 = arith.mulf %533, %537 : vector<4x8x8xf32>
    %539 = arith.truncf %538 : vector<4x8x8xf32> to vector<4x8x8xbf16>
    %540 = arith.truncf %523 : vector<4x8x8xf32> to vector<4x8x8xbf16>
    %cst_265 = arith.constant dense<0.000000e+00> : vector<4x8x8xf32>
    %541 = tpu.matmul %539, %540, %cst_265 {dimension_numbers = #tpu.dot_dimension_numbers<[2], [1], [1], [2], [0, 0, 0, 1, 1, 2], [0], [0]>} : vector<4x8x8xbf16>, vector<4x8x8xbf16>, vector<4x8x8xf32> -> vector<4x8x8xf32>
    %542 = arith.truncf %541 : vector<4x8x8xf32> to vector<4x8x8xbf16>
    %cst_266 = arith.constant dense<0.000000e+00> : vector<4x8x32xf32>
    %543 = tpu.matmul %542, %520, %cst_266 {dimension_numbers = #tpu.dot_dimension_numbers<[2], [1], [1], [2], [0, 0, 0, 1, 1, 2], [0], [0]>} : vector<4x8x8xbf16>, vector<4x8x32xbf16>, vector<4x8x32xf32> -> vector<4x8x32xf32>
    %544 = vector.extract_strided_slice %543 {offsets = [0, 0, 0], sizes = [1, 8, 32], strides = [1, 1, 1]} : vector<4x8x32xf32> to vector<1x8x32xf32>
    %545 = vector.shape_cast %544 : vector<1x8x32xf32> to vector<8x32xf32>
    %546 = vector.extract_strided_slice %543 {offsets = [1, 0, 0], sizes = [1, 8, 32], strides = [1, 1, 1]} : vector<4x8x32xf32> to vector<1x8x32xf32>
    %547 = vector.shape_cast %546 : vector<1x8x32xf32> to vector<8x32xf32>
    %548 = arith.addf %545, %547 : vector<8x32xf32>
    %549 = vector.extract_strided_slice %543 {offsets = [2, 0, 0], sizes = [1, 8, 32], strides = [1, 1, 1]} : vector<4x8x32xf32> to vector<1x8x32xf32>
    %550 = vector.shape_cast %549 : vector<1x8x32xf32> to vector<8x32xf32>
    %551 = arith.addf %548, %550 : vector<8x32xf32>
    %552 = vector.extract_strided_slice %543 {offsets = [3, 0, 0], sizes = [1, 8, 32], strides = [1, 1, 1]} : vector<4x8x32xf32> to vector<1x8x32xf32>
    %553 = vector.shape_cast %552 : vector<1x8x32xf32> to vector<8x32xf32>
    %554 = arith.addf %551, %553 : vector<8x32xf32>
    %555 = tpu.concatenate %507, %554 in 0 : vector<8x32xf32>, vector<8x32xf32> -> vector<16x32xf32>
    %556 = arith.addf %446, %555 : vector<16x32xf32>
    %c2_267 = arith.constant 2 : index
    %c0_268 = arith.constant 0 : index
    %c0_269 = arith.constant 0 : index
    %557 = vector.load %arg13[%c2_267, %c0_268, %c0_269] : memref<7x1x32xf32, #tpu.memory_space<vmem>>, vector<1x1x32xf32>
    %558 = vector.shape_cast %557 : vector<1x1x32xf32> to vector<1x32xf32>
    %559 = arith.mulf %556, %556 : vector<16x32xf32>
    %cst_270 = arith.constant dense<0.000000e+00> : vector<16xf32>
    %560 = vector.multi_reduction <add>, %559, %cst_270 [1] : vector<16x32xf32> to vector<16xf32>
    %561 = vector.shape_cast %560 : vector<16xf32> to vector<16x1xf32>
    %cst_271 = arith.constant 3.200000e+01 : f32
    %562 = vector.broadcast %cst_271 : f32 to vector<16x1xf32>
    %563 = arith.divf %561, %562 : vector<16x1xf32>
    %cst_272 = arith.constant 9.99999997E-7 : f32
    %564 = vector.broadcast %cst_272 : f32 to vector<16x1xf32>
    %565 = arith.addf %563, %564 : vector<16x1xf32>
    %566 = math.rsqrt %565 : vector<16x1xf32>
    %567 = vector.broadcast %566 : vector<16x1xf32> to vector<16x32xf32>
    %568 = arith.mulf %556, %567 : vector<16x32xf32>
    %569 = vector.broadcast %558 : vector<1x32xf32> to vector<16x32xf32>
    %570 = arith.mulf %568, %569 : vector<16x32xf32>
    %c0_273 = arith.constant 0 : index
    %c0_274 = arith.constant 0 : index
    %c0_275 = arith.constant 0 : index
    %571 = vector.load %arg19[%c0_273, %c0_274, %c0_275] : memref<2x32x64xbf16, #tpu.memory_space<vmem>>, vector<1x32x64xbf16>
    %572 = vector.shape_cast %571 : vector<1x32x64xbf16> to vector<32x64xbf16>
    %573 = arith.truncf %570 : vector<16x32xf32> to vector<16x32xbf16>
    %cst_276 = arith.constant dense<0.000000e+00> : vector<16x64xf32>
    %574 = tpu.matmul %573, %572, %cst_276 {dimension_numbers = #tpu.dot_dimension_numbers<[1], [0], [0], [1], [0, 0, 1, 1], [], []>} : vector<16x32xbf16>, vector<32x64xbf16>, vector<16x64xf32> -> vector<16x64xf32>
    %cst_277 = arith.constant 0.000000e+00 : f32
    %575 = vector.broadcast %cst_277 : f32 to vector<16x64xf32>
    %576 = arith.maximumf %574, %575 : vector<16x64xf32>
    %c0_278 = arith.constant 0 : index
    %c0_279 = arith.constant 0 : index
    %c0_280 = arith.constant 0 : index
    %577 = vector.load %arg20[%c0_278, %c0_279, %c0_280] : memref<2x64x32xbf16, #tpu.memory_space<vmem>>, vector<1x64x32xbf16>
    %578 = vector.shape_cast %577 : vector<1x64x32xbf16> to vector<64x32xbf16>
    %579 = arith.truncf %576 : vector<16x64xf32> to vector<16x64xbf16>
    %cst_281 = arith.constant dense<0.000000e+00> : vector<16x32xf32>
    %580 = tpu.matmul %579, %578, %cst_281 {dimension_numbers = #tpu.dot_dimension_numbers<[1], [0], [0], [1], [0, 0, 1, 1], [], []>} : vector<16x64xbf16>, vector<64x32xbf16>, vector<16x32xf32> -> vector<16x32xf32>
    %581 = arith.addf %556, %580 : vector<16x32xf32>
    %c3_282 = arith.constant 3 : index
    %c0_283 = arith.constant 0 : index
    %c0_284 = arith.constant 0 : index
    %582 = vector.load %arg13[%c3_282, %c0_283, %c0_284] : memref<7x1x32xf32, #tpu.memory_space<vmem>>, vector<1x1x32xf32>
    %583 = vector.shape_cast %582 : vector<1x1x32xf32> to vector<1x32xf32>
    %584 = arith.mulf %581, %581 : vector<16x32xf32>
    %cst_285 = arith.constant dense<0.000000e+00> : vector<16xf32>
    %585 = vector.multi_reduction <add>, %584, %cst_285 [1] : vector<16x32xf32> to vector<16xf32>
    %586 = vector.shape_cast %585 : vector<16xf32> to vector<16x1xf32>
    %cst_286 = arith.constant 3.200000e+01 : f32
    %587 = vector.broadcast %cst_286 : f32 to vector<16x1xf32>
    %588 = arith.divf %586, %587 : vector<16x1xf32>
    %cst_287 = arith.constant 9.99999997E-7 : f32
    %589 = vector.broadcast %cst_287 : f32 to vector<16x1xf32>
    %590 = arith.addf %588, %589 : vector<16x1xf32>
    %591 = math.rsqrt %590 : vector<16x1xf32>
    %592 = vector.broadcast %591 : vector<16x1xf32> to vector<16x32xf32>
    %593 = arith.mulf %581, %592 : vector<16x32xf32>
    %594 = vector.broadcast %583 : vector<1x32xf32> to vector<16x32xf32>
    %595 = arith.mulf %593, %594 : vector<16x32xf32>
    %596 = vector.extract_strided_slice %595 {offsets = [0, 0], sizes = [8, 32], strides = [1, 1]} : vector<16x32xf32> to vector<8x32xf32>
    %597 = arith.truncf %596 : vector<8x32xf32> to vector<8x32xbf16>
    %598 = vector.shape_cast %597 : vector<8x32xbf16> to vector<1x8x32xbf16>
    %599 = vector.shape_cast %598 : vector<1x8x32xbf16> to vector<1x8x32xbf16>
    %600 = vector.broadcast %599 : vector<1x8x32xbf16> to vector<4x8x32xbf16>
    %c3_288 = arith.constant 3 : index
    %c0_289 = arith.constant 0 : index
    %c0_290 = arith.constant 0 : index
    %c0_291 = arith.constant 0 : index
    %601 = vector.load %arg14[%c3_288, %c0_289, %c0_290, %c0_291] : memref<6x4x32x8xbf16, #tpu.memory_space<vmem>>, vector<1x4x32x8xbf16>
    %602 = vector.shape_cast %601 : vector<1x4x32x8xbf16> to vector<4x32x8xbf16>
    %c4_292 = arith.constant 4 : index
    %c0_293 = arith.constant 0 : index
    %c0_294 = arith.constant 0 : index
    %c0_295 = arith.constant 0 : index
    %603 = vector.load %arg14[%c4_292, %c0_293, %c0_294, %c0_295] : memref<6x4x32x8xbf16, #tpu.memory_space<vmem>>, vector<1x4x32x8xbf16>
    %604 = vector.shape_cast %603 : vector<1x4x32x8xbf16> to vector<4x32x8xbf16>
    %c5_296 = arith.constant 5 : index
    %c0_297 = arith.constant 0 : index
    %c0_298 = arith.constant 0 : index
    %c0_299 = arith.constant 0 : index
    %605 = vector.load %arg14[%c5_296, %c0_297, %c0_298, %c0_299] : memref<6x4x32x8xbf16, #tpu.memory_space<vmem>>, vector<1x4x32x8xbf16>
    %606 = vector.shape_cast %605 : vector<1x4x32x8xbf16> to vector<4x32x8xbf16>
    %c1_300 = arith.constant 1 : index
    %c0_301 = arith.constant 0 : index
    %c0_302 = arith.constant 0 : index
    %c0_303 = arith.constant 0 : index
    %607 = vector.load %arg15[%c1_300, %c0_301, %c0_302, %c0_303] : memref<2x4x8x32xbf16, #tpu.memory_space<vmem>>, vector<1x4x8x32xbf16>
    %608 = vector.shape_cast %607 : vector<1x4x8x32xbf16> to vector<4x8x32xbf16>
    %cst_304 = arith.constant dense<0.000000e+00> : vector<4x8x8xf32>
    %609 = tpu.matmul %600, %602, %cst_304 {dimension_numbers = #tpu.dot_dimension_numbers<[2], [1], [1], [2], [0, 0, 0, 1, 1, 2], [0], [0]>} : vector<4x8x32xbf16>, vector<4x32x8xbf16>, vector<4x8x8xf32> -> vector<4x8x8xf32>
    %cst_305 = arith.constant dense<0.000000e+00> : vector<4x8x8xf32>
    %610 = tpu.matmul %600, %604, %cst_305 {dimension_numbers = #tpu.dot_dimension_numbers<[2], [1], [1], [2], [0, 0, 0, 1, 1, 2], [0], [0]>} : vector<4x8x32xbf16>, vector<4x32x8xbf16>, vector<4x8x8xf32> -> vector<4x8x8xf32>
    %cst_306 = arith.constant dense<0.000000e+00> : vector<4x8x8xf32>
    %611 = tpu.matmul %600, %606, %cst_306 {dimension_numbers = #tpu.dot_dimension_numbers<[2], [1], [1], [2], [0, 0, 0, 1, 1, 2], [0], [0]>} : vector<4x8x32xbf16>, vector<4x32x8xbf16>, vector<4x8x8xf32> -> vector<4x8x8xf32>
    %612 = arith.truncf %609 : vector<4x8x8xf32> to vector<4x8x8xbf16>
    %613 = arith.truncf %610 : vector<4x8x8xf32> to vector<4x8x8xbf16>
    %cst_307 = arith.constant dense<0.000000e+00> : vector<4x8x8xf32>
    %614 = tpu.matmul %612, %613, %cst_307 {dimension_numbers = #tpu.dot_dimension_numbers<[2], [2], [1], [1], [0, 0, 0, 1, 1, 1], [0], [0]>} : vector<4x8x8xbf16>, vector<4x8x8xbf16>, vector<4x8x8xf32> -> vector<4x8x8xf32>
    %615 = arith.addf %614, %26 : vector<4x8x8xf32>
    %cst_308 = arith.constant dense<0xFF800000> : vector<4x8xf32>
    %616 = vector.multi_reduction <maximumf>, %615, %cst_308 [2] : vector<4x8x8xf32> to vector<4x8xf32>
    %617 = vector.shape_cast %616 : vector<4x8xf32> to vector<4x8x1xf32>
    %618 = vector.broadcast %617 : vector<4x8x1xf32> to vector<4x8x8xf32>
    %619 = arith.subf %615, %618 : vector<4x8x8xf32>
    %620 = math.exp %619 : vector<4x8x8xf32>
    %cst_309 = arith.constant dense<0.000000e+00> : vector<4x8xf32>
    %621 = vector.multi_reduction <add>, %620, %cst_309 [2] : vector<4x8x8xf32> to vector<4x8xf32>
    %622 = vector.shape_cast %621 : vector<4x8xf32> to vector<4x8x1xf32>
    %623 = tpu.reciprocal %622 {approx = true} : vector<4x8x1xf32> -> vector<4x8x1xf32>
    %624 = vector.broadcast %623 : vector<4x8x1xf32> to vector<4x8x8xf32>
    %625 = arith.mulf %620, %624 : vector<4x8x8xf32>
    %626 = arith.truncf %625 : vector<4x8x8xf32> to vector<4x8x8xbf16>
    %627 = arith.truncf %611 : vector<4x8x8xf32> to vector<4x8x8xbf16>
    %cst_310 = arith.constant dense<0.000000e+00> : vector<4x8x8xf32>
    %628 = tpu.matmul %626, %627, %cst_310 {dimension_numbers = #tpu.dot_dimension_numbers<[2], [1], [1], [2], [0, 0, 0, 1, 1, 2], [0], [0]>} : vector<4x8x8xbf16>, vector<4x8x8xbf16>, vector<4x8x8xf32> -> vector<4x8x8xf32>
    %629 = arith.truncf %628 : vector<4x8x8xf32> to vector<4x8x8xbf16>
    %cst_311 = arith.constant dense<0.000000e+00> : vector<4x8x32xf32>
    %630 = tpu.matmul %629, %608, %cst_311 {dimension_numbers = #tpu.dot_dimension_numbers<[2], [1], [1], [2], [0, 0, 0, 1, 1, 2], [0], [0]>} : vector<4x8x8xbf16>, vector<4x8x32xbf16>, vector<4x8x32xf32> -> vector<4x8x32xf32>
    %631 = vector.extract_strided_slice %630 {offsets = [0, 0, 0], sizes = [1, 8, 32], strides = [1, 1, 1]} : vector<4x8x32xf32> to vector<1x8x32xf32>
    %632 = vector.shape_cast %631 : vector<1x8x32xf32> to vector<8x32xf32>
    %633 = vector.extract_strided_slice %630 {offsets = [1, 0, 0], sizes = [1, 8, 32], strides = [1, 1, 1]} : vector<4x8x32xf32> to vector<1x8x32xf32>
    %634 = vector.shape_cast %633 : vector<1x8x32xf32> to vector<8x32xf32>
    %635 = arith.addf %632, %634 : vector<8x32xf32>
    %636 = vector.extract_strided_slice %630 {offsets = [2, 0, 0], sizes = [1, 8, 32], strides = [1, 1, 1]} : vector<4x8x32xf32> to vector<1x8x32xf32>
    %637 = vector.shape_cast %636 : vector<1x8x32xf32> to vector<8x32xf32>
    %638 = arith.addf %635, %637 : vector<8x32xf32>
    %639 = vector.extract_strided_slice %630 {offsets = [3, 0, 0], sizes = [1, 8, 32], strides = [1, 1, 1]} : vector<4x8x32xf32> to vector<1x8x32xf32>
    %640 = vector.shape_cast %639 : vector<1x8x32xf32> to vector<8x32xf32>
    %641 = arith.addf %638, %640 : vector<8x32xf32>
    %642 = vector.extract_strided_slice %595 {offsets = [8, 0], sizes = [8, 32], strides = [1, 1]} : vector<16x32xf32> to vector<8x32xf32>
    %643 = arith.truncf %642 : vector<8x32xf32> to vector<8x32xbf16>
    %644 = vector.shape_cast %643 : vector<8x32xbf16> to vector<1x8x32xbf16>
    %645 = vector.shape_cast %644 : vector<1x8x32xbf16> to vector<1x8x32xbf16>
    %646 = vector.broadcast %645 : vector<1x8x32xbf16> to vector<4x8x32xbf16>
    %c3_312 = arith.constant 3 : index
    %c0_313 = arith.constant 0 : index
    %c0_314 = arith.constant 0 : index
    %c0_315 = arith.constant 0 : index
    %647 = vector.load %arg14[%c3_312, %c0_313, %c0_314, %c0_315] : memref<6x4x32x8xbf16, #tpu.memory_space<vmem>>, vector<1x4x32x8xbf16>
    %648 = vector.shape_cast %647 : vector<1x4x32x8xbf16> to vector<4x32x8xbf16>
    %c4_316 = arith.constant 4 : index
    %c0_317 = arith.constant 0 : index
    %c0_318 = arith.constant 0 : index
    %c0_319 = arith.constant 0 : index
    %649 = vector.load %arg14[%c4_316, %c0_317, %c0_318, %c0_319] : memref<6x4x32x8xbf16, #tpu.memory_space<vmem>>, vector<1x4x32x8xbf16>
    %650 = vector.shape_cast %649 : vector<1x4x32x8xbf16> to vector<4x32x8xbf16>
    %c5_320 = arith.constant 5 : index
    %c0_321 = arith.constant 0 : index
    %c0_322 = arith.constant 0 : index
    %c0_323 = arith.constant 0 : index
    %651 = vector.load %arg14[%c5_320, %c0_321, %c0_322, %c0_323] : memref<6x4x32x8xbf16, #tpu.memory_space<vmem>>, vector<1x4x32x8xbf16>
    %652 = vector.shape_cast %651 : vector<1x4x32x8xbf16> to vector<4x32x8xbf16>
    %c1_324 = arith.constant 1 : index
    %c0_325 = arith.constant 0 : index
    %c0_326 = arith.constant 0 : index
    %c0_327 = arith.constant 0 : index
    %653 = vector.load %arg15[%c1_324, %c0_325, %c0_326, %c0_327] : memref<2x4x8x32xbf16, #tpu.memory_space<vmem>>, vector<1x4x8x32xbf16>
    %654 = vector.shape_cast %653 : vector<1x4x8x32xbf16> to vector<4x8x32xbf16>
    %cst_328 = arith.constant dense<0.000000e+00> : vector<4x8x8xf32>
    %655 = tpu.matmul %646, %648, %cst_328 {dimension_numbers = #tpu.dot_dimension_numbers<[2], [1], [1], [2], [0, 0, 0, 1, 1, 2], [0], [0]>} : vector<4x8x32xbf16>, vector<4x32x8xbf16>, vector<4x8x8xf32> -> vector<4x8x8xf32>
    %cst_329 = arith.constant dense<0.000000e+00> : vector<4x8x8xf32>
    %656 = tpu.matmul %646, %650, %cst_329 {dimension_numbers = #tpu.dot_dimension_numbers<[2], [1], [1], [2], [0, 0, 0, 1, 1, 2], [0], [0]>} : vector<4x8x32xbf16>, vector<4x32x8xbf16>, vector<4x8x8xf32> -> vector<4x8x8xf32>
    %cst_330 = arith.constant dense<0.000000e+00> : vector<4x8x8xf32>
    %657 = tpu.matmul %646, %652, %cst_330 {dimension_numbers = #tpu.dot_dimension_numbers<[2], [1], [1], [2], [0, 0, 0, 1, 1, 2], [0], [0]>} : vector<4x8x32xbf16>, vector<4x32x8xbf16>, vector<4x8x8xf32> -> vector<4x8x8xf32>
    %658 = arith.truncf %655 : vector<4x8x8xf32> to vector<4x8x8xbf16>
    %659 = arith.truncf %656 : vector<4x8x8xf32> to vector<4x8x8xbf16>
    %cst_331 = arith.constant dense<0.000000e+00> : vector<4x8x8xf32>
    %660 = tpu.matmul %658, %659, %cst_331 {dimension_numbers = #tpu.dot_dimension_numbers<[2], [2], [1], [1], [0, 0, 0, 1, 1, 1], [0], [0]>} : vector<4x8x8xbf16>, vector<4x8x8xbf16>, vector<4x8x8xf32> -> vector<4x8x8xf32>
    %661 = arith.addf %660, %45 : vector<4x8x8xf32>
    %cst_332 = arith.constant dense<0xFF800000> : vector<4x8xf32>
    %662 = vector.multi_reduction <maximumf>, %661, %cst_332 [2] : vector<4x8x8xf32> to vector<4x8xf32>
    %663 = vector.shape_cast %662 : vector<4x8xf32> to vector<4x8x1xf32>
    %664 = vector.broadcast %663 : vector<4x8x1xf32> to vector<4x8x8xf32>
    %665 = arith.subf %661, %664 : vector<4x8x8xf32>
    %666 = math.exp %665 : vector<4x8x8xf32>
    %cst_333 = arith.constant dense<0.000000e+00> : vector<4x8xf32>
    %667 = vector.multi_reduction <add>, %666, %cst_333 [2] : vector<4x8x8xf32> to vector<4x8xf32>
    %668 = vector.shape_cast %667 : vector<4x8xf32> to vector<4x8x1xf32>
    %669 = tpu.reciprocal %668 {approx = true} : vector<4x8x1xf32> -> vector<4x8x1xf32>
    %670 = vector.broadcast %669 : vector<4x8x1xf32> to vector<4x8x8xf32>
    %671 = arith.mulf %666, %670 : vector<4x8x8xf32>
    %672 = arith.truncf %671 : vector<4x8x8xf32> to vector<4x8x8xbf16>
    %673 = arith.truncf %657 : vector<4x8x8xf32> to vector<4x8x8xbf16>
    %cst_334 = arith.constant dense<0.000000e+00> : vector<4x8x8xf32>
    %674 = tpu.matmul %672, %673, %cst_334 {dimension_numbers = #tpu.dot_dimension_numbers<[2], [1], [1], [2], [0, 0, 0, 1, 1, 2], [0], [0]>} : vector<4x8x8xbf16>, vector<4x8x8xbf16>, vector<4x8x8xf32> -> vector<4x8x8xf32>
    %675 = arith.truncf %674 : vector<4x8x8xf32> to vector<4x8x8xbf16>
    %cst_335 = arith.constant dense<0.000000e+00> : vector<4x8x32xf32>
    %676 = tpu.matmul %675, %654, %cst_335 {dimension_numbers = #tpu.dot_dimension_numbers<[2], [1], [1], [2], [0, 0, 0, 1, 1, 2], [0], [0]>} : vector<4x8x8xbf16>, vector<4x8x32xbf16>, vector<4x8x32xf32> -> vector<4x8x32xf32>
    %677 = vector.extract_strided_slice %676 {offsets = [0, 0, 0], sizes = [1, 8, 32], strides = [1, 1, 1]} : vector<4x8x32xf32> to vector<1x8x32xf32>
    %678 = vector.shape_cast %677 : vector<1x8x32xf32> to vector<8x32xf32>
    %679 = vector.extract_strided_slice %676 {offsets = [1, 0, 0], sizes = [1, 8, 32], strides = [1, 1, 1]} : vector<4x8x32xf32> to vector<1x8x32xf32>
    %680 = vector.shape_cast %679 : vector<1x8x32xf32> to vector<8x32xf32>
    %681 = arith.addf %678, %680 : vector<8x32xf32>
    %682 = vector.extract_strided_slice %676 {offsets = [2, 0, 0], sizes = [1, 8, 32], strides = [1, 1, 1]} : vector<4x8x32xf32> to vector<1x8x32xf32>
    %683 = vector.shape_cast %682 : vector<1x8x32xf32> to vector<8x32xf32>
    %684 = arith.addf %681, %683 : vector<8x32xf32>
    %685 = vector.extract_strided_slice %676 {offsets = [3, 0, 0], sizes = [1, 8, 32], strides = [1, 1, 1]} : vector<4x8x32xf32> to vector<1x8x32xf32>
    %686 = vector.shape_cast %685 : vector<1x8x32xf32> to vector<8x32xf32>
    %687 = arith.addf %684, %686 : vector<8x32xf32>
    %688 = tpu.concatenate %641, %687 in 0 : vector<8x32xf32>, vector<8x32xf32> -> vector<16x32xf32>
    %689 = arith.addf %581, %688 : vector<16x32xf32>
    %c4_336 = arith.constant 4 : index
    %c0_337 = arith.constant 0 : index
    %c0_338 = arith.constant 0 : index
    %690 = vector.load %arg13[%c4_336, %c0_337, %c0_338] : memref<7x1x32xf32, #tpu.memory_space<vmem>>, vector<1x1x32xf32>
    %691 = vector.shape_cast %690 : vector<1x1x32xf32> to vector<1x32xf32>
    %692 = arith.mulf %689, %689 : vector<16x32xf32>
    %cst_339 = arith.constant dense<0.000000e+00> : vector<16xf32>
    %693 = vector.multi_reduction <add>, %692, %cst_339 [1] : vector<16x32xf32> to vector<16xf32>
    %694 = vector.shape_cast %693 : vector<16xf32> to vector<16x1xf32>
    %cst_340 = arith.constant 3.200000e+01 : f32
    %695 = vector.broadcast %cst_340 : f32 to vector<16x1xf32>
    %696 = arith.divf %694, %695 : vector<16x1xf32>
    %cst_341 = arith.constant 9.99999997E-7 : f32
    %697 = vector.broadcast %cst_341 : f32 to vector<16x1xf32>
    %698 = arith.addf %696, %697 : vector<16x1xf32>
    %699 = math.rsqrt %698 : vector<16x1xf32>
    %700 = vector.broadcast %699 : vector<16x1xf32> to vector<16x32xf32>
    %701 = arith.mulf %689, %700 : vector<16x32xf32>
    %702 = vector.broadcast %691 : vector<1x32xf32> to vector<16x32xf32>
    %703 = arith.mulf %701, %702 : vector<16x32xf32>
    %704 = vector.extract_strided_slice %703 {offsets = [0, 0], sizes = [8, 32], strides = [1, 1]} : vector<16x32xf32> to vector<8x32xf32>
    %705 = arith.truncf %704 : vector<8x32xf32> to vector<8x32xbf16>
    %706 = vector.shape_cast %705 : vector<8x32xbf16> to vector<1x8x32xbf16>
    %707 = vector.shape_cast %706 : vector<1x8x32xbf16> to vector<1x8x32xbf16>
    %708 = vector.broadcast %707 : vector<1x8x32xbf16> to vector<4x8x32xbf16>
    %c1_342 = arith.constant 1 : index
    %c0_343 = arith.constant 0 : index
    %c0_344 = arith.constant 0 : index
    %c0_345 = arith.constant 0 : index
    %709 = vector.load %arg16[%c1_342, %c0_343, %c0_344, %c0_345] : memref<2x4x32x8xbf16, #tpu.memory_space<vmem>>, vector<1x4x32x8xbf16>
    %710 = vector.shape_cast %709 : vector<1x4x32x8xbf16> to vector<4x32x8xbf16>
    %c2_346 = arith.constant 2 : index
    %c0_347 = arith.constant 0 : index
    %c0_348 = arith.constant 0 : index
    %c0_349 = arith.constant 0 : index
    %711 = vector.load %arg17[%c2_346, %c0_347, %c0_348, %c0_349] : memref<4x4x32x8xbf16, #tpu.memory_space<vmem>>, vector<1x4x32x8xbf16>
    %712 = vector.shape_cast %711 : vector<1x4x32x8xbf16> to vector<4x32x8xbf16>
    %c3_350 = arith.constant 3 : index
    %c0_351 = arith.constant 0 : index
    %c0_352 = arith.constant 0 : index
    %c0_353 = arith.constant 0 : index
    %713 = vector.load %arg17[%c3_350, %c0_351, %c0_352, %c0_353] : memref<4x4x32x8xbf16, #tpu.memory_space<vmem>>, vector<1x4x32x8xbf16>
    %714 = vector.shape_cast %713 : vector<1x4x32x8xbf16> to vector<4x32x8xbf16>
    %c1_354 = arith.constant 1 : index
    %c0_355 = arith.constant 0 : index
    %c0_356 = arith.constant 0 : index
    %c0_357 = arith.constant 0 : index
    %715 = vector.load %arg18[%c1_354, %c0_355, %c0_356, %c0_357] : memref<2x4x8x32xbf16, #tpu.memory_space<vmem>>, vector<1x4x8x32xbf16>
    %716 = vector.shape_cast %715 : vector<1x4x8x32xbf16> to vector<4x8x32xbf16>
    %cst_358 = arith.constant dense<0.000000e+00> : vector<4x8x8xf32>
    %717 = tpu.matmul %708, %710, %cst_358 {dimension_numbers = #tpu.dot_dimension_numbers<[2], [1], [1], [2], [0, 0, 0, 1, 1, 2], [0], [0]>} : vector<4x8x32xbf16>, vector<4x32x8xbf16>, vector<4x8x8xf32> -> vector<4x8x8xf32>
    %cst_359 = arith.constant dense<0.000000e+00> : vector<4x8x8xf32>
    %718 = tpu.matmul %332, %712, %cst_359 {dimension_numbers = #tpu.dot_dimension_numbers<[2], [1], [1], [2], [0, 0, 0, 1, 1, 2], [0], [0]>} : vector<4x8x32xbf16>, vector<4x32x8xbf16>, vector<4x8x8xf32> -> vector<4x8x8xf32>
    %cst_360 = arith.constant dense<0.000000e+00> : vector<4x8x8xf32>
    %719 = tpu.matmul %332, %714, %cst_360 {dimension_numbers = #tpu.dot_dimension_numbers<[2], [1], [1], [2], [0, 0, 0, 1, 1, 2], [0], [0]>} : vector<4x8x32xbf16>, vector<4x32x8xbf16>, vector<4x8x8xf32> -> vector<4x8x8xf32>
    %720 = arith.truncf %717 : vector<4x8x8xf32> to vector<4x8x8xbf16>
    %721 = arith.truncf %718 : vector<4x8x8xf32> to vector<4x8x8xbf16>
    %cst_361 = arith.constant dense<0.000000e+00> : vector<4x8x8xf32>
    %722 = tpu.matmul %720, %721, %cst_361 {dimension_numbers = #tpu.dot_dimension_numbers<[2], [2], [1], [1], [0, 0, 0, 1, 1, 1], [0], [0]>} : vector<4x8x8xbf16>, vector<4x8x8xbf16>, vector<4x8x8xf32> -> vector<4x8x8xf32>
    %723 = vector.broadcast %27 : vector<1x1x8xf32> to vector<4x8x8xf32>
    %724 = arith.addf %722, %723 : vector<4x8x8xf32>
    %cst_362 = arith.constant dense<0xFF800000> : vector<4x8xf32>
    %725 = vector.multi_reduction <maximumf>, %724, %cst_362 [2] : vector<4x8x8xf32> to vector<4x8xf32>
    %726 = vector.shape_cast %725 : vector<4x8xf32> to vector<4x8x1xf32>
    %727 = vector.broadcast %726 : vector<4x8x1xf32> to vector<4x8x8xf32>
    %728 = arith.subf %724, %727 : vector<4x8x8xf32>
    %729 = math.exp %728 : vector<4x8x8xf32>
    %cst_363 = arith.constant dense<0.000000e+00> : vector<4x8xf32>
    %730 = vector.multi_reduction <add>, %729, %cst_363 [2] : vector<4x8x8xf32> to vector<4x8xf32>
    %731 = vector.shape_cast %730 : vector<4x8xf32> to vector<4x8x1xf32>
    %732 = tpu.reciprocal %731 {approx = true} : vector<4x8x1xf32> -> vector<4x8x1xf32>
    %733 = vector.broadcast %732 : vector<4x8x1xf32> to vector<4x8x8xf32>
    %734 = arith.mulf %729, %733 : vector<4x8x8xf32>
    %735 = arith.truncf %734 : vector<4x8x8xf32> to vector<4x8x8xbf16>
    %736 = arith.truncf %719 : vector<4x8x8xf32> to vector<4x8x8xbf16>
    %cst_364 = arith.constant dense<0.000000e+00> : vector<4x8x8xf32>
    %737 = tpu.matmul %735, %736, %cst_364 {dimension_numbers = #tpu.dot_dimension_numbers<[2], [1], [1], [2], [0, 0, 0, 1, 1, 2], [0], [0]>} : vector<4x8x8xbf16>, vector<4x8x8xbf16>, vector<4x8x8xf32> -> vector<4x8x8xf32>
    %738 = arith.truncf %737 : vector<4x8x8xf32> to vector<4x8x8xbf16>
    %cst_365 = arith.constant dense<0.000000e+00> : vector<4x8x32xf32>
    %739 = tpu.matmul %738, %716, %cst_365 {dimension_numbers = #tpu.dot_dimension_numbers<[2], [1], [1], [2], [0, 0, 0, 1, 1, 2], [0], [0]>} : vector<4x8x8xbf16>, vector<4x8x32xbf16>, vector<4x8x32xf32> -> vector<4x8x32xf32>
    %740 = vector.extract_strided_slice %739 {offsets = [0, 0, 0], sizes = [1, 8, 32], strides = [1, 1, 1]} : vector<4x8x32xf32> to vector<1x8x32xf32>
    %741 = vector.shape_cast %740 : vector<1x8x32xf32> to vector<8x32xf32>
    %742 = vector.extract_strided_slice %739 {offsets = [1, 0, 0], sizes = [1, 8, 32], strides = [1, 1, 1]} : vector<4x8x32xf32> to vector<1x8x32xf32>
    %743 = vector.shape_cast %742 : vector<1x8x32xf32> to vector<8x32xf32>
    %744 = arith.addf %741, %743 : vector<8x32xf32>
    %745 = vector.extract_strided_slice %739 {offsets = [2, 0, 0], sizes = [1, 8, 32], strides = [1, 1, 1]} : vector<4x8x32xf32> to vector<1x8x32xf32>
    %746 = vector.shape_cast %745 : vector<1x8x32xf32> to vector<8x32xf32>
    %747 = arith.addf %744, %746 : vector<8x32xf32>
    %748 = vector.extract_strided_slice %739 {offsets = [3, 0, 0], sizes = [1, 8, 32], strides = [1, 1, 1]} : vector<4x8x32xf32> to vector<1x8x32xf32>
    %749 = vector.shape_cast %748 : vector<1x8x32xf32> to vector<8x32xf32>
    %750 = arith.addf %747, %749 : vector<8x32xf32>
    %751 = vector.extract_strided_slice %703 {offsets = [8, 0], sizes = [8, 32], strides = [1, 1]} : vector<16x32xf32> to vector<8x32xf32>
    %752 = arith.truncf %751 : vector<8x32xf32> to vector<8x32xbf16>
    %753 = vector.shape_cast %752 : vector<8x32xbf16> to vector<1x8x32xbf16>
    %754 = vector.shape_cast %753 : vector<1x8x32xbf16> to vector<1x8x32xbf16>
    %755 = vector.broadcast %754 : vector<1x8x32xbf16> to vector<4x8x32xbf16>
    %c1_366 = arith.constant 1 : index
    %c0_367 = arith.constant 0 : index
    %c0_368 = arith.constant 0 : index
    %c0_369 = arith.constant 0 : index
    %756 = vector.load %arg16[%c1_366, %c0_367, %c0_368, %c0_369] : memref<2x4x32x8xbf16, #tpu.memory_space<vmem>>, vector<1x4x32x8xbf16>
    %757 = vector.shape_cast %756 : vector<1x4x32x8xbf16> to vector<4x32x8xbf16>
    %c2_370 = arith.constant 2 : index
    %c0_371 = arith.constant 0 : index
    %c0_372 = arith.constant 0 : index
    %c0_373 = arith.constant 0 : index
    %758 = vector.load %arg17[%c2_370, %c0_371, %c0_372, %c0_373] : memref<4x4x32x8xbf16, #tpu.memory_space<vmem>>, vector<1x4x32x8xbf16>
    %759 = vector.shape_cast %758 : vector<1x4x32x8xbf16> to vector<4x32x8xbf16>
    %c3_374 = arith.constant 3 : index
    %c0_375 = arith.constant 0 : index
    %c0_376 = arith.constant 0 : index
    %c0_377 = arith.constant 0 : index
    %760 = vector.load %arg17[%c3_374, %c0_375, %c0_376, %c0_377] : memref<4x4x32x8xbf16, #tpu.memory_space<vmem>>, vector<1x4x32x8xbf16>
    %761 = vector.shape_cast %760 : vector<1x4x32x8xbf16> to vector<4x32x8xbf16>
    %c1_378 = arith.constant 1 : index
    %c0_379 = arith.constant 0 : index
    %c0_380 = arith.constant 0 : index
    %c0_381 = arith.constant 0 : index
    %762 = vector.load %arg18[%c1_378, %c0_379, %c0_380, %c0_381] : memref<2x4x8x32xbf16, #tpu.memory_space<vmem>>, vector<1x4x8x32xbf16>
    %763 = vector.shape_cast %762 : vector<1x4x8x32xbf16> to vector<4x8x32xbf16>
    %cst_382 = arith.constant dense<0.000000e+00> : vector<4x8x8xf32>
    %764 = tpu.matmul %755, %757, %cst_382 {dimension_numbers = #tpu.dot_dimension_numbers<[2], [1], [1], [2], [0, 0, 0, 1, 1, 2], [0], [0]>} : vector<4x8x32xbf16>, vector<4x32x8xbf16>, vector<4x8x8xf32> -> vector<4x8x8xf32>
    %cst_383 = arith.constant dense<0.000000e+00> : vector<4x8x8xf32>
    %765 = tpu.matmul %337, %759, %cst_383 {dimension_numbers = #tpu.dot_dimension_numbers<[2], [1], [1], [2], [0, 0, 0, 1, 1, 2], [0], [0]>} : vector<4x8x32xbf16>, vector<4x32x8xbf16>, vector<4x8x8xf32> -> vector<4x8x8xf32>
    %cst_384 = arith.constant dense<0.000000e+00> : vector<4x8x8xf32>
    %766 = tpu.matmul %337, %761, %cst_384 {dimension_numbers = #tpu.dot_dimension_numbers<[2], [1], [1], [2], [0, 0, 0, 1, 1, 2], [0], [0]>} : vector<4x8x32xbf16>, vector<4x32x8xbf16>, vector<4x8x8xf32> -> vector<4x8x8xf32>
    %767 = arith.truncf %764 : vector<4x8x8xf32> to vector<4x8x8xbf16>
    %768 = arith.truncf %765 : vector<4x8x8xf32> to vector<4x8x8xbf16>
    %cst_385 = arith.constant dense<0.000000e+00> : vector<4x8x8xf32>
    %769 = tpu.matmul %767, %768, %cst_385 {dimension_numbers = #tpu.dot_dimension_numbers<[2], [2], [1], [1], [0, 0, 0, 1, 1, 1], [0], [0]>} : vector<4x8x8xbf16>, vector<4x8x8xbf16>, vector<4x8x8xf32> -> vector<4x8x8xf32>
    %770 = vector.broadcast %46 : vector<1x1x8xf32> to vector<4x8x8xf32>
    %771 = arith.addf %769, %770 : vector<4x8x8xf32>
    %cst_386 = arith.constant dense<0xFF800000> : vector<4x8xf32>
    %772 = vector.multi_reduction <maximumf>, %771, %cst_386 [2] : vector<4x8x8xf32> to vector<4x8xf32>
    %773 = vector.shape_cast %772 : vector<4x8xf32> to vector<4x8x1xf32>
    %774 = vector.broadcast %773 : vector<4x8x1xf32> to vector<4x8x8xf32>
    %775 = arith.subf %771, %774 : vector<4x8x8xf32>
    %776 = math.exp %775 : vector<4x8x8xf32>
    %cst_387 = arith.constant dense<0.000000e+00> : vector<4x8xf32>
    %777 = vector.multi_reduction <add>, %776, %cst_387 [2] : vector<4x8x8xf32> to vector<4x8xf32>
    %778 = vector.shape_cast %777 : vector<4x8xf32> to vector<4x8x1xf32>
    %779 = tpu.reciprocal %778 {approx = true} : vector<4x8x1xf32> -> vector<4x8x1xf32>
    %780 = vector.broadcast %779 : vector<4x8x1xf32> to vector<4x8x8xf32>
    %781 = arith.mulf %776, %780 : vector<4x8x8xf32>
    %782 = arith.truncf %781 : vector<4x8x8xf32> to vector<4x8x8xbf16>
    %783 = arith.truncf %766 : vector<4x8x8xf32> to vector<4x8x8xbf16>
    %cst_388 = arith.constant dense<0.000000e+00> : vector<4x8x8xf32>
    %784 = tpu.matmul %782, %783, %cst_388 {dimension_numbers = #tpu.dot_dimension_numbers<[2], [1], [1], [2], [0, 0, 0, 1, 1, 2], [0], [0]>} : vector<4x8x8xbf16>, vector<4x8x8xbf16>, vector<4x8x8xf32> -> vector<4x8x8xf32>
    %785 = arith.truncf %784 : vector<4x8x8xf32> to vector<4x8x8xbf16>
    %cst_389 = arith.constant dense<0.000000e+00> : vector<4x8x32xf32>
    %786 = tpu.matmul %785, %763, %cst_389 {dimension_numbers = #tpu.dot_dimension_numbers<[2], [1], [1], [2], [0, 0, 0, 1, 1, 2], [0], [0]>} : vector<4x8x8xbf16>, vector<4x8x32xbf16>, vector<4x8x32xf32> -> vector<4x8x32xf32>
    %787 = vector.extract_strided_slice %786 {offsets = [0, 0, 0], sizes = [1, 8, 32], strides = [1, 1, 1]} : vector<4x8x32xf32> to vector<1x8x32xf32>
    %788 = vector.shape_cast %787 : vector<1x8x32xf32> to vector<8x32xf32>
    %789 = vector.extract_strided_slice %786 {offsets = [1, 0, 0], sizes = [1, 8, 32], strides = [1, 1, 1]} : vector<4x8x32xf32> to vector<1x8x32xf32>
    %790 = vector.shape_cast %789 : vector<1x8x32xf32> to vector<8x32xf32>
    %791 = arith.addf %788, %790 : vector<8x32xf32>
    %792 = vector.extract_strided_slice %786 {offsets = [2, 0, 0], sizes = [1, 8, 32], strides = [1, 1, 1]} : vector<4x8x32xf32> to vector<1x8x32xf32>
    %793 = vector.shape_cast %792 : vector<1x8x32xf32> to vector<8x32xf32>
    %794 = arith.addf %791, %793 : vector<8x32xf32>
    %795 = vector.extract_strided_slice %786 {offsets = [3, 0, 0], sizes = [1, 8, 32], strides = [1, 1, 1]} : vector<4x8x32xf32> to vector<1x8x32xf32>
    %796 = vector.shape_cast %795 : vector<1x8x32xf32> to vector<8x32xf32>
    %797 = arith.addf %794, %796 : vector<8x32xf32>
    %798 = tpu.concatenate %750, %797 in 0 : vector<8x32xf32>, vector<8x32xf32> -> vector<16x32xf32>
    %799 = arith.addf %689, %798 : vector<16x32xf32>
    %c5_390 = arith.constant 5 : index
    %c0_391 = arith.constant 0 : index
    %c0_392 = arith.constant 0 : index
    %800 = vector.load %arg13[%c5_390, %c0_391, %c0_392] : memref<7x1x32xf32, #tpu.memory_space<vmem>>, vector<1x1x32xf32>
    %801 = vector.shape_cast %800 : vector<1x1x32xf32> to vector<1x32xf32>
    %802 = arith.mulf %799, %799 : vector<16x32xf32>
    %cst_393 = arith.constant dense<0.000000e+00> : vector<16xf32>
    %803 = vector.multi_reduction <add>, %802, %cst_393 [1] : vector<16x32xf32> to vector<16xf32>
    %804 = vector.shape_cast %803 : vector<16xf32> to vector<16x1xf32>
    %cst_394 = arith.constant 3.200000e+01 : f32
    %805 = vector.broadcast %cst_394 : f32 to vector<16x1xf32>
    %806 = arith.divf %804, %805 : vector<16x1xf32>
    %cst_395 = arith.constant 9.99999997E-7 : f32
    %807 = vector.broadcast %cst_395 : f32 to vector<16x1xf32>
    %808 = arith.addf %806, %807 : vector<16x1xf32>
    %809 = math.rsqrt %808 : vector<16x1xf32>
    %810 = vector.broadcast %809 : vector<16x1xf32> to vector<16x32xf32>
    %811 = arith.mulf %799, %810 : vector<16x32xf32>
    %812 = vector.broadcast %801 : vector<1x32xf32> to vector<16x32xf32>
    %813 = arith.mulf %811, %812 : vector<16x32xf32>
    %c1_396 = arith.constant 1 : index
    %c0_397 = arith.constant 0 : index
    %c0_398 = arith.constant 0 : index
    %814 = vector.load %arg19[%c1_396, %c0_397, %c0_398] : memref<2x32x64xbf16, #tpu.memory_space<vmem>>, vector<1x32x64xbf16>
    %815 = vector.shape_cast %814 : vector<1x32x64xbf16> to vector<32x64xbf16>
    %816 = arith.truncf %813 : vector<16x32xf32> to vector<16x32xbf16>
    %cst_399 = arith.constant dense<0.000000e+00> : vector<16x64xf32>
    %817 = tpu.matmul %816, %815, %cst_399 {dimension_numbers = #tpu.dot_dimension_numbers<[1], [0], [0], [1], [0, 0, 1, 1], [], []>} : vector<16x32xbf16>, vector<32x64xbf16>, vector<16x64xf32> -> vector<16x64xf32>
    %cst_400 = arith.constant 0.000000e+00 : f32
    %818 = vector.broadcast %cst_400 : f32 to vector<16x64xf32>
    %819 = arith.maximumf %817, %818 : vector<16x64xf32>
    %c1_401 = arith.constant 1 : index
    %c0_402 = arith.constant 0 : index
    %c0_403 = arith.constant 0 : index
    %820 = vector.load %arg20[%c1_401, %c0_402, %c0_403] : memref<2x64x32xbf16, #tpu.memory_space<vmem>>, vector<1x64x32xbf16>
    %821 = vector.shape_cast %820 : vector<1x64x32xbf16> to vector<64x32xbf16>
    %822 = arith.truncf %819 : vector<16x64xf32> to vector<16x64xbf16>
    %cst_404 = arith.constant dense<0.000000e+00> : vector<16x32xf32>
    %823 = tpu.matmul %822, %821, %cst_404 {dimension_numbers = #tpu.dot_dimension_numbers<[1], [0], [0], [1], [0, 0, 1, 1], [], []>} : vector<16x64xbf16>, vector<64x32xbf16>, vector<16x32xf32> -> vector<16x32xf32>
    %824 = arith.addf %799, %823 : vector<16x32xf32>
    %c6 = arith.constant 6 : index
    %c0_405 = arith.constant 0 : index
    %c0_406 = arith.constant 0 : index
    %825 = vector.load %arg13[%c6, %c0_405, %c0_406] : memref<7x1x32xf32, #tpu.memory_space<vmem>>, vector<1x1x32xf32>
    %826 = vector.shape_cast %825 : vector<1x1x32xf32> to vector<1x32xf32>
    %827 = arith.mulf %824, %824 : vector<16x32xf32>
    %cst_407 = arith.constant dense<0.000000e+00> : vector<16xf32>
    %828 = vector.multi_reduction <add>, %827, %cst_407 [1] : vector<16x32xf32> to vector<16xf32>
    %829 = vector.shape_cast %828 : vector<16xf32> to vector<16x1xf32>
    %cst_408 = arith.constant 3.200000e+01 : f32
    %830 = vector.broadcast %cst_408 : f32 to vector<16x1xf32>
    %831 = arith.divf %829, %830 : vector<16x1xf32>
    %cst_409 = arith.constant 9.99999997E-7 : f32
    %832 = vector.broadcast %cst_409 : f32 to vector<16x1xf32>
    %833 = arith.addf %831, %832 : vector<16x1xf32>
    %834 = math.rsqrt %833 : vector<16x1xf32>
    %835 = vector.broadcast %834 : vector<16x1xf32> to vector<16x32xf32>
    %836 = arith.mulf %824, %835 : vector<16x32xf32>
    %837 = vector.broadcast %826 : vector<1x32xf32> to vector<16x32xf32>
    %838 = arith.mulf %836, %837 : vector<16x32xf32>
    %cst_410 = arith.constant 0.176776692 : f32
    %839 = vector.broadcast %cst_410 : f32 to vector<16x32xf32>
    %840 = arith.mulf %838, %839 : vector<16x32xf32>
    %841 = arith.truncf %840 : vector<16x32xf32> to vector<16x32xbf16>
    %c0_411 = arith.constant 0 : index
    %c0_412 = arith.constant 0 : index
    %842 = vector.load %arg7[%c0_411, %c0_412] : memref<64x32xbf16, #tpu.memory_space<vmem>>, vector<64x32xbf16>
    %cst_413 = arith.constant dense<0.000000e+00> : vector<16x64xf32>
    %843 = tpu.matmul %841, %842, %cst_413 {dimension_numbers = #tpu.dot_dimension_numbers<[1], [1], [0], [0], [0, 0, 1, 0], [], []>} : vector<16x32xbf16>, vector<64x32xbf16>, vector<16x64xf32> -> vector<16x64xf32>
    %c0_414 = arith.constant 0 : index
    %c0_415 = arith.constant 0 : index
    %844 = vector.load %arg6[%c0_414, %c0_415] : memref<16x1xi32, #tpu.memory_space<vmem>>, vector<16x1xi32>
    %cst_416 = arith.constant dense<0xFF800000> : vector<16xf32>
    %845 = vector.multi_reduction <maximumf>, %843, %cst_416 [1] : vector<16x64xf32> to vector<16xf32>
    %846 = vector.shape_cast %845 : vector<16xf32> to vector<16x1xf32>
    %847 = vector.broadcast %846 : vector<16x1xf32> to vector<16x64xf32>
    %848 = arith.subf %843, %847 : vector<16x64xf32>
    %849 = math.exp %848 : vector<16x64xf32>
    %cst_417 = arith.constant dense<0.000000e+00> : vector<16xf32>
    %850 = vector.multi_reduction <add>, %849, %cst_417 [1] : vector<16x64xf32> to vector<16xf32>
    %851 = vector.shape_cast %850 : vector<16xf32> to vector<16x1xf32>
    %852 = math.log %851 : vector<16x1xf32>
    %853 = arith.addf %852, %846 : vector<16x1xf32>
    %854 = tpu.iota {dimensions = array<i32: 1>} : vector<16x64xi32>
    %855 = vector.broadcast %844 : vector<16x1xi32> to vector<16x64xi32>
    %856 = arith.cmpi eq, %854, %855 : vector<16x64xi32>
    %cst_418 = arith.constant 0.000000e+00 : f32
    %857 = vector.broadcast %cst_418 : f32 to vector<16x64xf32>
    %858 = arith.select %856, %843, %857 : vector<16x64xi1>, vector<16x64xf32>
    %cst_419 = arith.constant dense<0.000000e+00> : vector<16xf32>
    %859 = vector.multi_reduction <add>, %858, %cst_419 [1] : vector<16x64xf32> to vector<16xf32>
    %860 = vector.shape_cast %859 : vector<16xf32> to vector<16x1xf32>
    %c-100_i32 = arith.constant -100 : i32
    %861 = vector.broadcast %c-100_i32 : i32 to vector<16x1xi32>
    %862 = arith.cmpi ne, %844, %861 : vector<16x1xi32>
    %863 = arith.extui %862 : vector<16x1xi1> to vector<16x1xi32>
    %864 = arith.sitofp %863 : vector<16x1xi32> to vector<16x1xf32>
    %865 = arith.subf %853, %860 : vector<16x1xf32>
    %866 = arith.mulf %865, %864 : vector<16x1xf32>
    %867 = vector.shape_cast %866 : vector<16x1xf32> to vector<1x16x1xf32>
    %cst_420 = arith.constant dense<0.000000e+00> : vector<1xf32>
    %868 = vector.multi_reduction <add>, %867, %cst_420 [1, 2] : vector<1x16x1xf32> to vector<1xf32>
    %869 = vector.shape_cast %868 : vector<1xf32> to vector<1x1x1xf32>
    %870 = vector.extract %869[0, 0, 0] : f32 from vector<1x1x1xf32>
    %871 = vector.shape_cast %864 : vector<16x1xf32> to vector<1x16x1xf32>
    %cst_421 = arith.constant dense<0.000000e+00> : vector<1xf32>
    %872 = vector.multi_reduction <add>, %871, %cst_421 [1, 2] : vector<1x16x1xf32> to vector<1xf32>
    %873 = vector.shape_cast %872 : vector<1xf32> to vector<1x1x1xf32>
    %874 = vector.extract %873[0, 0, 0] : f32 from vector<1x1x1xf32>
    %cst_422 = arith.constant 1.000000e+00 : f32
    %875 = arith.maximumf %874, %cst_422 : f32
    %876 = arith.divf %870, %875 : f32
    %c0_423 = arith.constant 0 : index
    %c0_424 = arith.constant 0 : index
    %877 = memref.load %arg21[%c0_423, %c0_424] : memref<1x1xf32, #tpu.memory_space<smem>>
    memref.store %876, %arg21[%c0_423, %c0_424] : memref<1x1xf32, #tpu.memory_space<smem>>
    return
  }
}

</mosaic_0001>

<bundles_post_ra>
// kernel: writer_forward.1
= control target key start
LH: loop header
LB: loop body
LE: loop exit
PB: predicated region body
PF: predicated region fallthrough
CT: control target
= control target key end

     0   :  { %s23340_s0 = inlined_call_operand.vmem [shape: f32[16,32], index: 0, kind: input, shape index: {}]   ;;  %s23341_s1 = inlined_call_operand.vmem [shape: f32[16,32], index: 1, kind: input, shape index: {}]   ;;  %s23342_s2 = inlined_call_operand.vmem [shape: f32[4,8,8], index: 2, kind: input, shape index: {}]   ;;  %s23343_s3 = inlined_call_operand.vmem [shape: f32[4,8,8], index: 3, kind: input, shape index: {}]   ;;  %s23344_s4 = inlined_call_operand.vmem [shape: f32[2,8], index: 4, kind: input, shape index: {}]   ;;  %s23345_s5 = inlined_call_operand.vmem [shape: f32[2,8], index: 5, kind: input, shape index: {}]   ;;  %s23346_s6 = inlined_call_operand.vmem [shape: s32[16,1], index: 6, kind: input, shape index: {}]   ;;  %s23347_s7 = inlined_call_operand.vmem [shape: bf16[64,32], index: 7, kind: input, shape index: {}]   ;;  %s23348_s8 = inlined_call_operand.vmem [shape: f32[5,1,32], index: 8, kind: input, shape index: {}]   ;;  %s23349_s9 = inlined_call_operand.vmem [shape: bf16[6,4,32,8], index: 9, kind: input, shape index: {}]   ;;  %s23350_s10 = inlined_call_operand.vmem [shape: bf16[2,4,8,32], index: 10, kind: input, shape index: {}]   ;;  %s23351_s11 = inlined_call_operand.vmem [shape: bf16[2,32,64], index: 11, kind: input, shape index: {}]   ;;  %s23352_s12 = inlined_call_operand.vmem [shape: bf16[2,64,32], index: 12, kind: input, shape index: {}]   ;;  %s23353_s13 = inlined_call_operand.vmem [shape: f32[7,1,32], index: 13, kind: input, shape index: {}]   ;;  %s23354_s14 = inlined_call_operand.vmem [shape: bf16[6,4,32,8], index: 14, kind: input, shape index: {}]   ;;  %s23355_s15 = inlined_call_operand.vmem [shape: bf16[2,4,8,32], index: 15, kind: input, shape index: {}]   ;;  %s23356_s16 = inlined_call_operand.vmem [shape: bf16[2,4,32,8], index: 16, kind: input, shape index: {}]   ;;  %s23357_s17 = inlined_call_operand.vmem [shape: bf16[4,4,32,8], index: 17, kind: input, shape index: {}]   ;;  %s23358_s18 = inlined_call_operand.vmem [shape: bf16[2,4,8,32], index: 18, kind: input, shape index: {}]   ;;  %s23359_s19 = inlined_call_operand.vmem [shape: bf16[2,32,64], index: 19, kind: input, shape index: {}]   ;;  %s23360_s20 = inlined_call_operand.vmem [shape: bf16[2,64,32], index: 20, kind: input, shape index: {}]   ;;  %s23361_s21 = inlined_call_operand.hbm [shape: f32[1,1], index: 21, kind: output, shape index: {}]  }
   0x1   :  { %23366 = sst [smem:[#allocation5_spill]] %s23340_s0 }
   0x2   :  { %23367 = sst [smem:[#allocation6_spill]] %s23341_s1 }
   0x3   :  { %23368 = sst [smem:[#allocation7_spill]] %s23342_s2 }
   0x4   :  { %23369 = sst [smem:[#allocation8_spill]] %s23343_s3 }
   0x5   :  { %23370 = sst [smem:[#allocation9_spill]] %s23344_s4 }
   0x6   :  { %23371 = sst [smem:[#allocation10_spill]] %s23345_s5 }
   0x7   :  { %s23372_s26 = sld [smem:[#allocation5_spill]]  ;;  %vm132_vm0 = vcmask 261120   ;;  %v19211_v3 = vld [vmem:[%s23349_s9] sm:$0xff]   ;;  %v19212_v4 = vld [vmem:[%s23349_s9 + $0x30] sm:$0xff]   ;;  %v19652_v5 = vmov 0.0   ;;  %v19213_v6 = vld [vmem:[%s23349_s9 + $0x8] sm:$0xff]  }
   0x8   :  { %17090 = vmatprep.subr.bf16.mxu0 %v19652_v5  ;;  %17114 = vmatprep.subr.bf16.mxu1 %v19652_v5  ;;  %v19214_v7 = vld [vmem:[%s23349_s9 + $0x38] sm:$0xff]   ;;  %vm19653_vm1 = vmmov 0  }
   0x9   :  { %17091 = vmatpush3.bf16.msra.mxu0 %v19211_v3  ;;  %17115 = vmatpush3.bf16.msra.mxu1 %v19212_v4 }
   0xa   :  { %17092 = vmatprep.subr.bf16.mxu0 %v19652_v5  ;;  %17116 = vmatprep.subr.bf16.mxu1 %v19652_v5 }
   0xb   :  { %17094 = vmatprep.mubr.msk.bf16.mxu0 %vm19653_vm1, %v19652_v5  ;;  %17118 = vmatprep.mubr.msk.bf16.mxu1 %vm19653_vm1, %v19652_v5 }
   0xd   :  { %v127_v0 = vld [vmem:[%s23372_s26] sm:$0xff]  ;;  %17093 = vmatpush3.bf16.msra.mxu0 %v19213_v6  ;;  %17117 = vmatpush3.bf16.msra.mxu1 %v19214_v7 }
   0xe   :  { %v130_v1 = vmul.f32 %v127_v0, %v127_v0  ;;  %17098 = vmatprep.subr.bf16.mxu0 %v19652_v5  ;;  %17130 = vmatprep.subr.bf16.mxu1 %v19652_v5 }
  0x10   :  { %v133_v2 = vsel %vm132_vm0, %v130_v1, 0.0 }
  0x11   :  { %134 = vadd.xlane.f32.xlu0 %v133_v2 }
  0x12   :  { %26 = vsyncpa [#allocation3], 0  ;;  %v19796_v12 = vld [vmem:[%s23348_s8] ss:$0 sm:$0xff]  ;;  %v19802_v15 = vld [vmem:[%s23349_s9 + $0x10] sm:$0xff]   ;;  %vm846_vm2 = vcmask 64512  }
  0x13   :  { %v19807_v16 = vld [vmem:[%s23349_s9 + $0x50] sm:$0xff]   ;;  %v19820_v18 = vld [vmem:[%s23349_s9 + $0x18] sm:$0xff]   ;;  %v19838_v20 = vld [vmem:[%s23349_s9 + $0x20] sm:$0xff]   ;;  %vm1086_vm3 = vcmask 1043456   ;;  %s23373_s1 = sld [smem:[#allocation9_spill]]  ;;  %s23374_s25 = sld [smem:[#allocation7_spill]] }
  0x14   :  { %v19825_v19 = vld [vmem:[%s23349_s9 + $0x58] sm:$0xff]   ;;  %v19843_v21 = vld [vmem:[%s23349_s9 + $0x70] sm:$0xff]   ;;  %v19856_v22 = vld [vmem:[%s23349_s9 + $0x28] sm:$0xff]   ;;  %vm2674_vm4 = vcmask 523264   ;;  %s23375_s23 = sld [smem:[#allocation6_spill]]  ;;  %s23376_s30 = sld [smem:[#allocation10_spill]] }
  0x15   :  { %v19861_v23 = vld [vmem:[%s23349_s9 + $0x78] sm:$0xff]   ;;  %v19874_v24 = vld [vmem:[%s23349_s9 + $0x40] sm:$0xff]   ;;  %v19879_v25 = vld [vmem:[%s23349_s9 + $0x90] sm:$0xff]   ;;  %s23377_s22 = sld [smem:[#allocation8_spill]]  ;;  %vm15534_vm10 = vcmask 7168   ;;  %s19640_s28 = scalar_lea.hbm %s23361_s21, 16 }
  0x16   :  { %v19892_v26 = vld [vmem:[%s23349_s9 + $0x48] sm:$0xff]   ;;  %v19897_v27 = vld [vmem:[%s23349_s9 + $0x98] sm:$0xff]   ;;  %v19910_v28 = vld [vmem:[%s23349_s9 + $0x60] sm:$0xff]   ;;  %p19641_p0 = scmp.ne.s32.totalorder %s23361_s21, %s19640_s28  ;;  %p19644_p1 = scmp.lt.u32.totalorder %s19640_s28, %s23361_s21 }
  0x17   :  { %v19915_v29 = vld [vmem:[%s23349_s9 + $0xb0] sm:$0xff]   ;;  %v19928_v30 = vld [vmem:[%s23349_s9 + $0x68] sm:$0xff]   ;;  %v19933_v31 = vld [vmem:[%s23349_s9 + $0xb8] sm:$0xff]  }
  0x18   :  { %v19946_v32 = vld [vmem:[%s23349_s9 + $0x80] sm:$0xff]   ;;  %v19958_v33 = vld [vmem:[%s23349_s9 + $0x88] sm:$0xff]   ;;  %p19646_p2 = pnand %p19644_p1, %p19641_p0 }
  0x19   :  { %v19969_v34 = vld [vmem:[%s23349_s9 + $0xa0] sm:$0xff]   ;;  %v19978_v35 = vld [vmem:[%s23349_s9 + $0xa8] sm:$0xff]  }
  0x9e   :  { %v135_v8 = vpop.xlane.xlu0 %134 }
  0x9f   :  { %v140_v9 = vmul.f32 0.03125, %v135_v8 }
  0xa1   :  { %v142_v10 = vadd.f32 1e-06, %v140_v9 }
  0xa3   :  { %19383 = vrsqrt.f32 %v142_v10 }
  0xad   :  { %v19384_v11 = vpop.eup %19383 }
  0xae   :  { %v146_v13 = vmul.f32 %v19384_v11, %v127_v0 }
  0xb0   :  { %v154_v14 = vmul.f32 %v19796_v12, %v146_v13 }
  0xb2   :  { %v19809_v17 = vpack.c.bf16 %v154_v14, %v154_v14 }
  0xb4   :  { %17095 = vmatmul.mubr.msk.bf16.vlgmr.msra.gmra.mrb[0].mxu0 %vm132_vm0, %v19809_v17  ;;  %17119 = vmatmul.mubr.msk.bf16.vlgmr.msra.gmra.mrb[0].mxu1 %vm132_vm0, %v19809_v17 }
  0xb5   :  { %17099 = vmatpush3.bf16.msra.mxu0 %v19802_v15  ;;  %17131 = vmatpush3.bf16.msra.mxu1 %v19807_v16 }
  0xb6   :  { %17100 = vmatprep.subr.bf16.mxu0 %v19652_v5  ;;  %17132 = vmatprep.subr.bf16.mxu1 %v19652_v5 }
  0xb7   :  { %17102 = vmatprep.mubr.msk.bf16.mxu0 %vm19653_vm1, %v19652_v5  ;;  %17134 = vmatprep.mubr.msk.bf16.mxu1 %vm19653_vm1, %v19652_v5 }
  0xb9   :  { %17101 = vmatpush3.bf16.msra.mxu0 %v19820_v18  ;;  %17133 = vmatpush3.bf16.msra.mxu1 %v19825_v19 }
  0xba   :  { %17106 = vmatprep.subr.bf16.mxu0 %v19652_v5  ;;  %17146 = vmatprep.subr.bf16.mxu1 %v19652_v5 }
  0xbc   :  { %17103 = vmatmul.mubr.msk.bf16.vlgmr.msra.gmra.mrb[4].mxu0 %vm132_vm0, %v19809_v17  ;;  %17135 = vmatmul.mubr.msk.bf16.vlgmr.msra.gmra.mrb[4].mxu1 %vm132_vm0, %v19809_v17 }
  0xbd   :  { %17107 = vmatpush3.bf16.msra.mxu0 %v19838_v20  ;;  %17147 = vmatpush3.bf16.msra.mxu1 %v19843_v21 }
  0xbe   :  { %17108 = vmatprep.subr.bf16.mxu0 %v19652_v5  ;;  %17148 = vmatprep.subr.bf16.mxu1 %v19652_v5 }
  0xbf   :  { %17110 = vmatprep.mubr.msk.bf16.mxu0 %vm19653_vm1, %v19652_v5  ;;  %17150 = vmatprep.mubr.msk.bf16.mxu1 %vm19653_vm1, %v19652_v5 }
  0xc1   :  { %17109 = vmatpush3.bf16.msra.mxu0 %v19856_v22  ;;  %17149 = vmatpush3.bf16.msra.mxu1 %v19861_v23 }
  0xc2   :  { %17122 = vmatprep.subr.bf16.mxu0 %v19652_v5  ;;  %17162 = vmatprep.subr.bf16.mxu1 %v19652_v5 }
  0xc4   :  { %17111 = vmatmul.mubr.msk.bf16.vlgmr.msra.gmra.mrb[8].mxu0 %vm132_vm0, %v19809_v17  ;;  %17151 = vmatmul.mubr.msk.bf16.vlgmr.msra.gmra.mrb[8].mxu1 %vm132_vm0, %v19809_v17 }
  0xc5   :  { %17123 = vmatpush3.bf16.msra.mxu0 %v19874_v24  ;;  %17163 = vmatpush3.bf16.msra.mxu1 %v19879_v25 }
  0xc6   :  { %17124 = vmatprep.subr.bf16.mxu0 %v19652_v5  ;;  %17164 = vmatprep.subr.bf16.mxu1 %v19652_v5 }
  0xc7   :  { %17126 = vmatprep.mubr.msk.bf16.mxu0 %vm19653_vm1, %v19652_v5  ;;  %17166 = vmatprep.mubr.msk.bf16.mxu1 %vm19653_vm1, %v19652_v5 }
  0xc9   :  { %17125 = vmatpush3.bf16.msra.mxu0 %v19892_v26  ;;  %17165 = vmatpush3.bf16.msra.mxu1 %v19897_v27 }
  0xca   :  { %17138 = vmatprep.subr.bf16.mxu0 %v19652_v5  ;;  %17178 = vmatprep.subr.bf16.mxu1 %v19652_v5 }
  0xcc   :  { %17127 = vmatmul.mubr.msk.bf16.vlgmr.msra.gmra.mrb[12].mxu0 %vm132_vm0, %v19809_v17  ;;  %17167 = vmatmul.mubr.msk.bf16.vlgmr.msra.gmra.mrb[12].mxu1 %vm132_vm0, %v19809_v17 }
  0xcd   :  { %17139 = vmatpush3.bf16.msra.mxu0 %v19910_v28  ;;  %17179 = vmatpush3.bf16.msra.mxu1 %v19915_v29 }
  0xce   :  { %17140 = vmatprep.subr.bf16.mxu0 %v19652_v5  ;;  %17180 = vmatprep.subr.bf16.mxu1 %v19652_v5 }
  0xcf   :  { %17142 = vmatprep.mubr.msk.bf16.mxu0 %vm19653_vm1, %v19652_v5  ;;  %17182 = vmatprep.mubr.msk.bf16.mxu1 %vm19653_vm1, %v19652_v5 }
  0xd1   :  { %17141 = vmatpush3.bf16.msra.mxu0 %v19928_v30  ;;  %17181 = vmatpush3.bf16.msra.mxu1 %v19933_v31 }
  0xd2   :  { %17154 = vmatprep.subr.bf16.mxu0 %v19652_v5  ;;  %17192 = vmatprep.subr.bf16.mxu1 %v19652_v5 }
  0xd4   :  { %17143 = vmatmul.mubr.msk.bf16.vlgmr.msra.gmra.mrb[16].mxu0 %vm132_vm0, %v19809_v17  ;;  %17183 = vmatmul.mubr.msk.bf16.vlgmr.msra.gmra.mrb[16].mxu1 %vm132_vm0, %v19809_v17 }
  0xd5   :  { %17155 = vmatpush3.bf16.msra.mxu0 %v19946_v32  ;;  %17158 = vmatprep.mubr.msk.bf16.mxu0 %vm19653_vm1, %v19652_v5 }
  0xd6   :  { %17156 = vmatprep.subr.bf16.mxu0 %v19652_v5  ;;  %17194 = vmatprep.mubr.msk.bf16.mxu1 %vm19653_vm1, %v19652_v5 }
  0xd9   :  { %17157 = vmatpush3.bf16.msra.mxu0 %v19958_v33 }
  0xda   :  { %17170 = vmatprep.subr.bf16.mxu0 %v19652_v5 }
  0xdc   :  { %17159 = vmatmul.mubr.msk.bf16.vlgmr.msra.gmra.mrb[20].mxu0 %vm132_vm0, %v19809_v17 }
  0xdd   :  { %17171 = vmatpush3.bf16.msra.mxu0 %v19969_v34  ;;  %17174 = vmatprep.mubr.msk.bf16.mxu0 %vm19653_vm1, %v19652_v5 }
  0xde   :  { %17172 = vmatprep.subr.bf16.mxu0 %v19652_v5 }
  0xe1   :  { %17173 = vmatpush3.bf16.msra.mxu0 %v19978_v35 }
  0xe2   :  { %17186 = vmatprep.subr.bf16.mxu0 %v19652_v5 }
  0xe4   :  { %17175 = vmatmul.mubr.msk.bf16.vlgmr.msra.gmra.mrb[24].mxu0 %vm132_vm0, %v19809_v17 }
  0xe5   :  { %17188 = vmatprep.mubr.msk.bf16.mxu0 %vm19653_vm1, %v19652_v5 }
 0x187   :  { %v19989_v36 = vpop.f32.mrb[0].mxu0  ;;  %v416_v37 = vpop.f32.mrb[0].mxu1 }
 0x188   :  { %v17096_v38 = vpop.f32.mrb[1].mxu0  ;;  %v17120_v39 = vpop.f32.mrb[1].mxu1  ;;  %v841_v3 = vpack.c.bf16 %v416_v37, %v416_v37 }
 0x189   :  { %v263_v40 = vpop.f32.mrb[2].mxu0  ;;  %v419_v41 = vpop.f32.mrb[2].mxu1  ;;  %v838_v39 = vpack.c.bf16 %v19989_v36, %v19989_v36 }
 0x18a   :  { %v17097_v42 = vpop.f32.mrb[3].mxu0  ;;  %v17121_v43 = vpop.f32.mrb[3].mxu1 }
 0x18f   :  { %v312_v44 = vpop.f32.mrb[4].mxu0  ;;  %v520_v45 = vpop.f32.mrb[4].mxu1 }
 0x190   :  { %v843_v46 = vpack.c.bf16 %v520_v45, %v520_v45  ;;  %v17104_v47 = vpop.f32.mrb[5].mxu0  ;;  %v17136_v48 = vpop.f32.mrb[5].mxu1  ;;  %v839_v56 = vpack.c.bf16 %v312_v44, %v312_v44 }
 0x191   :  { %v315_v49 = vpop.f32.mrb[6].mxu0  ;;  %v523_v50 = vpop.f32.mrb[6].mxu1 }
 0x192   :  { %v17105_v51 = vpop.f32.mrb[7].mxu0  ;;  %v17137_v52 = vpop.f32.mrb[7].mxu1  ;;  %v897_v53 = vsel %vm846_vm2, %v843_v46, 0 }
 0x193   :  { %17193 = vmatpush3.bf16.xpose.msra.mxu1 %v897_v53 }
 0x194   :  { %17204 = vmatprep.subr.bf16.mxu1 %v19652_v5 }
 0x197   :  { %v364_v54 = vpop.f32.mrb[8].mxu0  ;;  %v624_v55 = vpop.f32.mrb[8].mxu1 }
 0x198   :  { %v845_v57 = vpack.c.bf16 %v624_v55, %v624_v55  ;;  %v17112_v58 = vpop.f32.mrb[9].mxu0  ;;  %v17152_v59 = vpop.f32.mrb[9].mxu1  ;;  %v840_v49 = vpack.c.bf16 %v364_v54, %v364_v54  ;;  %v80_v54 = vlaneseq }
 0x199   :  { %v367_v60 = vpop.f32.mrb[10].mxu0  ;;  %v627_v61 = vpop.f32.mrb[10].mxu1  ;;  %v70_v59 = vld [vmem:[%s23373_s1] sm:$0x3] }
 0x19a   :  { %v17113_v62 = vpop.f32.mrb[11].mxu0  ;;  %v17153_v63 = vpop.f32.mrb[11].mxu1  ;;  %17195 = vmatmul.mubr.msk.bf16.vlgmr.msra.gmra.mrb[20].mxu1 %vm846_vm2, %v839_v56  ;;  %v989_v0 = vsel %vm846_vm2, %v845_v57, 0  ;;  %v20025_v60 = vshrl.u32 %v80_v54, 7  ;;  %v87_v61 = vsub.f32 1.0, %v70_v59 }
 0x19b   :  { %17205 = vmatpush3.bf16.xpose.msra.mxu1 %v989_v0  ;;  %17206 = vmatprep.mubr.msk.bf16.mxu1 %vm19653_vm1, %v19652_v5 }
 0x19c   :  { %17216 = vmatprep.subr.bf16.mxu1 %v19652_v5  ;;  %v20027_v62 = vmul.f32 -1e+09, %v87_v61  ;;  %v91_v63 = vsub.s32 0, %v20025_v60 }
 0x19e   :  { %v20033_v0 = vrot.slane %v20027_v62, %v91_v63 }
 0x19f   :  { %v468_v1 = vpop.f32.mrb[12].mxu0  ;;  %v728_v2 = vpop.f32.mrb[12].mxu1 }
 0x1a0   :  { %v842_v4 = vpack.c.bf16 %v468_v1, %v468_v1  ;;  %v1080_v6 = vpack.c.bf16 %v728_v2, %v728_v2  ;;  %v17128_v7 = vpop.f32.mrb[13].mxu0  ;;  %v17168_v8 = vpop.f32.mrb[13].mxu1  ;;  %v20038_v1 = vld [vmem:[%s23374_s25 + $0x8] sm:$0xff] }
 0x1a1   :  { %v471_v9 = vpop.f32.mrb[14].mxu0  ;;  %v731_v10 = vpop.f32.mrb[14].mxu1  ;;  %v20042_v2 = vadd.f32 %v20033_v0, %v20038_v1 }
 0x1a2   :  { %v17129_v11 = vpop.f32.mrb[15].mxu0  ;;  %v17169_v13 = vpop.f32.mrb[15].mxu1  ;;  %17207 = vmatmul.mubr.msk.bf16.vlgmr.msra.gmra.mrb[24].mxu1 %vm846_vm2, %v841_v3  ;;  %v851_v14 = vsel %vm846_vm2, %v842_v4, 0  ;;  %v1134_v17 = vsel %vm1086_vm3, %v1080_v6, 0 }
 0x1a3   :  { %17187 = vmatpush3.bf16.xpose.msra.mxu0 %v851_v14  ;;  %17217 = vmatpush3.bf16.msra.mxu1 %v1134_v17  ;;  %v20049_v14 = vld [vmem:[%s23374_s25] sm:$0xff] }
 0x1a4   :  { %17198 = vmatprep.subr.bf16.mxu0 %v19652_v5  ;;  %17218 = vmatprep.mubr.msk.bf16.mxu1 %vm19653_vm1, %v19652_v5 }
 0x1a5   :  { %17228 = vmatprep.subr.bf16.mxu1 %v19652_v5 }
 0x1a7   :  { %v572_v37 = vpop.f32.mrb[16].mxu0  ;;  %v20005_v38 = vpop.f32.mrb[16].mxu1 }
 0x1a8   :  { %v844_v40 = vpack.c.bf16 %v572_v37, %v572_v37  ;;  %v17144_v41 = vpop.f32.mrb[17].mxu0  ;;  %v17184_v42 = vpop.f32.mrb[17].mxu1  ;;  %v20054_v37 = vld [vmem:[%s23374_s25 + $0x18] sm:$0xff] }
 0x1a9   :  { %v575_v43 = vpop.f32.mrb[18].mxu0  ;;  %v835_v44 = vpop.f32.mrb[18].mxu1 }
 0x1aa   :  { %v17145_v45 = vpop.f32.mrb[19].mxu0  ;;  %v17185_v46 = vpop.f32.mrb[19].mxu1  ;;  %17189 = vmatmul.mubr.msk.bf16.vlgmr.msra.gmra.mrb[28].mxu0 %vm846_vm2, %v838_v39  ;;  %v943_v47 = vsel %vm846_vm2, %v844_v40, 0  ;;  %v20058_v39 = vadd.f32 %v20033_v0, %v20049_v14  ;;  %v20062_v40 = vadd.f32 %v20033_v0, %v20054_v37 }
 0x1ab   :  { %17199 = vmatpush3.bf16.xpose.msra.mxu0 %v943_v47  ;;  %17200 = vmatprep.mubr.msk.bf16.mxu0 %vm19653_vm1, %v19652_v5  ;;  %v20068_v45 = vld [vmem:[%s23374_s25 + $0x10] sm:$0xff] }
 0x1ac   :  { %17210 = vmatprep.subr.bf16.mxu0 %v19652_v5 }
 0x1af   :  { %v676_v48 = vpop.f32.mrb[20].mxu0 }
 0x1b0   :  { %v1079_v36 = vpack.c.bf16 %v676_v48, %v676_v48  ;;  %v17160_v50 = vpop.f32.mrb[21].mxu0 }
 0x1b1   :  { %v679_v51 = vpop.f32.mrb[22].mxu0 }
 0x1b2   :  { %v17161_v52 = vpop.f32.mrb[23].mxu0  ;;  %17201 = vmatmul.mubr.msk.bf16.vlgmr.msra.gmra.mrb[32].mxu0 %vm846_vm2, %v840_v49  ;;  %v1088_v53 = vsel %vm1086_vm3, %v1079_v36, 0  ;;  %v20074_v49 = vadd.f32 %v20033_v0, %v20068_v45 }
 0x1b3   :  { %17211 = vmatpush3.bf16.msra.mxu0 %v1088_v53  ;;  %17212 = vmatprep.mubr.msk.bf16.mxu0 %vm19653_vm1, %v19652_v5 }
 0x1b4   :  { %17222 = vmatprep.subr.bf16.mxu0 %v19652_v5 }
 0x1b7   :  { %v20019_v55 = vpop.f32.mrb[24].mxu0 }
 0x1b8   :  { %v17176_v56 = vpop.f32.mrb[25].mxu0 }
 0x1b9   :  { %v783_v57 = vpop.f32.mrb[26].mxu0 }
 0x1ba   :  { %v17177_v58 = vpop.f32.mrb[27].mxu0 }
 0x26d   :  { %v933_v3 = vpop.f32.mrb[20].mxu1 }
 0x26e   :  { %v17196_v4 = vpop.f32.mrb[21].mxu1  ;;  %v934_v6 = vadd.f32 %v933_v3, %v20042_v2 }
 0x26f   :  { %v936_v7 = vpop.f32.mrb[22].mxu1 }
 0x270   :  { %v17197_v8 = vpop.f32.mrb[23].mxu1  ;;  %v1034_v9 = vsel %vm846_vm2, %v934_v6, -inf }
 0x271   :  { %1035 = vmax.xlane.f32.xlu1 %v1034_v9 }
 0x275   :  { %v1025_v10 = vpop.f32.mrb[24].mxu1 }
 0x276   :  { %v17208_v11 = vpop.f32.mrb[25].mxu1  ;;  %v1026_v48 = vadd.f32 %v1025_v10, %v20062_v40 }
 0x277   :  { %v1028_v13 = vpop.f32.mrb[26].mxu1 }
 0x278   :  { %v17209_v17 = vpop.f32.mrb[27].mxu1  ;;  %v1040_v36 = vsel %vm846_vm2, %v1026_v48, -inf }
 0x27d   :  { %v887_v41 = vpop.f32.mrb[28].mxu0 }
 0x27e   :  { %v17190_v42 = vpop.f32.mrb[29].mxu0  ;;  %v888_v43 = vadd.f32 %v887_v41, %v20058_v39 }
 0x27f   :  { %v890_v44 = vpop.f32.mrb[30].mxu0 }
 0x280   :  { %v17191_v46 = vpop.f32.mrb[31].mxu0  ;;  %v1031_v47 = vsel %vm846_vm2, %v888_v43, -inf }
 0x281   :  { %1032 = vmax.xlane.f32.xlu0 %v1031_v47 }
 0x285   :  { %v979_v50 = vpop.f32.mrb[32].mxu0  ;;  %1041 = vmax.xlane.f32.xlu0 %v1040_v36 }
 0x286   :  { %v17202_v51 = vpop.f32.mrb[33].mxu0  ;;  %v980_v52 = vadd.f32 %v979_v50, %v20074_v49 }
 0x287   :  { %v982_v53 = vpop.f32.mrb[34].mxu0 }
 0x288   :  { %v17203_v56 = vpop.f32.mrb[35].mxu0  ;;  %v1037_v57 = vsel %vm846_vm2, %v980_v52, -inf }
 0x289   :  { %1038 = vmax.xlane.f32.xlu1 %v1037_v57  ;;  %v1082_v56 = vpack.c.bf16 %v20005_v38, %v20005_v38  ;;  %v1081_v38 = vpack.c.bf16 %v20019_v55, %v20019_v55 }
 0x2fe   :  { %v1036_v58 = vpop.xlane.xlu1 %1035 }
 0x2ff   :  { %v1044_v59 = vsub.f32 %v934_v6, %v1036_v58 }
 0x301   :  { %v1049_v61 = vmul.f32 1.442695, %v1044_v59 }
 0x303   :  { %19385 = vpow2.f32 %v1049_v61  ;;  %v1226_v61 = vsel %vm1086_vm3, %v1082_v56, 0 }
 0x30d   :  { %v19386_v3 = vpop.eup %19385 }
 0x30e   :  { %v1033_v4 = vpop.xlane.xlu0 %1032  ;;  %v1058_v7 = vsel %vm846_vm2, %v19386_v3, 0.0 }
 0x30f   :  { %v1043_v8 = vsub.f32 %v888_v43, %v1033_v4  ;;  %1059 = vadd.xlane.f32.xlu0 %v1058_v7 }
 0x311   :  { %v1047_v9 = vmul.f32 1.442695, %v1043_v8 }
 0x312   :  { %v1042_v10 = vpop.xlane.xlu0 %1041 }
 0x313   :  { %19387 = vpow2.f32 %v1047_v9  ;;  %v1046_v11 = vsub.f32 %v1026_v48, %v1042_v10  ;;  %v20086_v48 = vld [vmem:[%s23372_s26 + $0x8] sm:$0xff] }
 0x314   :  { %v131_v50 = vmul.f32 %v20086_v48, %v20086_v48 }
 0x315   :  { %v1053_v13 = vmul.f32 1.442695, %v1046_v11  ;;  %v1180_v11 = vsel %vm1086_vm3, %v1081_v38, 0 }
 0x316   :  { %v1039_v17 = vpop.xlane.xlu1 %1038  ;;  %v136_v51 = vsel %vm132_vm0, %v131_v50, 0.0  ;;  %v210_v50 = vld [vmem:[%s23350_s10 + $0xc] sm:$0xf] }
 0x317   :  { %19389 = vpow2.f32 %v1053_v13  ;;  %v1045_v41 = vsub.f32 %v980_v52, %v1039_v17  ;;  %v20131_v56 = vsel %vm1086_vm3, %v210_v50, 0 }
 0x319   :  { %v1051_v42 = vmul.f32 1.442695, %v1045_v41 }
 0x31b   :  { %19391 = vpow2.f32 %v1051_v42 }
 0x31d   :  { %v19388_v44 = vpop.eup %19387 }
 0x31e   :  { %v1055_v6 = vsel %vm846_vm2, %v19388_v44, 0.0 }
 0x31f   :  { %1056 = vadd.xlane.f32.xlu1 %v1055_v6 }
 0x321   :  { %v19390_v46 = vpop.eup %19389 }
 0x322   :  { %v1064_v47 = vsel %vm846_vm2, %v19390_v46, 0.0 }
 0x323   :  { %1065 = vadd.xlane.f32.xlu0 %v1064_v47 }
 0x325   :  { %v19392_v43 = vpop.eup %19391 }
 0x326   :  { %v1061_v36 = vsel %vm846_vm2, %v19392_v43, 0.0 }
 0x327   :  { %1062 = vadd.xlane.f32.xlu1 %v1061_v36 }
 0x32b   :  { %137 = vadd.xlane.f32.xlu1 %v136_v51 }
 0x39c   :  { %v1060_v52 = vpop.xlane.xlu0 %1059 }
 0x39d   :  { %19393 = vrcp.f32 %v1060_v52 }
 0x3a7   :  { %v19394_v53 = vpop.eup %19393 }
 0x3a8   :  { %v1072_v57 = vmul.f32 %v19394_v53, %v19386_v3 }
 0x3aa   :  { %v1076_v58 = vpack.c.bf16 %v1072_v57, %v1072_v57 }
 0x3ac   :  { %v1057_v59 = vpop.xlane.xlu1 %1056  ;;  %17219 = vmatmul.mubr.msk.bf16.vlgmr.msra.gmra.mrb[28].mxu1 %vm846_vm2, %v1076_v58 }
 0x3ad   :  { %19395 = vrcp.f32 %v1057_v59  ;;  %17229 = vmatpush3.bf16.msra.mxu1 %v1226_v61  ;;  %17230 = vmatprep.mubr.msk.bf16.mxu1 %vm19653_vm1, %v19652_v5  ;;  %v209_v61 = vld [vmem:[%s23350_s10 + $0x8] sm:$0xf] }
 0x3ae   :  { %17240 = vmatprep.subr.bf16.mxu1 %v19652_v5 }
 0x3b0   :  { %v1066_v4 = vpop.xlane.xlu0 %1065 }
 0x3b1   :  { %19397 = vrcp.f32 %v1066_v4 }
 0x3b4   :  { %v1063_v7 = vpop.xlane.xlu1 %1062 }
 0x3b5   :  { %19399 = vrcp.f32 %v1063_v7 }
 0x3b7   :  { %v19396_v8 = vpop.eup %19395 }
 0x3b8   :  { %v1071_v3 = vmul.f32 %v19396_v8, %v19388_v44  ;;  %v208_v44 = vld [vmem:[%s23350_s10 + $0x4] sm:$0xf] }
 0x3b9   :  { %v20115_v6 = vsel %vm1086_vm3, %v208_v44, 0 }
 0x3ba   :  { %v1075_v9 = vpack.c.bf16 %v1071_v3, %v1071_v3  ;;  %v20142_v3 = vsel %vm1086_vm3, %v209_v61, 0 }
 0x3bb   :  { %v19398_v10 = vpop.eup %19397 }
 0x3bc   :  { %17213 = vmatmul.mubr.msk.bf16.vlgmr.msra.gmra.mrb[36].mxu0 %vm846_vm2, %v1075_v9  ;;  %v1074_v13 = vmul.f32 %v19398_v10, %v19390_v46  ;;  %v207_v46 = vld [vmem:[%s23350_s10] sm:$0xf] }
 0x3bd   :  { %17223 = vmatpush3.bf16.msra.mxu0 %v1180_v11  ;;  %17224 = vmatprep.mubr.msk.bf16.mxu0 %vm19653_vm1, %v19652_v5  ;;  %v20123_v47 = vsel %vm1086_vm3, %v207_v46, 0 }
 0x3be   :  { %v1078_v17 = vpack.c.bf16 %v1074_v13, %v1074_v13  ;;  %17234 = vmatprep.subr.bf16.mxu0 %v19652_v5 }
 0x3bf   :  { %v19400_v41 = vpop.eup %19399 }
 0x3c0   :  { %17231 = vmatmul.mubr.msk.bf16.vlgmr.msra.gmra.mrb[32].mxu1 %vm846_vm2, %v1078_v17  ;;  %v1073_v42 = vmul.f32 %v19400_v41, %v19392_v43  ;;  %v138_v43 = vpop.xlane.xlu1 %137 }
 0x3c1   :  { %17242 = vmatprep.mubr.msk.bf16.mxu1 %vm19653_vm1, %v19652_v5  ;;  %17241 = vmatpush3.bf16.msra.mxu1 %v20115_v6  ;;  %v141_v36 = vmul.f32 0.03125, %v138_v43 }
 0x3c2   :  { %v1077_v55 = vpack.c.bf16 %v1073_v42, %v1073_v42  ;;  %17252 = vmatprep.subr.bf16.mxu1 %v19652_v5 }
 0x3c3   :  { %v143_v58 = vadd.f32 1e-06, %v141_v36 }
 0x3c4   :  { %17225 = vmatmul.mubr.msk.bf16.vlgmr.msra.gmra.mrb[40].mxu0 %vm846_vm2, %v1077_v55 }
 0x3c5   :  { %17236 = vmatprep.mubr.msk.bf16.mxu0 %vm19653_vm1, %v19652_v5  ;;  %17235 = vmatpush3.bf16.msra.mxu0 %v20123_v47  ;;  %19401 = vrsqrt.f32 %v143_v58 }
 0x3c6   :  { %17246 = vmatprep.subr.bf16.mxu0 %v19652_v5 }
 0x3cf   :  { %v19402_v4 = vpop.eup %19401 }
 0x3d0   :  { %v147_v10 = vmul.f32 %v19402_v4, %v20086_v48 }
 0x3d2   :  { %v155_v55 = vmul.f32 %v19796_v12, %v147_v10  ;;  %v19633_v12 = vld [vmem:[%s23349_s9] sm:$0xff]  }
 0x47f   :  { %v1170_v51 = vpop.f32.mrb[28].mxu1 }
 0x480   :  { %v1269_v52 = vpack.c.bf16 %v1170_v51, %v1170_v51  ;;  %v17220_v53 = vpop.f32.mrb[29].mxu1  ;;  %v20156_v51 = vpack.c.bf16 %v155_v55, %v155_v55 }
 0x481   :  { %v1173_v57 = vpop.f32.mrb[30].mxu1  ;;  %v19635_v53 = vld [vmem:[%s23349_s9 + $0x30] sm:$0xff]  }
 0x482   :  { %v17221_v59 = vpop.f32.mrb[31].mxu1  ;;  %17243 = vmatmul.mubr.msk.bf16.vlgmr.msra.gmra.mrb[36].mxu1 %vm846_vm2, %v1269_v52 }
 0x483   :  { %17253 = vmatpush3.bf16.msra.mxu1 %v20131_v56  ;;  %17254 = vmatprep.mubr.msk.bf16.mxu1 %vm19653_vm1, %v19652_v5 }
 0x484   :  { %17266 = vmatprep.subr.bf16.mxu1 %v19652_v5 }
 0x48f   :  { %v1124_v7 = vpop.f32.mrb[36].mxu0 }
 0x490   :  { %v1268_v8 = vpack.c.bf16 %v1124_v7, %v1124_v7  ;;  %v17214_v38 = vpop.f32.mrb[37].mxu0 }
 0x491   :  { %v1127_v9 = vpop.f32.mrb[38].mxu0 }
 0x492   :  { %v17215_v11 = vpop.f32.mrb[39].mxu0  ;;  %17237 = vmatmul.mubr.msk.bf16.vlgmr.msra.gmra.mrb[44].mxu0 %vm846_vm2, %v1268_v8 }
 0x493   :  { %v1262_v13 = vpop.f32.mrb[32].mxu1  ;;  %17247 = vmatpush3.bf16.msra.mxu0 %v20142_v3  ;;  %17248 = vmatprep.mubr.msk.bf16.mxu0 %vm19653_vm1, %v19652_v5 }
 0x494   :  { %v1271_v17 = vpack.c.bf16 %v1262_v13, %v1262_v13  ;;  %v17232_v41 = vpop.f32.mrb[33].mxu1  ;;  %17258 = vmatprep.subr.bf16.mxu0 %v19652_v5 }
 0x495   :  { %v1265_v42 = vpop.f32.mrb[34].mxu1 }
 0x496   :  { %v17233_v44 = vpop.f32.mrb[35].mxu1  ;;  %17255 = vmatmul.mubr.msk.bf16.vlgmr.msra.gmra.mrb[40].mxu1 %vm846_vm2, %v1271_v17 }
 0x497   :  { %v1216_v46 = vpop.f32.mrb[40].mxu0  ;;  %17267 = vmatpush3.bf16.msra.mxu1 %v19802_v15  ;;  %17270 = vmatprep.mubr.msk.bf16.mxu1 %vm19653_vm1, %v19652_v5  ;;  %v19634_v15 = vld [vmem:[%s23349_s9 + $0x8] sm:$0xff]  }
 0x498   :  { %v1270_v43 = vpack.c.bf16 %v1216_v46, %v1216_v46  ;;  %v17226_v36 = vpop.f32.mrb[41].mxu0  ;;  %17268 = vmatprep.subr.bf16.mxu1 %v19652_v5 }
 0x499   :  { %v1219_v50 = vpop.f32.mrb[42].mxu0 }
 0x49a   :  { %v17227_v52 = vpop.f32.mrb[43].mxu0  ;;  %17249 = vmatmul.mubr.msk.bf16.vlgmr.msra.gmra.mrb[48].mxu0 %vm846_vm2, %v1270_v43 }
 0x49b   :  { %17259 = vmatpush3.bf16.msra.mxu0 %v19633_v12  ;;  %17269 = vmatpush3.bf16.msra.mxu1 %v19820_v18  ;;  %v19636_v18 = vld [vmem:[%s23349_s9 + $0x38] sm:$0xff]  }
 0x49c   :  { %17260 = vmatprep.subr.bf16.mxu0 %v19652_v5  ;;  %17282 = vmatprep.subr.bf16.mxu1 %v19652_v5 }
 0x49d   :  { %17262 = vmatprep.mubr.msk.bf16.mxu0 %vm19653_vm1, %v19652_v5 }
 0x49e   :  { %17271 = vmatmul.mubr.msk.bf16.vlgmr.msra.gmra.mrb[44].mxu1 %vm132_vm0, %v20156_v51 }
 0x49f   :  { %17261 = vmatpush3.bf16.msra.mxu0 %v19634_v15  ;;  %17283 = vmatpush3.bf16.msra.mxu1 %v19635_v53 }
 0x4a0   :  { %17274 = vmatprep.subr.bf16.mxu0 %v19652_v5  ;;  %17284 = vmatprep.subr.bf16.mxu1 %v19652_v5 }
 0x4a1   :  { %17286 = vmatprep.mubr.msk.bf16.mxu1 %vm19653_vm1, %v19652_v5 }
 0x4a2   :  { %17263 = vmatmul.mubr.msk.bf16.vlgmr.msra.gmra.mrb[52].mxu0 %vm132_vm0, %v20156_v51 }
 0x4a3   :  { %17275 = vmatpush3.bf16.msra.mxu0 %v19838_v20  ;;  %17285 = vmatpush3.bf16.msra.mxu1 %v19636_v18 }
 0x4a4   :  { %17276 = vmatprep.subr.bf16.mxu0 %v19652_v5  ;;  %17298 = vmatprep.subr.bf16.mxu1 %v19652_v5 }
 0x4a5   :  { %17278 = vmatprep.mubr.msk.bf16.mxu0 %vm19653_vm1, %v19652_v5 }
 0x4a6   :  { %17287 = vmatmul.mubr.msk.bf16.vlgmr.msra.gmra.mrb[48].mxu1 %vm132_vm0, %v20156_v51 }
 0x4a7   :  { %17277 = vmatpush3.bf16.msra.mxu0 %v19856_v22  ;;  %17299 = vmatpush3.bf16.msra.mxu1 %v19807_v16 }
 0x4a8   :  { %17290 = vmatprep.subr.bf16.mxu0 %v19652_v5  ;;  %17300 = vmatprep.subr.bf16.mxu1 %v19652_v5 }
 0x4a9   :  { %17302 = vmatprep.mubr.msk.bf16.mxu1 %vm19653_vm1, %v19652_v5 }
 0x4aa   :  { %17279 = vmatmul.mubr.msk.bf16.vlgmr.msra.gmra.mrb[56].mxu0 %vm132_vm0, %v20156_v51 }
 0x4ab   :  { %17291 = vmatpush3.bf16.msra.mxu0 %v19874_v24  ;;  %17301 = vmatpush3.bf16.msra.mxu1 %v19825_v19 }
 0x4ac   :  { %17292 = vmatprep.subr.bf16.mxu0 %v19652_v5  ;;  %17314 = vmatprep.subr.bf16.mxu1 %v19652_v5 }
 0x4ad   :  { %17294 = vmatprep.mubr.msk.bf16.mxu0 %vm19653_vm1, %v19652_v5 }
 0x4ae   :  { %17303 = vmatmul.mubr.msk.bf16.vlgmr.msra.gmra.mrb[52].mxu1 %vm132_vm0, %v20156_v51 }
 0x4af   :  { %17293 = vmatpush3.bf16.msra.mxu0 %v19892_v26  ;;  %17315 = vmatpush3.bf16.msra.mxu1 %v19843_v21 }
 0x4b0   :  { %17306 = vmatprep.subr.bf16.mxu0 %v19652_v5  ;;  %17316 = vmatprep.subr.bf16.mxu1 %v19652_v5 }
 0x4b1   :  { %17318 = vmatprep.mubr.msk.bf16.mxu1 %vm19653_vm1, %v19652_v5 }
 0x4b2   :  { %17295 = vmatmul.mubr.msk.bf16.vlgmr.msra.gmra.mrb[60].mxu0 %vm132_vm0, %v20156_v51 }
 0x4b3   :  { %17307 = vmatpush3.bf16.msra.mxu0 %v19910_v28  ;;  %17317 = vmatpush3.bf16.msra.mxu1 %v19861_v23 }
 0x4b4   :  { %17308 = vmatprep.subr.bf16.mxu0 %v19652_v5  ;;  %17330 = vmatprep.subr.bf16.mxu1 %v19652_v5 }
 0x4b5   :  { %17310 = vmatprep.mubr.msk.bf16.mxu0 %vm19653_vm1, %v19652_v5 }
 0x4b6   :  { %17319 = vmatmul.mubr.msk.bf16.vlgmr.msra.gmra.mrb[56].mxu1 %vm132_vm0, %v20156_v51 }
 0x4b7   :  { %17309 = vmatpush3.bf16.msra.mxu0 %v19928_v30  ;;  %17331 = vmatpush3.bf16.msra.mxu1 %v19879_v25 }
 0x4b8   :  { %17322 = vmatprep.subr.bf16.mxu0 %v19652_v5  ;;  %17332 = vmatprep.subr.bf16.mxu1 %v19652_v5 }
 0x4b9   :  { %17334 = vmatprep.mubr.msk.bf16.mxu1 %vm19653_vm1, %v19652_v5 }
 0x4ba   :  { %17311 = vmatmul.mubr.msk.bf16.vlgmr.msra.gmra.mrb[64].mxu0 %vm132_vm0, %v20156_v51 }
 0x4bb   :  { %17323 = vmatpush3.bf16.msra.mxu0 %v19946_v32  ;;  %17333 = vmatpush3.bf16.msra.mxu1 %v19897_v27 }
 0x4bc   :  { %17324 = vmatprep.subr.bf16.mxu0 %v19652_v5  ;;  %17346 = vmatprep.subr.bf16.mxu1 %v19652_v5 }
 0x4bd   :  { %17326 = vmatprep.mubr.msk.bf16.mxu0 %vm19653_vm1, %v19652_v5 }
 0x4be   :  { %17335 = vmatmul.mubr.msk.bf16.vlgmr.msra.gmra.mrb[60].mxu1 %vm132_vm0, %v20156_v51 }
 0x4bf   :  { %17325 = vmatpush3.bf16.msra.mxu0 %v19958_v33  ;;  %17347 = vmatpush3.bf16.msra.mxu1 %v19915_v29 }
 0x4c0   :  { %17338 = vmatprep.subr.bf16.mxu0 %v19652_v5  ;;  %17348 = vmatprep.subr.bf16.mxu1 %v19652_v5 }
 0x4c1   :  { %17350 = vmatprep.mubr.msk.bf16.mxu1 %vm19653_vm1, %v19652_v5 }
 0x4c2   :  { %17327 = vmatmul.mubr.msk.bf16.vlgmr.msra.gmra.mrb[68].mxu0 %vm132_vm0, %v20156_v51 }
 0x4c3   :  { %17339 = vmatpush3.bf16.msra.mxu0 %v19969_v34  ;;  %17349 = vmatpush3.bf16.msra.mxu1 %v19933_v31 }
 0x4c4   :  { %17340 = vmatprep.subr.bf16.mxu0 %v19652_v5  ;;  %17342 = vmatprep.mubr.msk.bf16.mxu0 %vm19653_vm1, %v19652_v5 }
 0x4c5   :  { %17360 = vmatprep.subr.bf16.mxu1 %v19652_v5 }
 0x4c6   :  { %17351 = vmatmul.mubr.msk.bf16.vlgmr.msra.gmra.mrb[64].mxu1 %vm132_vm0, %v20156_v51 }
 0x4c7   :  { %17341 = vmatpush3.bf16.msra.mxu0 %v19978_v35  ;;  %17362 = vmatprep.mubr.msk.bf16.mxu1 %vm19653_vm1, %v19652_v5 }
 0x4c8   :  { %17354 = vmatprep.subr.bf16.mxu0 %v19652_v5 }
 0x4ca   :  { %17343 = vmatmul.mubr.msk.bf16.vlgmr.msra.gmra.mrb[72].mxu0 %vm132_vm0, %v20156_v51 }
 0x4cb   :  { %17356 = vmatprep.mubr.msk.bf16.mxu0 %vm19653_vm1, %v19652_v5 }
 0x555   :  { %v1358_v16 = vpop.f32.mrb[36].mxu1 }
 0x556   :  { %v17244_v19 = vpop.f32.mrb[37].mxu1 }
 0x557   :  { %v1361_v20 = vpop.f32.mrb[38].mxu1 }
 0x558   :  { %v17245_v21 = vpop.f32.mrb[39].mxu1 }
 0x565   :  { %v1312_v22 = vpop.f32.mrb[44].mxu0 }
 0x566   :  { %v1456_v23 = vadd.f32 %v1358_v16, %v1312_v22  ;;  %v17238_v24 = vpop.f32.mrb[45].mxu0 }
 0x567   :  { %v1315_v25 = vpop.f32.mrb[46].mxu0 }
 0x568   :  { %v17239_v26 = vpop.f32.mrb[47].mxu0 }
 0x569   :  { %v1450_v27 = vpop.f32.mrb[40].mxu1 }
 0x56a   :  { %v17256_v28 = vpop.f32.mrb[41].mxu1 }
 0x56b   :  { %v1453_v29 = vpop.f32.mrb[42].mxu1 }
 0x56c   :  { %v17257_v30 = vpop.f32.mrb[43].mxu1 }
 0x56d   :  { %v1404_v31 = vpop.f32.mrb[48].mxu0 }
 0x56e   :  { %v1457_v32 = vadd.f32 %v1456_v23, %v1404_v31  ;;  %v17250_v33 = vpop.f32.mrb[49].mxu0 }
 0x56f   :  { %v1407_v34 = vpop.f32.mrb[50].mxu0 }
 0x570   :  { %v20263_v35 = vadd.f32 %v1457_v32, %v1450_v27  ;;  %v17251_v57 = vpop.f32.mrb[51].mxu0 }
 0x571   :  { %v1537_v58 = vpop.f32.mrb[44].mxu1 }
 0x572   :  { %v17272_v59 = vpop.f32.mrb[45].mxu1  ;;  %v1944_v21 = vpack.c.bf16 %v1537_v58, %v1537_v58 }
 0x573   :  { %v1540_v61 = vpop.f32.mrb[46].mxu1 }
 0x574   :  { %v17273_v4 = vpop.f32.mrb[47].mxu1 }
 0x575   :  { %v1497_v7 = vpop.f32.mrb[52].mxu0 }
 0x576   :  { %v17264_v8 = vpop.f32.mrb[53].mxu0  ;;  %v1943_v28 = vpack.c.bf16 %v1497_v7, %v1497_v7 }
 0x577   :  { %v1500_v38 = vpop.f32.mrb[54].mxu0 }
 0x578   :  { %v17265_v9 = vpop.f32.mrb[55].mxu0 }
 0x579   :  { %v1617_v10 = vpop.f32.mrb[48].mxu1 }
 0x57a   :  { %v17288_v11 = vpop.f32.mrb[49].mxu1  ;;  %v1946_v57 = vpack.c.bf16 %v1617_v10, %v1617_v10 }
 0x57b   :  { %v1620_v13 = vpop.f32.mrb[50].mxu1 }
 0x57c   :  { %v17289_v17 = vpop.f32.mrb[51].mxu1 }
 0x57d   :  { %v1577_v41 = vpop.f32.mrb[56].mxu0 }
 0x57e   :  { %v17280_v42 = vpop.f32.mrb[57].mxu0  ;;  %v1945_v38 = vpack.c.bf16 %v1577_v41, %v1577_v41 }
 0x57f   :  { %v1580_v55 = vpop.f32.mrb[58].mxu0 }
 0x580   :  { %v17281_v44 = vpop.f32.mrb[59].mxu0 }
 0x581   :  { %v1697_v46 = vpop.f32.mrb[52].mxu1 }
 0x582   :  { %v1948_v43 = vpack.c.bf16 %v1697_v46, %v1697_v46  ;;  %v17304_v36 = vpop.f32.mrb[53].mxu1 }
 0x583   :  { %v1700_v50 = vpop.f32.mrb[54].mxu1 }
 0x584   :  { %v17305_v51 = vpop.f32.mrb[55].mxu1  ;;  %v2001_v52 = vsel %vm846_vm2, %v1948_v43, 0 }
 0x585   :  { %v1657_v12 = vpop.f32.mrb[60].mxu0  ;;  %17361 = vmatpush3.bf16.xpose.msra.mxu1 %v2001_v52  ;;  %v110_v51 = vsub.s32 1, %v20025_v60 }
 0x586   :  { %v1947_v15 = vpack.c.bf16 %v1657_v12, %v1657_v12  ;;  %v17296_v53 = vpop.f32.mrb[61].mxu0  ;;  %17372 = vmatprep.subr.bf16.mxu1 %v19652_v5 }
 0x587   :  { %v1660_v18 = vpop.f32.mrb[62].mxu0  ;;  %v20297_v52 = vrot.slane %v20027_v62, %v110_v51 }
 0x588   :  { %v17297_v16 = vpop.f32.mrb[63].mxu0  ;;  %v1955_v19 = vsel %vm846_vm2, %v1947_v15, 0 }
 0x589   :  { %v1777_v20 = vpop.f32.mrb[56].mxu1  ;;  %17355 = vmatpush3.bf16.xpose.msra.mxu0 %v1955_v19  ;;  %v20301_v12 = vadd.f32 %v20297_v52, %v20038_v1  ;;  %v20306_v16 = vadd.f32 %v20297_v52, %v20049_v14  ;;  %v20312_v1 = vadd.f32 %v20297_v52, %v20054_v37 }
 0x58a   :  { %v1950_v22 = vpack.c.bf16 %v1777_v20, %v1777_v20  ;;  %v17320_v23 = vpop.f32.mrb[57].mxu1  ;;  %17366 = vmatprep.subr.bf16.mxu0 %v19652_v5 }
 0x58b   :  { %v1780_v24 = vpop.f32.mrb[58].mxu1 }
 0x58c   :  { %v17321_v25 = vpop.f32.mrb[59].mxu1  ;;  %17363 = vmatmul.mubr.msk.bf16.vlgmr.msra.gmra.mrb[68].mxu1 %vm846_vm2, %v1944_v21  ;;  %v2093_v26 = vsel %vm846_vm2, %v1950_v22, 0 }
 0x58d   :  { %v1737_v27 = vpop.f32.mrb[64].mxu0  ;;  %17373 = vmatpush3.bf16.xpose.msra.mxu1 %v2093_v26  ;;  %17374 = vmatprep.mubr.msk.bf16.mxu1 %vm19653_vm1, %v19652_v5 }
 0x58e   :  { %v1949_v29 = vpack.c.bf16 %v1737_v27, %v1737_v27  ;;  %v17312_v30 = vpop.f32.mrb[65].mxu0  ;;  %17384 = vmatprep.subr.bf16.mxu1 %v19652_v5 }
 0x58f   :  { %v1740_v31 = vpop.f32.mrb[66].mxu0 }
 0x590   :  { %v17313_v32 = vpop.f32.mrb[67].mxu0  ;;  %17357 = vmatmul.mubr.msk.bf16.vlgmr.msra.gmra.mrb[76].mxu0 %vm846_vm2, %v1943_v28  ;;  %v2047_v33 = vsel %vm846_vm2, %v1949_v29, 0  ;;  %v20318_v29 = vadd.f32 %v20297_v52, %v20068_v45 }
 0x591   :  { %v1857_v34 = vpop.f32.mrb[60].mxu1  ;;  %17367 = vmatpush3.bf16.xpose.msra.mxu0 %v2047_v33  ;;  %17368 = vmatprep.mubr.msk.bf16.mxu0 %vm19653_vm1, %v19652_v5 }
 0x592   :  { %v2184_v58 = vpack.c.bf16 %v1857_v34, %v1857_v34  ;;  %v17336_v59 = vpop.f32.mrb[61].mxu1  ;;  %17378 = vmatprep.subr.bf16.mxu0 %v19652_v5 }
 0x593   :  { %v1860_v61 = vpop.f32.mrb[62].mxu1 }
 0x594   :  { %v17337_v4 = vpop.f32.mrb[63].mxu1  ;;  %17375 = vmatmul.mubr.msk.bf16.vlgmr.msra.gmra.mrb[72].mxu1 %vm846_vm2, %v1946_v57  ;;  %v2237_v7 = vsel %vm1086_vm3, %v2184_v58, 0 }
 0x595   :  { %v1817_v8 = vpop.f32.mrb[68].mxu0  ;;  %17385 = vmatpush3.bf16.msra.mxu1 %v2237_v7  ;;  %17386 = vmatprep.mubr.msk.bf16.mxu1 %vm19653_vm1, %v19652_v5 }
 0x596   :  { %v2183_v9 = vpack.c.bf16 %v1817_v8, %v1817_v8  ;;  %v17328_v11 = vpop.f32.mrb[69].mxu0  ;;  %17396 = vmatprep.subr.bf16.mxu1 %v19652_v5 }
 0x597   :  { %v1820_v10 = vpop.f32.mrb[70].mxu0 }
 0x598   :  { %v17329_v13 = vpop.f32.mrb[71].mxu0  ;;  %17369 = vmatmul.mubr.msk.bf16.vlgmr.msra.gmra.mrb[80].mxu0 %vm846_vm2, %v1945_v38  ;;  %v2191_v17 = vsel %vm1086_vm3, %v2183_v9, 0 }
 0x599   :  { %v20286_v42 = vpop.f32.mrb[64].mxu1  ;;  %17379 = vmatpush3.bf16.msra.mxu0 %v2191_v17  ;;  %17380 = vmatprep.mubr.msk.bf16.mxu0 %vm19653_vm1, %v19652_v5 }
 0x59a   :  { %v17352_v55 = vpop.f32.mrb[65].mxu1  ;;  %17390 = vmatprep.subr.bf16.mxu0 %v19652_v5 }
 0x59b   :  { %v1940_v41 = vpop.f32.mrb[66].mxu1 }
 0x59c   :  { %v17353_v44 = vpop.f32.mrb[67].mxu1 }
 0x59d   :  { %v20291_v46 = vpop.f32.mrb[72].mxu0 }
 0x59e   :  { %v17344_v43 = vpop.f32.mrb[73].mxu0 }
 0x59f   :  { %v1900_v36 = vpop.f32.mrb[74].mxu0 }
 0x5a0   :  { %v17345_v50 = vpop.f32.mrb[75].mxu0 }
 0x65f   :  { %v2037_v15 = vpop.f32.mrb[68].mxu1 }
 0x660   :  { %v17364_v53 = vpop.f32.mrb[69].mxu1  ;;  %v2038_v18 = vadd.f32 %v2037_v15, %v20301_v12 }
 0x661   :  { %v2040_v19 = vpop.f32.mrb[70].mxu1  ;;  %v19637_v53 = vld [vmem:[%s23372_s26] sm:$0xff] }
 0x662   :  { %v17365_v20 = vpop.f32.mrb[71].mxu1  ;;  %v2138_v21 = vsel %vm846_vm2, %v2038_v18, -inf }
 0x663   :  { %v1991_v22 = vpop.f32.mrb[76].mxu0  ;;  %2139 = vmax.xlane.f32.xlu1 %v2138_v21 }
 0x664   :  { %v17358_v62 = vpop.f32.mrb[77].mxu0  ;;  %v1992_v23 = vadd.f32 %v1991_v22, %v20306_v16 }
 0x665   :  { %v1994_v24 = vpop.f32.mrb[78].mxu0 }
 0x666   :  { %v17359_v25 = vpop.f32.mrb[79].mxu0  ;;  %v2135_v26 = vsel %vm846_vm2, %v1992_v23, -inf }
 0x667   :  { %2136 = vmax.xlane.f32.xlu0 %v2135_v26  ;;  %v2129_v14 = vpop.f32.mrb[72].mxu1 }
 0x668   :  { %v17376_v27 = vpop.f32.mrb[73].mxu1  ;;  %v2130_v28 = vadd.f32 %v2129_v14, %v20312_v1 }
 0x669   :  { %v2132_v30 = vpop.f32.mrb[74].mxu1 }
 0x66a   :  { %v17377_v31 = vpop.f32.mrb[75].mxu1  ;;  %v2144_v32 = vsel %vm846_vm2, %v2130_v28, -inf  ;;  %v2185_v30 = vpack.c.bf16 %v20291_v46, %v20291_v46 }
 0x66b   :  { %v2083_v33 = vpop.f32.mrb[80].mxu0  ;;  %2145 = vmax.xlane.f32.xlu1 %v2144_v32 }
 0x66c   :  { %v17370_v37 = vpop.f32.mrb[81].mxu0  ;;  %v2084_v34 = vadd.f32 %v2083_v33, %v20318_v29 }
 0x66d   :  { %v2086_v57 = vpop.f32.mrb[82].mxu0  ;;  %v2283_v37 = vsel %vm1086_vm3, %v2185_v30, 0 }
 0x66e   :  { %v17371_v58 = vpop.f32.mrb[83].mxu0  ;;  %v2141_v59 = vsel %vm846_vm2, %v2084_v34, -inf }
 0x66f   :  { %2142 = vmax.xlane.f32.xlu0 %v2141_v59 }
 0x6f0   :  { %v2140_v61 = vpop.xlane.xlu1 %2139 }
 0x6f1   :  { %v2148_v4 = vsub.f32 %v2038_v18, %v2140_v61  ;;  %v20330_v18 = vadd.f32 %v19637_v53, %v20263_v35  ;;  %v2186_v35 = vpack.c.bf16 %v20286_v42, %v20286_v42 }
 0x6f3   :  { %v2153_v7 = vmul.f32 1.442695, %v2148_v4  ;;  %v2554_v21 = vmul.f32 %v20330_v18, %v20330_v18  ;;  %v2329_v31 = vsel %vm1086_vm3, %v2186_v35, 0 }
 0x6f4   :  { %v2137_v8 = vpop.xlane.xlu0 %2136 }
 0x6f5   :  { %19403 = vpow2.f32 %v2153_v7  ;;  %v2147_v45 = vsub.f32 %v1992_v23, %v2137_v8  ;;  %v2556_v22 = vsel %vm132_vm0, %v2554_v21, 0.0 }
 0x6f7   :  { %v2151_v38 = vmul.f32 1.442695, %v2147_v45 }
 0x6f8   :  { %v2146_v9 = vpop.xlane.xlu1 %2145 }
 0x6f9   :  { %19405 = vpow2.f32 %v2151_v38  ;;  %v2150_v11 = vsub.f32 %v2130_v28, %v2146_v9 }
 0x6fb   :  { %v2157_v10 = vmul.f32 1.442695, %v2150_v11 }
 0x6fc   :  { %v2143_v13 = vpop.xlane.xlu0 %2142 }
 0x6fd   :  { %19407 = vpow2.f32 %v2157_v10  ;;  %v2149_v17 = vsub.f32 %v2084_v34, %v2143_v13 }
 0x6ff   :  { %v19404_v55 = vpop.eup %19403  ;;  %v2155_v41 = vmul.f32 1.442695, %v2149_v17 }
 0x700   :  { %v2162_v44 = vsel %vm846_vm2, %v19404_v55, 0.0 }
 0x701   :  { %19409 = vpow2.f32 %v2155_v41  ;;  %2163 = vadd.xlane.f32.xlu1 %v2162_v44 }
 0x703   :  { %v19406_v43 = vpop.eup %19405 }
 0x704   :  { %v2159_v36 = vsel %vm846_vm2, %v19406_v43, 0.0 }
 0x705   :  { %2160 = vadd.xlane.f32.xlu0 %v2159_v36 }
 0x707   :  { %v19408_v50 = vpop.eup %19407 }
 0x708   :  { %v2168_v15 = vsel %vm846_vm2, %v19408_v50, 0.0 }
 0x709   :  { %2169 = vadd.xlane.f32.xlu1 %v2168_v15 }
 0x70b   :  { %v19410_v19 = vpop.eup %19409 }
 0x70c   :  { %v2165_v20 = vsel %vm846_vm2, %v19410_v19, 0.0 }
 0x70d   :  { %2166 = vadd.xlane.f32.xlu0 %v2165_v20 }
 0x711   :  { %2557 = vadd.xlane.f32.xlu0 %v2556_v22 }
 0x78e   :  { %v2164_v62 = vpop.xlane.xlu1 %2163 }
 0x78f   :  { %19411 = vrcp.f32 %v2164_v62 }
 0x792   :  { %v2161_v23 = vpop.xlane.xlu0 %2160 }
 0x793   :  { %19413 = vrcp.f32 %v2161_v23 }
 0x796   :  { %v2170_v24 = vpop.xlane.xlu1 %2169 }
 0x797   :  { %19415 = vrcp.f32 %v2170_v24 }
 0x799   :  { %v19412_v25 = vpop.eup %19411 }
 0x79a   :  { %v2167_v26 = vpop.xlane.xlu0 %2166  ;;  %v2176_v14 = vmul.f32 %v19412_v25, %v19404_v55 }
 0x79b   :  { %19417 = vrcp.f32 %v2167_v26 }
 0x79c   :  { %v2180_v27 = vpack.c.bf16 %v2176_v14, %v2176_v14 }
 0x79d   :  { %v19414_v28 = vpop.eup %19413 }
 0x79e   :  { %17387 = vmatmul.mubr.msk.bf16.vlgmr.msra.gmra.mrb[76].mxu1 %vm846_vm2, %v2180_v27  ;;  %v2175_v32 = vmul.f32 %v19414_v28, %v19406_v43 }
 0x79f   :  { %17397 = vmatpush3.bf16.msra.mxu1 %v2329_v31  ;;  %17398 = vmatprep.mubr.msk.bf16.mxu1 %vm19653_vm1, %v19652_v5 }
 0x7a0   :  { %v2179_v33 = vpack.c.bf16 %v2175_v32, %v2175_v32  ;;  %17408 = vmatprep.subr.bf16.mxu1 %v19652_v5 }
 0x7a1   :  { %v19416_v42 = vpop.eup %19415 }
 0x7a2   :  { %17381 = vmatmul.mubr.msk.bf16.vlgmr.msra.gmra.mrb[84].mxu0 %vm846_vm2, %v2179_v33  ;;  %v2178_v34 = vmul.f32 %v19416_v42, %v19408_v50 }
 0x7a3   :  { %17391 = vmatpush3.bf16.msra.mxu0 %v2283_v37  ;;  %17392 = vmatprep.mubr.msk.bf16.mxu0 %vm19653_vm1, %v19652_v5 }
 0x7a4   :  { %v2182_v46 = vpack.c.bf16 %v2178_v34, %v2178_v34  ;;  %17402 = vmatprep.subr.bf16.mxu0 %v19652_v5  ;;  %v19235_v34 = vld [vmem:[%s23351_s11] sm:$0xff]  }
 0x7a5   :  { %v19418_v57 = vpop.eup %19417 }
 0x7a6   :  { %17399 = vmatmul.mubr.msk.bf16.vlgmr.msra.gmra.mrb[80].mxu1 %vm846_vm2, %v2182_v46  ;;  %v2177_v58 = vmul.f32 %v19418_v57, %v19410_v19  ;;  %v19236_v46 = vld [vmem:[%s23351_s11 + $0x8] sm:$0xff]  }
 0x7a7   :  { %17409 = vmatpush3.bf16.msra.mxu1 %v20115_v6  ;;  %17410 = vmatprep.mubr.msk.bf16.mxu1 %vm19653_vm1, %v19652_v5  ;;  %v19238_v57 = vld [vmem:[%s23352_s12 + $0x8] sm:$0xff]  }
 0x7a8   :  { %v2181_v59 = vpack.c.bf16 %v2177_v58, %v2177_v58  ;;  %17420 = vmatprep.subr.bf16.mxu1 %v19652_v5  ;;  %v2558_v58 = vpop.xlane.xlu0 %2557 }
 0x7aa   :  { %17393 = vmatmul.mubr.msk.bf16.vlgmr.msra.gmra.mrb[88].mxu0 %vm846_vm2, %v2181_v59  ;;  %v2562_v59 = vmul.f32 0.03125, %v2558_v58  ;;  %v20517_v58 = vld [vmem:[%s23349_s9 + $0xf8] sm:$0xff]  }
 0x7ab   :  { %17403 = vmatpush3.bf16.msra.mxu0 %v20123_v47  ;;  %17404 = vmatprep.mubr.msk.bf16.mxu0 %vm19653_vm1, %v19652_v5 }
 0x7ac   :  { %17414 = vmatprep.subr.bf16.mxu0 %v19652_v5 }
 0x871   :  { %v2273_v61 = vpop.f32.mrb[76].mxu1 }
 0x872   :  { %v2372_v4 = vpack.c.bf16 %v2273_v61, %v2273_v61  ;;  %v17388_v7 = vpop.f32.mrb[77].mxu1  ;;  %v2564_v61 = vadd.f32 1e-06, %v2562_v59  ;;  %v20522_v59 = vld [vmem:[%s23349_s9 + $0x128] sm:$0xff]  }
 0x873   :  { %v2276_v8 = vpop.f32.mrb[78].mxu1 }
 0x874   :  { %v17389_v6 = vpop.f32.mrb[79].mxu1  ;;  %17411 = vmatmul.mubr.msk.bf16.vlgmr.msra.gmra.mrb[84].mxu1 %vm846_vm2, %v2372_v4  ;;  %19419 = vrsqrt.f32 %v2564_v61  ;;  %v20535_v61 = vld [vmem:[%s23349_s9 + $0x110] sm:$0xff]  }
 0x875   :  { %v2227_v45 = vpop.f32.mrb[84].mxu0  ;;  %17421 = vmatpush3.bf16.msra.mxu1 %v20131_v56  ;;  %17422 = vmatprep.mubr.msk.bf16.mxu1 %vm19653_vm1, %v19652_v5 }
 0x876   :  { %v2371_v38 = vpack.c.bf16 %v2227_v45, %v2227_v45  ;;  %v17382_v47 = vpop.f32.mrb[85].mxu0  ;;  %17434 = vmatprep.subr.bf16.mxu1 %v19652_v5 }
 0x877   :  { %v2230_v9 = vpop.f32.mrb[86].mxu0  ;;  %v15686_v47 = vld [vmem:[%s23348_s8 + $0x1] ss:$0 sm:$0xff] }
 0x878   :  { %v17383_v11 = vpop.f32.mrb[87].mxu0  ;;  %17405 = vmatmul.mubr.msk.bf16.vlgmr.msra.gmra.mrb[92].mxu0 %vm846_vm2, %v2371_v38 }
 0x879   :  { %v2365_v10 = vpop.f32.mrb[80].mxu1  ;;  %17415 = vmatpush3.bf16.msra.mxu0 %v20142_v3  ;;  %17416 = vmatprep.mubr.msk.bf16.mxu0 %vm19653_vm1, %v19652_v5 }
 0x87a   :  { %v2374_v13 = vpack.c.bf16 %v2365_v10, %v2365_v10  ;;  %v17400_v17 = vpop.f32.mrb[81].mxu1  ;;  %17426 = vmatprep.subr.bf16.mxu0 %v19652_v5 }
 0x87b   :  { %v2368_v56 = vpop.f32.mrb[82].mxu1  ;;  %v19239_v17 = vld [vmem:[%s23352_s12 + $0x10] sm:$0xff]  }
 0x87c   :  { %v17401_v55 = vpop.f32.mrb[83].mxu1  ;;  %17423 = vmatmul.mubr.msk.bf16.vlgmr.msra.gmra.mrb[88].mxu1 %vm846_vm2, %v2374_v13  ;;  %v19240_v56 = vld [vmem:[%s23352_s12 + $0x18] sm:$0xff]  }
 0x87d   :  { %v2319_v41 = vpop.f32.mrb[88].mxu0  ;;  %17442 = vmatprep.mubr.msk.bf16.mxu1 %vm19653_vm1, %v19652_v5 }
 0x87e   :  { %v2373_v44 = vpack.c.bf16 %v2319_v41, %v2319_v41  ;;  %v17394_v43 = vpop.f32.mrb[89].mxu0  ;;  %v19420_v6 = vpop.eup %19419 }
 0x87f   :  { %v2322_v36 = vpop.f32.mrb[90].mxu0  ;;  %v2568_v45 = vmul.f32 %v19420_v6, %v20330_v18  ;;  %v20571_v6 = vld [vmem:[%s23349_s9 + $0x130] sm:$0xff]  }
 0x880   :  { %v17395_v50 = vpop.f32.mrb[91].mxu0  ;;  %17417 = vmatmul.mubr.msk.bf16.vlgmr.msra.gmra.mrb[96].mxu0 %vm846_vm2, %v2373_v44 }
 0x881   :  { %17430 = vmatprep.mubr.msk.bf16.mxu0 %vm19653_vm1, %v19652_v5  ;;  %17427 = vmatpush3.bf16.msra.mxu0 %v19235_v34  ;;  %v2576_v11 = vmul.f32 %v15686_v47, %v2568_v45  ;;  %v20481_v34 = vld [vmem:[%s23349_s9 + $0xd8] sm:$0xff]   ;;  %v20576_v45 = vld [vmem:[%s23349_s9 + $0x160] sm:$0xff]  }
 0x882   :  { %17428 = vmatprep.subr.bf16.mxu0 %v19652_v5 }
 0x885   :  { %17429 = vmatpush3.bf16.msra.mxu0 %v19236_v46  ;;  %v20486_v46 = vld [vmem:[%s23349_s9 + $0x108] sm:$0xff]  }
 0x886   :  { %17446 = vmatprep.subr.bf16.mxu0 %v19652_v5 }
 0x947   :  { %v2455_v3 = vpop.f32.mrb[84].mxu1 }
 0x948   :  { %v17412_v15 = vpop.f32.mrb[85].mxu1 }
 0x949   :  { %v2458_v53 = vpop.f32.mrb[86].mxu1 }
 0x94a   :  { %v17413_v19 = vpop.f32.mrb[87].mxu1 }
 0x94b   :  { %v2412_v20 = vpop.f32.mrb[92].mxu0 }
 0x94c   :  { %v2547_v21 = vadd.f32 %v2455_v3, %v2412_v20  ;;  %v17406_v22 = vpop.f32.mrb[93].mxu0 }
 0x94d   :  { %v2415_v62 = vpop.f32.mrb[94].mxu0 }
 0x94e   :  { %v17407_v23 = vpop.f32.mrb[95].mxu0 }
 0x94f   :  { %v2541_v24 = vpop.f32.mrb[88].mxu1  ;;  %v20428_v23 = vld [vmem:[%s23349_s9 + $0xc0] sm:$0xff]  }
 0x950   :  { %v17424_v25 = vpop.f32.mrb[89].mxu1 }
 0x951   :  { %v2544_v35 = vpop.f32.mrb[90].mxu1  ;;  %v20447_v25 = vld [vmem:[%s23349_s9 + $0xe8] sm:$0xff]  }
 0x952   :  { %v17425_v26 = vpop.f32.mrb[91].mxu1 }
 0x953   :  { %v2498_v14 = vpop.f32.mrb[96].mxu0 }
 0x954   :  { %v2548_v27 = vadd.f32 %v2547_v21, %v2498_v14  ;;  %v17418_v28 = vpop.f32.mrb[97].mxu0 }
 0x955   :  { %v2501_v30 = vpop.f32.mrb[98].mxu0  ;;  %v20456_v28 = vld [vmem:[%s23348_s8 + $0x2] ss:$0 sm:$0xff] }
 0x956   :  { %v2549_v31 = vadd.f32 %v2548_v27, %v2541_v24  ;;  %v17419_v32 = vpop.f32.mrb[99].mxu0  ;;  %v20442_v24 = vld [vmem:[%s23349_s9 + $0xc8] sm:$0xff]  }
 0x957   :  { %v20463_v32 = vld [vmem:[%s23349_s9 + $0xd0] sm:$0xff]  }
 0x958   :  { %v20377_v33 = vadd.f32 %v2549_v31, %v20086_v48  ;;  %v19237_v48 = vld [vmem:[%s23352_s12] sm:$0xff]  }
 0x959   :  { %17435 = vmatpush3.bf16.msra.mxu1 %v19237_v48  ;;  %v20499_v48 = vld [vmem:[%s23349_s9 + $0xf0] sm:$0xff]  }
 0x95a   :  { %v2555_v42 = vmul.f32 %v20377_v33, %v20377_v33  ;;  %17436 = vmatprep.subr.bf16.mxu1 %v19652_v5 }
 0x95c   :  { %v2559_v37 = vsel %vm132_vm0, %v2555_v42, 0.0  ;;  %v20468_v42 = vld [vmem:[%s23349_s9 + $0x100] sm:$0xff]  }
 0x95d   :  { %2560 = vadd.xlane.f32.xlu1 %v2559_v37  ;;  %17437 = vmatpush3.bf16.msra.mxu1 %v19238_v57  ;;  %v20504_v57 = vld [vmem:[%s23349_s9 + $0x120] sm:$0xff]  }
 0x95e   :  { %17438 = vmatprep.subr.bf16.mxu1 %v19652_v5 }
 0x961   :  { %17439 = vmatpush3.bf16.msra.mxu1 %v19239_v17 }
 0x962   :  { %17440 = vmatprep.subr.bf16.mxu1 %v19652_v5 }
 0x965   :  { %17441 = vmatpush3.bf16.msra.mxu1 %v19240_v56 }
 0x966   :  { %17462 = vmatprep.subr.bf16.mxu1 %v19652_v5 }
 0x9ea   :  { %v2561_v4 = vpop.xlane.xlu1 %2560 }
 0x9eb   :  { %v2563_v7 = vmul.f32 0.03125, %v2561_v4  ;;  %v20540_v4 = vld [vmem:[%s23349_s9 + $0x140] sm:$0xff]  }
 0x9ed   :  { %v2565_v8 = vadd.f32 1e-06, %v2563_v7  ;;  %v20553_v7 = vld [vmem:[%s23349_s9 + $0x118] sm:$0xff]  }
 0x9ef   :  { %19421 = vrsqrt.f32 %v2565_v8  ;;  %v20558_v8 = vld [vmem:[%s23349_s9 + $0x148] sm:$0xff]  }
 0x9f9   :  { %v19422_v38 = vpop.eup %19421 }
 0x9fa   :  { %v2569_v9 = vmul.f32 %v19422_v38, %v20377_v33  ;;  %v20589_v38 = vld [vmem:[%s23349_s9 + $0x138] sm:$0xff]  }
 0x9fc   :  { %v2577_v10 = vmul.f32 %v15686_v47, %v2569_v9  ;;  %v20594_v47 = vld [vmem:[%s23349_s9 + $0x168] sm:$0xff]   ;;  %v20607_v9 = vld [vmem:[%s23349_s9 + $0x150] sm:$0xff]  }
 0x9fe   :  { %v2582_v13 = vpack.c.bf16 %v2577_v10, %v2576_v11  ;;  %v20619_v11 = vld [vmem:[%s23349_s9 + $0x158] sm:$0xff]   ;;  %v20630_v10 = vld [vmem:[%s23349_s9 + $0x170] sm:$0xff]  }
 0xa00   :  { %17431 = vmatmul.mubr.msk.bf16.vlgmr.msra.gmra.mrb[100].mxu0 %vm132_vm0, %v2582_v13  ;;  %v20639_v13 = vld [vmem:[%s23349_s9 + $0x178] sm:$0xff]  }
 0xa01   :  { %17450 = vmatprep.mubr.msk.bf16.mxu0 %vm19653_vm1, %v19652_v5  ;;  %17447 = vmatpush3.bf16.msra.mxu0 %v20428_v23 }
 0xa02   :  { %17448 = vmatprep.subr.bf16.mxu0 %v19652_v5 }
 0xa05   :  { %17449 = vmatpush3.bf16.msra.mxu0 %v20442_v24 }
 0xa06   :  { %17454 = vmatprep.subr.bf16.mxu0 %v19652_v5 }
 0xad3   :  { %v2632_v55 = vpop.f32.mrb[100].mxu0 }
 0xad4   :  { %v17432_v41 = vpop.f32.mrb[101].mxu0  ;;  %v2639_v43 = vmax.f32 %v2632_v55, 0.0 }
 0xad5   :  { %v2635_v44 = vpop.f32.mrb[102].mxu0 }
 0xad6   :  { %v2640_v36 = vmax.f32 %v2635_v44, 0.0  ;;  %v17433_v50 = vpop.f32.mrb[103].mxu0 }
 0xad8   :  { %v2649_v3 = vpack.c.bf16 %v2640_v36, %v2639_v43 }
 0xada   :  { %17443 = vmatmul.mubr.msk.bf16.vlgmr.msra.gmra.mrb[92].mxu1 %vm2674_vm4, %v2649_v3 }
 0xadb   :  { %17466 = vmatprep.mubr.msk.bf16.mxu1 %vm19653_vm1, %v19652_v5 }
 0xbad   :  { %v2712_v15 = vpop.f32.mrb[92].mxu1 }
 0xbae   :  { %v20418_v53 = vadd.f32 %v2712_v15, %v20330_v18  ;;  %v17444_v19 = vpop.f32.mrb[93].mxu1  ;;  %v20433_v18 = vld [vmem:[%s23349_s9 + $0xe0] sm:$0xff]  }
 0xbaf   :  { %v20420_v20 = vpop.f32.mrb[94].mxu1  ;;  %17463 = vmatpush3.bf16.msra.mxu1 %v20433_v18 }
 0xbb0   :  { %v17445_v21 = vpop.f32.mrb[95].mxu1  ;;  %v2723_v22 = vmul.f32 %v20418_v53, %v20418_v53  ;;  %17464 = vmatprep.subr.bf16.mxu1 %v19652_v5 }
 0xbb2   :  { %v2725_v62 = vsel %vm132_vm0, %v2723_v22, 0.0 }
 0xbb3   :  { %2726 = vadd.xlane.f32.xlu0 %v2725_v62  ;;  %17465 = vmatpush3.bf16.msra.mxu1 %v20447_v25 }
 0xbb4   :  { %17478 = vmatprep.subr.bf16.mxu1 %v19652_v5 }
 0xc40   :  { %v2727_v35 = vpop.xlane.xlu0 %2726 }
 0xc41   :  { %v2731_v26 = vmul.f32 0.03125, %v2727_v35 }
 0xc43   :  { %v2733_v14 = vadd.f32 1e-06, %v2731_v26 }
 0xc45   :  { %19423 = vrsqrt.f32 %v2733_v14 }
 0xc4f   :  { %v19424_v27 = vpop.eup %19423 }
 0xc50   :  { %v2737_v30 = vmul.f32 %v19424_v27, %v20418_v53 }
 0xc52   :  { %v2745_v31 = vmul.f32 %v20456_v28, %v2737_v30 }
 0xc54   :  { %v20470_v37 = vpack.c.bf16 %v2745_v31, %v2745_v31 }
 0xc56   :  { %17451 = vmatmul.mubr.msk.bf16.vlgmr.msra.gmra.mrb[104].mxu0 %vm132_vm0, %v20470_v37  ;;  %17467 = vmatmul.mubr.msk.bf16.vlgmr.msra.gmra.mrb[96].mxu1 %vm132_vm0, %v20470_v37 }
 0xc57   :  { %17455 = vmatpush3.bf16.msra.mxu0 %v20463_v32  ;;  %17479 = vmatpush3.bf16.msra.mxu1 %v20468_v42 }
 0xc58   :  { %17456 = vmatprep.subr.bf16.mxu0 %v19652_v5  ;;  %17480 = vmatprep.subr.bf16.mxu1 %v19652_v5 }
 0xc59   :  { %17458 = vmatprep.mubr.msk.bf16.mxu0 %vm19653_vm1, %v19652_v5  ;;  %17482 = vmatprep.mubr.msk.bf16.mxu1 %vm19653_vm1, %v19652_v5 }
 0xc5b   :  { %17457 = vmatpush3.bf16.msra.mxu0 %v20481_v34  ;;  %17481 = vmatpush3.bf16.msra.mxu1 %v20486_v46 }
 0xc5c   :  { %17470 = vmatprep.subr.bf16.mxu0 %v19652_v5  ;;  %17494 = vmatprep.subr.bf16.mxu1 %v19652_v5 }
 0xc5e   :  { %17459 = vmatmul.mubr.msk.bf16.vlgmr.msra.gmra.mrb[108].mxu0 %vm132_vm0, %v20470_v37  ;;  %17483 = vmatmul.mubr.msk.bf16.vlgmr.msra.gmra.mrb[100].mxu1 %vm132_vm0, %v20470_v37 }
 0xc5f   :  { %17471 = vmatpush3.bf16.msra.mxu0 %v20499_v48  ;;  %17495 = vmatpush3.bf16.msra.mxu1 %v20504_v57 }
 0xc60   :  { %17472 = vmatprep.subr.bf16.mxu0 %v19652_v5  ;;  %17496 = vmatprep.subr.bf16.mxu1 %v19652_v5 }
 0xc61   :  { %17474 = vmatprep.mubr.msk.bf16.mxu0 %vm19653_vm1, %v19652_v5  ;;  %17498 = vmatprep.mubr.msk.bf16.mxu1 %vm19653_vm1, %v19652_v5 }
 0xc63   :  { %17473 = vmatpush3.bf16.msra.mxu0 %v20517_v58  ;;  %17497 = vmatpush3.bf16.msra.mxu1 %v20522_v59 }
 0xc64   :  { %17486 = vmatprep.subr.bf16.mxu0 %v19652_v5  ;;  %17510 = vmatprep.subr.bf16.mxu1 %v19652_v5 }
 0xc66   :  { %17475 = vmatmul.mubr.msk.bf16.vlgmr.msra.gmra.mrb[112].mxu0 %vm132_vm0, %v20470_v37  ;;  %17499 = vmatmul.mubr.msk.bf16.vlgmr.msra.gmra.mrb[104].mxu1 %vm132_vm0, %v20470_v37 }
 0xc67   :  { %17487 = vmatpush3.bf16.msra.mxu0 %v20535_v61  ;;  %17511 = vmatpush3.bf16.msra.mxu1 %v20540_v4 }
 0xc68   :  { %17488 = vmatprep.subr.bf16.mxu0 %v19652_v5  ;;  %17512 = vmatprep.subr.bf16.mxu1 %v19652_v5 }
 0xc69   :  { %17490 = vmatprep.mubr.msk.bf16.mxu0 %vm19653_vm1, %v19652_v5  ;;  %17514 = vmatprep.mubr.msk.bf16.mxu1 %vm19653_vm1, %v19652_v5 }
 0xc6b   :  { %17489 = vmatpush3.bf16.msra.mxu0 %v20553_v7  ;;  %17513 = vmatpush3.bf16.msra.mxu1 %v20558_v8 }
 0xc6c   :  { %17502 = vmatprep.subr.bf16.mxu0 %v19652_v5  ;;  %17526 = vmatprep.subr.bf16.mxu1 %v19652_v5 }
 0xc6e   :  { %17491 = vmatmul.mubr.msk.bf16.vlgmr.msra.gmra.mrb[116].mxu0 %vm132_vm0, %v20470_v37  ;;  %17515 = vmatmul.mubr.msk.bf16.vlgmr.msra.gmra.mrb[108].mxu1 %vm132_vm0, %v20470_v37 }
 0xc6f   :  { %17503 = vmatpush3.bf16.msra.mxu0 %v20571_v6  ;;  %17527 = vmatpush3.bf16.msra.mxu1 %v20576_v45 }
 0xc70   :  { %17504 = vmatprep.subr.bf16.mxu0 %v19652_v5  ;;  %17528 = vmatprep.subr.bf16.mxu1 %v19652_v5 }
 0xc71   :  { %17506 = vmatprep.mubr.msk.bf16.mxu0 %vm19653_vm1, %v19652_v5  ;;  %17530 = vmatprep.mubr.msk.bf16.mxu1 %vm19653_vm1, %v19652_v5 }
 0xc73   :  { %17505 = vmatpush3.bf16.msra.mxu0 %v20589_v38  ;;  %17529 = vmatpush3.bf16.msra.mxu1 %v20594_v47 }
 0xc74   :  { %17518 = vmatprep.subr.bf16.mxu0 %v19652_v5  ;;  %17542 = vmatprep.subr.bf16.mxu1 %v19652_v5 }
 0xc76   :  { %17507 = vmatmul.mubr.msk.bf16.vlgmr.msra.gmra.mrb[120].mxu0 %vm132_vm0, %v20470_v37  ;;  %17531 = vmatmul.mubr.msk.bf16.vlgmr.msra.gmra.mrb[112].mxu1 %vm132_vm0, %v20470_v37 }
 0xc77   :  { %17519 = vmatpush3.bf16.msra.mxu0 %v20607_v9  ;;  %17522 = vmatprep.mubr.msk.bf16.mxu0 %vm19653_vm1, %v19652_v5 }
 0xc78   :  { %17520 = vmatprep.subr.bf16.mxu0 %v19652_v5  ;;  %17544 = vmatprep.mubr.msk.bf16.mxu1 %vm19653_vm1, %v19652_v5 }
 0xc7b   :  { %17521 = vmatpush3.bf16.msra.mxu0 %v20619_v11 }
 0xc7c   :  { %17534 = vmatprep.subr.bf16.mxu0 %v19652_v5 }
 0xc7e   :  { %17523 = vmatmul.mubr.msk.bf16.vlgmr.msra.gmra.mrb[124].mxu0 %vm132_vm0, %v20470_v37 }
 0xc7f   :  { %17535 = vmatpush3.bf16.msra.mxu0 %v20630_v10  ;;  %17538 = vmatprep.mubr.msk.bf16.mxu0 %vm19653_vm1, %v19652_v5 }
 0xc80   :  { %17536 = vmatprep.subr.bf16.mxu0 %v19652_v5 }
 0xc83   :  { %17537 = vmatpush3.bf16.msra.mxu0 %v20639_v13 }
 0xc84   :  { %17548 = vmatprep.subr.bf16.mxu0 %v19652_v5 }
 0xc86   :  { %17539 = vmatmul.mubr.msk.bf16.vlgmr.msra.gmra.mrb[128].mxu0 %vm132_vm0, %v20470_v37 }
 0xc87   :  { %17550 = vmatprep.mubr.msk.bf16.mxu0 %vm19653_vm1, %v19652_v5 }
 0xd29   :  { %v2853_v17 = vpop.f32.mrb[104].mxu0  ;;  %v2957_v56 = vpop.f32.mrb[96].mxu1 }
 0xd2a   :  { %v17452_v55 = vpop.f32.mrb[105].mxu0  ;;  %v17468_v41 = vpop.f32.mrb[97].mxu1  ;;  %v3431_v37 = vpack.c.bf16 %v2853_v17, %v2853_v17  ;;  %v3433_v17 = vpack.c.bf16 %v2957_v56, %v2957_v56 }
 0xd2b   :  { %v2856_v44 = vpop.f32.mrb[106].mxu0  ;;  %v2960_v43 = vpop.f32.mrb[98].mxu1 }
 0xd2c   :  { %v17453_v36 = vpop.f32.mrb[107].mxu0  ;;  %v17469_v50 = vpop.f32.mrb[99].mxu1 }
 0xd31   :  { %v2905_v3 = vpop.f32.mrb[108].mxu0  ;;  %v3061_v15 = vpop.f32.mrb[100].mxu1 }
 0xd32   :  { %v3435_v19 = vpack.c.bf16 %v3061_v15, %v3061_v15  ;;  %v17460_v21 = vpop.f32.mrb[109].mxu0  ;;  %v17484_v22 = vpop.f32.mrb[101].mxu1 }
 0xd33   :  { %v2908_v62 = vpop.f32.mrb[110].mxu0  ;;  %v3064_v35 = vpop.f32.mrb[102].mxu1 }
 0xd34   :  { %v17461_v26 = vpop.f32.mrb[111].mxu0  ;;  %v17485_v14 = vpop.f32.mrb[103].mxu1  ;;  %v3443_v27 = vsel %vm846_vm2, %v3435_v19, 0 }
 0xd35   :  { %17543 = vmatpush3.bf16.xpose.msra.mxu1 %v3443_v27 }
 0xd36   :  { %17554 = vmatprep.subr.bf16.mxu1 %v19652_v5 }
 0xd39   :  { %v3009_v30 = vpop.f32.mrb[112].mxu0  ;;  %v3165_v31 = vpop.f32.mrb[104].mxu1 }
 0xd3a   :  { %v3437_v55 = vpack.c.bf16 %v3165_v31, %v3165_v31  ;;  %v17476_v41 = vpop.f32.mrb[113].mxu0  ;;  %v17500_v44 = vpop.f32.mrb[105].mxu1 }
 0xd3b   :  { %v3012_v43 = vpop.f32.mrb[114].mxu0  ;;  %v3168_v36 = vpop.f32.mrb[106].mxu1 }
 0xd3c   :  { %v17477_v50 = vpop.f32.mrb[115].mxu0  ;;  %v17501_v15 = vpop.f32.mrb[107].mxu1  ;;  %17545 = vmatmul.mubr.msk.bf16.vlgmr.msra.gmra.mrb[116].mxu1 %vm846_vm2, %v3431_v37  ;;  %v3535_v21 = vsel %vm846_vm2, %v3437_v55, 0  ;;  %v3432_v36 = vpack.c.bf16 %v2905_v3, %v2905_v3 }
 0xd3d   :  { %17555 = vmatpush3.bf16.xpose.msra.mxu1 %v3535_v21  ;;  %17556 = vmatprep.mubr.msk.bf16.mxu1 %vm19653_vm1, %v19652_v5 }
 0xd3e   :  { %17566 = vmatprep.subr.bf16.mxu1 %v19652_v5 }
 0xd41   :  { %v3113_v19 = vpop.f32.mrb[116].mxu0  ;;  %v3269_v22 = vpop.f32.mrb[108].mxu1 }
 0xd42   :  { %v3436_v62 = vpack.c.bf16 %v3113_v19, %v3113_v19  ;;  %v3671_v35 = vpack.c.bf16 %v3269_v22, %v3269_v22  ;;  %v17492_v26 = vpop.f32.mrb[117].mxu0  ;;  %v17516_v14 = vpop.f32.mrb[109].mxu1 }
 0xd43   :  { %v3116_v27 = vpop.f32.mrb[118].mxu0  ;;  %v3272_v31 = vpop.f32.mrb[110].mxu1  ;;  %v3434_v14 = vpack.c.bf16 %v3009_v30, %v3009_v30 }
 0xd44   :  { %v17493_v41 = vpop.f32.mrb[119].mxu0  ;;  %v17517_v44 = vpop.f32.mrb[111].mxu1  ;;  %17557 = vmatmul.mubr.msk.bf16.vlgmr.msra.gmra.mrb[120].mxu1 %vm846_vm2, %v3433_v17  ;;  %v3489_v37 = vsel %vm846_vm2, %v3436_v62, 0  ;;  %v3679_v55 = vsel %vm1086_vm3, %v3671_v35, 0 }
 0xd45   :  { %17549 = vmatpush3.bf16.xpose.msra.mxu0 %v3489_v37  ;;  %17567 = vmatpush3.bf16.msra.mxu1 %v3679_v55 }
 0xd46   :  { %17560 = vmatprep.subr.bf16.mxu0 %v19652_v5  ;;  %17568 = vmatprep.mubr.msk.bf16.mxu1 %vm19653_vm1, %v19652_v5 }
 0xd47   :  { %17578 = vmatprep.subr.bf16.mxu1 %v19652_v5 }
 0xd49   :  { %v3217_v56 = vpop.f32.mrb[120].mxu0  ;;  %v20664_v43 = vpop.f32.mrb[112].mxu1 }
 0xd4a   :  { %v3438_v50 = vpack.c.bf16 %v3217_v56, %v3217_v56  ;;  %v17508_v15 = vpop.f32.mrb[121].mxu0  ;;  %v17532_v21 = vpop.f32.mrb[113].mxu1 }
 0xd4b   :  { %v3220_v19 = vpop.f32.mrb[122].mxu0  ;;  %v3376_v22 = vpop.f32.mrb[114].mxu1 }
 0xd4c   :  { %v17509_v17 = vpop.f32.mrb[123].mxu0  ;;  %v17533_v62 = vpop.f32.mrb[115].mxu1  ;;  %17551 = vmatmul.mubr.msk.bf16.vlgmr.msra.gmra.mrb[132].mxu0 %vm846_vm2, %v3432_v36  ;;  %v3581_v35 = vsel %vm846_vm2, %v3438_v50, 0 }
 0xd4d   :  { %17561 = vmatpush3.bf16.xpose.msra.mxu0 %v3581_v35  ;;  %17562 = vmatprep.mubr.msk.bf16.mxu0 %vm19653_vm1, %v19652_v5 }
 0xd4e   :  { %17572 = vmatprep.subr.bf16.mxu0 %v19652_v5 }
 0xd51   :  { %v3321_v26 = vpop.f32.mrb[124].mxu0 }
 0xd52   :  { %v3672_v3 = vpack.c.bf16 %v3321_v26, %v3321_v26  ;;  %v17524_v27 = vpop.f32.mrb[125].mxu0 }
 0xd53   :  { %v3324_v31 = vpop.f32.mrb[126].mxu0 }
 0xd54   :  { %v17525_v41 = vpop.f32.mrb[127].mxu0  ;;  %17563 = vmatmul.mubr.msk.bf16.vlgmr.msra.gmra.mrb[136].mxu0 %vm846_vm2, %v3434_v14  ;;  %v3725_v44 = vsel %vm1086_vm3, %v3672_v3, 0 }
 0xd55   :  { %17573 = vmatpush3.bf16.msra.mxu0 %v3725_v44  ;;  %17574 = vmatprep.mubr.msk.bf16.mxu0 %vm19653_vm1, %v19652_v5 }
 0xd56   :  { %17584 = vmatprep.subr.bf16.mxu0 %v19652_v5 }
 0xd59   :  { %v20676_v37 = vpop.f32.mrb[128].mxu0 }
 0xd5a   :  { %v17540_v55 = vpop.f32.mrb[129].mxu0 }
 0xd5b   :  { %v3428_v56 = vpop.f32.mrb[130].mxu0 }
 0xd5c   :  { %v17541_v36 = vpop.f32.mrb[131].mxu0 }
 0xe0f   :  { %v3479_v30 = vpop.f32.mrb[116].mxu1 }
 0xe10   :  { %v17546_v50 = vpop.f32.mrb[117].mxu1  ;;  %v3480_v15 = vadd.f32 %v3479_v30, %v20058_v39 }
 0xe11   :  { %v3482_v21 = vpop.f32.mrb[118].mxu1 }
 0xe12   :  { %v17547_v19 = vpop.f32.mrb[119].mxu1  ;;  %v3623_v22 = vsel %vm846_vm2, %v3480_v15, -inf }
 0xe13   :  { %3624 = vmax.xlane.f32.xlu1 %v3623_v22 }
 0xe17   :  { %v3571_v17 = vpop.f32.mrb[120].mxu1 }
 0xe18   :  { %v17558_v62 = vpop.f32.mrb[121].mxu1  ;;  %v3572_v35 = vadd.f32 %v3571_v17, %v20074_v49 }
 0xe19   :  { %v3574_v26 = vpop.f32.mrb[122].mxu1 }
 0xe1a   :  { %v17559_v14 = vpop.f32.mrb[123].mxu1  ;;  %v3629_v3 = vsel %vm846_vm2, %v3572_v35, -inf }
 0xe1b   :  { %3630 = vmax.xlane.f32.xlu1 %v3629_v3 }
 0xe1f   :  { %v3525_v27 = vpop.f32.mrb[132].mxu0 }
 0xe20   :  { %v17552_v31 = vpop.f32.mrb[133].mxu0  ;;  %v3526_v41 = vadd.f32 %v3525_v27, %v20042_v2 }
 0xe21   :  { %v3528_v44 = vpop.f32.mrb[134].mxu0 }
 0xe22   :  { %v17553_v39 = vpop.f32.mrb[135].mxu0  ;;  %v3626_v55 = vsel %vm846_vm2, %v3526_v41, -inf  ;;  %v20689_v44 = vadd.f32 %v20420_v20, %v20377_v33 }
 0xe23   :  { %3627 = vmax.xlane.f32.xlu0 %v3626_v55 }
 0xe27   :  { %v3617_v56 = vpop.f32.mrb[136].mxu0 }
 0xe28   :  { %v17564_v36 = vpop.f32.mrb[137].mxu0  ;;  %v3618_v30 = vadd.f32 %v3617_v56, %v20062_v40 }
 0xe29   :  { %v3620_v50 = vpop.f32.mrb[138].mxu0 }
 0xe2a   :  { %v17565_v49 = vpop.f32.mrb[139].mxu0  ;;  %v3632_v21 = vsel %vm846_vm2, %v3618_v30, -inf }
 0xe2b   :  { %3633 = vmax.xlane.f32.xlu0 %v3632_v21 }
 0xea0   :  { %v3625_v19 = vpop.xlane.xlu1 %3624 }
 0xea1   :  { %v3635_v22 = vsub.f32 %v3480_v15, %v3625_v19 }
 0xea3   :  { %v3639_v17 = vmul.f32 1.442695, %v3635_v22 }
 0xea5   :  { %19425 = vpow2.f32 %v3639_v17 }
 0xea8   :  { %v3631_v62 = vpop.xlane.xlu1 %3630 }
 0xea9   :  { %v3637_v2 = vsub.f32 %v3572_v35, %v3631_v62  ;;  %v2724_v35 = vmul.f32 %v20689_v44, %v20689_v44 }
 0xeab   :  { %v3643_v26 = vmul.f32 1.442695, %v3637_v2  ;;  %v2728_v50 = vsel %vm132_vm0, %v2724_v35, 0.0 }
 0xead   :  { %19427 = vpow2.f32 %v3643_v26 }
 0xeaf   :  { %v19426_v14 = vpop.eup %19425 }
 0xeb0   :  { %v3628_v3 = vpop.xlane.xlu0 %3627  ;;  %v3647_v27 = vsel %vm846_vm2, %v19426_v14, 0.0 }
 0xeb1   :  { %v3636_v31 = vsub.f32 %v3526_v41, %v3628_v3  ;;  %3648 = vadd.xlane.f32.xlu1 %v3647_v27 }
 0xeb3   :  { %v3641_v40 = vmul.f32 1.442695, %v3636_v31 }
 0xeb5   :  { %19429 = vpow2.f32 %v3641_v40  ;;  %v3674_v40 = vpack.c.bf16 %v20676_v37, %v20676_v37  ;;  %v15745_v37 = vld [vmem:[%s23350_s10 + $0x10] sm:$0xf] }
 0xeb7   :  { %v19428_v39 = vpop.eup %19427  ;;  %v3817_v35 = vsel %vm1086_vm3, %v3674_v40, 0 }
 0xeb8   :  { %v3634_v15 = vpop.xlane.xlu0 %3633  ;;  %v3653_v55 = vsel %vm846_vm2, %v19428_v39, 0.0 }
 0xeb9   :  { %v3638_v56 = vsub.f32 %v3618_v30, %v3634_v15  ;;  %3654 = vadd.xlane.f32.xlu1 %v3653_v55  ;;  %v3673_v30 = vpack.c.bf16 %v20664_v43, %v20664_v43 }
 0xebb   :  { %v3645_v36 = vmul.f32 1.442695, %v3638_v56  ;;  %v3771_v2 = vsel %vm1086_vm3, %v3673_v30, 0 }
 0xebd   :  { %19431 = vpow2.f32 %v3645_v36  ;;  %2729 = vadd.xlane.f32.xlu1 %v2728_v50  ;;  %v20721_v50 = vsel %vm1086_vm3, %v15745_v37, 0 }
 0xebf   :  { %v19430_v41 = vpop.eup %19429 }
 0xec0   :  { %v3650_v49 = vsel %vm846_vm2, %v19430_v41, 0.0 }
 0xec1   :  { %3651 = vadd.xlane.f32.xlu0 %v3650_v49 }
 0xec7   :  { %v19432_v33 = vpop.eup %19431 }
 0xec8   :  { %v3656_v20 = vsel %vm846_vm2, %v19432_v33, 0.0 }
 0xec9   :  { %3657 = vadd.xlane.f32.xlu0 %v3656_v20 }
 0xf3e   :  { %v3649_v21 = vpop.xlane.xlu1 %3648 }
 0xf3f   :  { %19433 = vrcp.f32 %v3649_v21 }
 0xf46   :  { %v3655_v19 = vpop.xlane.xlu1 %3654 }
 0xf47   :  { %19435 = vrcp.f32 %v3655_v19  ;;  %v15747_v19 = vld [vmem:[%s23350_s10 + $0x18] sm:$0xf] }
 0xf49   :  { %v19434_v22 = vpop.eup %19433 }
 0xf4a   :  { %v3663_v17 = vmul.f32 %v19434_v22, %v19426_v14 }
 0xf4c   :  { %v3667_v62 = vpack.c.bf16 %v3663_v17, %v3663_v17 }
 0xf4e   :  { %17569 = vmatmul.mubr.msk.bf16.vlgmr.msra.gmra.mrb[124].mxu1 %vm846_vm2, %v3667_v62  ;;  %v3652_v26 = vpop.xlane.xlu0 %3651  ;;  %v20737_v62 = vsel %vm1086_vm3, %v15747_v19, 0 }
 0xf4f   :  { %17579 = vmatpush3.bf16.msra.mxu1 %v3771_v2  ;;  %17580 = vmatprep.mubr.msk.bf16.mxu1 %vm19653_vm1, %v19652_v5  ;;  %19437 = vrcp.f32 %v3652_v26 }
 0xf50   :  { %17590 = vmatprep.subr.bf16.mxu1 %v19652_v5 }
 0xf51   :  { %v19436_v3 = vpop.eup %19435 }
 0xf52   :  { %v3665_v27 = vmul.f32 %v19436_v3, %v19428_v39 }
 0xf54   :  { %v3669_v31 = vpack.c.bf16 %v3665_v27, %v3665_v27 }
 0xf56   :  { %17581 = vmatmul.mubr.msk.bf16.vlgmr.msra.gmra.mrb[128].mxu1 %vm846_vm2, %v3669_v31  ;;  %v3658_v43 = vpop.xlane.xlu0 %3657 }
 0xf57   :  { %19439 = vrcp.f32 %v3658_v43  ;;  %17592 = vmatprep.mubr.msk.bf16.mxu1 %vm19653_vm1, %v19652_v5  ;;  %17591 = vmatpush3.bf16.msra.mxu1 %v20721_v50 }
 0xf58   :  { %17602 = vmatprep.subr.bf16.mxu1 %v19652_v5 }
 0xf59   :  { %v19438_v14 = vpop.eup %19437 }
 0xf5a   :  { %v3664_v15 = vmul.f32 %v19438_v14, %v19430_v41  ;;  %v15746_v41 = vld [vmem:[%s23350_s10 + $0x14] sm:$0xf] }
 0xf5b   :  { %v20729_v49 = vsel %vm1086_vm3, %v15746_v41, 0 }
 0xf5c   :  { %v3668_v55 = vpack.c.bf16 %v3664_v15, %v3664_v15 }
 0xf5e   :  { %17575 = vmatmul.mubr.msk.bf16.vlgmr.msra.gmra.mrb[140].mxu0 %vm846_vm2, %v3668_v55 }
 0xf5f   :  { %17585 = vmatpush3.bf16.msra.mxu0 %v3817_v35  ;;  %17586 = vmatprep.mubr.msk.bf16.mxu0 %vm19653_vm1, %v19652_v5  ;;  %v15748_v35 = vld [vmem:[%s23350_s10 + $0x1c] sm:$0xf] }
 0xf60   :  { %17596 = vmatprep.subr.bf16.mxu0 %v19652_v5  ;;  %v20759_v37 = vsel %vm1086_vm3, %v15748_v35, 0 }
 0xf61   :  { %v19440_v39 = vpop.eup %19439 }
 0xf62   :  { %v3666_v56 = vmul.f32 %v19440_v39, %v19432_v33  ;;  %v2730_v33 = vpop.xlane.xlu1 %2729 }
 0xf63   :  { %v2732_v20 = vmul.f32 0.03125, %v2730_v33 }
 0xf64   :  { %v3670_v36 = vpack.c.bf16 %v3666_v56, %v3666_v56 }
 0xf65   :  { %v2734_v21 = vadd.f32 1e-06, %v2732_v20 }
 0xf66   :  { %17587 = vmatmul.mubr.msk.bf16.vlgmr.msra.gmra.mrb[144].mxu0 %vm846_vm2, %v3670_v36 }
 0xf67   :  { %17598 = vmatprep.mubr.msk.bf16.mxu0 %vm19653_vm1, %v19652_v5  ;;  %17597 = vmatpush3.bf16.msra.mxu0 %v20729_v49  ;;  %19441 = vrsqrt.f32 %v2734_v21 }
 0xf68   :  { %17608 = vmatprep.subr.bf16.mxu0 %v19652_v5 }
 0xf71   :  { %v19442_v3 = vpop.eup %19441 }
 0xf72   :  { %v2738_v31 = vmul.f32 %v19442_v3, %v20689_v44 }
 0xf74   :  { %v2746_v55 = vmul.f32 %v20456_v28, %v2738_v31 }
 0xf76   :  { %v20755_v39 = vpack.c.bf16 %v2746_v55, %v2746_v55 }
0x1021   :  { %v3715_v22 = vpop.f32.mrb[124].mxu1 }
0x1022   :  { %v3859_v30 = vpack.c.bf16 %v3715_v22, %v3715_v22  ;;  %v17570_v17 = vpop.f32.mrb[125].mxu1 }
0x1023   :  { %v3718_v2 = vpop.f32.mrb[126].mxu1 }
0x1024   :  { %v17571_v26 = vpop.f32.mrb[127].mxu1  ;;  %17593 = vmatmul.mubr.msk.bf16.vlgmr.msra.gmra.mrb[132].mxu1 %vm846_vm2, %v3859_v30 }
0x1025   :  { %17603 = vmatpush3.bf16.msra.mxu1 %v20737_v62  ;;  %17604 = vmatprep.mubr.msk.bf16.mxu1 %vm19653_vm1, %v19652_v5 }
0x1026   :  { %17614 = vmatprep.subr.bf16.mxu1 %v19652_v5 }
0x1029   :  { %v3807_v27 = vpop.f32.mrb[128].mxu1 }
0x102a   :  { %v3861_v43 = vpack.c.bf16 %v3807_v27, %v3807_v27  ;;  %v17582_v14 = vpop.f32.mrb[129].mxu1 }
0x102b   :  { %v3810_v40 = vpop.f32.mrb[130].mxu1 }
0x102c   :  { %v17583_v15 = vpop.f32.mrb[131].mxu1  ;;  %17605 = vmatmul.mubr.msk.bf16.vlgmr.msra.gmra.mrb[136].mxu1 %vm846_vm2, %v3861_v43 }
0x102d   :  { %17615 = vmatpush3.bf16.msra.mxu1 %v20428_v23  ;;  %17618 = vmatprep.mubr.msk.bf16.mxu1 %vm19653_vm1, %v19652_v5 }
0x102e   :  { %17616 = vmatprep.subr.bf16.mxu1 %v19652_v5 }
0x1031   :  { %17617 = vmatpush3.bf16.msra.mxu1 %v20442_v24  ;;  %v3761_v56 = vpop.f32.mrb[140].mxu0 }
0x1032   :  { %17630 = vmatprep.subr.bf16.mxu1 %v19652_v5  ;;  %v3860_v36 = vpack.c.bf16 %v3761_v56, %v3761_v56  ;;  %v17576_v23 = vpop.f32.mrb[141].mxu0 }
0x1033   :  { %v3764_v41 = vpop.f32.mrb[142].mxu0 }
0x1034   :  { %17619 = vmatmul.mubr.msk.bf16.vlgmr.msra.gmra.mrb[140].mxu1 %vm132_vm0, %v20755_v39  ;;  %v17577_v28 = vpop.f32.mrb[143].mxu0  ;;  %17599 = vmatmul.mubr.msk.bf16.vlgmr.msra.gmra.mrb[148].mxu0 %vm846_vm2, %v3860_v36 }
0x1035   :  { %17631 = vmatpush3.bf16.msra.mxu1 %v20433_v18  ;;  %17609 = vmatpush3.bf16.msra.mxu0 %v20759_v37 }
0x1036   :  { %17632 = vmatprep.subr.bf16.mxu1 %v19652_v5  ;;  %17610 = vmatprep.mubr.msk.bf16.mxu0 %vm19653_vm1, %v19652_v5 }
0x1037   :  { %17634 = vmatprep.mubr.msk.bf16.mxu1 %vm19653_vm1, %v19652_v5  ;;  %17622 = vmatprep.subr.bf16.mxu0 %v19652_v5 }
0x1039   :  { %17633 = vmatpush3.bf16.msra.mxu1 %v20447_v25  ;;  %v3853_v24 = vpop.f32.mrb[144].mxu0 }
0x103a   :  { %17646 = vmatprep.subr.bf16.mxu1 %v19652_v5  ;;  %v3862_v33 = vpack.c.bf16 %v3853_v24, %v3853_v24  ;;  %v17588_v20 = vpop.f32.mrb[145].mxu0 }
0x103b   :  { %v3856_v18 = vpop.f32.mrb[146].mxu0 }
0x103c   :  { %17635 = vmatmul.mubr.msk.bf16.vlgmr.msra.gmra.mrb[144].mxu1 %vm132_vm0, %v20755_v39  ;;  %v17589_v21 = vpop.f32.mrb[147].mxu0  ;;  %17611 = vmatmul.mubr.msk.bf16.vlgmr.msra.gmra.mrb[152].mxu0 %vm846_vm2, %v3862_v33 }
0x103d   :  { %17647 = vmatpush3.bf16.msra.mxu1 %v20468_v42  ;;  %17623 = vmatpush3.bf16.msra.mxu0 %v20463_v32 }
0x103e   :  { %17648 = vmatprep.subr.bf16.mxu1 %v19652_v5  ;;  %17624 = vmatprep.subr.bf16.mxu0 %v19652_v5 }
0x103f   :  { %17626 = vmatprep.mubr.msk.bf16.mxu0 %vm19653_vm1, %v19652_v5  ;;  %17650 = vmatprep.mubr.msk.bf16.mxu1 %vm19653_vm1, %v19652_v5 }
0x1041   :  { %17649 = vmatpush3.bf16.msra.mxu1 %v20486_v46  ;;  %17625 = vmatpush3.bf16.msra.mxu0 %v20481_v34 }
0x1042   :  { %17662 = vmatprep.subr.bf16.mxu1 %v19652_v5  ;;  %17638 = vmatprep.subr.bf16.mxu0 %v19652_v5 }
0x1044   :  { %17651 = vmatmul.mubr.msk.bf16.vlgmr.msra.gmra.mrb[148].mxu1 %vm132_vm0, %v20755_v39  ;;  %17627 = vmatmul.mubr.msk.bf16.vlgmr.msra.gmra.mrb[156].mxu0 %vm132_vm0, %v20755_v39 }
0x1045   :  { %17663 = vmatpush3.bf16.msra.mxu1 %v20504_v57  ;;  %17639 = vmatpush3.bf16.msra.mxu0 %v20499_v48 }
0x1046   :  { %17664 = vmatprep.subr.bf16.mxu1 %v19652_v5  ;;  %17640 = vmatprep.subr.bf16.mxu0 %v19652_v5 }
0x1047   :  { %17642 = vmatprep.mubr.msk.bf16.mxu0 %vm19653_vm1, %v19652_v5  ;;  %17666 = vmatprep.mubr.msk.bf16.mxu1 %vm19653_vm1, %v19652_v5 }
0x1049   :  { %17665 = vmatpush3.bf16.msra.mxu1 %v20522_v59  ;;  %17641 = vmatpush3.bf16.msra.mxu0 %v20517_v58 }
0x104a   :  { %17678 = vmatprep.subr.bf16.mxu1 %v19652_v5  ;;  %17654 = vmatprep.subr.bf16.mxu0 %v19652_v5 }
0x104c   :  { %17667 = vmatmul.mubr.msk.bf16.vlgmr.msra.gmra.mrb[152].mxu1 %vm132_vm0, %v20755_v39  ;;  %17643 = vmatmul.mubr.msk.bf16.vlgmr.msra.gmra.mrb[160].mxu0 %vm132_vm0, %v20755_v39 }
0x104d   :  { %17679 = vmatpush3.bf16.msra.mxu1 %v20540_v4  ;;  %17655 = vmatpush3.bf16.msra.mxu0 %v20535_v61 }
0x104e   :  { %17680 = vmatprep.subr.bf16.mxu1 %v19652_v5  ;;  %17656 = vmatprep.subr.bf16.mxu0 %v19652_v5 }
0x104f   :  { %17658 = vmatprep.mubr.msk.bf16.mxu0 %vm19653_vm1, %v19652_v5  ;;  %17682 = vmatprep.mubr.msk.bf16.mxu1 %vm19653_vm1, %v19652_v5 }
0x1051   :  { %17681 = vmatpush3.bf16.msra.mxu1 %v20558_v8  ;;  %17657 = vmatpush3.bf16.msra.mxu0 %v20553_v7 }
0x1052   :  { %17694 = vmatprep.subr.bf16.mxu1 %v19652_v5  ;;  %17670 = vmatprep.subr.bf16.mxu0 %v19652_v5 }
0x1054   :  { %17683 = vmatmul.mubr.msk.bf16.vlgmr.msra.gmra.mrb[156].mxu1 %vm132_vm0, %v20755_v39  ;;  %17659 = vmatmul.mubr.msk.bf16.vlgmr.msra.gmra.mrb[164].mxu0 %vm132_vm0, %v20755_v39 }
0x1055   :  { %17695 = vmatpush3.bf16.msra.mxu1 %v20576_v45  ;;  %17671 = vmatpush3.bf16.msra.mxu0 %v20571_v6 }
0x1056   :  { %17696 = vmatprep.subr.bf16.mxu1 %v19652_v5  ;;  %17672 = vmatprep.subr.bf16.mxu0 %v19652_v5 }
0x1057   :  { %17674 = vmatprep.mubr.msk.bf16.mxu0 %vm19653_vm1, %v19652_v5  ;;  %17698 = vmatprep.mubr.msk.bf16.mxu1 %vm19653_vm1, %v19652_v5 }
0x1059   :  { %17697 = vmatpush3.bf16.msra.mxu1 %v20594_v47  ;;  %17673 = vmatpush3.bf16.msra.mxu0 %v20589_v38 }
0x105a   :  { %17710 = vmatprep.subr.bf16.mxu1 %v19652_v5  ;;  %17686 = vmatprep.subr.bf16.mxu0 %v19652_v5 }
0x105c   :  { %17699 = vmatmul.mubr.msk.bf16.vlgmr.msra.gmra.mrb[160].mxu1 %vm132_vm0, %v20755_v39  ;;  %17675 = vmatmul.mubr.msk.bf16.vlgmr.msra.gmra.mrb[168].mxu0 %vm132_vm0, %v20755_v39 }
0x105d   :  { %17712 = vmatprep.mubr.msk.bf16.mxu1 %vm19653_vm1, %v19652_v5  ;;  %17687 = vmatpush3.bf16.msra.mxu0 %v20607_v9 }
0x105e   :  { %17690 = vmatprep.mubr.msk.bf16.mxu0 %vm19653_vm1, %v19652_v5  ;;  %17688 = vmatprep.subr.bf16.mxu0 %v19652_v5 }
0x1061   :  { %17689 = vmatpush3.bf16.msra.mxu0 %v20619_v11 }
0x1062   :  { %17702 = vmatprep.subr.bf16.mxu0 %v19652_v5 }
0x1064   :  { %17691 = vmatmul.mubr.msk.bf16.vlgmr.msra.gmra.mrb[172].mxu0 %vm132_vm0, %v20755_v39 }
0x1065   :  { %17703 = vmatpush3.bf16.msra.mxu0 %v20630_v10  ;;  %17706 = vmatprep.mubr.msk.bf16.mxu0 %vm19653_vm1, %v19652_v5 }
0x1066   :  { %17704 = vmatprep.subr.bf16.mxu0 %v19652_v5 }
0x1069   :  { %17705 = vmatpush3.bf16.msra.mxu0 %v20639_v13 }
0x106a   :  { %17716 = vmatprep.subr.bf16.mxu0 %v19652_v5 }
0x106c   :  { %17707 = vmatmul.mubr.msk.bf16.vlgmr.msra.gmra.mrb[176].mxu0 %vm132_vm0, %v20755_v39 }
0x106d   :  { %17718 = vmatprep.mubr.msk.bf16.mxu0 %vm19653_vm1, %v19652_v5 }
0x10f7   :  { %v3903_v25 = vpop.f32.mrb[132].mxu1 }
0x10f8   :  { %v17594_v32 = vpop.f32.mrb[133].mxu1 }
0x10f9   :  { %v3906_v42 = vpop.f32.mrb[134].mxu1 }
0x10fa   :  { %v17595_v34 = vpop.f32.mrb[135].mxu1 }
0x10ff   :  { %v3995_v46 = vpop.f32.mrb[136].mxu1 }
0x1100   :  { %v17606_v48 = vpop.f32.mrb[137].mxu1 }
0x1101   :  { %v3998_v57 = vpop.f32.mrb[138].mxu1 }
0x1102   :  { %v17607_v58 = vpop.f32.mrb[139].mxu1 }
0x1107   :  { %v4088_v59 = vpop.f32.mrb[140].mxu1  ;;  %v3949_v61 = vpop.f32.mrb[148].mxu0 }
0x1108   :  { %v17620_v4 = vpop.f32.mrb[141].mxu1  ;;  %v4047_v7 = vadd.f32 %v3949_v61, %v3903_v25  ;;  %v17600_v8 = vpop.f32.mrb[149].mxu0  ;;  %v4534_v36 = vpack.c.bf16 %v4088_v59, %v4088_v59 }
0x1109   :  { %v4091_v6 = vpop.f32.mrb[142].mxu1  ;;  %v3952_v45 = vpop.f32.mrb[150].mxu0 }
0x110a   :  { %v17621_v38 = vpop.f32.mrb[143].mxu1  ;;  %v17601_v47 = vpop.f32.mrb[151].mxu0  ;;  %v4048_v9 = vadd.f32 %v4047_v7, %v3995_v46 }
0x110f   :  { %v4168_v11 = vpop.f32.mrb[144].mxu1  ;;  %v4041_v10 = vpop.f32.mrb[152].mxu0 }
0x1110   :  { %v17636_v13 = vpop.f32.mrb[145].mxu1  ;;  %v20861_v19 = vadd.f32 %v4048_v9, %v4041_v10  ;;  %v17612_v22 = vpop.f32.mrb[153].mxu0  ;;  %v4536_v42 = vpack.c.bf16 %v4168_v11, %v4168_v11 }
0x1111   :  { %v4171_v30 = vpop.f32.mrb[146].mxu1  ;;  %v4044_v17 = vpop.f32.mrb[154].mxu0 }
0x1112   :  { %v17637_v2 = vpop.f32.mrb[147].mxu1  ;;  %v17613_v26 = vpop.f32.mrb[155].mxu0 }
0x1117   :  { %v4248_v3 = vpop.f32.mrb[148].mxu1  ;;  %v4128_v27 = vpop.f32.mrb[156].mxu0 }
0x1118   :  { %v4538_v31 = vpack.c.bf16 %v4248_v3, %v4248_v3  ;;  %v17652_v43 = vpop.f32.mrb[149].mxu1  ;;  %v17628_v14 = vpop.f32.mrb[157].mxu0  ;;  %v4535_v9 = vpack.c.bf16 %v4128_v27, %v4128_v27 }
0x1119   :  { %v4251_v40 = vpop.f32.mrb[150].mxu1  ;;  %v4131_v15 = vpop.f32.mrb[158].mxu0 }
0x111a   :  { %v17653_v55 = vpop.f32.mrb[151].mxu1  ;;  %v4546_v35 = vsel %vm846_vm2, %v4538_v31, 0  ;;  %v17629_v39 = vpop.f32.mrb[159].mxu0 }
0x111b   :  { %17711 = vmatpush3.bf16.xpose.msra.mxu1 %v4546_v35 }
0x111c   :  { %17722 = vmatprep.subr.bf16.mxu1 %v19652_v5 }
0x111f   :  { %v4328_v56 = vpop.f32.mrb[152].mxu1  ;;  %v4208_v23 = vpop.f32.mrb[160].mxu0 }
0x1120   :  { %v4540_v41 = vpack.c.bf16 %v4328_v56, %v4328_v56  ;;  %v17668_v28 = vpop.f32.mrb[153].mxu1  ;;  %v17644_v24 = vpop.f32.mrb[161].mxu0  ;;  %v4537_v3 = vpack.c.bf16 %v4208_v23, %v4208_v23 }
0x1121   :  { %v4331_v33 = vpop.f32.mrb[154].mxu1  ;;  %v4211_v20 = vpop.f32.mrb[162].mxu0 }
0x1122   :  { %v17669_v18 = vpop.f32.mrb[155].mxu1  ;;  %17713 = vmatmul.mubr.msk.bf16.vlgmr.msra.gmra.mrb[164].mxu1 %vm846_vm2, %v4534_v36  ;;  %v4638_v21 = vsel %vm846_vm2, %v4540_v41, 0  ;;  %v17645_v25 = vpop.f32.mrb[163].mxu0 }
0x1123   :  { %17723 = vmatpush3.bf16.xpose.msra.mxu1 %v4638_v21  ;;  %17724 = vmatprep.mubr.msk.bf16.mxu1 %vm19653_vm1, %v19652_v5 }
0x1124   :  { %17734 = vmatprep.subr.bf16.mxu1 %v19652_v5 }
0x1127   :  { %v4408_v32 = vpop.f32.mrb[156].mxu1  ;;  %v4288_v34 = vpop.f32.mrb[164].mxu0 }
0x1128   :  { %v4774_v46 = vpack.c.bf16 %v4408_v32, %v4408_v32  ;;  %v17684_v48 = vpop.f32.mrb[157].mxu1  ;;  %v4539_v57 = vpack.c.bf16 %v4288_v34, %v4288_v34  ;;  %v17660_v58 = vpop.f32.mrb[165].mxu0 }
0x1129   :  { %v4411_v59 = vpop.f32.mrb[158].mxu1  ;;  %v4291_v61 = vpop.f32.mrb[166].mxu0 }
0x112a   :  { %v17685_v4 = vpop.f32.mrb[159].mxu1  ;;  %17725 = vmatmul.mubr.msk.bf16.vlgmr.msra.gmra.mrb[168].mxu1 %vm846_vm2, %v4536_v42  ;;  %v4782_v7 = vsel %vm1086_vm3, %v4774_v46, 0  ;;  %v17661_v8 = vpop.f32.mrb[167].mxu0  ;;  %v4592_v6 = vsel %vm846_vm2, %v4539_v57, 0 }
0x112b   :  { %17735 = vmatpush3.bf16.msra.mxu1 %v4782_v7  ;;  %17736 = vmatprep.mubr.msk.bf16.mxu1 %vm19653_vm1, %v19652_v5 }
0x112c   :  { %17717 = vmatpush3.bf16.xpose.msra.mxu0 %v4592_v6  ;;  %17746 = vmatprep.subr.bf16.mxu1 %v19652_v5 }
0x112d   :  { %17728 = vmatprep.subr.bf16.mxu0 %v19652_v5 }
0x112f   :  { %v20877_v45 = vpop.f32.mrb[160].mxu1  ;;  %v4368_v38 = vpop.f32.mrb[168].mxu0 }
0x1130   :  { %v17700_v47 = vpop.f32.mrb[161].mxu1  ;;  %v4541_v11 = vpack.c.bf16 %v4368_v38, %v4368_v38  ;;  %v17676_v10 = vpop.f32.mrb[169].mxu0 }
0x1131   :  { %v4491_v13 = vpop.f32.mrb[162].mxu1  ;;  %v4371_v22 = vpop.f32.mrb[170].mxu0 }
0x1132   :  { %v17701_v30 = vpop.f32.mrb[163].mxu1  ;;  %v17677_v17 = vpop.f32.mrb[171].mxu0  ;;  %v4684_v2 = vsel %vm846_vm2, %v4541_v11, 0 }
0x1133   :  { %17719 = vmatmul.mubr.msk.bf16.vlgmr.msra.gmra.mrb[180].mxu0 %vm846_vm2, %v4535_v9 }
0x1134   :  { %17729 = vmatpush3.bf16.xpose.msra.mxu0 %v4684_v2  ;;  %17730 = vmatprep.mubr.msk.bf16.mxu0 %vm19653_vm1, %v19652_v5 }
0x1135   :  { %17740 = vmatprep.subr.bf16.mxu0 %v19652_v5 }
0x1137   :  { %v4448_v26 = vpop.f32.mrb[172].mxu0 }
0x1138   :  { %v4775_v31 = vpack.c.bf16 %v4448_v26, %v4448_v26  ;;  %v17692_v27 = vpop.f32.mrb[173].mxu0 }
0x1139   :  { %v4451_v43 = vpop.f32.mrb[174].mxu0 }
0x113a   :  { %v17693_v14 = vpop.f32.mrb[175].mxu0  ;;  %v4828_v40 = vsel %vm1086_vm3, %v4775_v31, 0 }
0x113b   :  { %17731 = vmatmul.mubr.msk.bf16.vlgmr.msra.gmra.mrb[184].mxu0 %vm846_vm2, %v4537_v3 }
0x113c   :  { %17741 = vmatpush3.bf16.msra.mxu0 %v4828_v40  ;;  %17742 = vmatprep.mubr.msk.bf16.mxu0 %vm19653_vm1, %v19652_v5 }
0x113d   :  { %17752 = vmatprep.subr.bf16.mxu0 %v19652_v5 }
0x113f   :  { %v20889_v15 = vpop.f32.mrb[176].mxu0 }
0x1140   :  { %v17708_v55 = vpop.f32.mrb[177].mxu0 }
0x1141   :  { %v4531_v35 = vpop.f32.mrb[178].mxu0 }
0x1142   :  { %v17709_v39 = vpop.f32.mrb[179].mxu0 }
0x11f5   :  { %v4582_v56 = vpop.f32.mrb[164].mxu1 }
0x11f6   :  { %v17714_v36 = vpop.f32.mrb[165].mxu1  ;;  %v4583_v23 = vadd.f32 %v4582_v56, %v20306_v16  ;;  %v4776_v56 = vpack.c.bf16 %v20877_v45, %v20877_v45 }
0x11f7   :  { %v4585_v41 = vpop.f32.mrb[166].mxu1 }
0x11f8   :  { %v17715_v28 = vpop.f32.mrb[167].mxu1  ;;  %v4726_v24 = vsel %vm846_vm2, %v4583_v23, -inf  ;;  %v4874_v41 = vsel %vm1086_vm3, %v4776_v56, 0 }
0x11f9   :  { %4727 = vmax.xlane.f32.xlu0 %v4726_v24 }
0x11fd   :  { %v4674_v33 = vpop.f32.mrb[168].mxu1 }
0x11fe   :  { %v17726_v20 = vpop.f32.mrb[169].mxu1  ;;  %v4675_v18 = vadd.f32 %v4674_v33, %v20318_v29 }
0x11ff   :  { %v4677_v21 = vpop.f32.mrb[170].mxu1 }
0x1200   :  { %v17727_v25 = vpop.f32.mrb[171].mxu1  ;;  %v4732_v32 = vsel %vm846_vm2, %v4675_v18, -inf  ;;  %v4777_v21 = vpack.c.bf16 %v20889_v15, %v20889_v15 }
0x1201   :  { %4733 = vmax.xlane.f32.xlu0 %v4732_v32 }
0x1206   :  { %v4628_v42 = vpop.f32.mrb[180].mxu0 }
0x1207   :  { %v17720_v34 = vpop.f32.mrb[181].mxu0  ;;  %v4629_v46 = vadd.f32 %v4628_v42, %v20301_v12  ;;  %v4920_v42 = vsel %vm1086_vm3, %v4777_v21, 0 }
0x1208   :  { %v4631_v48 = vpop.f32.mrb[182].mxu0 }
0x1209   :  { %v17721_v16 = vpop.f32.mrb[183].mxu0  ;;  %v4729_v57 = vsel %vm846_vm2, %v4629_v46, -inf }
0x120a   :  { %4730 = vmax.xlane.f32.xlu1 %v4729_v57 }
0x120e   :  { %v4720_v58 = vpop.f32.mrb[184].mxu0 }
0x120f   :  { %v17732_v59 = vpop.f32.mrb[185].mxu0  ;;  %v4721_v61 = vadd.f32 %v4720_v58, %v20312_v1  ;;  %v20902_v1 = vadd.f32 %v20861_v19, %v20418_v53 }
0x1210   :  { %v4723_v4 = vpop.f32.mrb[186].mxu0 }
0x1211   :  { %v17733_v29 = vpop.f32.mrb[187].mxu0  ;;  %v4735_v7 = vsel %vm846_vm2, %v4721_v61, -inf  ;;  %v5145_v26 = vmul.f32 %v20902_v1, %v20902_v1 }
0x1212   :  { %4736 = vmax.xlane.f32.xlu1 %v4735_v7 }
0x1213   :  { %v5147_v43 = vsel %vm132_vm0, %v5145_v26, 0.0 }
0x1286   :  { %v4728_v8 = vpop.xlane.xlu0 %4727 }
0x1287   :  { %v4738_v6 = vsub.f32 %v4583_v23, %v4728_v8 }
0x1289   :  { %v4742_v38 = vmul.f32 1.442695, %v4738_v6 }
0x128b   :  { %19443 = vpow2.f32 %v4742_v38 }
0x128e   :  { %v4734_v47 = vpop.xlane.xlu0 %4733 }
0x128f   :  { %v4740_v12 = vsub.f32 %v4675_v18, %v4734_v47 }
0x1291   :  { %v4746_v9 = vmul.f32 1.442695, %v4740_v12 }
0x1293   :  { %19445 = vpow2.f32 %v4746_v9 }
0x1295   :  { %v19444_v11 = vpop.eup %19443 }
0x1296   :  { %v4750_v10 = vsel %vm846_vm2, %v19444_v11, 0.0 }
0x1297   :  { %v4731_v13 = vpop.xlane.xlu1 %4730  ;;  %4751 = vadd.xlane.f32.xlu0 %v4750_v10 }
0x1298   :  { %v4739_v22 = vsub.f32 %v4629_v46, %v4731_v13  ;;  %v5341_v13 = vld [vmem:[%s23375_s23] sm:$0xff] }
0x129a   :  { %v4744_v30 = vmul.f32 1.442695, %v4739_v22 }
0x129c   :  { %19447 = vpow2.f32 %v4744_v30 }
0x129d   :  { %v19446_v17 = vpop.eup %19445 }
0x129e   :  { %v4756_v2 = vsel %vm846_vm2, %v19446_v17, 0.0 }
0x129f   :  { %v4737_v3 = vpop.xlane.xlu1 %4736  ;;  %4757 = vadd.xlane.f32.xlu0 %v4756_v2 }
0x12a0   :  { %v4741_v31 = vsub.f32 %v4721_v61, %v4737_v3 }
0x12a2   :  { %v4748_v27 = vmul.f32 1.442695, %v4741_v31 }
0x12a3   :  { %5148 = vadd.xlane.f32.xlu0 %v5147_v43 }
0x12a4   :  { %19449 = vpow2.f32 %v4748_v27 }
0x12a6   :  { %v19448_v14 = vpop.eup %19447 }
0x12a7   :  { %v4753_v53 = vsel %vm846_vm2, %v19448_v14, 0.0 }
0x12a8   :  { %4754 = vadd.xlane.f32.xlu1 %v4753_v53 }
0x12ae   :  { %v19450_v19 = vpop.eup %19449 }
0x12af   :  { %v4759_v40 = vsel %vm846_vm2, %v19450_v19, 0.0 }
0x12b0   :  { %4760 = vadd.xlane.f32.xlu1 %v4759_v40 }
0x1324   :  { %v4752_v55 = vpop.xlane.xlu0 %4751 }
0x1325   :  { %19451 = vrcp.f32 %v4752_v55 }
0x132c   :  { %v4758_v35 = vpop.xlane.xlu0 %4757 }
0x132d   :  { %19453 = vrcp.f32 %v4758_v35 }
0x132f   :  { %v19452_v39 = vpop.eup %19451 }
0x1330   :  { %v4766_v36 = vmul.f32 %v19452_v39, %v19444_v11  ;;  %v5149_v21 = vpop.xlane.xlu0 %5148 }
0x1332   :  { %v4770_v23 = vpack.c.bf16 %v4766_v36, %v4766_v36 }
0x1334   :  { %17737 = vmatmul.mubr.msk.bf16.vlgmr.msra.gmra.mrb[172].mxu1 %vm846_vm2, %v4770_v23 }
0x1335   :  { %17747 = vmatpush3.bf16.msra.mxu1 %v4874_v41  ;;  %v4755_v28 = vpop.xlane.xlu1 %4754  ;;  %17748 = vmatprep.mubr.msk.bf16.mxu1 %vm19653_vm1, %v19652_v5 }
0x1336   :  { %19455 = vrcp.f32 %v4755_v28  ;;  %17758 = vmatprep.subr.bf16.mxu1 %v19652_v5 }
0x1337   :  { %v19454_v24 = vpop.eup %19453 }
0x1338   :  { %v4768_v33 = vmul.f32 %v19454_v24, %v19446_v17 }
0x133a   :  { %v4772_v20 = vpack.c.bf16 %v4768_v33, %v4768_v33 }
0x133c   :  { %17749 = vmatmul.mubr.msk.bf16.vlgmr.msra.gmra.mrb[176].mxu1 %vm846_vm2, %v4772_v20  ;;  %v19265_v20 = vld [vmem:[%s23351_s11 + $0x10] sm:$0xff]  }
0x133d   :  { %v4761_v45 = vpop.xlane.xlu1 %4760  ;;  %17759 = vmatpush3.bf16.msra.mxu1 %v20721_v50  ;;  %17760 = vmatprep.mubr.msk.bf16.mxu1 %vm19653_vm1, %v19652_v5 }
0x133e   :  { %19457 = vrcp.f32 %v4761_v45  ;;  %17770 = vmatprep.subr.bf16.mxu1 %v19652_v5  ;;  %v19266_v45 = vld [vmem:[%s23351_s11 + $0x18] sm:$0xff]  }
0x1340   :  { %v19456_v18 = vpop.eup %19455 }
0x1341   :  { %v4767_v25 = vmul.f32 %v19456_v18, %v19448_v14  ;;  %v19282_v18 = vld [vmem:[%s23352_s12 + $0x28] sm:$0xff]  }
0x1343   :  { %v4771_v32 = vpack.c.bf16 %v4767_v25, %v4767_v25  ;;  %v5153_v25 = vmul.f32 0.03125, %v5149_v21 }
0x1345   :  { %17743 = vmatmul.mubr.msk.bf16.vlgmr.msra.gmra.mrb[188].mxu0 %vm846_vm2, %v4771_v32 }
0x1346   :  { %17753 = vmatpush3.bf16.msra.mxu0 %v4920_v42  ;;  %17754 = vmatprep.mubr.msk.bf16.mxu0 %vm19653_vm1, %v19652_v5 }
0x1347   :  { %17764 = vmatprep.subr.bf16.mxu0 %v19652_v5 }
0x1348   :  { %v19458_v50 = vpop.eup %19457 }
0x1349   :  { %v4769_v34 = vmul.f32 %v19458_v50, %v19450_v19  ;;  %v5155_v50 = vadd.f32 1e-06, %v5153_v25 }
0x134b   :  { %v4773_v46 = vpack.c.bf16 %v4769_v34, %v4769_v34  ;;  %19459 = vrsqrt.f32 %v5155_v50  ;;  %v21174_v50 = vld [vmem:[%s23354_s14 + $0x68] sm:$0xff]  }
0x134d   :  { %17755 = vmatmul.mubr.msk.bf16.vlgmr.msra.gmra.mrb[192].mxu0 %vm846_vm2, %v4773_v46 }
0x134e   :  { %17765 = vmatpush3.bf16.msra.mxu0 %v20729_v49  ;;  %17766 = vmatprep.mubr.msk.bf16.mxu0 %vm19653_vm1, %v19652_v5 }
0x134f   :  { %17776 = vmatprep.subr.bf16.mxu0 %v19652_v5 }
0x1407   :  { %v4818_v15 = vpop.f32.mrb[172].mxu1 }
0x1408   :  { %v4962_v48 = vpack.c.bf16 %v4818_v15, %v4818_v15  ;;  %v17738_v16 = vpop.f32.mrb[173].mxu1 }
0x1409   :  { %v4821_v57 = vpop.f32.mrb[174].mxu1  ;;  %v19460_v16 = vpop.eup %19459 }
0x140a   :  { %v17739_v58 = vpop.f32.mrb[175].mxu1  ;;  %17761 = vmatmul.mubr.msk.bf16.vlgmr.msra.gmra.mrb[180].mxu1 %vm846_vm2, %v4962_v48 }
0x140b   :  { %17771 = vmatpush3.bf16.msra.mxu1 %v20737_v62  ;;  %17772 = vmatprep.mubr.msk.bf16.mxu1 %vm19653_vm1, %v19652_v5  ;;  %v5159_v58 = vmul.f32 %v19460_v16, %v20902_v1 }
0x140c   :  { %17782 = vmatprep.subr.bf16.mxu1 %v19652_v5 }
0x140f   :  { %v4910_v49 = vpop.f32.mrb[176].mxu1 }
0x1410   :  { %v4964_v59 = vpack.c.bf16 %v4910_v49, %v4910_v49  ;;  %v17750_v61 = vpop.f32.mrb[177].mxu1 }
0x1411   :  { %v4913_v4 = vpop.f32.mrb[178].mxu1 }
0x1412   :  { %v17751_v29 = vpop.f32.mrb[179].mxu1  ;;  %17773 = vmatmul.mubr.msk.bf16.vlgmr.msra.gmra.mrb[184].mxu1 %vm846_vm2, %v4964_v59  ;;  %v15822_v59 = vld [vmem:[%s23348_s8 + $0x3] ss:$0 sm:$0xff] }
0x1413   :  { %17786 = vmatprep.mubr.msk.bf16.mxu1 %vm19653_vm1, %v19652_v5  ;;  %17783 = vmatpush3.bf16.msra.mxu1 %v19265_v20  ;;  %v5167_v29 = vmul.f32 %v15822_v59, %v5159_v58  ;;  %v21147_v20 = vld [vmem:[%s23354_s14 + $0x40] sm:$0xff]  }
0x1414   :  { %17784 = vmatprep.subr.bf16.mxu1 %v19652_v5 }
0x1417   :  { %17785 = vmatpush3.bf16.msra.mxu1 %v19266_v45  ;;  %v21156_v45 = vld [vmem:[%s23354_s14 + $0x48] sm:$0xff]  }
0x1418   :  { %v4864_v7 = vpop.f32.mrb[188].mxu0  ;;  %17802 = vmatprep.subr.bf16.mxu1 %v19652_v5 }
0x1419   :  { %v4963_v8 = vpack.c.bf16 %v4864_v7, %v4864_v7  ;;  %v17744_v6 = vpop.f32.mrb[189].mxu0 }
0x141a   :  { %v4867_v38 = vpop.f32.mrb[190].mxu0  ;;  %v20989_v6 = vld [vmem:[%s23354_s14] sm:$0xff]  }
0x141b   :  { %v17745_v62 = vpop.f32.mrb[191].mxu0  ;;  %17767 = vmatmul.mubr.msk.bf16.vlgmr.msra.gmra.mrb[196].mxu0 %vm846_vm2, %v4963_v8  ;;  %v20984_v8 = vld [vmem:[%s23353_s13] ss:$0 sm:$0xff] }
0x141c   :  { %17777 = vmatpush3.bf16.msra.mxu0 %v20759_v37  ;;  %17778 = vmatprep.mubr.msk.bf16.mxu0 %vm19653_vm1, %v19652_v5  ;;  %v5344_v37 = vmul.f32 %v5341_v13, %v5341_v13 }
0x141d   :  { %17790 = vmatprep.subr.bf16.mxu0 %v19652_v5 }
0x141e   :  { %v5346_v22 = vsel %vm132_vm0, %v5344_v37, 0.0  ;;  %v21044_v37 = vld [vmem:[%s23354_s14 + $0x50] sm:$0xff]  }
0x141f   :  { %5347 = vadd.xlane.f32.xlu0 %v5346_v22  ;;  %v21053_v22 = vld [vmem:[%s23354_s14 + $0x58] sm:$0xff]  }
0x1420   :  { %v4956_v47 = vpop.f32.mrb[192].mxu0 }
0x1421   :  { %v4965_v12 = vpack.c.bf16 %v4956_v47, %v4956_v47  ;;  %v17756_v9 = vpop.f32.mrb[193].mxu0  ;;  %v20997_v47 = vld [vmem:[%s23354_s14 + $0x8] sm:$0xff]  }
0x1422   :  { %v4959_v11 = vpop.f32.mrb[194].mxu0  ;;  %v21008_v9 = vld [vmem:[%s23354_s14 + $0x10] sm:$0xff]  }
0x1423   :  { %v17757_v10 = vpop.f32.mrb[195].mxu0  ;;  %17779 = vmatmul.mubr.msk.bf16.vlgmr.msra.gmra.mrb[200].mxu0 %vm846_vm2, %v4965_v12  ;;  %v21017_v11 = vld [vmem:[%s23354_s14 + $0x18] sm:$0xff]  }
0x1424   :  { %17798 = vmatprep.mubr.msk.bf16.mxu0 %vm19653_vm1, %v19652_v5  ;;  %v21026_v10 = vld [vmem:[%s23354_s14 + $0x30] sm:$0xff]  }
0x14ac   :  { %v5348_v32 = vpop.xlane.xlu0 %5347 }
0x14ad   :  { %v5352_v42 = vmul.f32 0.03125, %v5348_v32  ;;  %v21165_v32 = vld [vmem:[%s23354_s14 + $0x60] sm:$0xff]  }
0x14af   :  { %v5354_v46 = vadd.f32 1e-06, %v5352_v42 }
0x14b1   :  { %19461 = vrsqrt.f32 %v5354_v46 }
0x14bb   :  { %v19462_v57 = vpop.eup %19461 }
0x14bc   :  { %v5358_v4 = vmul.f32 %v19462_v57, %v5341_v13  ;;  %v21035_v13 = vld [vmem:[%s23354_s14 + $0x38] sm:$0xff]   ;;  %v21192_v57 = vld [vmem:[%s23354_s14 + $0x88] sm:$0xff]  }
0x14be   :  { %v5366_v62 = vmul.f32 %v20984_v8, %v5358_v4 }
0x14c0   :  { %v21002_v12 = vpack.c.bf16 %v5366_v62, %v5366_v62  ;;  %v21212_v62 = vld [vmem:[%s23354_s14 + $0xa8] sm:$0xff]  }
0x14dd   :  { %v5003_v30 = vpop.f32.mrb[180].mxu1 }
0x14de   :  { %v17762_v17 = vpop.f32.mrb[181].mxu1 }
0x14df   :  { %v5006_v2 = vpop.f32.mrb[182].mxu1  ;;  %v21071_v17 = vld [vmem:[%s23354_s14 + $0x78] sm:$0xff]  }
0x14e0   :  { %v17763_v26 = vpop.f32.mrb[183].mxu1  ;;  %v21080_v2 = vld [vmem:[%s23354_s14 + $0x90] sm:$0xff]  }
0x14e1   :  { %v21089_v26 = vld [vmem:[%s23354_s14 + $0x98] sm:$0xff]  }
0x14e5   :  { %v5089_v3 = vpop.f32.mrb[184].mxu1 }
0x14e6   :  { %v17774_v31 = vpop.f32.mrb[185].mxu1 }
0x14e7   :  { %v5092_v27 = vpop.f32.mrb[186].mxu1  ;;  %v21107_v31 = vld [vmem:[%s23354_s14 + $0xb8] sm:$0xff]  }
0x14e8   :  { %v17775_v43 = vpop.f32.mrb[187].mxu1  ;;  %v19283_v27 = vld [vmem:[%s23352_s12 + $0x30] sm:$0xff]  }
0x14e9   :  { %v19284_v43 = vld [vmem:[%s23352_s12 + $0x38] sm:$0xff]  }
0x14ee   :  { %v5046_v14 = vpop.f32.mrb[196].mxu0 }
0x14ef   :  { %v5138_v53 = vadd.f32 %v5046_v14, %v5003_v30  ;;  %v17768_v19 = vpop.f32.mrb[197].mxu0  ;;  %v21062_v30 = vld [vmem:[%s23354_s14 + $0x70] sm:$0xff]  }
0x14f0   :  { %v5049_v40 = vpop.f32.mrb[198].mxu0 }
0x14f1   :  { %v17769_v55 = vpop.f32.mrb[199].mxu0  ;;  %v5139_v35 = vadd.f32 %v5138_v53, %v5089_v3  ;;  %v21098_v3 = vld [vmem:[%s23354_s14 + $0xb0] sm:$0xff]  }
0x14f6   :  { %v5132_v39 = vpop.f32.mrb[200].mxu0 }
0x14f7   :  { %v5140_v56 = vadd.f32 %v5139_v35, %v5132_v39  ;;  %v17780_v36 = vpop.f32.mrb[201].mxu0  ;;  %v21129_v39 = vld [vmem:[%s23354_s14 + $0x20] sm:$0xff]  }
0x14f8   :  { %v5135_v23 = vpop.f32.mrb[202].mxu0  ;;  %v21136_v36 = vld [vmem:[%s23354_s14 + $0x28] sm:$0xff]  }
0x14f9   :  { %v20955_v41 = vadd.f32 %v5140_v56, %v20689_v44  ;;  %v17781_v28 = vpop.f32.mrb[203].mxu0  ;;  %v19280_v44 = vld [vmem:[%s23352_s12 + $0x20] sm:$0xff]  }
0x14fa   :  { %17791 = vmatpush3.bf16.msra.mxu0 %v19280_v44 }
0x14fb   :  { %v5146_v24 = vmul.f32 %v20955_v41, %v20955_v41  ;;  %17792 = vmatprep.subr.bf16.mxu0 %v19652_v5 }
0x14fd   :  { %v5150_v33 = vsel %vm132_vm0, %v5146_v24, 0.0 }
0x14fe   :  { %5151 = vadd.xlane.f32.xlu1 %v5150_v33  ;;  %17793 = vmatpush3.bf16.msra.mxu0 %v19282_v18 }
0x14ff   :  { %17794 = vmatprep.subr.bf16.mxu0 %v19652_v5 }
0x1502   :  { %17795 = vmatpush3.bf16.msra.mxu0 %v19283_v27 }
0x1503   :  { %17796 = vmatprep.subr.bf16.mxu0 %v19652_v5 }
0x1506   :  { %17797 = vmatpush3.bf16.msra.mxu0 %v19284_v43 }
0x1507   :  { %17818 = vmatprep.subr.bf16.mxu0 %v19652_v5 }
0x158b   :  { %v5152_v34 = vpop.xlane.xlu1 %5151 }
0x158c   :  { %v5154_v15 = vmul.f32 0.03125, %v5152_v34 }
0x158e   :  { %v5156_v48 = vadd.f32 1e-06, %v5154_v15 }
0x1590   :  { %19463 = vrsqrt.f32 %v5156_v48  ;;  %v21183_v48 = vld [vmem:[%s23354_s14 + $0x80] sm:$0xff]  }
0x159a   :  { %v19464_v49 = vpop.eup %19463 }
0x159b   :  { %v5160_v61 = vmul.f32 %v19464_v49, %v20955_v41 }
0x159d   :  { %v5168_v7 = vmul.f32 %v15822_v59, %v5160_v61 }
0x159f   :  { %v5174_v38 = vpack.c.bf16 %v5168_v7, %v5167_v29  ;;  %v21202_v29 = vld [vmem:[%s23354_s14 + $0xa0] sm:$0xff]  }
0x15a1   :  { %17787 = vmatmul.mubr.msk.bf16.vlgmr.msra.gmra.mrb[188].mxu1 %vm132_vm0, %v5174_v38 }
0x15a2   :  { %17803 = vmatpush3.bf16.msra.mxu1 %v20989_v6  ;;  %17806 = vmatprep.mubr.msk.bf16.mxu1 %vm19653_vm1, %v19652_v5 }
0x15a3   :  { %17804 = vmatprep.subr.bf16.mxu1 %v19652_v5 }
0x15a6   :  { %17805 = vmatpush3.bf16.msra.mxu1 %v20997_v47 }
0x15a7   :  { %17810 = vmatprep.subr.bf16.mxu1 %v19652_v5 }
0x15a9   :  { %17807 = vmatmul.mubr.msk.bf16.vlgmr.msra.gmra.mrb[192].mxu1 %vm132_vm0, %v21002_v12 }
0x15aa   :  { %17811 = vmatpush3.bf16.msra.mxu1 %v21008_v9  ;;  %17814 = vmatprep.mubr.msk.bf16.mxu1 %vm19653_vm1, %v19652_v5 }
0x15ab   :  { %17812 = vmatprep.subr.bf16.mxu1 %v19652_v5 }
0x15ae   :  { %17813 = vmatpush3.bf16.msra.mxu1 %v21017_v11 }
0x15af   :  { %17826 = vmatprep.subr.bf16.mxu1 %v19652_v5 }
0x15b1   :  { %17815 = vmatmul.mubr.msk.bf16.vlgmr.msra.gmra.mrb[196].mxu1 %vm132_vm0, %v21002_v12 }
0x15b2   :  { %17827 = vmatpush3.bf16.msra.mxu1 %v21026_v10  ;;  %17830 = vmatprep.mubr.msk.bf16.mxu1 %vm19653_vm1, %v19652_v5 }
0x15b3   :  { %17828 = vmatprep.subr.bf16.mxu1 %v19652_v5 }
0x15b6   :  { %17829 = vmatpush3.bf16.msra.mxu1 %v21035_v13 }
0x15b7   :  { %17842 = vmatprep.subr.bf16.mxu1 %v19652_v5 }
0x15b9   :  { %17831 = vmatmul.mubr.msk.bf16.vlgmr.msra.gmra.mrb[200].mxu1 %vm132_vm0, %v21002_v12 }
0x15ba   :  { %17843 = vmatpush3.bf16.msra.mxu1 %v21044_v37  ;;  %17846 = vmatprep.mubr.msk.bf16.mxu1 %vm19653_vm1, %v19652_v5 }
0x15bb   :  { %17844 = vmatprep.subr.bf16.mxu1 %v19652_v5 }
0x15be   :  { %17845 = vmatpush3.bf16.msra.mxu1 %v21053_v22 }
0x15bf   :  { %17858 = vmatprep.subr.bf16.mxu1 %v19652_v5 }
0x15c1   :  { %17847 = vmatmul.mubr.msk.bf16.vlgmr.msra.gmra.mrb[204].mxu1 %vm132_vm0, %v21002_v12 }
0x15c2   :  { %17859 = vmatpush3.bf16.msra.mxu1 %v21062_v30  ;;  %17862 = vmatprep.mubr.msk.bf16.mxu1 %vm19653_vm1, %v19652_v5 }
0x15c3   :  { %17860 = vmatprep.subr.bf16.mxu1 %v19652_v5 }
0x15c6   :  { %17861 = vmatpush3.bf16.msra.mxu1 %v21071_v17 }
0x15c7   :  { %17874 = vmatprep.subr.bf16.mxu1 %v19652_v5 }
0x15c9   :  { %17863 = vmatmul.mubr.msk.bf16.vlgmr.msra.gmra.mrb[208].mxu1 %vm132_vm0, %v21002_v12 }
0x15ca   :  { %17875 = vmatpush3.bf16.msra.mxu1 %v21080_v2  ;;  %17878 = vmatprep.mubr.msk.bf16.mxu1 %vm19653_vm1, %v19652_v5 }
0x15cb   :  { %17876 = vmatprep.subr.bf16.mxu1 %v19652_v5 }
0x15ce   :  { %17877 = vmatpush3.bf16.msra.mxu1 %v21089_v26 }
0x15cf   :  { %17890 = vmatprep.subr.bf16.mxu1 %v19652_v5 }
0x15d1   :  { %17879 = vmatmul.mubr.msk.bf16.vlgmr.msra.gmra.mrb[212].mxu1 %vm132_vm0, %v21002_v12 }
0x15d2   :  { %17891 = vmatpush3.bf16.msra.mxu1 %v21098_v3  ;;  %17894 = vmatprep.mubr.msk.bf16.mxu1 %vm19653_vm1, %v19652_v5 }
0x15d3   :  { %17892 = vmatprep.subr.bf16.mxu1 %v19652_v5 }
0x15d6   :  { %17893 = vmatpush3.bf16.msra.mxu1 %v21107_v31 }
0x15d7   :  { %17904 = vmatprep.subr.bf16.mxu1 %v19652_v5 }
0x15d9   :  { %17895 = vmatmul.mubr.msk.bf16.vlgmr.msra.gmra.mrb[216].mxu1 %vm132_vm0, %v21002_v12 }
0x15da   :  { %17906 = vmatprep.mubr.msk.bf16.mxu1 %vm19653_vm1, %v19652_v5 }
0x1674   :  { %v5224_v14 = vpop.f32.mrb[188].mxu1 }
0x1675   :  { %v17788_v53 = vpop.f32.mrb[189].mxu1  ;;  %v5231_v40 = vmax.f32 %v5224_v14, 0.0 }
0x1676   :  { %v5227_v19 = vpop.f32.mrb[190].mxu1 }
0x1677   :  { %v5232_v55 = vmax.f32 %v5227_v19, 0.0  ;;  %v17789_v35 = vpop.f32.mrb[191].mxu1 }
0x1679   :  { %v5242_v56 = vpack.c.bf16 %v5232_v55, %v5231_v40 }
0x167b   :  { %17799 = vmatmul.mubr.msk.bf16.vlgmr.msra.gmra.mrb[204].mxu0 %vm2674_vm4, %v5242_v56 }
0x167c   :  { %17819 = vmatpush3.bf16.msra.mxu0 %v21129_v39  ;;  %17822 = vmatprep.mubr.msk.bf16.mxu0 %vm19653_vm1, %v19652_v5  ;;  %v21140_v23 = vpop.f32.mrb[192].mxu1 }
0x167d   :  { %17820 = vmatprep.subr.bf16.mxu0 %v19652_v5  ;;  %v17808_v28 = vpop.f32.mrb[193].mxu1 }
0x167e   :  { %v5475_v24 = vpop.f32.mrb[194].mxu1 }
0x167f   :  { %v17809_v33 = vpop.f32.mrb[195].mxu1 }
0x1680   :  { %17821 = vmatpush3.bf16.msra.mxu0 %v21136_v36 }
0x1681   :  { %17834 = vmatprep.subr.bf16.mxu0 %v19652_v5 }
0x1683   :  { %17823 = vmatmul.mubr.msk.bf16.vlgmr.msra.gmra.mrb[208].mxu0 %vm132_vm0, %v21002_v12 }
0x1684   :  { %17835 = vmatpush3.bf16.msra.mxu0 %v21147_v20  ;;  %17838 = vmatprep.mubr.msk.bf16.mxu0 %vm19653_vm1, %v19652_v5  ;;  %v5524_v44 = vpop.f32.mrb[196].mxu1 }
0x1685   :  { %17836 = vmatprep.subr.bf16.mxu0 %v19652_v5  ;;  %v17816_v18 = vpop.f32.mrb[197].mxu1  ;;  %v6051_v7 = vpack.c.bf16 %v5524_v44, %v5524_v44 }
0x1686   :  { %v5527_v21 = vpop.f32.mrb[198].mxu1 }
0x1687   :  { %v17817_v25 = vpop.f32.mrb[199].mxu1 }
0x1688   :  { %17837 = vmatpush3.bf16.msra.mxu0 %v21156_v45 }
0x1689   :  { %17850 = vmatprep.subr.bf16.mxu0 %v19652_v5 }
0x168b   :  { %17839 = vmatmul.mubr.msk.bf16.vlgmr.msra.gmra.mrb[212].mxu0 %vm132_vm0, %v21002_v12 }
0x168c   :  { %17851 = vmatpush3.bf16.msra.mxu0 %v21165_v32  ;;  %v5628_v42 = vpop.f32.mrb[200].mxu1  ;;  %17854 = vmatprep.mubr.msk.bf16.mxu0 %vm19653_vm1, %v19652_v5 }
0x168d   :  { %17852 = vmatprep.subr.bf16.mxu0 %v19652_v5  ;;  %v17832_v34 = vpop.f32.mrb[201].mxu1  ;;  %v6053_v40 = vpack.c.bf16 %v5628_v42, %v5628_v42 }
0x168e   :  { %v5631_v46 = vpop.f32.mrb[202].mxu1 }
0x168f   :  { %v17833_v15 = vpop.f32.mrb[203].mxu1 }
0x1690   :  { %17853 = vmatpush3.bf16.msra.mxu0 %v21174_v50 }
0x1691   :  { %17866 = vmatprep.subr.bf16.mxu0 %v19652_v5 }
0x1693   :  { %17855 = vmatmul.mubr.msk.bf16.vlgmr.msra.gmra.mrb[216].mxu0 %vm132_vm0, %v21002_v12 }
0x1694   :  { %v5732_v16 = vpop.f32.mrb[204].mxu1  ;;  %17867 = vmatpush3.bf16.msra.mxu0 %v21183_v48  ;;  %17870 = vmatprep.mubr.msk.bf16.mxu0 %vm19653_vm1, %v19652_v5 }
0x1695   :  { %v6055_v58 = vpack.c.bf16 %v5732_v16, %v5732_v16  ;;  %17868 = vmatprep.subr.bf16.mxu0 %v19652_v5  ;;  %v17848_v49 = vpop.f32.mrb[205].mxu1 }
0x1696   :  { %v5735_v59 = vpop.f32.mrb[206].mxu1 }
0x1697   :  { %v6108_v61 = vsel %vm846_vm2, %v6055_v58, 0  ;;  %v17849_v4 = vpop.f32.mrb[207].mxu1  ;;  %v21240_v59 = vand.u32 127, %v80_v54 }
0x1698   :  { %17869 = vmatpush3.bf16.msra.mxu0 %v21192_v57  ;;  %17905 = vmatpush3.bf16.xpose.msra.mxu1 %v6108_v61  ;;  %v21245_v61 = vld [vmem:[%s23376_s30] sm:$0x3] }
0x1699   :  { %17882 = vmatprep.subr.bf16.mxu0 %v19652_v5  ;;  %17916 = vmatprep.subr.bf16.mxu1 %v19652_v5  ;;  %vm84_vm5 = vcmp.le.s32.totalorder %v21240_v59, %v20025_v60 }
0x169b   :  { %17871 = vmatmul.mubr.msk.bf16.vlgmr.msra.gmra.mrb[220].mxu0 %vm132_vm0, %v21002_v12 }
0x169c   :  { %v5836_v38 = vpop.f32.mrb[208].mxu1  ;;  %17883 = vmatpush3.bf16.msra.mxu0 %v21202_v29  ;;  %17886 = vmatprep.mubr.msk.bf16.mxu0 %vm19653_vm1, %v19652_v5 }
0x169d   :  { %v6057_v27 = vpack.c.bf16 %v5836_v38, %v5836_v38  ;;  %17884 = vmatprep.subr.bf16.mxu0 %v19652_v5  ;;  %v17864_v43 = vpop.f32.mrb[209].mxu1 }
0x169e   :  { %v5839_v14 = vpop.f32.mrb[210].mxu1 }
0x169f   :  { %17907 = vmatmul.mubr.msk.bf16.vlgmr.msra.gmra.mrb[220].mxu1 %vm846_vm2, %v6051_v7  ;;  %v6200_v53 = vsel %vm846_vm2, %v6057_v27, 0  ;;  %v17865_v19 = vpop.f32.mrb[211].mxu1  ;;  %v100_v27 = vrot.slane %v21245_v61, %v91_v63  ;;  %v21253_v14 = vsel %vm84_vm5, 1.0, %v19652_v5 }
0x16a0   :  { %17885 = vmatpush3.bf16.msra.mxu0 %v21212_v62  ;;  %17917 = vmatpush3.bf16.xpose.msra.mxu1 %v6200_v53 }
0x16a1   :  { %17918 = vmatprep.mubr.msk.bf16.mxu1 %vm19653_vm1, %v19652_v5  ;;  %17928 = vmatprep.subr.bf16.mxu1 %v19652_v5  ;;  %v101_v19 = vmul.f32 %v21253_v14, %v100_v27 }
0x16a2   :  { %17898 = vmatprep.subr.bf16.mxu0 %v19652_v5 }
0x16a3   :  { %17887 = vmatmul.mubr.msk.bf16.vlgmr.msra.gmra.mrb[224].mxu0 %vm132_vm0, %v21002_v12 }
0x16a4   :  { %v5940_v55 = vpop.f32.mrb[212].mxu1  ;;  %17900 = vmatprep.mubr.msk.bf16.mxu0 %vm19653_vm1, %v19652_v5 }
0x16a5   :  { %v6291_v35 = vpack.c.bf16 %v5940_v55, %v5940_v55  ;;  %v17880_v56 = vpop.f32.mrb[213].mxu1  ;;  %v6050_v55 = vpack.c.bf16 %v21140_v23, %v21140_v23  ;;  %v21268_v23 = vld [vmem:[%s23377_s22 + $0x8] sm:$0xff] }
0x16a6   :  { %v5943_v28 = vpop.f32.mrb[214].mxu1 }
0x16a7   :  { %17919 = vmatmul.mubr.msk.bf16.vlgmr.msra.gmra.mrb[224].mxu1 %vm846_vm2, %v6053_v40  ;;  %v17881_v24 = vpop.f32.mrb[215].mxu1  ;;  %v6344_v33 = vsel %vm1086_vm3, %v6291_v35, 0  ;;  %v102_v28 = vsub.f32 1.0, %v101_v19 }
0x16a8   :  { %17929 = vmatpush3.bf16.msra.mxu1 %v6344_v33  ;;  %17930 = vmatprep.mubr.msk.bf16.mxu1 %vm19653_vm1, %v19652_v5 }
0x16a9   :  { %17940 = vmatprep.subr.bf16.mxu1 %v19652_v5 }
0x16ac   :  { %v21233_v44 = vpop.f32.mrb[216].mxu1 }
0x16ad   :  { %v17896_v12 = vpop.f32.mrb[217].mxu1 }
0x16ae   :  { %v6047_v18 = vpop.f32.mrb[218].mxu1  ;;  %v103_v12 = vmul.f32 -1e+09, %v102_v28 }
0x16af   :  { %v17897_v21 = vpop.f32.mrb[219].mxu1 }
0x174e   :  { %v21235_v25 = vpop.f32.mrb[204].mxu0 }
0x174f   :  { %v17800_v42 = vpop.f32.mrb[205].mxu0 }
0x1750   :  { %v21237_v34 = vpop.f32.mrb[206].mxu0 }
0x1751   :  { %v17801_v46 = vpop.f32.mrb[207].mxu0 }
0x1756   :  { %v5576_v15 = vpop.f32.mrb[208].mxu0 }
0x1757   :  { %v17824_v16 = vpop.f32.mrb[209].mxu0  ;;  %v6052_v21 = vpack.c.bf16 %v5576_v15, %v5576_v15 }
0x1758   :  { %v5579_v58 = vpop.f32.mrb[210].mxu0  ;;  %v21271_v16 = vadd.f32 %v103_v12, %v21268_v23 }
0x1759   :  { %v17825_v49 = vpop.f32.mrb[211].mxu0 }
0x175e   :  { %v5680_v4 = vpop.f32.mrb[212].mxu0 }
0x175f   :  { %v6054_v7 = vpack.c.bf16 %v5680_v4, %v5680_v4  ;;  %v17840_v38 = vpop.f32.mrb[213].mxu0 }
0x1760   :  { %v5683_v43 = vpop.f32.mrb[214].mxu0 }
0x1761   :  { %v17841_v54 = vpop.f32.mrb[215].mxu0  ;;  %v6062_v53 = vsel %vm846_vm2, %v6054_v7, 0  ;;  %v21282_v43 = vld [vmem:[%s23377_s22 + $0x18] sm:$0xff] }
0x1762   :  { %17899 = vmatpush3.bf16.xpose.msra.mxu0 %v6062_v53 }
0x1763   :  { %17910 = vmatprep.subr.bf16.mxu0 %v19652_v5 }
0x1766   :  { %v5784_v40 = vpop.f32.mrb[216].mxu0 }
0x1767   :  { %v6056_v35 = vpack.c.bf16 %v5784_v40, %v5784_v40  ;;  %v17856_v56 = vpop.f32.mrb[217].mxu0 }
0x1768   :  { %v5787_v63 = vpop.f32.mrb[218].mxu0 }
0x1769   :  { %v17857_v24 = vpop.f32.mrb[219].mxu0  ;;  %17901 = vmatmul.mubr.msk.bf16.vlgmr.msra.gmra.mrb[228].mxu0 %vm846_vm2, %v6050_v55  ;;  %v6154_v33 = vsel %vm846_vm2, %v6056_v35, 0  ;;  %v21288_v55 = vadd.f32 %v103_v12, %v21282_v43 }
0x176a   :  { %17911 = vmatpush3.bf16.xpose.msra.mxu0 %v6154_v33  ;;  %17912 = vmatprep.mubr.msk.bf16.mxu0 %vm19653_vm1, %v19652_v5 }
0x176b   :  { %17922 = vmatprep.subr.bf16.mxu0 %v19652_v5 }
0x176e   :  { %v5888_v18 = vpop.f32.mrb[220].mxu0 }
0x176f   :  { %v6290_v42 = vpack.c.bf16 %v5888_v18, %v5888_v18  ;;  %v17872_v46 = vpop.f32.mrb[221].mxu0 }
0x1770   :  { %v5891_v58 = vpop.f32.mrb[222].mxu0 }
0x1771   :  { %v17873_v49 = vpop.f32.mrb[223].mxu0  ;;  %17913 = vmatmul.mubr.msk.bf16.vlgmr.msra.gmra.mrb[232].mxu0 %vm846_vm2, %v6052_v21  ;;  %v6298_v4 = vsel %vm1086_vm3, %v6290_v42, 0 }
0x1772   :  { %v6144_v7 = vpop.f32.mrb[220].mxu1  ;;  %17923 = vmatpush3.bf16.msra.mxu0 %v6298_v4  ;;  %17924 = vmatprep.mubr.msk.bf16.mxu0 %vm19653_vm1, %v19652_v5 }
0x1773   :  { %v6145_v38 = vadd.f32 %v6144_v7, %v21271_v16  ;;  %v17908_v27 = vpop.f32.mrb[221].mxu1  ;;  %17934 = vmatprep.subr.bf16.mxu0 %v19652_v5 }
0x1774   :  { %v6147_v15 = vpop.f32.mrb[222].mxu1 }
0x1775   :  { %v6245_v54 = vsel %vm846_vm2, %v6145_v38, -inf  ;;  %v17909_v53 = vpop.f32.mrb[223].mxu1 }
0x1776   :  { %6246 = vmax.xlane.f32.xlu0 %v6245_v54  ;;  %v21285_v19 = vpop.f32.mrb[224].mxu0 }
0x1777   :  { %v17888_v40 = vpop.f32.mrb[225].mxu0 }
0x1778   :  { %v5995_v35 = vpop.f32.mrb[226].mxu0  ;;  %v21297_v40 = vld [vmem:[%s23377_s22] sm:$0xff] }
0x1779   :  { %v17889_v56 = vpop.f32.mrb[227].mxu0 }
0x177a   :  { %v6236_v28 = vpop.f32.mrb[224].mxu1 }
0x177b   :  { %v6237_v63 = vadd.f32 %v6236_v28, %v21288_v55  ;;  %v17920_v24 = vpop.f32.mrb[225].mxu1 }
0x177c   :  { %v6239_v33 = vpop.f32.mrb[226].mxu1  ;;  %v21306_v24 = vld [vmem:[%s23377_s22 + $0x10] sm:$0xff] }
0x177d   :  { %v6251_v18 = vsel %vm846_vm2, %v6237_v63, -inf  ;;  %v17921_v21 = vpop.f32.mrb[227].mxu1 }
0x177e   :  { %6252 = vmax.xlane.f32.xlu0 %v6251_v18  ;;  %v21310_v21 = vadd.f32 %v103_v12, %v21306_v24 }
0x1803   :  { %v6247_v42 = vpop.xlane.xlu0 %6246 }
0x1804   :  { %v6255_v46 = vsub.f32 %v6145_v38, %v6247_v42  ;;  %v21300_v38 = vadd.f32 %v103_v12, %v21297_v40 }
0x1806   :  { %v6260_v58 = vmul.f32 1.442695, %v6255_v46 }
0x1808   :  { %19465 = vpow2.f32 %v6260_v58 }
0x180b   :  { %v6253_v49 = vpop.xlane.xlu0 %6252 }
0x180c   :  { %v6257_v4 = vsub.f32 %v6237_v63, %v6253_v49 }
0x180e   :  { %v6264_v7 = vmul.f32 1.442695, %v6257_v4 }
0x1810   :  { %19467 = vpow2.f32 %v6264_v7 }
0x1812   :  { %v19466_v27 = vpop.eup %19465 }
0x1813   :  { %v6269_v15 = vsel %vm846_vm2, %v19466_v27, 0.0 }
0x1814   :  { %6270 = vadd.xlane.f32.xlu0 %v6269_v15 }
0x181a   :  { %v19468_v54 = vpop.eup %19467 }
0x181b   :  { %v6275_v53 = vsel %vm846_vm2, %v19468_v54, 0.0 }
0x181c   :  { %6276 = vadd.xlane.f32.xlu0 %v6275_v53 }
0x183c   :  { %v6098_v35 = vpop.f32.mrb[228].mxu0 }
0x183d   :  { %v17902_v56 = vpop.f32.mrb[229].mxu0  ;;  %v6099_v28 = vadd.f32 %v6098_v35, %v21300_v38 }
0x183e   :  { %v6101_v63 = vpop.f32.mrb[230].mxu0  ;;  %v6293_v56 = vpack.c.bf16 %v21233_v44, %v21233_v44 }
0x183f   :  { %v17903_v33 = vpop.f32.mrb[231].mxu0  ;;  %v6242_v18 = vsel %vm846_vm2, %v6099_v28, -inf }
0x1840   :  { %6243 = vmax.xlane.f32.xlu1 %v6242_v18  ;;  %v6436_v33 = vsel %vm1086_vm3, %v6293_v56, 0 }
0x1844   :  { %v6190_v42 = vpop.f32.mrb[232].mxu0 }
0x1845   :  { %v17914_v46 = vpop.f32.mrb[233].mxu0  ;;  %v6191_v58 = vadd.f32 %v6190_v42, %v21310_v21 }
0x1846   :  { %v6193_v49 = vpop.f32.mrb[234].mxu0 }
0x1847   :  { %v17915_v4 = vpop.f32.mrb[235].mxu0  ;;  %v6248_v7 = vsel %vm846_vm2, %v6191_v58, -inf }
0x1848   :  { %6249 = vmax.xlane.f32.xlu1 %v6248_v7 }
0x18a1   :  { %v6271_v15 = vpop.xlane.xlu0 %6270 }
0x18a2   :  { %19469 = vrcp.f32 %v6271_v15 }
0x18a9   :  { %v6277_v53 = vpop.xlane.xlu0 %6276 }
0x18aa   :  { %19471 = vrcp.f32 %v6277_v53 }
0x18ac   :  { %v19470_v35 = vpop.eup %19469 }
0x18ad   :  { %v6283_v63 = vmul.f32 %v19470_v35, %v19466_v27 }
0x18af   :  { %v6287_v12 = vpack.c.bf16 %v6283_v63, %v6283_v63 }
0x18b1   :  { %17931 = vmatmul.mubr.msk.bf16.vlgmr.msra.gmra.mrb[228].mxu1 %vm846_vm2, %v6287_v12 }
0x18b2   :  { %17941 = vmatpush3.bf16.msra.mxu1 %v6436_v33  ;;  %17942 = vmatprep.mubr.msk.bf16.mxu1 %vm19653_vm1, %v19652_v5 }
0x18b3   :  { %17952 = vmatprep.subr.bf16.mxu1 %v19652_v5 }
0x18b4   :  { %v19472_v18 = vpop.eup %19471 }
0x18b5   :  { %v6285_v42 = vmul.f32 %v19472_v18, %v19468_v54  ;;  %v5342_v54 = vld [vmem:[%s23375_s23 + $0x8] sm:$0xff] }
0x18b6   :  { %v5345_v56 = vmul.f32 %v5342_v54, %v5342_v54 }
0x18b7   :  { %v6289_v46 = vpack.c.bf16 %v6285_v42, %v6285_v42 }
0x18b9   :  { %17943 = vmatmul.mubr.msk.bf16.vlgmr.msra.gmra.mrb[232].mxu1 %vm846_vm2, %v6289_v46 }
0x18ba   :  { %17954 = vmatprep.mubr.msk.bf16.mxu1 %vm19653_vm1, %v19652_v5 }
0x18cd   :  { %v6244_v44 = vpop.xlane.xlu1 %6243 }
0x18ce   :  { %v6254_v27 = vsub.f32 %v6099_v28, %v6244_v44  ;;  %v5349_v28 = vsel %vm132_vm0, %v5345_v56, 0.0  ;;  %v6292_v44 = vpack.c.bf16 %v21285_v19, %v21285_v19  ;;  %v5419_v19 = vld [vmem:[%s23355_s15] sm:$0xf] }
0x18d0   :  { %v6258_v49 = vmul.f32 1.442695, %v6254_v27 }
0x18d2   :  { %19473 = vpow2.f32 %v6258_v49 }
0x18d5   :  { %v6250_v4 = vpop.xlane.xlu1 %6249 }
0x18d6   :  { %v6256_v7 = vsub.f32 %v6191_v58, %v6250_v4  ;;  %v5420_v58 = vld [vmem:[%s23355_s15 + $0x4] sm:$0xf] }
0x18d7   :  { %v21334_v33 = vsel %vm1086_vm3, %v5420_v58, 0  ;;  %v5422_v58 = vld [vmem:[%s23355_s15 + $0xc] sm:$0xf] }
0x18d8   :  { %v6262_v15 = vmul.f32 1.442695, %v6256_v7  ;;  %17953 = vmatpush3.bf16.msra.mxu1 %v21334_v33 }
0x18d9   :  { %17964 = vmatprep.subr.bf16.mxu1 %v19652_v5 }
0x18da   :  { %19475 = vpow2.f32 %v6262_v15 }
0x18dc   :  { %v19474_v53 = vpop.eup %19473 }
0x18dd   :  { %v6266_v35 = vsel %vm846_vm2, %v19474_v53, 0.0 }
0x18de   :  { %6267 = vadd.xlane.f32.xlu1 %v6266_v35  ;;  %v6390_v35 = vsel %vm1086_vm3, %v6292_v44, 0 }
0x18e4   :  { %v19476_v63 = vpop.eup %19475 }
0x18e5   :  { %v6272_v12 = vsel %vm846_vm2, %v19476_v63, 0.0 }
0x18e6   :  { %6273 = vadd.xlane.f32.xlu1 %v6272_v12 }
0x18ea   :  { %5350 = vadd.xlane.f32.xlu1 %v5349_v28  ;;  %v21349_v28 = vsel %vm1086_vm3, %v5419_v19, 0 }
0x196b   :  { %v6268_v18 = vpop.xlane.xlu1 %6267 }
0x196c   :  { %19477 = vrcp.f32 %v6268_v18 }
0x1973   :  { %v6274_v42 = vpop.xlane.xlu1 %6273 }
0x1974   :  { %19479 = vrcp.f32 %v6274_v42 }
0x1976   :  { %v19478_v46 = vpop.eup %19477 }
0x1977   :  { %v6282_v27 = vmul.f32 %v19478_v46, %v19474_v53  ;;  %v5351_v49 = vpop.xlane.xlu1 %5350 }
0x1978   :  { %v5353_v4 = vmul.f32 0.03125, %v5351_v49 }
0x1979   :  { %v6286_v7 = vpack.c.bf16 %v6282_v27, %v6282_v27 }
0x197a   :  { %v5355_v15 = vadd.f32 1e-06, %v5353_v4 }
0x197b   :  { %17925 = vmatmul.mubr.msk.bf16.vlgmr.msra.gmra.mrb[236].mxu0 %vm846_vm2, %v6286_v7 }
0x197c   :  { %17935 = vmatpush3.bf16.msra.mxu0 %v6390_v35  ;;  %17936 = vmatprep.mubr.msk.bf16.mxu0 %vm19653_vm1, %v19652_v5  ;;  %19481 = vrsqrt.f32 %v5355_v15 }
0x197d   :  { %17946 = vmatprep.subr.bf16.mxu0 %v19652_v5 }
0x197e   :  { %v19480_v56 = vpop.eup %19479 }
0x197f   :  { %v6284_v53 = vmul.f32 %v19480_v56, %v19476_v63  ;;  %v21359_v63 = vsel %vm1086_vm3, %v5422_v58, 0 }
0x1981   :  { %v6288_v12 = vpack.c.bf16 %v6284_v53, %v6284_v53 }
0x1983   :  { %17937 = vmatmul.mubr.msk.bf16.vlgmr.msra.gmra.mrb[240].mxu0 %vm846_vm2, %v6288_v12 }
0x1984   :  { %v6380_v18 = vpop.f32.mrb[228].mxu1  ;;  %17947 = vmatpush3.bf16.msra.mxu0 %v21349_v28  ;;  %17948 = vmatprep.mubr.msk.bf16.mxu0 %vm19653_vm1, %v19652_v5 }
0x1985   :  { %v6479_v42 = vpack.c.bf16 %v6380_v18, %v6380_v18  ;;  %v17932_v46 = vpop.f32.mrb[229].mxu1  ;;  %17958 = vmatprep.subr.bf16.mxu0 %v19652_v5 }
0x1986   :  { %v6383_v44 = vpop.f32.mrb[230].mxu1  ;;  %v19482_v49 = vpop.eup %19481 }
0x1987   :  { %v17933_v27 = vpop.f32.mrb[231].mxu1  ;;  %17955 = vmatmul.mubr.msk.bf16.vlgmr.msra.gmra.mrb[236].mxu1 %vm846_vm2, %v6479_v42  ;;  %v5359_v4 = vmul.f32 %v19482_v49, %v5342_v54 }
0x1988   :  { %17965 = vmatpush3.bf16.msra.mxu1 %v21359_v63  ;;  %17966 = vmatprep.mubr.msk.bf16.mxu1 %vm19653_vm1, %v19652_v5 }
0x1989   :  { %17978 = vmatprep.subr.bf16.mxu1 %v19652_v5  ;;  %v5367_v19 = vmul.f32 %v20984_v8, %v5359_v4  ;;  %v5421_v8 = vld [vmem:[%s23355_s15 + $0x8] sm:$0xf] }
0x198b   :  { %v21373_v12 = vpack.c.bf16 %v5367_v19, %v5367_v19 }
0x198c   :  { %v6472_v7 = vpop.f32.mrb[232].mxu1 }
0x198d   :  { %v6481_v15 = vpack.c.bf16 %v6472_v7, %v6472_v7  ;;  %v17944_v35 = vpop.f32.mrb[233].mxu1 }
0x198e   :  { %v6475_v56 = vpop.f32.mrb[234].mxu1 }
0x198f   :  { %v17945_v53 = vpop.f32.mrb[235].mxu1  ;;  %17967 = vmatmul.mubr.msk.bf16.vlgmr.msra.gmra.mrb[240].mxu1 %vm846_vm2, %v6481_v15 }
0x1990   :  { %17979 = vmatpush3.bf16.msra.mxu1 %v21008_v9  ;;  %17982 = vmatprep.mubr.msk.bf16.mxu1 %vm19653_vm1, %v19652_v5 }
0x1991   :  { %17980 = vmatprep.subr.bf16.mxu1 %v19652_v5 }
0x1994   :  { %17981 = vmatpush3.bf16.msra.mxu1 %v21017_v11 }
0x1995   :  { %17994 = vmatprep.subr.bf16.mxu1 %v19652_v5 }
0x1997   :  { %17983 = vmatmul.mubr.msk.bf16.vlgmr.msra.gmra.mrb[244].mxu1 %vm132_vm0, %v21373_v12 }
0x1998   :  { %17995 = vmatpush3.bf16.msra.mxu1 %v21026_v10  ;;  %17998 = vmatprep.mubr.msk.bf16.mxu1 %vm19653_vm1, %v19652_v5 }
0x1999   :  { %17996 = vmatprep.subr.bf16.mxu1 %v19652_v5 }
0x199c   :  { %17997 = vmatpush3.bf16.msra.mxu1 %v21035_v13  ;;  %v21425_v13 = vsel %vm1086_vm3, %v5421_v8, 0 }
0x199d   :  { %18010 = vmatprep.subr.bf16.mxu1 %v19652_v5 }
0x199f   :  { %17999 = vmatmul.mubr.msk.bf16.vlgmr.msra.gmra.mrb[248].mxu1 %vm132_vm0, %v21373_v12 }
0x19a0   :  { %18011 = vmatpush3.bf16.msra.mxu1 %v21044_v37  ;;  %18014 = vmatprep.mubr.msk.bf16.mxu1 %vm19653_vm1, %v19652_v5 }
0x19a1   :  { %18012 = vmatprep.subr.bf16.mxu1 %v19652_v5 }
0x19a4   :  { %18013 = vmatpush3.bf16.msra.mxu1 %v21053_v22 }
0x19a5   :  { %18026 = vmatprep.subr.bf16.mxu1 %v19652_v5 }
0x19a7   :  { %18015 = vmatmul.mubr.msk.bf16.vlgmr.msra.gmra.mrb[252].mxu1 %vm132_vm0, %v21373_v12 }
0x19a8   :  { %18027 = vmatpush3.bf16.msra.mxu1 %v21062_v30  ;;  %18030 = vmatprep.mubr.msk.bf16.mxu1 %vm19653_vm1, %v19652_v5 }
0x19a9   :  { %18028 = vmatprep.subr.bf16.mxu1 %v19652_v5 }
0x19ac   :  { %18029 = vmatpush3.bf16.msra.mxu1 %v21071_v17 }
0x19ad   :  { %18042 = vmatprep.subr.bf16.mxu1 %v19652_v5 }
0x19af   :  { %18031 = vmatmul.mubr.msk.bf16.vlgmr.msra.gmra.mrb[0].mxu1 %vm132_vm0, %v21373_v12 }
0x19b0   :  { %18043 = vmatpush3.bf16.msra.mxu1 %v21080_v2  ;;  %18046 = vmatprep.mubr.msk.bf16.mxu1 %vm19653_vm1, %v19652_v5 }
0x19b1   :  { %18044 = vmatprep.subr.bf16.mxu1 %v19652_v5 }
0x19b4   :  { %18045 = vmatpush3.bf16.msra.mxu1 %v21089_v26 }
0x19b5   :  { %18058 = vmatprep.subr.bf16.mxu1 %v19652_v5 }
0x19b7   :  { %18047 = vmatmul.mubr.msk.bf16.vlgmr.msra.gmra.mrb[4].mxu1 %vm132_vm0, %v21373_v12 }
0x19b8   :  { %18059 = vmatpush3.bf16.msra.mxu1 %v21098_v3  ;;  %18062 = vmatprep.mubr.msk.bf16.mxu1 %vm19653_vm1, %v19652_v5 }
0x19b9   :  { %18060 = vmatprep.subr.bf16.mxu1 %v19652_v5 }
0x19bc   :  { %18061 = vmatpush3.bf16.msra.mxu1 %v21107_v31 }
0x19bd   :  { %18072 = vmatprep.subr.bf16.mxu1 %v19652_v5 }
0x19bf   :  { %18063 = vmatmul.mubr.msk.bf16.vlgmr.msra.gmra.mrb[8].mxu1 %vm132_vm0, %v21373_v12 }
0x19c0   :  { %18074 = vmatprep.mubr.msk.bf16.mxu1 %vm19653_vm1, %v19652_v5 }
0x1a4e   :  { %v6334_v9 = vpop.f32.mrb[236].mxu0 }
0x1a4f   :  { %v6478_v11 = vpack.c.bf16 %v6334_v9, %v6334_v9  ;;  %v17926_v10 = vpop.f32.mrb[237].mxu0 }
0x1a50   :  { %v6337_v37 = vpop.f32.mrb[238].mxu0 }
0x1a51   :  { %v17927_v22 = vpop.f32.mrb[239].mxu0  ;;  %17949 = vmatmul.mubr.msk.bf16.vlgmr.msra.gmra.mrb[244].mxu0 %vm846_vm2, %v6478_v11 }
0x1a52   :  { %17959 = vmatpush3.bf16.msra.mxu0 %v21425_v13  ;;  %17960 = vmatprep.mubr.msk.bf16.mxu0 %vm19653_vm1, %v19652_v5 }
0x1a53   :  { %17970 = vmatprep.subr.bf16.mxu0 %v19652_v5 }
0x1a56   :  { %v6426_v30 = vpop.f32.mrb[240].mxu0 }
0x1a57   :  { %v6480_v17 = vpack.c.bf16 %v6426_v30, %v6426_v30  ;;  %v17938_v2 = vpop.f32.mrb[241].mxu0 }
0x1a58   :  { %v6429_v26 = vpop.f32.mrb[242].mxu0 }
0x1a59   :  { %v17939_v3 = vpop.f32.mrb[243].mxu0  ;;  %17961 = vmatmul.mubr.msk.bf16.vlgmr.msra.gmra.mrb[248].mxu0 %vm846_vm2, %v6480_v17 }
0x1a5a   :  { %v21433_v31 = vpop.f32.mrb[236].mxu1  ;;  %17971 = vmatpush3.bf16.msra.mxu0 %v20989_v6  ;;  %17974 = vmatprep.mubr.msk.bf16.mxu0 %vm19653_vm1, %v19652_v5 }
0x1a5b   :  { %v17956_v54 = vpop.f32.mrb[237].mxu1  ;;  %17972 = vmatprep.subr.bf16.mxu0 %v19652_v5 }
0x1a5c   :  { %v6571_v58 = vpop.f32.mrb[238].mxu1 }
0x1a5d   :  { %v17957_v18 = vpop.f32.mrb[239].mxu1 }
0x1a5e   :  { %17973 = vmatpush3.bf16.msra.mxu0 %v20997_v47 }
0x1a5f   :  { %17986 = vmatprep.subr.bf16.mxu0 %v19652_v5 }
0x1a61   :  { %17975 = vmatmul.mubr.msk.bf16.vlgmr.msra.gmra.mrb[252].mxu0 %vm132_vm0, %v21373_v12 }
0x1a62   :  { %v21443_v42 = vpop.f32.mrb[240].mxu1  ;;  %17987 = vmatpush3.bf16.msra.mxu0 %v21129_v39  ;;  %17990 = vmatprep.mubr.msk.bf16.mxu0 %vm19653_vm1, %v19652_v5 }
0x1a63   :  { %v17968_v6 = vpop.f32.mrb[241].mxu1  ;;  %17988 = vmatprep.subr.bf16.mxu0 %v19652_v5 }
0x1a64   :  { %v6663_v46 = vpop.f32.mrb[242].mxu1 }
0x1a65   :  { %v17969_v44 = vpop.f32.mrb[243].mxu1 }
0x1a66   :  { %17989 = vmatpush3.bf16.msra.mxu0 %v21136_v36 }
0x1a67   :  { %18002 = vmatprep.subr.bf16.mxu0 %v19652_v5 }
0x1a69   :  { %17991 = vmatmul.mubr.msk.bf16.vlgmr.msra.gmra.mrb[0].mxu0 %vm132_vm0, %v21373_v12 }
0x1a6a   :  { %18003 = vmatpush3.bf16.msra.mxu0 %v21147_v20  ;;  %18006 = vmatprep.mubr.msk.bf16.mxu0 %vm19653_vm1, %v19652_v5  ;;  %v6747_v47 = vpop.f32.mrb[244].mxu1 }
0x1a6b   :  { %18004 = vmatprep.subr.bf16.mxu0 %v19652_v5  ;;  %v17984_v39 = vpop.f32.mrb[245].mxu1 }
0x1a6c   :  { %v6750_v27 = vpop.f32.mrb[246].mxu1 }
0x1a6d   :  { %v17985_v49 = vpop.f32.mrb[247].mxu1 }
0x1a6e   :  { %18005 = vmatpush3.bf16.msra.mxu0 %v21156_v45 }
0x1a6f   :  { %18018 = vmatprep.subr.bf16.mxu0 %v19652_v5 }
0x1a71   :  { %18007 = vmatmul.mubr.msk.bf16.vlgmr.msra.gmra.mrb[4].mxu0 %vm132_vm0, %v21373_v12 }
0x1a72   :  { %18019 = vmatpush3.bf16.msra.mxu0 %v21165_v32  ;;  %v6827_v36 = vpop.f32.mrb[248].mxu1  ;;  %18022 = vmatprep.mubr.msk.bf16.mxu0 %vm19653_vm1, %v19652_v5 }
0x1a73   :  { %18020 = vmatprep.subr.bf16.mxu0 %v19652_v5  ;;  %v18000_v20 = vpop.f32.mrb[249].mxu1 }
0x1a74   :  { %v6830_v4 = vpop.f32.mrb[250].mxu1 }
0x1a75   :  { %v18001_v7 = vpop.f32.mrb[251].mxu1 }
0x1a76   :  { %18021 = vmatpush3.bf16.msra.mxu0 %v21174_v50  ;;  %v7154_v50 = vpack.c.bf16 %v6747_v47, %v6747_v47 }
0x1a77   :  { %18034 = vmatprep.subr.bf16.mxu0 %v19652_v5 }
0x1a79   :  { %18023 = vmatmul.mubr.msk.bf16.vlgmr.msra.gmra.mrb[8].mxu0 %vm132_vm0, %v21373_v12 }
0x1a7a   :  { %v6907_v45 = vpop.f32.mrb[252].mxu1  ;;  %18035 = vmatpush3.bf16.msra.mxu0 %v21183_v48  ;;  %18038 = vmatprep.mubr.msk.bf16.mxu0 %vm19653_vm1, %v19652_v5 }
0x1a7b   :  { %v7158_v32 = vpack.c.bf16 %v6907_v45, %v6907_v45  ;;  %18036 = vmatprep.subr.bf16.mxu0 %v19652_v5  ;;  %v18016_v15 = vpop.f32.mrb[253].mxu1 }
0x1a7c   :  { %v6910_v35 = vpop.f32.mrb[254].mxu1 }
0x1a7d   :  { %v7211_v56 = vsel %vm846_vm2, %v7158_v32, 0  ;;  %v18017_v19 = vpop.f32.mrb[255].mxu1 }
0x1a7e   :  { %18037 = vmatpush3.bf16.msra.mxu0 %v21192_v57  ;;  %18073 = vmatpush3.bf16.xpose.msra.mxu1 %v7211_v56 }
0x1a7f   :  { %18050 = vmatprep.subr.bf16.mxu0 %v19652_v5  ;;  %18084 = vmatprep.subr.bf16.mxu1 %v19652_v5 }
0x1a81   :  { %18039 = vmatmul.mubr.msk.bf16.vlgmr.msra.gmra.mrb[12].mxu0 %vm132_vm0, %v21373_v12 }
0x1a82   :  { %v6987_v48 = vpop.f32.mrb[0].mxu1  ;;  %18051 = vmatpush3.bf16.msra.mxu0 %v21202_v29  ;;  %18054 = vmatprep.mubr.msk.bf16.mxu0 %vm19653_vm1, %v19652_v5  ;;  %v7156_v29 = vpack.c.bf16 %v6827_v36, %v6827_v36 }
0x1a83   :  { %v7160_v53 = vpack.c.bf16 %v6987_v48, %v6987_v48  ;;  %18052 = vmatprep.subr.bf16.mxu0 %v19652_v5  ;;  %v18032_v8 = vpop.f32.mrb[1].mxu1  ;;  %v119_v48 = vrot.slane %v21245_v61, %v110_v51 }
0x1a84   :  { %v6990_v57 = vpop.f32.mrb[2].mxu1 }
0x1a85   :  { %18075 = vmatmul.mubr.msk.bf16.vlgmr.msra.gmra.mrb[12].mxu1 %vm846_vm2, %v7154_v50  ;;  %v7303_v9 = vsel %vm846_vm2, %v7160_v53, 0  ;;  %v18033_v11 = vpop.f32.mrb[3].mxu1  ;;  %v120_v57 = vmul.f32 %v21253_v14, %v119_v48 }
0x1a86   :  { %18053 = vmatpush3.bf16.msra.mxu0 %v21212_v62  ;;  %18085 = vmatpush3.bf16.xpose.msra.mxu1 %v7303_v9 }
0x1a87   :  { %18086 = vmatprep.mubr.msk.bf16.mxu1 %vm19653_vm1, %v19652_v5  ;;  %18096 = vmatprep.subr.bf16.mxu1 %v19652_v5 }
0x1a88   :  { %18066 = vmatprep.subr.bf16.mxu0 %v19652_v5 }
0x1a89   :  { %18055 = vmatmul.mubr.msk.bf16.vlgmr.msra.gmra.mrb[16].mxu0 %vm132_vm0, %v21373_v12 }
0x1a8a   :  { %18068 = vmatprep.mubr.msk.bf16.mxu0 %vm19653_vm1, %v19652_v5  ;;  %v7067_v62 = vpop.f32.mrb[4].mxu1 }
0x1a8b   :  { %v18048_v10 = vpop.f32.mrb[5].mxu1  ;;  %v7394_v17 = vpack.c.bf16 %v7067_v62, %v7067_v62 }
0x1a8c   :  { %v7070_v37 = vpop.f32.mrb[6].mxu1  ;;  %v121_v10 = vsub.f32 1.0, %v120_v57 }
0x1a8d   :  { %18087 = vmatmul.mubr.msk.bf16.vlgmr.msra.gmra.mrb[16].mxu1 %vm846_vm2, %v7156_v29  ;;  %v18049_v22 = vpop.f32.mrb[7].mxu1  ;;  %v7447_v12 = vsel %vm1086_vm3, %v7394_v17, 0 }
0x1a8e   :  { %18098 = vmatprep.mubr.msk.bf16.mxu1 %vm19653_vm1, %v19652_v5  ;;  %18097 = vmatpush3.bf16.msra.mxu1 %v7447_v12  ;;  %v122_v51 = vmul.f32 -1e+09, %v121_v10 }
0x1a8f   :  { %18108 = vmatprep.subr.bf16.mxu1 %v19652_v5 }
0x1a92   :  { %v21497_v30 = vpop.f32.mrb[8].mxu1 }
0x1a93   :  { %v18064_v2 = vpop.f32.mrb[9].mxu1 }
0x1a94   :  { %v7150_v26 = vpop.f32.mrb[10].mxu1 }
0x1a95   :  { %v18065_v3 = vpop.f32.mrb[11].mxu1  ;;  %v21517_v26 = vadd.f32 %v122_v51, %v21268_v23 }
0x1b24   :  { %v6522_v54 = vpop.f32.mrb[244].mxu0 }
0x1b25   :  { %v6666_v58 = vadd.f32 %v21433_v31, %v6522_v54  ;;  %v17950_v18 = vpop.f32.mrb[245].mxu0 }
0x1b26   :  { %v6525_v6 = vpop.f32.mrb[246].mxu0 }
0x1b27   :  { %v17951_v46 = vpop.f32.mrb[247].mxu0 }
0x1b2c   :  { %v6614_v44 = vpop.f32.mrb[248].mxu0 }
0x1b2d   :  { %v6667_v47 = vadd.f32 %v6666_v58, %v6614_v44  ;;  %v17962_v39 = vpop.f32.mrb[249].mxu0 }
0x1b2e   :  { %v6617_v27 = vpop.f32.mrb[250].mxu0 }
0x1b2f   :  { %v21503_v49 = vadd.f32 %v6667_v47, %v21443_v42  ;;  %v17963_v36 = vpop.f32.mrb[251].mxu0  ;;  %v21529_v27 = vadd.f32 %v122_v51, %v21282_v43 }
0x1b34   :  { %v6707_v20 = vpop.f32.mrb[252].mxu0 }
0x1b35   :  { %v17976_v4 = vpop.f32.mrb[253].mxu0  ;;  %v7153_v11 = vpack.c.bf16 %v6707_v20, %v6707_v20 }
0x1b36   :  { %v6710_v7 = vpop.f32.mrb[254].mxu0 }
0x1b37   :  { %v17977_v45 = vpop.f32.mrb[255].mxu0 }
0x1b3c   :  { %v6787_v32 = vpop.f32.mrb[0].mxu0 }
0x1b3d   :  { %v17992_v15 = vpop.f32.mrb[1].mxu0  ;;  %v7155_v14 = vpack.c.bf16 %v6787_v32, %v6787_v32 }
0x1b3e   :  { %v6790_v35 = vpop.f32.mrb[2].mxu0 }
0x1b3f   :  { %v17993_v56 = vpop.f32.mrb[3].mxu0 }
0x1b44   :  { %v6867_v31 = vpop.f32.mrb[4].mxu0 }
0x1b45   :  { %v7157_v19 = vpack.c.bf16 %v6867_v31, %v6867_v31  ;;  %v18008_v50 = vpop.f32.mrb[5].mxu0 }
0x1b46   :  { %v6870_v53 = vpop.f32.mrb[6].mxu0 }
0x1b47   :  { %v18009_v8 = vpop.f32.mrb[7].mxu0  ;;  %v7165_v42 = vsel %vm846_vm2, %v7157_v19, 0 }
0x1b48   :  { %18067 = vmatpush3.bf16.xpose.msra.mxu0 %v7165_v42  ;;  %v21536_v42 = vadd.f32 %v21235_v25, %v20902_v1 }
0x1b49   :  { %18078 = vmatprep.subr.bf16.mxu0 %v19652_v5 }
0x1b4c   :  { %v6947_v9 = vpop.f32.mrb[8].mxu0 }
0x1b4d   :  { %v7159_v29 = vpack.c.bf16 %v6947_v9, %v6947_v9  ;;  %v18024_v62 = vpop.f32.mrb[9].mxu0 }
0x1b4e   :  { %v6950_v37 = vpop.f32.mrb[10].mxu0  ;;  %v21543_v62 = vadd.f32 %v122_v51, %v21297_v40 }
0x1b4f   :  { %v18025_v22 = vpop.f32.mrb[11].mxu0  ;;  %18069 = vmatmul.mubr.msk.bf16.vlgmr.msra.gmra.mrb[20].mxu0 %vm846_vm2, %v7153_v11  ;;  %v7257_v60 = vsel %vm846_vm2, %v7159_v29, 0  ;;  %v5315_v11 = vmul.f32 %v21536_v42, %v21536_v42 }
0x1b50   :  { %18079 = vmatpush3.bf16.xpose.msra.mxu0 %v7257_v60  ;;  %18080 = vmatprep.mubr.msk.bf16.mxu0 %vm19653_vm1, %v19652_v5 }
0x1b51   :  { %18090 = vmatprep.subr.bf16.mxu0 %v19652_v5  ;;  %v5317_v29 = vsel %vm132_vm0, %v5315_v11, 0.0 }
0x1b54   :  { %v7027_v61 = vpop.f32.mrb[12].mxu0 }
0x1b55   :  { %v7393_v17 = vpack.c.bf16 %v7027_v61, %v7027_v61  ;;  %v18040_v2 = vpop.f32.mrb[13].mxu0  ;;  %v21548_v61 = vadd.f32 %v122_v51, %v21306_v24 }
0x1b56   :  { %v7030_v3 = vpop.f32.mrb[14].mxu0 }
0x1b57   :  { %v18041_v12 = vpop.f32.mrb[15].mxu0  ;;  %18081 = vmatmul.mubr.msk.bf16.vlgmr.msra.gmra.mrb[24].mxu0 %vm846_vm2, %v7155_v14  ;;  %v7401_v54 = vsel %vm1086_vm3, %v7393_v17, 0 }
0x1b58   :  { %v7247_v58 = vpop.f32.mrb[12].mxu1  ;;  %18091 = vmatpush3.bf16.msra.mxu0 %v7401_v54  ;;  %18092 = vmatprep.mubr.msk.bf16.mxu0 %vm19653_vm1, %v19652_v5 }
0x1b59   :  { %v7248_v18 = vadd.f32 %v7247_v58, %v21517_v26  ;;  %v18076_v6 = vpop.f32.mrb[13].mxu1  ;;  %18102 = vmatprep.subr.bf16.mxu0 %v19652_v5 }
0x1b5a   :  { %v7250_v46 = vpop.f32.mrb[14].mxu1  ;;  %v7396_v6 = vpack.c.bf16 %v21497_v30, %v21497_v30 }
0x1b5b   :  { %v7348_v23 = vsel %vm846_vm2, %v7248_v18, -inf  ;;  %v18077_v44 = vpop.f32.mrb[15].mxu1 }
0x1b5c   :  { %7349 = vmax.xlane.f32.xlu1 %v7348_v23  ;;  %v21526_v47 = vpop.f32.mrb[16].mxu0  ;;  %v7539_v51 = vsel %vm1086_vm3, %v7396_v6, 0 }
0x1b5d   :  { %v18056_v39 = vpop.f32.mrb[17].mxu0 }
0x1b5e   :  { %v7110_v36 = vpop.f32.mrb[18].mxu0 }
0x1b5f   :  { %v18057_v20 = vpop.f32.mrb[19].mxu0 }
0x1b60   :  { %v7339_v4 = vpop.f32.mrb[16].mxu1 }
0x1b61   :  { %v7340_v7 = vadd.f32 %v7339_v4, %v21529_v27  ;;  %v18088_v45 = vpop.f32.mrb[17].mxu1 }
0x1b62   :  { %v7342_v32 = vpop.f32.mrb[18].mxu1 }
0x1b63   :  { %v7354_v15 = vsel %vm846_vm2, %v7340_v7, -inf  ;;  %v18089_v35 = vpop.f32.mrb[19].mxu1 }
0x1b64   :  { %7355 = vmax.xlane.f32.xlu1 %v7354_v15 }
0x1be9   :  { %v7350_v56 = vpop.xlane.xlu1 %7349 }
0x1bea   :  { %v7358_v31 = vsub.f32 %v7248_v18, %v7350_v56 }
0x1bec   :  { %v7363_v19 = vmul.f32 1.442695, %v7358_v31 }
0x1bee   :  { %19483 = vpow2.f32 %v7363_v19 }
0x1bf1   :  { %v7356_v50 = vpop.xlane.xlu1 %7355 }
0x1bf2   :  { %v7360_v48 = vsub.f32 %v7340_v7, %v7356_v50 }
0x1bf4   :  { %v7367_v53 = vmul.f32 1.442695, %v7360_v48 }
0x1bf6   :  { %19485 = vpow2.f32 %v7367_v53 }
0x1bf8   :  { %v19484_v43 = vpop.eup %19483 }
0x1bf9   :  { %v7372_v8 = vsel %vm846_vm2, %v19484_v43, 0.0 }
0x1bfa   :  { %7373 = vadd.xlane.f32.xlu1 %v7372_v8  ;;  %v7395_v8 = vpack.c.bf16 %v21526_v47, %v21526_v47 }
0x1c00   :  { %v19486_v57 = vpop.eup %19485 }
0x1c01   :  { %v7378_v9 = vsel %vm846_vm2, %v19486_v57, 0.0 }
0x1c02   :  { %7379 = vadd.xlane.f32.xlu1 %v7378_v9 }
0x1c06   :  { %5318 = vadd.xlane.f32.xlu1 %v5317_v29  ;;  %v7493_v29 = vsel %vm1086_vm3, %v7395_v8, 0 }
0x1c22   :  { %v7201_v10 = vpop.f32.mrb[20].mxu0 }
0x1c23   :  { %v18070_v37 = vpop.f32.mrb[21].mxu0  ;;  %v7202_v22 = vadd.f32 %v7201_v10, %v21543_v62 }
0x1c24   :  { %v7204_v60 = vpop.f32.mrb[22].mxu0 }
0x1c25   :  { %v18071_v1 = vpop.f32.mrb[23].mxu0  ;;  %v7345_v25 = vsel %vm846_vm2, %v7202_v22, -inf }
0x1c26   :  { %7346 = vmax.xlane.f32.xlu0 %v7345_v25 }
0x1c2a   :  { %v7293_v14 = vpop.f32.mrb[24].mxu0 }
0x1c2b   :  { %v18082_v17 = vpop.f32.mrb[25].mxu0  ;;  %v7294_v2 = vadd.f32 %v7293_v14, %v21548_v61 }
0x1c2c   :  { %v7296_v3 = vpop.f32.mrb[26].mxu0 }
0x1c2d   :  { %v18083_v12 = vpop.f32.mrb[27].mxu0  ;;  %v7351_v40 = vsel %vm846_vm2, %v7294_v2, -inf }
0x1c2e   :  { %7352 = vmax.xlane.f32.xlu0 %v7351_v40 }
0x1c87   :  { %v7374_v54 = vpop.xlane.xlu1 %7373 }
0x1c88   :  { %19487 = vrcp.f32 %v7374_v54  ;;  %v21595_v54 = vld [vmem:[%s23356_s16 + $0x10] sm:$0xff]  }
0x1c8f   :  { %v7380_v58 = vpop.xlane.xlu1 %7379 }
0x1c90   :  { %19489 = vrcp.f32 %v7380_v58 }
0x1c92   :  { %v19488_v18 = vpop.eup %19487 }
0x1c93   :  { %v7386_v46 = vmul.f32 %v19488_v18, %v19484_v43  ;;  %v5319_v1 = vpop.xlane.xlu1 %5318 }
0x1c94   :  { %v5323_v3 = vmul.f32 0.03125, %v5319_v1 }
0x1c95   :  { %v7390_v24 = vpack.c.bf16 %v7386_v46, %v7386_v46 }
0x1c96   :  { %v5325_v12 = vadd.f32 1e-06, %v5323_v3 }
0x1c97   :  { %18099 = vmatmul.mubr.msk.bf16.vlgmr.msra.gmra.mrb[20].mxu1 %vm846_vm2, %v7390_v24 }
0x1c98   :  { %18109 = vmatpush3.bf16.msra.mxu1 %v7539_v51  ;;  %18110 = vmatprep.mubr.msk.bf16.mxu1 %vm19653_vm1, %v19652_v5  ;;  %v21608_v51 = vld [vmem:[%s23356_s16 + $0x18] sm:$0xff]  }
0x1c99   :  { %18120 = vmatprep.subr.bf16.mxu1 %v19652_v5 }
0x1c9a   :  { %v19490_v23 = vpop.eup %19489 }
0x1c9b   :  { %v7388_v44 = vmul.f32 %v19490_v23, %v19486_v57 }
0x1c9d   :  { %v7392_v39 = vpack.c.bf16 %v7388_v44, %v7388_v44  ;;  %v21618_v44 = vld [vmem:[%s23356_s16 + $0x30] sm:$0xff]  }
0x1c9f   :  { %18111 = vmatmul.mubr.msk.bf16.vlgmr.msra.gmra.mrb[24].mxu1 %vm846_vm2, %v7392_v39 }
0x1ca0   :  { %18121 = vmatpush3.bf16.msra.mxu1 %v21334_v33  ;;  %18122 = vmatprep.mubr.msk.bf16.mxu1 %vm19653_vm1, %v19652_v5  ;;  %v19638_v33 = vld [vmem:[%s23375_s23] sm:$0xff] }
0x1ca1   :  { %18132 = vmatprep.subr.bf16.mxu1 %v19652_v5  ;;  %v21569_v35 = vadd.f32 %v19638_v33, %v21503_v49  ;;  %v21674_v33 = vld [vmem:[%s23357_s17 + $0x38] sm:$0xff]  }
0x1ca3   :  { %v7764_v19 = vmul.f32 %v21569_v35, %v21569_v35 }
0x1ca5   :  { %v7766_v50 = vsel %vm132_vm0, %v7764_v19, 0.0  ;;  %v21701_v19 = vld [vmem:[%s23357_s17 + $0x70] sm:$0xff]  }
0x1cb3   :  { %v7347_v30 = vpop.xlane.xlu0 %7346 }
0x1cb4   :  { %v7357_v36 = vsub.f32 %v7202_v22, %v7347_v30  ;;  %v21629_v30 = vld [vmem:[%s23356_s16 + $0x38] sm:$0xff]  }
0x1cb6   :  { %v7361_v20 = vmul.f32 1.442695, %v7357_v36 }
0x1cb8   :  { %19491 = vpow2.f32 %v7361_v20  ;;  %v21638_v20 = vld [vmem:[%s23357_s17 + $0x10] sm:$0xff]  }
0x1cbb   :  { %v7353_v4 = vpop.xlane.xlu0 %7352 }
0x1cbc   :  { %v7359_v7 = vsub.f32 %v7294_v2, %v7353_v4 }
0x1cbe   :  { %v7365_v45 = vmul.f32 1.442695, %v7359_v7  ;;  %v21645_v7 = vld [vmem:[%s23348_s8 + $0x4] ss:$0 sm:$0xff] }
0x1cc0   :  { %19493 = vpow2.f32 %v7365_v45  ;;  %v21653_v45 = vld [vmem:[%s23357_s17 + $0x18] sm:$0xff]  }
0x1cc2   :  { %v19492_v32 = vpop.eup %19491 }
0x1cc3   :  { %v7369_v15 = vsel %vm846_vm2, %v19492_v32, 0.0 }
0x1cc4   :  { %7370 = vadd.xlane.f32.xlu0 %v7369_v15 }
0x1cca   :  { %v19494_v56 = vpop.eup %19493 }
0x1ccb   :  { %v7375_v31 = vsel %vm846_vm2, %v19494_v56, 0.0 }
0x1ccc   :  { %7376 = vadd.xlane.f32.xlu0 %v7375_v31  ;;  %v21692_v31 = vld [vmem:[%s23357_s17 + $0x58] sm:$0xff]  }
0x1cd0   :  { %7767 = vadd.xlane.f32.xlu0 %v7766_v50  ;;  %v21710_v50 = vld [vmem:[%s23357_s17 + $0x78] sm:$0xff]  }
0x1d51   :  { %v7371_v48 = vpop.xlane.xlu0 %7370 }
0x1d52   :  { %19495 = vrcp.f32 %v7371_v48 }
0x1d59   :  { %v7377_v53 = vpop.xlane.xlu0 %7376 }
0x1d5a   :  { %19497 = vrcp.f32 %v7377_v53 }
0x1d5c   :  { %v19496_v43 = vpop.eup %19495 }
0x1d5d   :  { %v7385_v49 = vmul.f32 %v19496_v43, %v19492_v32  ;;  %v7768_v57 = vpop.xlane.xlu0 %7767  ;;  %v21663_v32 = vld [vmem:[%s23357_s17 + $0x30] sm:$0xff]  }
0x1d5e   :  { %v7772_v9 = vmul.f32 0.03125, %v7768_v57 }
0x1d5f   :  { %v7389_v11 = vpack.c.bf16 %v7385_v49, %v7385_v49 }
0x1d60   :  { %v7774_v10 = vadd.f32 1e-06, %v7772_v9  ;;  %v21729_v9 = vld [vmem:[%s23356_s16] sm:$0xff]  }
0x1d61   :  { %18093 = vmatmul.mubr.msk.bf16.vlgmr.msra.gmra.mrb[28].mxu0 %vm846_vm2, %v7389_v11 }
0x1d62   :  { %18103 = vmatpush3.bf16.msra.mxu0 %v7493_v29  ;;  %18104 = vmatprep.mubr.msk.bf16.mxu0 %vm19653_vm1, %v19652_v5  ;;  %19499 = vrsqrt.f32 %v7774_v10 }
0x1d63   :  { %18114 = vmatprep.subr.bf16.mxu0 %v19652_v5  ;;  %19501 = vrsqrt.f32 %v5325_v12  ;;  %v21767_v12 = vld [vmem:[%s23357_s17] sm:$0xff]  }
0x1d64   :  { %v19498_v37 = vpop.eup %19497 }
0x1d65   :  { %v7387_v22 = vmul.f32 %v19498_v37, %v19494_v56  ;;  %v21683_v56 = vld [vmem:[%s23357_s17 + $0x50] sm:$0xff]  }
0x1d67   :  { %v7391_v60 = vpack.c.bf16 %v7387_v22, %v7387_v22 }
0x1d69   :  { %18105 = vmatmul.mubr.msk.bf16.vlgmr.msra.gmra.mrb[32].mxu0 %vm846_vm2, %v7391_v60 }
0x1d6a   :  { %v7483_v47 = vpop.f32.mrb[20].mxu1  ;;  %18115 = vmatpush3.bf16.msra.mxu0 %v21349_v28  ;;  %18116 = vmatprep.mubr.msk.bf16.mxu0 %vm19653_vm1, %v19652_v5 }
0x1d6b   :  { %v7582_v25 = vpack.c.bf16 %v7483_v47, %v7483_v47  ;;  %v18100_v14 = vpop.f32.mrb[21].mxu1  ;;  %18126 = vmatprep.subr.bf16.mxu0 %v19652_v5 }
0x1d6c   :  { %v7486_v17 = vpop.f32.mrb[22].mxu1  ;;  %v19500_v28 = vpop.eup %19499 }
0x1d6d   :  { %v18101_v2 = vpop.f32.mrb[23].mxu1  ;;  %18123 = vmatmul.mubr.msk.bf16.vlgmr.msra.gmra.mrb[28].mxu1 %vm846_vm2, %v7582_v25  ;;  %v7778_v58 = vmul.f32 %v19500_v28, %v21569_v35  ;;  %v19502_v36 = vpop.eup %19501  ;;  %v21747_v25 = vld [vmem:[%s23356_s16 + $0x20] sm:$0xff]   ;;  %v21758_v17 = vld [vmem:[%s23356_s16 + $0x28] sm:$0xff]  }
0x1d6e   :  { %18133 = vmatpush3.bf16.msra.mxu1 %v21359_v63  ;;  %18134 = vmatprep.mubr.msk.bf16.mxu1 %vm19653_vm1, %v19652_v5  ;;  %v21601_v63 = vld [vmem:[%s23353_s13 + $0x1] ss:$0 sm:$0xff]  ;;  %v5329_v4 = vmul.f32 %v19502_v36, %v21536_v42 }
0x1d6f   :  { %18146 = vmatprep.subr.bf16.mxu1 %v19652_v5  ;;  %v7786_v23 = vmul.f32 %v21601_v63, %v7778_v58  ;;  %v21776_v58 = vld [vmem:[%s23357_s17 + $0x8] sm:$0xff]  }
0x1d70   :  { %v5337_v42 = vmul.f32 %v21645_v7, %v5329_v4 }
0x1d71   :  { %v21620_v39 = vpack.c.bf16 %v7786_v23, %v7786_v23 }
0x1d72   :  { %v7575_v40 = vpop.f32.mrb[24].mxu1  ;;  %v21665_v15 = vpack.c.bf16 %v5337_v42, %v5337_v42 }
0x1d73   :  { %v7584_v18 = vpack.c.bf16 %v7575_v40, %v7575_v40  ;;  %v18112_v6 = vpop.f32.mrb[25].mxu1 }
0x1d74   :  { %v7578_v46 = vpop.f32.mrb[26].mxu1 }
0x1d75   :  { %v18113_v24 = vpop.f32.mrb[27].mxu1  ;;  %18135 = vmatmul.mubr.msk.bf16.vlgmr.msra.gmra.mrb[32].mxu1 %vm846_vm2, %v7584_v18 }
0x1d76   :  { %18147 = vmatpush3.bf16.msra.mxu1 %v21595_v54  ;;  %18150 = vmatprep.mubr.msk.bf16.mxu1 %vm19653_vm1, %v19652_v5  ;;  %v21785_v24 = vld [vmem:[%s23357_s17 + $0x20] sm:$0xff]  }
0x1d77   :  { %18148 = vmatprep.subr.bf16.mxu1 %v19652_v5 }
0x1d7a   :  { %18149 = vmatpush3.bf16.msra.mxu1 %v21608_v51 }
0x1d7b   :  { %18162 = vmatprep.subr.bf16.mxu1 %v19652_v5 }
0x1d7d   :  { %18151 = vmatmul.mubr.msk.bf16.vlgmr.msra.gmra.mrb[36].mxu1 %vm132_vm0, %v21620_v39 }
0x1d7e   :  { %18163 = vmatpush3.bf16.msra.mxu1 %v21618_v44  ;;  %18166 = vmatprep.mubr.msk.bf16.mxu1 %vm19653_vm1, %v19652_v5 }
0x1d7f   :  { %18164 = vmatprep.subr.bf16.mxu1 %v19652_v5 }
0x1d82   :  { %18165 = vmatpush3.bf16.msra.mxu1 %v21629_v30 }
0x1d83   :  { %18178 = vmatprep.subr.bf16.mxu1 %v19652_v5 }
0x1d85   :  { %18167 = vmatmul.mubr.msk.bf16.vlgmr.msra.gmra.mrb[40].mxu1 %vm132_vm0, %v21620_v39 }
0x1d86   :  { %18179 = vmatpush3.bf16.msra.mxu1 %v21638_v20  ;;  %18182 = vmatprep.mubr.msk.bf16.mxu1 %vm19653_vm1, %v19652_v5 }
0x1d87   :  { %18180 = vmatprep.subr.bf16.mxu1 %v19652_v5 }
0x1d8a   :  { %18181 = vmatpush3.bf16.msra.mxu1 %v21653_v45 }
0x1d8b   :  { %18194 = vmatprep.subr.bf16.mxu1 %v19652_v5 }
0x1d8d   :  { %18183 = vmatmul.mubr.msk.bf16.vlgmr.msra.gmra.mrb[44].mxu1 %vm132_vm0, %v21665_v15 }
0x1d8e   :  { %18195 = vmatpush3.bf16.msra.mxu1 %v21663_v32  ;;  %18198 = vmatprep.mubr.msk.bf16.mxu1 %vm19653_vm1, %v19652_v5 }
0x1d8f   :  { %18196 = vmatprep.subr.bf16.mxu1 %v19652_v5 }
0x1d92   :  { %18197 = vmatpush3.bf16.msra.mxu1 %v21674_v33 }
0x1d93   :  { %18210 = vmatprep.subr.bf16.mxu1 %v19652_v5 }
0x1d95   :  { %18199 = vmatmul.mubr.msk.bf16.vlgmr.msra.gmra.mrb[48].mxu1 %vm132_vm0, %v21665_v15 }
0x1d96   :  { %18211 = vmatpush3.bf16.msra.mxu1 %v21683_v56  ;;  %18214 = vmatprep.mubr.msk.bf16.mxu1 %vm19653_vm1, %v19652_v5 }
0x1d97   :  { %18212 = vmatprep.subr.bf16.mxu1 %v19652_v5 }
0x1d9a   :  { %18213 = vmatpush3.bf16.msra.mxu1 %v21692_v31 }
0x1d9b   :  { %18226 = vmatprep.subr.bf16.mxu1 %v19652_v5 }
0x1d9d   :  { %18215 = vmatmul.mubr.msk.bf16.vlgmr.msra.gmra.mrb[52].mxu1 %vm132_vm0, %v21665_v15 }
0x1d9e   :  { %18227 = vmatpush3.bf16.msra.mxu1 %v21701_v19  ;;  %18230 = vmatprep.mubr.msk.bf16.mxu1 %vm19653_vm1, %v19652_v5 }
0x1d9f   :  { %18228 = vmatprep.subr.bf16.mxu1 %v19652_v5 }
0x1da2   :  { %18229 = vmatpush3.bf16.msra.mxu1 %v21710_v50 }
0x1da3   :  { %18240 = vmatprep.subr.bf16.mxu1 %v19652_v5 }
0x1da5   :  { %18231 = vmatmul.mubr.msk.bf16.vlgmr.msra.gmra.mrb[56].mxu1 %vm132_vm0, %v21665_v15 }
0x1da6   :  { %18242 = vmatprep.mubr.msk.bf16.mxu1 %vm19653_vm1, %v19652_v5 }
0x1e34   :  { %v7437_v48 = vpop.f32.mrb[28].mxu0 }
0x1e35   :  { %v7581_v53 = vpack.c.bf16 %v7437_v48, %v7437_v48  ;;  %v18094_v43 = vpop.f32.mrb[29].mxu0  ;;  %v21803_v48 = vld [vmem:[%s23357_s17 + $0x40] sm:$0xff]  }
0x1e36   :  { %v7440_v8 = vpop.f32.mrb[30].mxu0  ;;  %v21812_v43 = vld [vmem:[%s23357_s17 + $0x48] sm:$0xff]  }
0x1e37   :  { %v18095_v49 = vpop.f32.mrb[31].mxu0  ;;  %18117 = vmatmul.mubr.msk.bf16.vlgmr.msra.gmra.mrb[36].mxu0 %vm846_vm2, %v7581_v53 }
0x1e38   :  { %18127 = vmatpush3.bf16.msra.mxu0 %v21425_v13  ;;  %18128 = vmatprep.mubr.msk.bf16.mxu0 %vm19653_vm1, %v19652_v5  ;;  %v21738_v13 = vld [vmem:[%s23356_s16 + $0x8] sm:$0xff]  }
0x1e39   :  { %18138 = vmatprep.subr.bf16.mxu0 %v19652_v5 }
0x1e3c   :  { %v7529_v57 = vpop.f32.mrb[32].mxu0 }
0x1e3d   :  { %v7583_v11 = vpack.c.bf16 %v7529_v57, %v7529_v57  ;;  %v18106_v29 = vpop.f32.mrb[33].mxu0 }
0x1e3e   :  { %v7532_v10 = vpop.f32.mrb[34].mxu0 }
0x1e3f   :  { %v18107_v37 = vpop.f32.mrb[35].mxu0  ;;  %18129 = vmatmul.mubr.msk.bf16.vlgmr.msra.gmra.mrb[40].mxu0 %vm846_vm2, %v7583_v11  ;;  %v21822_v10 = vld [vmem:[%s23357_s17 + $0x60] sm:$0xff]  }
0x1e40   :  { %v21732_v22 = vpop.f32.mrb[28].mxu1  ;;  %18139 = vmatpush3.bf16.msra.mxu0 %v21729_v9  ;;  %18142 = vmatprep.mubr.msk.bf16.mxu0 %vm19653_vm1, %v19652_v5 }
0x1e41   :  { %v18124_v60 = vpop.f32.mrb[29].mxu1  ;;  %18140 = vmatprep.subr.bf16.mxu0 %v19652_v5 }
0x1e42   :  { %v7668_v47 = vpop.f32.mrb[30].mxu1  ;;  %v21832_v60 = vld [vmem:[%s23357_s17 + $0x68] sm:$0xff]  }
0x1e43   :  { %v18125_v1 = vpop.f32.mrb[31].mxu1 }
0x1e44   :  { %18141 = vmatpush3.bf16.msra.mxu0 %v21738_v13 }
0x1e45   :  { %18154 = vmatprep.subr.bf16.mxu0 %v19652_v5 }
0x1e47   :  { %18143 = vmatmul.mubr.msk.bf16.vlgmr.msra.gmra.mrb[44].mxu0 %vm132_vm0, %v21620_v39 }
0x1e48   :  { %v21752_v14 = vpop.f32.mrb[32].mxu1  ;;  %18155 = vmatpush3.bf16.msra.mxu0 %v21747_v25  ;;  %18158 = vmatprep.mubr.msk.bf16.mxu0 %vm19653_vm1, %v19652_v5 }
0x1e49   :  { %v18136_v2 = vpop.f32.mrb[33].mxu1  ;;  %18156 = vmatprep.subr.bf16.mxu0 %v19652_v5 }
0x1e4a   :  { %v7754_v3 = vpop.f32.mrb[34].mxu1 }
0x1e4b   :  { %v18137_v28 = vpop.f32.mrb[35].mxu1 }
0x1e4c   :  { %18157 = vmatpush3.bf16.msra.mxu0 %v21758_v17 }
0x1e4d   :  { %18170 = vmatprep.subr.bf16.mxu0 %v19652_v5 }
0x1e4f   :  { %18159 = vmatmul.mubr.msk.bf16.vlgmr.msra.gmra.mrb[48].mxu0 %vm132_vm0, %v21620_v39  ;;  %v21794_v39 = vld [vmem:[%s23357_s17 + $0x28] sm:$0xff]  }
0x1e50   :  { %v7943_v40 = vpop.f32.mrb[36].mxu1  ;;  %18171 = vmatpush3.bf16.msra.mxu0 %v21767_v12  ;;  %18174 = vmatprep.mubr.msk.bf16.mxu0 %vm19653_vm1, %v19652_v5 }
0x1e51   :  { %v18152_v18 = vpop.f32.mrb[37].mxu1  ;;  %18172 = vmatprep.subr.bf16.mxu0 %v19652_v5  ;;  %v8473_v47 = vpack.c.bf16 %v7943_v40, %v7943_v40 }
0x1e52   :  { %v7946_v6 = vpop.f32.mrb[38].mxu1 }
0x1e53   :  { %v18153_v46 = vpop.f32.mrb[39].mxu1 }
0x1e54   :  { %18173 = vmatpush3.bf16.msra.mxu0 %v21776_v58 }
0x1e55   :  { %18186 = vmatprep.subr.bf16.mxu0 %v19652_v5 }
0x1e57   :  { %18175 = vmatmul.mubr.msk.bf16.vlgmr.msra.gmra.mrb[52].mxu0 %vm132_vm0, %v21665_v15 }
0x1e58   :  { %v8047_v23 = vpop.f32.mrb[40].mxu1  ;;  %18187 = vmatpush3.bf16.msra.mxu0 %v21785_v24  ;;  %18190 = vmatprep.mubr.msk.bf16.mxu0 %vm19653_vm1, %v19652_v5 }
0x1e59   :  { %v18168_v36 = vpop.f32.mrb[41].mxu1  ;;  %18188 = vmatprep.subr.bf16.mxu0 %v19652_v5  ;;  %v8475_v6 = vpack.c.bf16 %v8047_v23, %v8047_v23 }
0x1e5a   :  { %v8050_v4 = vpop.f32.mrb[42].mxu1 }
0x1e5b   :  { %v18169_v42 = vpop.f32.mrb[43].mxu1 }
0x1e5c   :  { %18189 = vmatpush3.bf16.msra.mxu0 %v21794_v39 }
0x1e5d   :  { %18202 = vmatprep.subr.bf16.mxu0 %v19652_v5 }
0x1e5f   :  { %18191 = vmatmul.mubr.msk.bf16.vlgmr.msra.gmra.mrb[56].mxu0 %vm132_vm0, %v21665_v15 }
0x1e60   :  { %v8154_v53 = vpop.f32.mrb[44].mxu1  ;;  %18203 = vmatpush3.bf16.msra.mxu0 %v21803_v48  ;;  %18206 = vmatprep.mubr.msk.bf16.mxu0 %vm19653_vm1, %v19652_v5 }
0x1e61   :  { %v8477_v8 = vpack.c.bf16 %v8154_v53, %v8154_v53  ;;  %v18184_v49 = vpop.f32.mrb[45].mxu1  ;;  %18204 = vmatprep.subr.bf16.mxu0 %v19652_v5 }
0x1e62   :  { %v8157_v57 = vpop.f32.mrb[46].mxu1 }
0x1e63   :  { %v18185_v11 = vpop.f32.mrb[47].mxu1  ;;  %v8530_v29 = vsel %vm846_vm2, %v8477_v8, 0 }
0x1e64   :  { %18205 = vmatpush3.bf16.msra.mxu0 %v21812_v43  ;;  %18241 = vmatpush3.bf16.xpose.msra.mxu1 %v8530_v29 }
0x1e65   :  { %18218 = vmatprep.subr.bf16.mxu0 %v19652_v5  ;;  %18252 = vmatprep.subr.bf16.mxu1 %v19652_v5 }
0x1e67   :  { %18207 = vmatmul.mubr.msk.bf16.vlgmr.msra.gmra.mrb[60].mxu0 %vm132_vm0, %v21665_v15 }
0x1e68   :  { %v8258_v37 = vpop.f32.mrb[48].mxu1  ;;  %18219 = vmatpush3.bf16.msra.mxu0 %v21822_v10  ;;  %18222 = vmatprep.mubr.msk.bf16.mxu0 %vm19653_vm1, %v19652_v5 }
0x1e69   :  { %v8479_v1 = vpack.c.bf16 %v8258_v37, %v8258_v37  ;;  %v18200_v2 = vpop.f32.mrb[49].mxu1  ;;  %18220 = vmatprep.subr.bf16.mxu0 %v19652_v5 }
0x1e6a   :  { %v8261_v3 = vpop.f32.mrb[50].mxu1 }
0x1e6b   :  { %v18201_v28 = vpop.f32.mrb[51].mxu1  ;;  %18243 = vmatmul.mubr.msk.bf16.vlgmr.msra.gmra.mrb[60].mxu1 %vm846_vm2, %v8473_v47  ;;  %v8622_v18 = vsel %vm846_vm2, %v8479_v1, 0 }
0x1e6c   :  { %18221 = vmatpush3.bf16.msra.mxu0 %v21832_v60  ;;  %18253 = vmatpush3.bf16.xpose.msra.mxu1 %v8622_v18 }
0x1e6d   :  { %18254 = vmatprep.mubr.msk.bf16.mxu1 %vm19653_vm1, %v19652_v5  ;;  %18264 = vmatprep.subr.bf16.mxu1 %v19652_v5 }
0x1e6e   :  { %18234 = vmatprep.subr.bf16.mxu0 %v19652_v5 }
0x1e6f   :  { %18223 = vmatmul.mubr.msk.bf16.vlgmr.msra.gmra.mrb[64].mxu0 %vm132_vm0, %v21665_v15 }
0x1e70   :  { %v8362_v40 = vpop.f32.mrb[52].mxu1  ;;  %18236 = vmatprep.mubr.msk.bf16.mxu0 %vm19653_vm1, %v19652_v5 }
0x1e71   :  { %v8713_v46 = vpack.c.bf16 %v8362_v40, %v8362_v40  ;;  %v18216_v36 = vpop.f32.mrb[53].mxu1 }
0x1e72   :  { %v8365_v4 = vpop.f32.mrb[54].mxu1 }
0x1e73   :  { %v18217_v42 = vpop.f32.mrb[55].mxu1  ;;  %18255 = vmatmul.mubr.msk.bf16.vlgmr.msra.gmra.mrb[64].mxu1 %vm846_vm2, %v8475_v6  ;;  %v8766_v53 = vsel %vm1086_vm3, %v8713_v46, 0 }
0x1e74   :  { %18265 = vmatpush3.bf16.msra.mxu1 %v8766_v53  ;;  %18266 = vmatprep.mubr.msk.bf16.mxu1 %vm19653_vm1, %v19652_v5 }
0x1e75   :  { %18276 = vmatprep.subr.bf16.mxu1 %v19652_v5 }
0x1e78   :  { %v21853_v8 = vpop.f32.mrb[56].mxu1 }
0x1e79   :  { %v18232_v49 = vpop.f32.mrb[57].mxu1 }
0x1e7a   :  { %v8469_v57 = vpop.f32.mrb[58].mxu1 }
0x1e7b   :  { %v18233_v11 = vpop.f32.mrb[59].mxu1 }
0x1f0a   :  { %v7622_v23 = vpop.f32.mrb[36].mxu0 }
0x1f0b   :  { %v7757_v29 = vadd.f32 %v21732_v22, %v7622_v23  ;;  %v18118_v37 = vpop.f32.mrb[37].mxu0 }
0x1f0c   :  { %v7625_v47 = vpop.f32.mrb[38].mxu0 }
0x1f0d   :  { %v18119_v1 = vpop.f32.mrb[39].mxu0 }
0x1f12   :  { %v7708_v2 = vpop.f32.mrb[40].mxu0 }
0x1f13   :  { %v7758_v3 = vadd.f32 %v7757_v29, %v7708_v2  ;;  %v18130_v28 = vpop.f32.mrb[41].mxu0 }
0x1f14   :  { %v7711_v18 = vpop.f32.mrb[42].mxu0 }
0x1f15   :  { %v21857_v40 = vadd.f32 %v7758_v3, %v21752_v14  ;;  %v18131_v6 = vpop.f32.mrb[43].mxu0 }
0x1f1a   :  { %v7891_v46 = vpop.f32.mrb[44].mxu0 }
0x1f1b   :  { %v18144_v36 = vpop.f32.mrb[45].mxu0  ;;  %v8472_v2 = vpack.c.bf16 %v7891_v46, %v7891_v46 }
0x1f1c   :  { %v7894_v4 = vpop.f32.mrb[46].mxu0 }
0x1f1d   :  { %v18145_v42 = vpop.f32.mrb[47].mxu0 }
0x1f22   :  { %v7995_v53 = vpop.f32.mrb[48].mxu0 }
0x1f23   :  { %v18160_v49 = vpop.f32.mrb[49].mxu0  ;;  %v8474_v42 = vpack.c.bf16 %v7995_v53, %v7995_v53 }
0x1f24   :  { %v7998_v57 = vpop.f32.mrb[50].mxu0 }
0x1f25   :  { %v18161_v11 = vpop.f32.mrb[51].mxu0 }
0x1f2a   :  { %v8102_v22 = vpop.f32.mrb[52].mxu0 }
0x1f2b   :  { %v8476_v23 = vpack.c.bf16 %v8102_v22, %v8102_v22  ;;  %v18176_v37 = vpop.f32.mrb[53].mxu0 }
0x1f2c   :  { %v8105_v47 = vpop.f32.mrb[54].mxu0 }
0x1f2d   :  { %v18177_v1 = vpop.f32.mrb[55].mxu0  ;;  %v8484_v29 = vsel %vm846_vm2, %v8476_v23, 0 }
0x1f2e   :  { %18235 = vmatpush3.bf16.xpose.msra.mxu0 %v8484_v29 }
0x1f2f   :  { %18246 = vmatprep.subr.bf16.mxu0 %v19652_v5 }
0x1f32   :  { %v8206_v14 = vpop.f32.mrb[56].mxu0 }
0x1f33   :  { %v8478_v3 = vpack.c.bf16 %v8206_v14, %v8206_v14  ;;  %v18192_v28 = vpop.f32.mrb[57].mxu0 }
0x1f34   :  { %v8209_v18 = vpop.f32.mrb[58].mxu0 }
0x1f35   :  { %v18193_v6 = vpop.f32.mrb[59].mxu0  ;;  %18237 = vmatmul.mubr.msk.bf16.vlgmr.msra.gmra.mrb[68].mxu0 %vm846_vm2, %v8472_v2  ;;  %v8576_v36 = vsel %vm846_vm2, %v8478_v3, 0 }
0x1f36   :  { %18247 = vmatpush3.bf16.xpose.msra.mxu0 %v8576_v36  ;;  %18248 = vmatprep.mubr.msk.bf16.mxu0 %vm19653_vm1, %v19652_v5 }
0x1f37   :  { %18258 = vmatprep.subr.bf16.mxu0 %v19652_v5 }
0x1f3a   :  { %v8310_v4 = vpop.f32.mrb[60].mxu0 }
0x1f3b   :  { %v8712_v49 = vpack.c.bf16 %v8310_v4, %v8310_v4  ;;  %v18208_v57 = vpop.f32.mrb[61].mxu0 }
0x1f3c   :  { %v8313_v11 = vpop.f32.mrb[62].mxu0 }
0x1f3d   :  { %v18209_v46 = vpop.f32.mrb[63].mxu0  ;;  %18249 = vmatmul.mubr.msk.bf16.vlgmr.msra.gmra.mrb[72].mxu0 %vm846_vm2, %v8474_v42  ;;  %v8720_v22 = vsel %vm1086_vm3, %v8712_v49, 0 }
0x1f3e   :  { %v8566_v23 = vpop.f32.mrb[60].mxu1  ;;  %18259 = vmatpush3.bf16.msra.mxu0 %v8720_v22  ;;  %18260 = vmatprep.mubr.msk.bf16.mxu0 %vm19653_vm1, %v19652_v5 }
0x1f3f   :  { %v18244_v37 = vpop.f32.mrb[61].mxu1  ;;  %v8567_v47 = vadd.f32 %v8566_v23, %v20033_v0  ;;  %18270 = vmatprep.subr.bf16.mxu0 %v19652_v5 }
0x1f40   :  { %v8569_v1 = vpop.f32.mrb[62].mxu1 }
0x1f41   :  { %v18245_v53 = vpop.f32.mrb[63].mxu1  ;;  %v8667_v29 = vsel %vm846_vm2, %v8567_v47, -inf }
0x1f42   :  { %8668 = vmax.xlane.f32.xlu1 %v8667_v29  ;;  %v21873_v14 = vpop.f32.mrb[64].mxu0  ;;  %v21880_v29 = vadd.f32 %v21237_v34, %v20955_v41 }
0x1f43   :  { %v18224_v2 = vpop.f32.mrb[65].mxu0 }
0x1f44   :  { %v8417_v3 = vpop.f32.mrb[66].mxu0 }
0x1f45   :  { %v18225_v28 = vpop.f32.mrb[67].mxu0 }
0x1f46   :  { %v8658_v18 = vpop.f32.mrb[64].mxu1 }
0x1f47   :  { %v18256_v6 = vpop.f32.mrb[65].mxu1  ;;  %v8659_v36 = vadd.f32 %v8658_v18, %v20033_v0 }
0x1f48   :  { %v8661_v4 = vpop.f32.mrb[66].mxu1 }
0x1f49   :  { %v18257_v42 = vpop.f32.mrb[67].mxu1  ;;  %v8673_v49 = vsel %vm846_vm2, %v8659_v36, -inf }
0x1f4a   :  { %8674 = vmax.xlane.f32.xlu1 %v8673_v49 }
0x1fcf   :  { %v8669_v57 = vpop.xlane.xlu1 %8668 }
0x1fd0   :  { %v8677_v11 = vsub.f32 %v8567_v47, %v8669_v57  ;;  %v5316_v47 = vmul.f32 %v21880_v29, %v21880_v29 }
0x1fd2   :  { %v8682_v46 = vmul.f32 1.442695, %v8677_v11  ;;  %v5320_v28 = vsel %vm132_vm0, %v5316_v47, 0.0 }
0x1fd4   :  { %19503 = vpow2.f32 %v8682_v46 }
0x1fd7   :  { %v8675_v22 = vpop.xlane.xlu1 %8674 }
0x1fd8   :  { %v8679_v23 = vsub.f32 %v8659_v36, %v8675_v22 }
0x1fda   :  { %v8686_v37 = vmul.f32 1.442695, %v8679_v23 }
0x1fdc   :  { %19505 = vpow2.f32 %v8686_v37 }
0x1fde   :  { %v19504_v1 = vpop.eup %19503 }
0x1fdf   :  { %v8691_v53 = vsel %vm846_vm2, %v19504_v1, 0.0 }
0x1fe0   :  { %8692 = vadd.xlane.f32.xlu1 %v8691_v53 }
0x1fe6   :  { %v19506_v2 = vpop.eup %19505 }
0x1fe7   :  { %v8697_v3 = vsel %vm846_vm2, %v19506_v2, 0.0 }
0x1fe8   :  { %8698 = vadd.xlane.f32.xlu1 %v8697_v3  ;;  %v8715_v3 = vpack.c.bf16 %v21853_v8, %v21853_v8 }
0x1fec   :  { %5321 = vadd.xlane.f32.xlu1 %v5320_v28 }
0x2008   :  { %v8520_v18 = vpop.f32.mrb[68].mxu0 }
0x2009   :  { %v18238_v6 = vpop.f32.mrb[69].mxu0  ;;  %v8521_v36 = vadd.f32 %v8520_v18, %v20033_v0  ;;  %v8858_v18 = vsel %vm1086_vm3, %v8715_v3, 0  ;;  %v7839_v3 = vld [vmem:[%s23358_s18 + $0x4] sm:$0xf] }
0x200a   :  { %v8523_v4 = vpop.f32.mrb[70].mxu0 }
0x200b   :  { %v18239_v42 = vpop.f32.mrb[71].mxu0  ;;  %v8664_v49 = vsel %vm846_vm2, %v8521_v36, -inf }
0x200c   :  { %8665 = vmax.xlane.f32.xlu0 %v8664_v49 }
0x2010   :  { %v8612_v41 = vpop.f32.mrb[72].mxu0 }
0x2011   :  { %v18250_v34 = vpop.f32.mrb[73].mxu0  ;;  %v8613_v57 = vadd.f32 %v8612_v41, %v20033_v0 }
0x2012   :  { %v8615_v11 = vpop.f32.mrb[74].mxu0 }
0x2013   :  { %v18251_v46 = vpop.f32.mrb[75].mxu0  ;;  %v8670_v22 = vsel %vm846_vm2, %v8613_v57, -inf }
0x2014   :  { %8671 = vmax.xlane.f32.xlu0 %v8670_v22 }
0x206d   :  { %v8693_v23 = vpop.xlane.xlu1 %8692 }
0x206e   :  { %19507 = vrcp.f32 %v8693_v23 }
0x2075   :  { %v8699_v37 = vpop.xlane.xlu1 %8698 }
0x2076   :  { %19509 = vrcp.f32 %v8699_v37 }
0x2078   :  { %v19508_v53 = vpop.eup %19507 }
0x2079   :  { %v8705_v47 = vmul.f32 %v19508_v53, %v19504_v1 }
0x207b   :  { %v8709_v28 = vpack.c.bf16 %v8705_v47, %v8705_v47  ;;  %v21915_v47 = vsel %vm1086_vm3, %v7839_v3, 0 }
0x207d   :  { %18267 = vmatmul.mubr.msk.bf16.vlgmr.msra.gmra.mrb[68].mxu1 %vm846_vm2, %v8709_v28 }
0x207e   :  { %18277 = vmatpush3.bf16.msra.mxu1 %v8858_v18  ;;  %18278 = vmatprep.mubr.msk.bf16.mxu1 %vm19653_vm1, %v19652_v5 }
0x207f   :  { %18288 = vmatprep.subr.bf16.mxu1 %v19652_v5 }
0x2080   :  { %v19510_v6 = vpop.eup %19509 }
0x2081   :  { %v8707_v4 = vmul.f32 %v19510_v6, %v19506_v2  ;;  %v19639_v2 = vld [vmem:[%s23375_s23 + $0x8] sm:$0xff]  ;;  %v8714_v6 = vpack.c.bf16 %v21873_v14, %v21873_v14  ;;  %v7838_v14 = vld [vmem:[%s23358_s18] sm:$0xf] }
0x2082   :  { %v21905_v23 = vadd.f32 %v19639_v2, %v21857_v40  ;;  %v7841_v2 = vld [vmem:[%s23358_s18 + $0xc] sm:$0xf] }
0x2083   :  { %v8711_v42 = vpack.c.bf16 %v8707_v4, %v8707_v4  ;;  %v21940_v3 = vsel %vm1086_vm3, %v7841_v2, 0 }
0x2084   :  { %v7765_v53 = vmul.f32 %v21905_v23, %v21905_v23 }
0x2085   :  { %18279 = vmatmul.mubr.msk.bf16.vlgmr.msra.gmra.mrb[72].mxu1 %vm846_vm2, %v8711_v42 }
0x2086   :  { %18290 = vmatprep.mubr.msk.bf16.mxu1 %vm19653_vm1, %v19652_v5  ;;  %18289 = vmatpush3.bf16.msra.mxu1 %v21915_v47 }
0x2087   :  { %18300 = vmatprep.subr.bf16.mxu1 %v19652_v5 }
0x2099   :  { %v8666_v8 = vpop.xlane.xlu0 %8665 }
0x209a   :  { %v8676_v1 = vsub.f32 %v8521_v36, %v8666_v8 }
0x209c   :  { %v8680_v49 = vmul.f32 1.442695, %v8676_v1 }
0x209e   :  { %19511 = vpow2.f32 %v8680_v49  ;;  %v8812_v49 = vsel %vm1086_vm3, %v8714_v6, 0 }
0x20a1   :  { %v8672_v41 = vpop.xlane.xlu0 %8671 }
0x20a2   :  { %v8678_v34 = vsub.f32 %v8613_v57, %v8672_v41  ;;  %v7769_v57 = vsel %vm132_vm0, %v7765_v53, 0.0  ;;  %v5322_v53 = vpop.xlane.xlu1 %5321 }
0x20a4   :  { %v8684_v11 = vmul.f32 1.442695, %v8678_v34 }
0x20a6   :  { %19513 = vpow2.f32 %v8684_v11 }
0x20a8   :  { %v19512_v46 = vpop.eup %19511 }
0x20a9   :  { %v8688_v22 = vsel %vm846_vm2, %v19512_v46, 0.0 }
0x20aa   :  { %8689 = vadd.xlane.f32.xlu0 %v8688_v22  ;;  %v21930_v22 = vsel %vm1086_vm3, %v7838_v14, 0 }
0x20b0   :  { %v19514_v37 = vpop.eup %19513 }
0x20b1   :  { %v8694_v36 = vsel %vm846_vm2, %v19514_v37, 0.0 }
0x20b2   :  { %8695 = vadd.xlane.f32.xlu0 %v8694_v36 }
0x20b6   :  { %7770 = vadd.xlane.f32.xlu0 %v7769_v57 }
0x2137   :  { %v8690_v40 = vpop.xlane.xlu0 %8689 }
0x2138   :  { %19515 = vrcp.f32 %v8690_v40 }
0x213f   :  { %v8696_v28 = vpop.xlane.xlu0 %8695 }
0x2140   :  { %19517 = vrcp.f32 %v8696_v28 }
0x2142   :  { %v19516_v18 = vpop.eup %19515 }
0x2143   :  { %v8704_v4 = vmul.f32 %v19516_v18, %v19512_v46  ;;  %v7771_v42 = vpop.xlane.xlu0 %7770  ;;  %v5324_v18 = vmul.f32 0.03125, %v5322_v53 }
0x2144   :  { %v7773_v8 = vmul.f32 0.03125, %v7771_v42 }
0x2145   :  { %v8708_v1 = vpack.c.bf16 %v8704_v4, %v8704_v4  ;;  %v5326_v4 = vadd.f32 1e-06, %v5324_v18 }
0x2146   :  { %v7775_v41 = vadd.f32 1e-06, %v7773_v8 }
0x2147   :  { %18261 = vmatmul.mubr.msk.bf16.vlgmr.msra.gmra.mrb[76].mxu0 %vm846_vm2, %v8708_v1 }
0x2148   :  { %18271 = vmatpush3.bf16.msra.mxu0 %v8812_v49  ;;  %18272 = vmatprep.mubr.msk.bf16.mxu0 %vm19653_vm1, %v19652_v5  ;;  %19519 = vrsqrt.f32 %v7775_v41 }
0x2149   :  { %18282 = vmatprep.subr.bf16.mxu0 %v19652_v5  ;;  %19521 = vrsqrt.f32 %v5326_v4 }
0x214a   :  { %v19518_v34 = vpop.eup %19517 }
0x214b   :  { %v8706_v11 = vmul.f32 %v19518_v34, %v19514_v37 }
0x214d   :  { %v8710_v46 = vpack.c.bf16 %v8706_v11, %v8706_v11 }
0x214f   :  { %18273 = vmatmul.mubr.msk.bf16.vlgmr.msra.gmra.mrb[80].mxu0 %vm846_vm2, %v8710_v46 }
0x2150   :  { %v8802_v36 = vpop.f32.mrb[68].mxu1  ;;  %18283 = vmatpush3.bf16.msra.mxu0 %v21930_v22  ;;  %18284 = vmatprep.mubr.msk.bf16.mxu0 %vm19653_vm1, %v19652_v5 }
0x2151   :  { %v8901_v57 = vpack.c.bf16 %v8802_v36, %v8802_v36  ;;  %v18268_v37 = vpop.f32.mrb[69].mxu1  ;;  %18294 = vmatprep.subr.bf16.mxu0 %v19652_v5 }
0x2152   :  { %v8805_v40 = vpop.f32.mrb[70].mxu1  ;;  %v19520_v6 = vpop.eup %19519 }
0x2153   :  { %v18269_v28 = vpop.f32.mrb[71].mxu1  ;;  %18291 = vmatmul.mubr.msk.bf16.vlgmr.msra.gmra.mrb[76].mxu1 %vm846_vm2, %v8901_v57  ;;  %v7779_v8 = vmul.f32 %v19520_v6, %v21905_v23 }
0x2154   :  { %18301 = vmatpush3.bf16.msra.mxu1 %v21940_v3  ;;  %18302 = vmatprep.mubr.msk.bf16.mxu1 %vm19653_vm1, %v19652_v5 }
0x2155   :  { %18314 = vmatprep.subr.bf16.mxu1 %v19652_v5  ;;  %v7787_v14 = vmul.f32 %v21601_v63, %v7779_v8 }
0x2157   :  { %v21956_v11 = vpack.c.bf16 %v7787_v14, %v7787_v14 }
0x2158   :  { %v8894_v42 = vpop.f32.mrb[72].mxu1 }
0x2159   :  { %v8903_v1 = vpack.c.bf16 %v8894_v42, %v8894_v42  ;;  %v18280_v49 = vpop.f32.mrb[73].mxu1 }
0x215a   :  { %v8897_v41 = vpop.f32.mrb[74].mxu1 }
0x215b   :  { %v18281_v34 = vpop.f32.mrb[75].mxu1  ;;  %18303 = vmatmul.mubr.msk.bf16.vlgmr.msra.gmra.mrb[80].mxu1 %vm846_vm2, %v8903_v1 }
0x215c   :  { %18315 = vmatpush3.bf16.msra.mxu1 %v21595_v54  ;;  %18318 = vmatprep.mubr.msk.bf16.mxu1 %vm19653_vm1, %v19652_v5  ;;  %v19522_v54 = vpop.eup %19521 }
0x215d   :  { %18316 = vmatprep.subr.bf16.mxu1 %v19652_v5  ;;  %v5330_v63 = vmul.f32 %v19522_v54, %v21880_v29 }
0x2160   :  { %18317 = vmatpush3.bf16.msra.mxu1 %v21608_v51  ;;  %v5338_v51 = vmul.f32 %v21645_v7, %v5330_v63 }
0x2161   :  { %18330 = vmatprep.subr.bf16.mxu1 %v19652_v5 }
0x2163   :  { %18319 = vmatmul.mubr.msk.bf16.vlgmr.msra.gmra.mrb[84].mxu1 %vm132_vm0, %v21956_v11 }
0x2164   :  { %18331 = vmatpush3.bf16.msra.mxu1 %v21618_v44  ;;  %18334 = vmatprep.mubr.msk.bf16.mxu1 %vm19653_vm1, %v19652_v5  ;;  %v21976_v44 = vpack.c.bf16 %v5338_v51, %v5338_v51 }
0x2165   :  { %18332 = vmatprep.subr.bf16.mxu1 %v19652_v5 }
0x2168   :  { %18333 = vmatpush3.bf16.msra.mxu1 %v21629_v30  ;;  %v7840_v30 = vld [vmem:[%s23358_s18 + $0x8] sm:$0xf] }
0x2169   :  { %18346 = vmatprep.subr.bf16.mxu1 %v19652_v5 }
0x216b   :  { %18335 = vmatmul.mubr.msk.bf16.vlgmr.msra.gmra.mrb[88].mxu1 %vm132_vm0, %v21956_v11 }
0x216c   :  { %18347 = vmatpush3.bf16.msra.mxu1 %v21638_v20  ;;  %18350 = vmatprep.mubr.msk.bf16.mxu1 %vm19653_vm1, %v19652_v5 }
0x216d   :  { %18348 = vmatprep.subr.bf16.mxu1 %v19652_v5 }
0x2170   :  { %18349 = vmatpush3.bf16.msra.mxu1 %v21653_v45 }
0x2171   :  { %18362 = vmatprep.subr.bf16.mxu1 %v19652_v5 }
0x2173   :  { %18351 = vmatmul.mubr.msk.bf16.vlgmr.msra.gmra.mrb[92].mxu1 %vm132_vm0, %v21976_v44 }
0x2174   :  { %18363 = vmatpush3.bf16.msra.mxu1 %v21663_v32  ;;  %18366 = vmatprep.mubr.msk.bf16.mxu1 %vm19653_vm1, %v19652_v5  ;;  %v22011_v32 = vsel %vm1086_vm3, %v7840_v30, 0 }
0x2175   :  { %18364 = vmatprep.subr.bf16.mxu1 %v19652_v5 }
0x2178   :  { %18365 = vmatpush3.bf16.msra.mxu1 %v21674_v33 }
0x2179   :  { %18378 = vmatprep.subr.bf16.mxu1 %v19652_v5 }
0x217b   :  { %18367 = vmatmul.mubr.msk.bf16.vlgmr.msra.gmra.mrb[96].mxu1 %vm132_vm0, %v21976_v44 }
0x217c   :  { %18379 = vmatpush3.bf16.msra.mxu1 %v21683_v56  ;;  %18382 = vmatprep.mubr.msk.bf16.mxu1 %vm19653_vm1, %v19652_v5 }
0x217d   :  { %18380 = vmatprep.subr.bf16.mxu1 %v19652_v5 }
0x2180   :  { %18381 = vmatpush3.bf16.msra.mxu1 %v21692_v31 }
0x2181   :  { %18394 = vmatprep.subr.bf16.mxu1 %v19652_v5 }
0x2183   :  { %18383 = vmatmul.mubr.msk.bf16.vlgmr.msra.gmra.mrb[100].mxu1 %vm132_vm0, %v21976_v44 }
0x2184   :  { %18395 = vmatpush3.bf16.msra.mxu1 %v21701_v19  ;;  %18398 = vmatprep.mubr.msk.bf16.mxu1 %vm19653_vm1, %v19652_v5 }
0x2185   :  { %18396 = vmatprep.subr.bf16.mxu1 %v19652_v5 }
0x2188   :  { %18397 = vmatpush3.bf16.msra.mxu1 %v21710_v50 }
0x2189   :  { %18408 = vmatprep.subr.bf16.mxu1 %v19652_v5 }
0x218b   :  { %18399 = vmatmul.mubr.msk.bf16.vlgmr.msra.gmra.mrb[104].mxu1 %vm132_vm0, %v21976_v44 }
0x218c   :  { %18410 = vmatprep.mubr.msk.bf16.mxu1 %vm19653_vm1, %v19652_v5 }
0x221a   :  { %v8756_v20 = vpop.f32.mrb[76].mxu0 }
0x221b   :  { %v8900_v7 = vpack.c.bf16 %v8756_v20, %v8756_v20  ;;  %v18262_v45 = vpop.f32.mrb[77].mxu0 }
0x221c   :  { %v8759_v33 = vpop.f32.mrb[78].mxu0 }
0x221d   :  { %v18263_v56 = vpop.f32.mrb[79].mxu0  ;;  %18285 = vmatmul.mubr.msk.bf16.vlgmr.msra.gmra.mrb[84].mxu0 %vm846_vm2, %v8900_v7 }
0x221e   :  { %18295 = vmatpush3.bf16.msra.mxu0 %v22011_v32  ;;  %18296 = vmatprep.mubr.msk.bf16.mxu0 %vm19653_vm1, %v19652_v5 }
0x221f   :  { %18306 = vmatprep.subr.bf16.mxu0 %v19652_v5 }
0x2222   :  { %v8848_v31 = vpop.f32.mrb[80].mxu0 }
0x2223   :  { %v8902_v19 = vpack.c.bf16 %v8848_v31, %v8848_v31  ;;  %v18274_v50 = vpop.f32.mrb[81].mxu0 }
0x2224   :  { %v8851_v29 = vpop.f32.mrb[82].mxu0 }
0x2225   :  { %v18275_v46 = vpop.f32.mrb[83].mxu0  ;;  %18297 = vmatmul.mubr.msk.bf16.vlgmr.msra.gmra.mrb[88].mxu0 %vm846_vm2, %v8902_v19 }
0x2226   :  { %v22019_v2 = vpop.f32.mrb[76].mxu1  ;;  %18307 = vmatpush3.bf16.msra.mxu0 %v21729_v9  ;;  %18310 = vmatprep.mubr.msk.bf16.mxu0 %vm19653_vm1, %v19652_v5 }
0x2227   :  { %v18292_v36 = vpop.f32.mrb[77].mxu1  ;;  %18308 = vmatprep.subr.bf16.mxu0 %v19652_v5 }
0x2228   :  { %v8993_v53 = vpop.f32.mrb[78].mxu1 }
0x2229   :  { %v18293_v57 = vpop.f32.mrb[79].mxu1 }
0x222a   :  { %18309 = vmatpush3.bf16.msra.mxu0 %v21738_v13 }
0x222b   :  { %18322 = vmatprep.subr.bf16.mxu0 %v19652_v5 }
0x222d   :  { %18311 = vmatmul.mubr.msk.bf16.vlgmr.msra.gmra.mrb[92].mxu0 %vm132_vm0, %v21956_v11 }
0x222e   :  { %v22029_v37 = vpop.f32.mrb[80].mxu1  ;;  %18323 = vmatpush3.bf16.msra.mxu0 %v21747_v25  ;;  %18326 = vmatprep.mubr.msk.bf16.mxu0 %vm19653_vm1, %v19652_v5 }
0x222f   :  { %v18304_v9 = vpop.f32.mrb[81].mxu1  ;;  %18324 = vmatprep.subr.bf16.mxu0 %v19652_v5 }
0x2230   :  { %v9085_v40 = vpop.f32.mrb[82].mxu1 }
0x2231   :  { %v18305_v28 = vpop.f32.mrb[83].mxu1 }
0x2232   :  { %18325 = vmatpush3.bf16.msra.mxu0 %v21758_v17 }
0x2233   :  { %18338 = vmatprep.subr.bf16.mxu0 %v19652_v5 }
0x2235   :  { %18327 = vmatmul.mubr.msk.bf16.vlgmr.msra.gmra.mrb[96].mxu0 %vm132_vm0, %v21956_v11 }
0x2236   :  { %v9169_v13 = vpop.f32.mrb[84].mxu1  ;;  %18339 = vmatpush3.bf16.msra.mxu0 %v21767_v12  ;;  %18342 = vmatprep.mubr.msk.bf16.mxu0 %vm19653_vm1, %v19652_v5 }
0x2237   :  { %v18320_v25 = vpop.f32.mrb[85].mxu1  ;;  %18340 = vmatprep.subr.bf16.mxu0 %v19652_v5 }
0x2238   :  { %v9172_v18 = vpop.f32.mrb[86].mxu1 }
0x2239   :  { %v18321_v6 = vpop.f32.mrb[87].mxu1 }
0x223a   :  { %18341 = vmatpush3.bf16.msra.mxu0 %v21776_v58 }
0x223b   :  { %18354 = vmatprep.subr.bf16.mxu0 %v19652_v5 }
0x223d   :  { %18343 = vmatmul.mubr.msk.bf16.vlgmr.msra.gmra.mrb[100].mxu0 %vm132_vm0, %v21976_v44 }
0x223e   :  { %v9249_v17 = vpop.f32.mrb[88].mxu1  ;;  %18355 = vmatpush3.bf16.msra.mxu0 %v21785_v24  ;;  %18358 = vmatprep.mubr.msk.bf16.mxu0 %vm19653_vm1, %v19652_v5 }
0x223f   :  { %v18336_v12 = vpop.f32.mrb[89].mxu1  ;;  %18356 = vmatprep.subr.bf16.mxu0 %v19652_v5  ;;  %v9581_v63 = vpack.c.bf16 %v9249_v17, %v9249_v17 }
0x2240   :  { %v9252_v4 = vpop.f32.mrb[90].mxu1 }
0x2241   :  { %v18337_v42 = vpop.f32.mrb[91].mxu1 }
0x2242   :  { %18357 = vmatpush3.bf16.msra.mxu0 %v21794_v39 }
0x2243   :  { %18370 = vmatprep.subr.bf16.mxu0 %v19652_v5 }
0x2245   :  { %18359 = vmatmul.mubr.msk.bf16.vlgmr.msra.gmra.mrb[104].mxu0 %vm132_vm0, %v21976_v44 }
0x2246   :  { %v9332_v58 = vpop.f32.mrb[92].mxu1  ;;  %18371 = vmatpush3.bf16.msra.mxu0 %v21803_v48  ;;  %18374 = vmatprep.mubr.msk.bf16.mxu0 %vm19653_vm1, %v19652_v5  ;;  %v9579_v48 = vpack.c.bf16 %v9169_v13, %v9169_v13 }
0x2247   :  { %v9583_v24 = vpack.c.bf16 %v9332_v58, %v9332_v58  ;;  %v18352_v8 = vpop.f32.mrb[93].mxu1  ;;  %18372 = vmatprep.subr.bf16.mxu0 %v19652_v5 }
0x2248   :  { %v9335_v1 = vpop.f32.mrb[94].mxu1 }
0x2249   :  { %v9636_v49 = vsel %vm846_vm2, %v9583_v24, 0  ;;  %v18353_v41 = vpop.f32.mrb[95].mxu1 }
0x224a   :  { %18373 = vmatpush3.bf16.msra.mxu0 %v21812_v43  ;;  %18409 = vmatpush3.bf16.xpose.msra.mxu1 %v9636_v49 }
0x224b   :  { %18386 = vmatprep.subr.bf16.mxu0 %v19652_v5  ;;  %18420 = vmatprep.subr.bf16.mxu1 %v19652_v5 }
0x224d   :  { %18375 = vmatmul.mubr.msk.bf16.vlgmr.msra.gmra.mrb[108].mxu0 %vm132_vm0, %v21976_v44 }
0x224e   :  { %v9412_v39 = vpop.f32.mrb[96].mxu1  ;;  %18387 = vmatpush3.bf16.msra.mxu0 %v21822_v10  ;;  %18390 = vmatprep.mubr.msk.bf16.mxu0 %vm19653_vm1, %v19652_v5 }
0x224f   :  { %v9585_v34 = vpack.c.bf16 %v9412_v39, %v9412_v39  ;;  %v18368_v14 = vpop.f32.mrb[97].mxu1  ;;  %18388 = vmatprep.subr.bf16.mxu0 %v19652_v5 }
0x2250   :  { %v9415_v43 = vpop.f32.mrb[98].mxu1 }
0x2251   :  { %v9728_v11 = vsel %vm846_vm2, %v9585_v34, 0  ;;  %v18369_v54 = vpop.f32.mrb[99].mxu1  ;;  %18411 = vmatmul.mubr.msk.bf16.vlgmr.msra.gmra.mrb[108].mxu1 %vm846_vm2, %v9579_v48 }
0x2252   :  { %18389 = vmatpush3.bf16.msra.mxu0 %v21832_v60  ;;  %18421 = vmatpush3.bf16.xpose.msra.mxu1 %v9728_v11 }
0x2253   :  { %18422 = vmatprep.mubr.msk.bf16.mxu1 %vm19653_vm1, %v19652_v5  ;;  %18432 = vmatprep.subr.bf16.mxu1 %v19652_v5 }
0x2254   :  { %18402 = vmatprep.subr.bf16.mxu0 %v19652_v5 }
0x2255   :  { %18391 = vmatmul.mubr.msk.bf16.vlgmr.msra.gmra.mrb[112].mxu0 %vm132_vm0, %v21976_v44 }
0x2256   :  { %v9492_v10 = vpop.f32.mrb[100].mxu1  ;;  %18404 = vmatprep.mubr.msk.bf16.mxu0 %vm19653_vm1, %v19652_v5 }
0x2257   :  { %v9819_v51 = vpack.c.bf16 %v9492_v10, %v9492_v10  ;;  %v18384_v30 = vpop.f32.mrb[101].mxu1 }
0x2258   :  { %v9495_v20 = vpop.f32.mrb[102].mxu1 }
0x2259   :  { %v9872_v60 = vsel %vm1086_vm3, %v9819_v51, 0  ;;  %v18385_v7 = vpop.f32.mrb[103].mxu1  ;;  %18423 = vmatmul.mubr.msk.bf16.vlgmr.msra.gmra.mrb[112].mxu1 %vm846_vm2, %v9581_v63 }
0x225a   :  { %18433 = vmatpush3.bf16.msra.mxu1 %v9872_v60  ;;  %18434 = vmatprep.mubr.msk.bf16.mxu1 %vm19653_vm1, %v19652_v5 }
0x225b   :  { %18444 = vmatprep.subr.bf16.mxu1 %v19652_v5 }
0x225e   :  { %v22085_v45 = vpop.f32.mrb[104].mxu1 }
0x225f   :  { %v18400_v33 = vpop.f32.mrb[105].mxu1 }
0x2260   :  { %v9575_v56 = vpop.f32.mrb[106].mxu1 }
0x2261   :  { %v18401_v31 = vpop.f32.mrb[107].mxu1 }
0x22f0   :  { %v8944_v19 = vpop.f32.mrb[84].mxu0 }
0x22f1   :  { %v18286_v50 = vpop.f32.mrb[85].mxu0  ;;  %v9088_v29 = vadd.f32 %v22019_v2, %v8944_v19 }
0x22f2   :  { %v8947_v46 = vpop.f32.mrb[86].mxu0 }
0x22f3   :  { %v18287_v36 = vpop.f32.mrb[87].mxu0 }
0x22f8   :  { %v9036_v53 = vpop.f32.mrb[88].mxu0 }
0x22f9   :  { %v9089_v57 = vadd.f32 %v9088_v29, %v9036_v53  ;;  %v18298_v9 = vpop.f32.mrb[89].mxu0 }
0x22fa   :  { %v9039_v40 = vpop.f32.mrb[90].mxu0 }
0x22fb   :  { %v22089_v28 = vadd.f32 %v9089_v57, %v22029_v37  ;;  %v18299_v13 = vpop.f32.mrb[91].mxu0 }
0x2300   :  { %v9129_v25 = vpop.f32.mrb[92].mxu0 }
0x2301   :  { %v18312_v18 = vpop.f32.mrb[93].mxu0  ;;  %v9578_v39 = vpack.c.bf16 %v9129_v25, %v9129_v25 }
0x2302   :  { %v9132_v6 = vpop.f32.mrb[94].mxu0 }
0x2303   :  { %v18313_v17 = vpop.f32.mrb[95].mxu0 }
0x2308   :  { %v9209_v12 = vpop.f32.mrb[96].mxu0 }
0x2309   :  { %v18328_v4 = vpop.f32.mrb[97].mxu0  ;;  %v9580_v10 = vpack.c.bf16 %v9209_v12, %v9209_v12 }
0x230a   :  { %v9212_v42 = vpop.f32.mrb[98].mxu0 }
0x230b   :  { %v18329_v58 = vpop.f32.mrb[99].mxu0 }
0x2310   :  { %v9292_v24 = vpop.f32.mrb[100].mxu0 }
0x2311   :  { %v9582_v2 = vpack.c.bf16 %v9292_v24, %v9292_v24  ;;  %v18344_v8 = vpop.f32.mrb[101].mxu0 }
0x2312   :  { %v9295_v1 = vpop.f32.mrb[102].mxu0 }
0x2313   :  { %v9590_v49 = vsel %vm846_vm2, %v9582_v2, 0  ;;  %v18345_v41 = vpop.f32.mrb[103].mxu0 }
0x2314   :  { %18403 = vmatpush3.bf16.xpose.msra.mxu0 %v9590_v49 }
0x2315   :  { %18414 = vmatprep.subr.bf16.mxu0 %v19652_v5 }
0x2318   :  { %v9372_v37 = vpop.f32.mrb[104].mxu0 }
0x2319   :  { %v9584_v48 = vpack.c.bf16 %v9372_v37, %v9372_v37  ;;  %v18360_v34 = vpop.f32.mrb[105].mxu0 }
0x231a   :  { %v9375_v14 = vpop.f32.mrb[106].mxu0 }
0x231b   :  { %v9682_v43 = vsel %vm846_vm2, %v9584_v48, 0  ;;  %v18361_v11 = vpop.f32.mrb[107].mxu0  ;;  %18405 = vmatmul.mubr.msk.bf16.vlgmr.msra.gmra.mrb[116].mxu0 %vm846_vm2, %v9578_v39 }
0x231c   :  { %18415 = vmatpush3.bf16.xpose.msra.mxu0 %v9682_v43  ;;  %18416 = vmatprep.mubr.msk.bf16.mxu0 %vm19653_vm1, %v19652_v5 }
0x231d   :  { %18426 = vmatprep.subr.bf16.mxu0 %v19652_v5 }
0x2320   :  { %v9452_v54 = vpop.f32.mrb[108].mxu0 }
0x2321   :  { %v9818_v63 = vpack.c.bf16 %v9452_v54, %v9452_v54  ;;  %v18376_v51 = vpop.f32.mrb[109].mxu0 }
0x2322   :  { %v9455_v30 = vpop.f32.mrb[110].mxu0 }
0x2323   :  { %v9826_v20 = vsel %vm1086_vm3, %v9818_v63, 0  ;;  %v18377_v60 = vpop.f32.mrb[111].mxu0  ;;  %18417 = vmatmul.mubr.msk.bf16.vlgmr.msra.gmra.mrb[120].mxu0 %vm846_vm2, %v9580_v10 }
0x2324   :  { %v9672_v7 = vpop.f32.mrb[108].mxu1  ;;  %18427 = vmatpush3.bf16.msra.mxu0 %v9826_v20  ;;  %18428 = vmatprep.mubr.msk.bf16.mxu0 %vm19653_vm1, %v19652_v5  ;;  %v9821_v60 = vpack.c.bf16 %v22085_v45, %v22085_v45 }
0x2325   :  { %v9673_v33 = vadd.f32 %v9672_v7, %v20297_v52  ;;  %v18412_v56 = vpop.f32.mrb[109].mxu1  ;;  %18438 = vmatprep.subr.bf16.mxu0 %v19652_v5 }
0x2326   :  { %v9675_v31 = vpop.f32.mrb[110].mxu1  ;;  %v9964_v56 = vsel %vm1086_vm3, %v9821_v60, 0 }
0x2327   :  { %v18413_v19 = vpop.f32.mrb[111].mxu1  ;;  %v9773_v50 = vsel %vm846_vm2, %v9673_v33, -inf }
0x2328   :  { %9774 = vmax.xlane.f32.xlu1 %v9773_v50  ;;  %v22105_v29 = vpop.f32.mrb[112].mxu0 }
0x2329   :  { %v18392_v46 = vpop.f32.mrb[113].mxu0 }
0x232a   :  { %v9535_v36 = vpop.f32.mrb[114].mxu0 }
0x232b   :  { %v18393_v53 = vpop.f32.mrb[115].mxu0 }
0x232c   :  { %v9764_v57 = vpop.f32.mrb[112].mxu1 }
0x232d   :  { %v9765_v9 = vadd.f32 %v9764_v57, %v20297_v52  ;;  %v18424_v40 = vpop.f32.mrb[113].mxu1 }
0x232e   :  { %v9767_v13 = vpop.f32.mrb[114].mxu1 }
0x232f   :  { %v18425_v25 = vpop.f32.mrb[115].mxu1  ;;  %v9779_v18 = vsel %vm846_vm2, %v9765_v9, -inf }
0x2330   :  { %9780 = vmax.xlane.f32.xlu1 %v9779_v18 }
0x23b5   :  { %v9775_v6 = vpop.xlane.xlu1 %9774 }
0x23b6   :  { %v9783_v17 = vsub.f32 %v9673_v33, %v9775_v6 }
0x23b8   :  { %v9788_v12 = vmul.f32 1.442695, %v9783_v17 }
0x23ba   :  { %19523 = vpow2.f32 %v9788_v12 }
0x23bd   :  { %v9781_v4 = vpop.xlane.xlu1 %9780 }
0x23be   :  { %v9785_v42 = vsub.f32 %v9765_v9, %v9781_v4 }
0x23c0   :  { %v9792_v58 = vmul.f32 1.442695, %v9785_v42 }
0x23c2   :  { %19525 = vpow2.f32 %v9792_v58  ;;  %v9820_v58 = vpack.c.bf16 %v22105_v29, %v22105_v29 }
0x23c4   :  { %v19524_v24 = vpop.eup %19523 }
0x23c5   :  { %v9797_v2 = vsel %vm846_vm2, %v19524_v24, 0.0 }
0x23c6   :  { %9798 = vadd.xlane.f32.xlu1 %v9797_v2 }
0x23cc   :  { %v19526_v8 = vpop.eup %19525 }
0x23cd   :  { %v9803_v1 = vsel %vm846_vm2, %v19526_v8, 0.0 }
0x23ce   :  { %9804 = vadd.xlane.f32.xlu1 %v9803_v1 }
0x23ee   :  { %v9626_v49 = vpop.f32.mrb[116].mxu0 }
0x23ef   :  { %v9627_v41 = vadd.f32 %v9626_v49, %v20297_v52  ;;  %v18406_v37 = vpop.f32.mrb[117].mxu0 }
0x23f0   :  { %v9629_v39 = vpop.f32.mrb[118].mxu0 }
0x23f1   :  { %v18407_v48 = vpop.f32.mrb[119].mxu0  ;;  %v9770_v34 = vsel %vm846_vm2, %v9627_v41, -inf }
0x23f2   :  { %9771 = vmax.xlane.f32.xlu0 %v9770_v34 }
0x23f6   :  { %v9718_v14 = vpop.f32.mrb[120].mxu0 }
0x23f7   :  { %v9719_v43 = vadd.f32 %v9718_v14, %v20297_v52  ;;  %v18418_v11 = vpop.f32.mrb[121].mxu0 }
0x23f8   :  { %v9721_v54 = vpop.f32.mrb[122].mxu0 }
0x23f9   :  { %v18419_v10 = vpop.f32.mrb[123].mxu0  ;;  %v9776_v63 = vsel %vm846_vm2, %v9719_v43, -inf }
0x23fa   :  { %9777 = vmax.xlane.f32.xlu0 %v9776_v63 }
0x2453   :  { %v9799_v51 = vpop.xlane.xlu1 %9798 }
0x2454   :  { %19527 = vrcp.f32 %v9799_v51 }
0x245b   :  { %v9805_v30 = vpop.xlane.xlu1 %9804 }
0x245c   :  { %19529 = vrcp.f32 %v9805_v30 }
0x245e   :  { %v19528_v20 = vpop.eup %19527 }
0x245f   :  { %v9811_v7 = vmul.f32 %v19528_v20, %v19524_v24  ;;  %v9918_v24 = vsel %vm1086_vm3, %v9820_v58, 0 }
0x2461   :  { %v9815_v33 = vpack.c.bf16 %v9811_v7, %v9811_v7 }
0x2463   :  { %18435 = vmatmul.mubr.msk.bf16.vlgmr.msra.gmra.mrb[116].mxu1 %vm846_vm2, %v9815_v33 }
0x2464   :  { %18445 = vmatpush3.bf16.msra.mxu1 %v9964_v56  ;;  %18446 = vmatprep.mubr.msk.bf16.mxu1 %vm19653_vm1, %v19652_v5 }
0x2465   :  { %18456 = vmatprep.subr.bf16.mxu1 %v19652_v5 }
0x2466   :  { %v19530_v31 = vpop.eup %19529 }
0x2467   :  { %v9813_v19 = vmul.f32 %v19530_v31, %v19526_v8 }
0x2469   :  { %v9817_v50 = vpack.c.bf16 %v9813_v19, %v9813_v19 }
0x246b   :  { %18447 = vmatmul.mubr.msk.bf16.vlgmr.msra.gmra.mrb[120].mxu1 %vm846_vm2, %v9817_v50 }
0x246c   :  { %18457 = vmatpush3.bf16.msra.mxu1 %v21915_v47  ;;  %18458 = vmatprep.mubr.msk.bf16.mxu1 %vm19653_vm1, %v19652_v5  ;;  %v22130_v47 = vadd.f32 %v22089_v28, %v21569_v35 }
0x246d   :  { %18468 = vmatprep.subr.bf16.mxu1 %v19652_v5 }
0x246e   :  { %v10189_v6 = vmul.f32 %v22130_v47, %v22130_v47 }
0x2470   :  { %v10191_v17 = vsel %vm132_vm0, %v10189_v6, 0.0 }
0x247f   :  { %v9772_v45 = vpop.xlane.xlu0 %9771 }
0x2480   :  { %v9782_v46 = vsub.f32 %v9627_v41, %v9772_v45 }
0x2482   :  { %v9786_v36 = vmul.f32 1.442695, %v9782_v46 }
0x2484   :  { %19531 = vpow2.f32 %v9786_v36 }
0x2487   :  { %v9778_v53 = vpop.xlane.xlu0 %9777 }
0x2488   :  { %v9784_v57 = vsub.f32 %v9719_v43, %v9778_v53 }
0x248a   :  { %v9790_v9 = vmul.f32 1.442695, %v9784_v57 }
0x248c   :  { %19533 = vpow2.f32 %v9790_v9 }
0x248e   :  { %v19532_v40 = vpop.eup %19531 }
0x248f   :  { %v9794_v13 = vsel %vm846_vm2, %v19532_v40, 0.0 }
0x2490   :  { %9795 = vadd.xlane.f32.xlu0 %v9794_v13 }
0x2496   :  { %v19534_v25 = vpop.eup %19533 }
0x2497   :  { %v9800_v18 = vsel %vm846_vm2, %v19534_v25, 0.0 }
0x2498   :  { %9801 = vadd.xlane.f32.xlu0 %v9800_v18 }
0x249c   :  { %10192 = vadd.xlane.f32.xlu0 %v10191_v17 }
0x251d   :  { %v9796_v12 = vpop.xlane.xlu0 %9795 }
0x251e   :  { %19535 = vrcp.f32 %v9796_v12 }
0x2525   :  { %v9802_v4 = vpop.xlane.xlu0 %9801 }
0x2526   :  { %19537 = vrcp.f32 %v9802_v4 }
0x2528   :  { %v19536_v42 = vpop.eup %19535 }
0x2529   :  { %v9810_v35 = vmul.f32 %v19536_v42, %v19532_v40 }
0x252b   :  { %v9814_v28 = vpack.c.bf16 %v9810_v35, %v9810_v35  ;;  %v19319_v35 = vld [vmem:[%s23359_s19] sm:$0xff]  }
0x252d   :  { %18429 = vmatmul.mubr.msk.bf16.vlgmr.msra.gmra.mrb[124].mxu0 %vm846_vm2, %v9814_v28  ;;  %v19320_v28 = vld [vmem:[%s23359_s19 + $0x8] sm:$0xff]  }
0x252e   :  { %18439 = vmatpush3.bf16.msra.mxu0 %v9918_v24  ;;  %18440 = vmatprep.mubr.msk.bf16.mxu0 %vm19653_vm1, %v19652_v5  ;;  %v19322_v24 = vld [vmem:[%s23360_s20 + $0x8] sm:$0xff]  }
0x252f   :  { %18450 = vmatprep.subr.bf16.mxu0 %v19652_v5 }
0x2530   :  { %v19538_v2 = vpop.eup %19537 }
0x2531   :  { %v9812_v8 = vmul.f32 %v19538_v2, %v19534_v25  ;;  %v10193_v2 = vpop.xlane.xlu0 %10192 }
0x2533   :  { %v9816_v1 = vpack.c.bf16 %v9812_v8, %v9812_v8  ;;  %v10197_v8 = vmul.f32 0.03125, %v10193_v2  ;;  %v22310_v2 = vld [vmem:[%s23354_s14 + $0x128] sm:$0xff]  }
0x2535   :  { %18441 = vmatmul.mubr.msk.bf16.vlgmr.msra.gmra.mrb[128].mxu0 %vm846_vm2, %v9816_v1  ;;  %v10199_v1 = vadd.f32 1e-06, %v10197_v8  ;;  %v22323_v8 = vld [vmem:[%s23354_s14 + $0x110] sm:$0xff]  }
0x2536   :  { %v9908_v49 = vpop.f32.mrb[116].mxu1  ;;  %18451 = vmatpush3.bf16.msra.mxu0 %v21930_v22  ;;  %18452 = vmatprep.mubr.msk.bf16.mxu0 %vm19653_vm1, %v19652_v5 }
0x2537   :  { %v10007_v29 = vpack.c.bf16 %v9908_v49, %v9908_v49  ;;  %v18436_v41 = vpop.f32.mrb[117].mxu1  ;;  %18462 = vmatprep.subr.bf16.mxu0 %v19652_v5  ;;  %19539 = vrsqrt.f32 %v10199_v1  ;;  %v22328_v1 = vld [vmem:[%s23354_s14 + $0x140] sm:$0xff]  }
0x2538   :  { %v9911_v37 = vpop.f32.mrb[118].mxu1 }
0x2539   :  { %v18437_v39 = vpop.f32.mrb[119].mxu1  ;;  %18459 = vmatmul.mubr.msk.bf16.vlgmr.msra.gmra.mrb[124].mxu1 %vm846_vm2, %v10007_v29 }
0x253a   :  { %18469 = vmatpush3.bf16.msra.mxu1 %v21940_v3  ;;  %18470 = vmatprep.mubr.msk.bf16.mxu1 %vm19653_vm1, %v19652_v5 }
0x253b   :  { %18482 = vmatprep.subr.bf16.mxu1 %v19652_v5 }
0x253e   :  { %v10000_v48 = vpop.f32.mrb[120].mxu1 }
0x253f   :  { %v10009_v22 = vpack.c.bf16 %v10000_v48, %v10000_v48  ;;  %v18448_v34 = vpop.f32.mrb[121].mxu1 }
0x2540   :  { %v10003_v14 = vpop.f32.mrb[122].mxu1 }
0x2541   :  { %v18449_v43 = vpop.f32.mrb[123].mxu1  ;;  %18471 = vmatmul.mubr.msk.bf16.vlgmr.msra.gmra.mrb[128].mxu1 %vm846_vm2, %v10009_v22  ;;  %v19540_v37 = vpop.eup %19539  ;;  %v16041_v22 = vld [vmem:[%s23353_s13 + $0x2] ss:$0 sm:$0xff] }
0x2542   :  { %18490 = vmatprep.mubr.msk.bf16.mxu1 %vm19653_vm1, %v19652_v5  ;;  %v10203_v39 = vmul.f32 %v19540_v37, %v22130_v47  ;;  %v22364_v37 = vld [vmem:[%s23354_s14 + $0x160] sm:$0xff]  }
0x2544   :  { %v10211_v14 = vmul.f32 %v16041_v22, %v10203_v39  ;;  %v22377_v39 = vld [vmem:[%s23354_s14 + $0x138] sm:$0xff]  }
0x2600   :  { %v9862_v11 = vpop.f32.mrb[124].mxu0 }
0x2601   :  { %v10006_v54 = vpack.c.bf16 %v9862_v11, %v9862_v11  ;;  %v18430_v10 = vpop.f32.mrb[125].mxu0 }
0x2602   :  { %v9865_v63 = vpop.f32.mrb[126].mxu0  ;;  %v19324_v10 = vld [vmem:[%s23360_s20 + $0x18] sm:$0xff]  }
0x2603   :  { %v18431_v3 = vpop.f32.mrb[127].mxu0  ;;  %18453 = vmatmul.mubr.msk.bf16.vlgmr.msra.gmra.mrb[132].mxu0 %vm846_vm2, %v10006_v54  ;;  %v19323_v54 = vld [vmem:[%s23360_s20 + $0x10] sm:$0xff]  }
0x2604   :  { %18463 = vmatpush3.bf16.msra.mxu0 %v22011_v32  ;;  %18464 = vmatprep.mubr.msk.bf16.mxu0 %vm19653_vm1, %v19652_v5 }
0x2605   :  { %18474 = vmatprep.subr.bf16.mxu0 %v19652_v5 }
0x2608   :  { %v9954_v51 = vpop.f32.mrb[128].mxu0 }
0x2609   :  { %v10008_v30 = vpack.c.bf16 %v9954_v51, %v9954_v51  ;;  %v18442_v20 = vpop.f32.mrb[129].mxu0 }
0x260a   :  { %v9957_v60 = vpop.f32.mrb[130].mxu0 }
0x260b   :  { %v18443_v7 = vpop.f32.mrb[131].mxu0  ;;  %18465 = vmatmul.mubr.msk.bf16.vlgmr.msra.gmra.mrb[136].mxu0 %vm846_vm2, %v10008_v30 }
0x260c   :  { %v10090_v33 = vpop.f32.mrb[124].mxu1  ;;  %18478 = vmatprep.mubr.msk.bf16.mxu0 %vm19653_vm1, %v19652_v5  ;;  %18475 = vmatpush3.bf16.msra.mxu0 %v19319_v35  ;;  %v22274_v35 = vld [vmem:[%s23354_s14 + $0x108] sm:$0xff]  }
0x260d   :  { %v18460_v56 = vpop.f32.mrb[125].mxu1  ;;  %18476 = vmatprep.subr.bf16.mxu0 %v19652_v5 }
0x260e   :  { %v10093_v31 = vpop.f32.mrb[126].mxu1 }
0x260f   :  { %v18461_v19 = vpop.f32.mrb[127].mxu1 }
0x2610   :  { %18477 = vmatpush3.bf16.msra.mxu0 %v19320_v28  ;;  %v22287_v28 = vld [vmem:[%s23354_s14 + $0xf0] sm:$0xff]  }
0x2611   :  { %18494 = vmatprep.subr.bf16.mxu0 %v19652_v5 }
0x2614   :  { %v10176_v32 = vpop.f32.mrb[128].mxu1 }
0x2615   :  { %v18472_v50 = vpop.f32.mrb[129].mxu1 }
0x2616   :  { %v10179_v45 = vpop.f32.mrb[130].mxu1 }
0x2617   :  { %v18473_v46 = vpop.f32.mrb[131].mxu1 }
0x2618   :  { %v22216_v46 = vld [vmem:[%s23354_s14 + $0xc0] sm:$0xff]  }
0x26d6   :  { %v10047_v36 = vpop.f32.mrb[132].mxu0 }
0x26d7   :  { %v10182_v53 = vadd.f32 %v10090_v33, %v10047_v36  ;;  %v18454_v57 = vpop.f32.mrb[133].mxu0  ;;  %v22230_v36 = vld [vmem:[%s23354_s14 + $0xc8] sm:$0xff]  }
0x26d8   :  { %v10050_v9 = vpop.f32.mrb[134].mxu0 }
0x26d9   :  { %v18455_v40 = vpop.f32.mrb[135].mxu0 }
0x26de   :  { %v10133_v13 = vpop.f32.mrb[136].mxu0 }
0x26df   :  { %v10183_v25 = vadd.f32 %v10182_v53, %v10133_v13  ;;  %v18466_v18 = vpop.f32.mrb[137].mxu0  ;;  %v22235_v53 = vld [vmem:[%s23354_s14 + $0xe8] sm:$0xff]  }
0x26e0   :  { %v10136_v6 = vpop.f32.mrb[138].mxu0 }
0x26e1   :  { %v10184_v17 = vadd.f32 %v10183_v25, %v10176_v32  ;;  %v18467_v12 = vpop.f32.mrb[139].mxu0  ;;  %v22244_v25 = vld [vmem:[%s23353_s13 + $0x3] ss:$0 sm:$0xff] }
0x26e2   :  { %v22256_v12 = vld [vmem:[%s23354_s14 + $0x100] sm:$0xff]  }
0x26e3   :  { %v22165_v4 = vadd.f32 %v10184_v17, %v21905_v23  ;;  %v19321_v23 = vld [vmem:[%s23360_s20] sm:$0xff]   ;;  %v22251_v17 = vld [vmem:[%s23354_s14 + $0xd0] sm:$0xff]  }
0x26e4   :  { %18483 = vmatpush3.bf16.msra.mxu1 %v19321_v23  ;;  %v22292_v23 = vld [vmem:[%s23354_s14 + $0x120] sm:$0xff]  }
0x26e5   :  { %v10190_v42 = vmul.f32 %v22165_v4, %v22165_v4  ;;  %18484 = vmatprep.subr.bf16.mxu1 %v19652_v5 }
0x26e7   :  { %v10194_v58 = vsel %vm132_vm0, %v10190_v42, 0.0 }
0x26e8   :  { %10195 = vadd.xlane.f32.xlu1 %v10194_v58  ;;  %18485 = vmatpush3.bf16.msra.mxu1 %v19322_v24  ;;  %v22269_v58 = vld [vmem:[%s23354_s14 + $0xd8] sm:$0xff]  }
0x26e9   :  { %18486 = vmatprep.subr.bf16.mxu1 %v19652_v5  ;;  %v22305_v24 = vld [vmem:[%s23354_s14 + $0xf8] sm:$0xff]  }
0x26ec   :  { %18487 = vmatpush3.bf16.msra.mxu1 %v19323_v54 }
0x26ed   :  { %18488 = vmatprep.subr.bf16.mxu1 %v19652_v5 }
0x26f0   :  { %18489 = vmatpush3.bf16.msra.mxu1 %v19324_v10 }
0x26f1   :  { %18510 = vmatprep.subr.bf16.mxu1 %v19652_v5 }
0x2775   :  { %v10196_v49 = vpop.xlane.xlu1 %10195 }
0x2776   :  { %v10198_v29 = vmul.f32 0.03125, %v10196_v49  ;;  %v22341_v49 = vld [vmem:[%s23354_s14 + $0x118] sm:$0xff]  }
0x2778   :  { %v10200_v41 = vadd.f32 1e-06, %v10198_v29  ;;  %v22346_v29 = vld [vmem:[%s23354_s14 + $0x148] sm:$0xff]  }
0x277a   :  { %19541 = vrsqrt.f32 %v10200_v41  ;;  %v22359_v41 = vld [vmem:[%s23354_s14 + $0x130] sm:$0xff]  }
0x2784   :  { %v19542_v48 = vpop.eup %19541 }
0x2785   :  { %v10204_v34 = vmul.f32 %v19542_v48, %v22165_v4  ;;  %v22382_v48 = vld [vmem:[%s23354_s14 + $0x168] sm:$0xff]  }
0x2787   :  { %v10212_v43 = vmul.f32 %v16041_v22, %v10204_v34  ;;  %v22395_v22 = vld [vmem:[%s23354_s14 + $0x150] sm:$0xff]   ;;  %v22407_v34 = vld [vmem:[%s23354_s14 + $0x158] sm:$0xff]  }
0x2789   :  { %v10217_v11 = vpack.c.bf16 %v10212_v43, %v10211_v14  ;;  %v22418_v14 = vld [vmem:[%s23354_s14 + $0x170] sm:$0xff]   ;;  %v22427_v43 = vld [vmem:[%s23354_s14 + $0x178] sm:$0xff]  }
0x278b   :  { %18479 = vmatmul.mubr.msk.bf16.vlgmr.msra.gmra.mrb[140].mxu0 %vm132_vm0, %v10217_v11 }
0x278c   :  { %18498 = vmatprep.mubr.msk.bf16.mxu0 %vm19653_vm1, %v19652_v5  ;;  %18495 = vmatpush3.bf16.msra.mxu0 %v22216_v46 }
0x278d   :  { %18496 = vmatprep.subr.bf16.mxu0 %v19652_v5 }
0x2790   :  { %18497 = vmatpush3.bf16.msra.mxu0 %v22230_v36 }
0x2791   :  { %18502 = vmatprep.subr.bf16.mxu0 %v19652_v5 }
0x285e   :  { %v10267_v63 = vpop.f32.mrb[140].mxu0 }
0x285f   :  { %v18480_v3 = vpop.f32.mrb[141].mxu0  ;;  %v10274_v30 = vmax.f32 %v10267_v63, 0.0 }
0x2860   :  { %v10270_v51 = vpop.f32.mrb[142].mxu0 }
0x2861   :  { %v10275_v20 = vmax.f32 %v10270_v51, 0.0  ;;  %v18481_v60 = vpop.f32.mrb[143].mxu0 }
0x2863   :  { %v10284_v7 = vpack.c.bf16 %v10275_v20, %v10274_v30 }
0x2865   :  { %18491 = vmatmul.mubr.msk.bf16.vlgmr.msra.gmra.mrb[132].mxu1 %vm2674_vm4, %v10284_v7 }
0x2866   :  { %18514 = vmatprep.mubr.msk.bf16.mxu1 %vm19653_vm1, %v19652_v5 }
0x2938   :  { %v10346_v33 = vpop.f32.mrb[132].mxu1 }
0x2939   :  { %v22206_v56 = vadd.f32 %v10346_v33, %v22130_v47  ;;  %v18492_v31 = vpop.f32.mrb[133].mxu1  ;;  %v22221_v47 = vld [vmem:[%s23354_s14 + $0xe0] sm:$0xff]  }
0x293a   :  { %v22208_v19 = vpop.f32.mrb[134].mxu1  ;;  %18511 = vmatpush3.bf16.msra.mxu1 %v22221_v47 }
0x293b   :  { %v18493_v32 = vpop.f32.mrb[135].mxu1  ;;  %v10357_v50 = vmul.f32 %v22206_v56, %v22206_v56  ;;  %18512 = vmatprep.subr.bf16.mxu1 %v19652_v5 }
0x293d   :  { %v10359_v45 = vsel %vm132_vm0, %v10357_v50, 0.0 }
0x293e   :  { %10360 = vadd.xlane.f32.xlu0 %v10359_v45  ;;  %18513 = vmatpush3.bf16.msra.mxu1 %v22235_v53 }
0x293f   :  { %18526 = vmatprep.subr.bf16.mxu1 %v19652_v5 }
0x29cb   :  { %v10361_v57 = vpop.xlane.xlu0 %10360 }
0x29cc   :  { %v10365_v9 = vmul.f32 0.03125, %v10361_v57 }
0x29ce   :  { %v10367_v40 = vadd.f32 1e-06, %v10365_v9 }
0x29d0   :  { %19543 = vrsqrt.f32 %v10367_v40 }
0x29da   :  { %v19544_v13 = vpop.eup %19543 }
0x29db   :  { %v10371_v18 = vmul.f32 %v19544_v13, %v22206_v56 }
0x29dd   :  { %v10379_v6 = vmul.f32 %v22244_v25, %v10371_v18 }
0x29df   :  { %v22258_v42 = vpack.c.bf16 %v10379_v6, %v10379_v6 }
0x29e1   :  { %18499 = vmatmul.mubr.msk.bf16.vlgmr.msra.gmra.mrb[144].mxu0 %vm132_vm0, %v22258_v42  ;;  %18515 = vmatmul.mubr.msk.bf16.vlgmr.msra.gmra.mrb[136].mxu1 %vm132_vm0, %v22258_v42 }
0x29e2   :  { %18503 = vmatpush3.bf16.msra.mxu0 %v22251_v17  ;;  %18527 = vmatpush3.bf16.msra.mxu1 %v22256_v12 }
0x29e3   :  { %18504 = vmatprep.subr.bf16.mxu0 %v19652_v5  ;;  %18528 = vmatprep.subr.bf16.mxu1 %v19652_v5 }
0x29e4   :  { %18506 = vmatprep.mubr.msk.bf16.mxu0 %vm19653_vm1, %v19652_v5  ;;  %18530 = vmatprep.mubr.msk.bf16.mxu1 %vm19653_vm1, %v19652_v5 }
0x29e6   :  { %18505 = vmatpush3.bf16.msra.mxu0 %v22269_v58  ;;  %18529 = vmatpush3.bf16.msra.mxu1 %v22274_v35 }
0x29e7   :  { %18518 = vmatprep.subr.bf16.mxu0 %v19652_v5  ;;  %18542 = vmatprep.subr.bf16.mxu1 %v19652_v5 }
0x29e9   :  { %18507 = vmatmul.mubr.msk.bf16.vlgmr.msra.gmra.mrb[148].mxu0 %vm132_vm0, %v22258_v42  ;;  %18531 = vmatmul.mubr.msk.bf16.vlgmr.msra.gmra.mrb[140].mxu1 %vm132_vm0, %v22258_v42 }
0x29ea   :  { %18519 = vmatpush3.bf16.msra.mxu0 %v22287_v28  ;;  %18543 = vmatpush3.bf16.msra.mxu1 %v22292_v23 }
0x29eb   :  { %18520 = vmatprep.subr.bf16.mxu0 %v19652_v5  ;;  %18544 = vmatprep.subr.bf16.mxu1 %v19652_v5 }
0x29ec   :  { %18522 = vmatprep.mubr.msk.bf16.mxu0 %vm19653_vm1, %v19652_v5  ;;  %18546 = vmatprep.mubr.msk.bf16.mxu1 %vm19653_vm1, %v19652_v5 }
0x29ee   :  { %18521 = vmatpush3.bf16.msra.mxu0 %v22305_v24  ;;  %18545 = vmatpush3.bf16.msra.mxu1 %v22310_v2 }
0x29ef   :  { %18534 = vmatprep.subr.bf16.mxu0 %v19652_v5  ;;  %18558 = vmatprep.subr.bf16.mxu1 %v19652_v5 }
0x29f1   :  { %18523 = vmatmul.mubr.msk.bf16.vlgmr.msra.gmra.mrb[152].mxu0 %vm132_vm0, %v22258_v42  ;;  %18547 = vmatmul.mubr.msk.bf16.vlgmr.msra.gmra.mrb[144].mxu1 %vm132_vm0, %v22258_v42 }
0x29f2   :  { %18535 = vmatpush3.bf16.msra.mxu0 %v22323_v8  ;;  %18559 = vmatpush3.bf16.msra.mxu1 %v22328_v1 }
0x29f3   :  { %18536 = vmatprep.subr.bf16.mxu0 %v19652_v5  ;;  %18560 = vmatprep.subr.bf16.mxu1 %v19652_v5 }
0x29f4   :  { %18538 = vmatprep.mubr.msk.bf16.mxu0 %vm19653_vm1, %v19652_v5  ;;  %18562 = vmatprep.mubr.msk.bf16.mxu1 %vm19653_vm1, %v19652_v5 }
0x29f6   :  { %18537 = vmatpush3.bf16.msra.mxu0 %v22341_v49  ;;  %18561 = vmatpush3.bf16.msra.mxu1 %v22346_v29 }
0x29f7   :  { %18550 = vmatprep.subr.bf16.mxu0 %v19652_v5  ;;  %18574 = vmatprep.subr.bf16.mxu1 %v19652_v5 }
0x29f9   :  { %18539 = vmatmul.mubr.msk.bf16.vlgmr.msra.gmra.mrb[156].mxu0 %vm132_vm0, %v22258_v42  ;;  %18563 = vmatmul.mubr.msk.bf16.vlgmr.msra.gmra.mrb[148].mxu1 %vm132_vm0, %v22258_v42 }
0x29fa   :  { %18551 = vmatpush3.bf16.msra.mxu0 %v22359_v41  ;;  %18575 = vmatpush3.bf16.msra.mxu1 %v22364_v37 }
0x29fb   :  { %18552 = vmatprep.subr.bf16.mxu0 %v19652_v5  ;;  %18576 = vmatprep.subr.bf16.mxu1 %v19652_v5 }
0x29fc   :  { %18554 = vmatprep.mubr.msk.bf16.mxu0 %vm19653_vm1, %v19652_v5  ;;  %18578 = vmatprep.mubr.msk.bf16.mxu1 %vm19653_vm1, %v19652_v5 }
0x29fe   :  { %18553 = vmatpush3.bf16.msra.mxu0 %v22377_v39  ;;  %18577 = vmatpush3.bf16.msra.mxu1 %v22382_v48 }
0x29ff   :  { %18566 = vmatprep.subr.bf16.mxu0 %v19652_v5  ;;  %18590 = vmatprep.subr.bf16.mxu1 %v19652_v5 }
0x2a01   :  { %18555 = vmatmul.mubr.msk.bf16.vlgmr.msra.gmra.mrb[160].mxu0 %vm132_vm0, %v22258_v42  ;;  %18579 = vmatmul.mubr.msk.bf16.vlgmr.msra.gmra.mrb[152].mxu1 %vm132_vm0, %v22258_v42 }
0x2a02   :  { %18567 = vmatpush3.bf16.msra.mxu0 %v22395_v22  ;;  %18570 = vmatprep.mubr.msk.bf16.mxu0 %vm19653_vm1, %v19652_v5 }
0x2a03   :  { %18568 = vmatprep.subr.bf16.mxu0 %v19652_v5  ;;  %18592 = vmatprep.mubr.msk.bf16.mxu1 %vm19653_vm1, %v19652_v5 }
0x2a06   :  { %18569 = vmatpush3.bf16.msra.mxu0 %v22407_v34 }
0x2a07   :  { %18582 = vmatprep.subr.bf16.mxu0 %v19652_v5 }
0x2a09   :  { %18571 = vmatmul.mubr.msk.bf16.vlgmr.msra.gmra.mrb[164].mxu0 %vm132_vm0, %v22258_v42 }
0x2a0a   :  { %18583 = vmatpush3.bf16.msra.mxu0 %v22418_v14  ;;  %18586 = vmatprep.mubr.msk.bf16.mxu0 %vm19653_vm1, %v19652_v5 }
0x2a0b   :  { %18584 = vmatprep.subr.bf16.mxu0 %v19652_v5 }
0x2a0e   :  { %18585 = vmatpush3.bf16.msra.mxu0 %v22427_v43 }
0x2a0f   :  { %18596 = vmatprep.subr.bf16.mxu0 %v19652_v5 }
0x2a11   :  { %18587 = vmatmul.mubr.msk.bf16.vlgmr.msra.gmra.mrb[168].mxu0 %vm132_vm0, %v22258_v42 }
0x2a12   :  { %18598 = vmatprep.mubr.msk.bf16.mxu0 %vm19653_vm1, %v19652_v5 }
0x2ab4   :  { %v10487_v11 = vpop.f32.mrb[144].mxu0  ;;  %v10591_v54 = vpop.f32.mrb[136].mxu1 }
0x2ab5   :  { %v18500_v10 = vpop.f32.mrb[145].mxu0  ;;  %v18516_v63 = vpop.f32.mrb[137].mxu1  ;;  %v11065_v6 = vpack.c.bf16 %v10487_v11, %v10487_v11  ;;  %v11067_v11 = vpack.c.bf16 %v10591_v54, %v10591_v54 }
0x2ab6   :  { %v10490_v3 = vpop.f32.mrb[146].mxu0  ;;  %v10594_v51 = vpop.f32.mrb[138].mxu1 }
0x2ab7   :  { %v18501_v30 = vpop.f32.mrb[147].mxu0  ;;  %v18517_v20 = vpop.f32.mrb[139].mxu1 }
0x2abc   :  { %v10539_v60 = vpop.f32.mrb[148].mxu0  ;;  %v10695_v7 = vpop.f32.mrb[140].mxu1 }
0x2abd   :  { %v11069_v33 = vpack.c.bf16 %v10695_v7, %v10695_v7  ;;  %v18508_v31 = vpop.f32.mrb[149].mxu0  ;;  %v18532_v32 = vpop.f32.mrb[141].mxu1 }
0x2abe   :  { %v10542_v50 = vpop.f32.mrb[150].mxu0  ;;  %v10698_v45 = vpop.f32.mrb[142].mxu1 }
0x2abf   :  { %v11077_v57 = vsel %vm846_vm2, %v11069_v33, 0  ;;  %v18509_v9 = vpop.f32.mrb[151].mxu0  ;;  %v18533_v40 = vpop.f32.mrb[143].mxu1 }
0x2ac0   :  { %18591 = vmatpush3.bf16.xpose.msra.mxu1 %v11077_v57 }
0x2ac1   :  { %18602 = vmatprep.subr.bf16.mxu1 %v19652_v5 }
0x2ac4   :  { %v10643_v13 = vpop.f32.mrb[152].mxu0  ;;  %v10799_v18 = vpop.f32.mrb[144].mxu1 }
0x2ac5   :  { %v11071_v42 = vpack.c.bf16 %v10799_v18, %v10799_v18  ;;  %v18524_v10 = vpop.f32.mrb[153].mxu0  ;;  %v18548_v63 = vpop.f32.mrb[145].mxu1 }
0x2ac6   :  { %v10646_v3 = vpop.f32.mrb[154].mxu0  ;;  %v10802_v51 = vpop.f32.mrb[146].mxu1 }
0x2ac7   :  { %v11169_v30 = vsel %vm846_vm2, %v11071_v42, 0  ;;  %v18525_v20 = vpop.f32.mrb[155].mxu0  ;;  %v18549_v7 = vpop.f32.mrb[147].mxu1  ;;  %18593 = vmatmul.mubr.msk.bf16.vlgmr.msra.gmra.mrb[156].mxu1 %vm846_vm2, %v11065_v6  ;;  %v11066_v3 = vpack.c.bf16 %v10539_v60, %v10539_v60 }
0x2ac8   :  { %18603 = vmatpush3.bf16.xpose.msra.mxu1 %v11169_v30  ;;  %18604 = vmatprep.mubr.msk.bf16.mxu1 %vm19653_vm1, %v19652_v5 }
0x2ac9   :  { %18614 = vmatprep.subr.bf16.mxu1 %v19652_v5 }
0x2acc   :  { %v10747_v33 = vpop.f32.mrb[156].mxu0  ;;  %v10903_v31 = vpop.f32.mrb[148].mxu1 }
0x2acd   :  { %v11070_v32 = vpack.c.bf16 %v10747_v33, %v10747_v33  ;;  %v11305_v50 = vpack.c.bf16 %v10903_v31, %v10903_v31  ;;  %v18540_v45 = vpop.f32.mrb[157].mxu0  ;;  %v18564_v57 = vpop.f32.mrb[149].mxu1 }
0x2ace   :  { %v10750_v9 = vpop.f32.mrb[158].mxu0  ;;  %v10906_v40 = vpop.f32.mrb[150].mxu1  ;;  %v11068_v45 = vpack.c.bf16 %v10643_v13, %v10643_v13 }
0x2acf   :  { %v11123_v18 = vsel %vm846_vm2, %v11070_v32, 0  ;;  %v11313_v42 = vsel %vm1086_vm3, %v11305_v50, 0  ;;  %v18541_v6 = vpop.f32.mrb[159].mxu0  ;;  %v18565_v10 = vpop.f32.mrb[151].mxu1  ;;  %18605 = vmatmul.mubr.msk.bf16.vlgmr.msra.gmra.mrb[160].mxu1 %vm846_vm2, %v11067_v11 }
0x2ad0   :  { %18597 = vmatpush3.bf16.xpose.msra.mxu0 %v11123_v18  ;;  %18615 = vmatpush3.bf16.msra.mxu1 %v11313_v42 }
0x2ad1   :  { %18608 = vmatprep.subr.bf16.mxu0 %v19652_v5  ;;  %18616 = vmatprep.mubr.msk.bf16.mxu1 %vm19653_vm1, %v19652_v5 }
0x2ad2   :  { %18626 = vmatprep.subr.bf16.mxu1 %v19652_v5 }
0x2ad4   :  { %v10851_v54 = vpop.f32.mrb[160].mxu0  ;;  %v22452_v63 = vpop.f32.mrb[152].mxu1 }
0x2ad5   :  { %v11072_v51 = vpack.c.bf16 %v10851_v54, %v10851_v54  ;;  %v18556_v30 = vpop.f32.mrb[161].mxu0  ;;  %v18580_v20 = vpop.f32.mrb[153].mxu1 }
0x2ad6   :  { %v10854_v7 = vpop.f32.mrb[162].mxu0  ;;  %v11010_v33 = vpop.f32.mrb[154].mxu1 }
0x2ad7   :  { %v11215_v31 = vsel %vm846_vm2, %v11072_v51, 0  ;;  %v18557_v11 = vpop.f32.mrb[163].mxu0  ;;  %v18581_v32 = vpop.f32.mrb[155].mxu1  ;;  %18599 = vmatmul.mubr.msk.bf16.vlgmr.msra.gmra.mrb[172].mxu0 %vm846_vm2, %v11066_v3 }
0x2ad8   :  { %18609 = vmatpush3.bf16.xpose.msra.mxu0 %v11215_v31  ;;  %18610 = vmatprep.mubr.msk.bf16.mxu0 %vm19653_vm1, %v19652_v5 }
0x2ad9   :  { %18620 = vmatprep.subr.bf16.mxu0 %v19652_v5 }
0x2adc   :  { %v10955_v50 = vpop.f32.mrb[164].mxu0 }
0x2add   :  { %v11306_v60 = vpack.c.bf16 %v10955_v50, %v10955_v50  ;;  %v18572_v57 = vpop.f32.mrb[165].mxu0 }
0x2ade   :  { %v10958_v9 = vpop.f32.mrb[166].mxu0 }
0x2adf   :  { %v11359_v40 = vsel %vm1086_vm3, %v11306_v60, 0  ;;  %v18573_v18 = vpop.f32.mrb[167].mxu0  ;;  %18611 = vmatmul.mubr.msk.bf16.vlgmr.msra.gmra.mrb[176].mxu0 %vm846_vm2, %v11068_v45 }
0x2ae0   :  { %18621 = vmatpush3.bf16.msra.mxu0 %v11359_v40  ;;  %18622 = vmatprep.mubr.msk.bf16.mxu0 %vm19653_vm1, %v19652_v5 }
0x2ae1   :  { %18632 = vmatprep.subr.bf16.mxu0 %v19652_v5 }
0x2ae4   :  { %v22464_v42 = vpop.f32.mrb[168].mxu0 }
0x2ae5   :  { %v18588_v6 = vpop.f32.mrb[169].mxu0 }
0x2ae6   :  { %v11062_v10 = vpop.f32.mrb[170].mxu0 }
0x2ae7   :  { %v18589_v54 = vpop.f32.mrb[171].mxu0 }
0x2b9a   :  { %v11113_v13 = vpop.f32.mrb[156].mxu1 }
0x2b9b   :  { %v11114_v3 = vadd.f32 %v11113_v13, %v21300_v38  ;;  %v18594_v51 = vpop.f32.mrb[157].mxu1 }
0x2b9c   :  { %v11116_v30 = vpop.f32.mrb[158].mxu1 }
0x2b9d   :  { %v18595_v20 = vpop.f32.mrb[159].mxu1  ;;  %v11257_v7 = vsel %vm846_vm2, %v11114_v3, -inf }
0x2b9e   :  { %11258 = vmax.xlane.f32.xlu1 %v11257_v7 }
0x2ba2   :  { %v11205_v33 = vpop.f32.mrb[160].mxu1 }
0x2ba3   :  { %v11206_v31 = vadd.f32 %v11205_v33, %v21310_v21  ;;  %v18606_v11 = vpop.f32.mrb[161].mxu1 }
0x2ba4   :  { %v11208_v32 = vpop.f32.mrb[162].mxu1 }
0x2ba5   :  { %v18607_v50 = vpop.f32.mrb[163].mxu1  ;;  %v11263_v45 = vsel %vm846_vm2, %v11206_v31, -inf }
0x2ba6   :  { %11264 = vmax.xlane.f32.xlu1 %v11263_v45 }
0x2baa   :  { %v11159_v60 = vpop.f32.mrb[172].mxu0 }
0x2bab   :  { %v11160_v57 = vadd.f32 %v11159_v60, %v21271_v16  ;;  %v18600_v9 = vpop.f32.mrb[173].mxu0 }
0x2bac   :  { %v11162_v38 = vpop.f32.mrb[174].mxu0  ;;  %v22477_v9 = vadd.f32 %v22208_v19, %v22165_v4 }
0x2bad   :  { %v18601_v40 = vpop.f32.mrb[175].mxu0  ;;  %v11260_v18 = vsel %vm846_vm2, %v11160_v57, -inf }
0x2bae   :  { %11261 = vmax.xlane.f32.xlu0 %v11260_v18 }
0x2bb2   :  { %v11251_v6 = vpop.f32.mrb[176].mxu0 }
0x2bb3   :  { %v11252_v10 = vadd.f32 %v11251_v6, %v21288_v55  ;;  %v18612_v54 = vpop.f32.mrb[177].mxu0 }
0x2bb4   :  { %v11254_v21 = vpop.f32.mrb[178].mxu0 }
0x2bb5   :  { %v18613_v13 = vpop.f32.mrb[179].mxu0  ;;  %v11266_v51 = vsel %vm846_vm2, %v11252_v10, -inf }
0x2bb6   :  { %11267 = vmax.xlane.f32.xlu0 %v11266_v51 }
0x2c2b   :  { %v11259_v30 = vpop.xlane.xlu1 %11258 }
0x2c2c   :  { %v11269_v20 = vsub.f32 %v11114_v3, %v11259_v30 }
0x2c2e   :  { %v11273_v7 = vmul.f32 1.442695, %v11269_v20 }
0x2c30   :  { %19545 = vpow2.f32 %v11273_v7 }
0x2c33   :  { %v11265_v16 = vpop.xlane.xlu1 %11264 }
0x2c34   :  { %v11271_v33 = vsub.f32 %v11206_v31, %v11265_v16  ;;  %v10358_v31 = vmul.f32 %v22477_v9, %v22477_v9 }
0x2c36   :  { %v11277_v11 = vmul.f32 1.442695, %v11271_v33  ;;  %v10362_v54 = vsel %vm132_vm0, %v10358_v31, 0.0 }
0x2c38   :  { %19547 = vpow2.f32 %v11277_v11 }
0x2c3a   :  { %v19546_v32 = vpop.eup %19545 }
0x2c3b   :  { %v11262_v50 = vpop.xlane.xlu0 %11261  ;;  %v11281_v45 = vsel %vm846_vm2, %v19546_v32, 0.0 }
0x2c3c   :  { %v11270_v60 = vsub.f32 %v11160_v57, %v11262_v50  ;;  %11282 = vadd.xlane.f32.xlu1 %v11281_v45 }
0x2c3e   :  { %v11275_v55 = vmul.f32 1.442695, %v11270_v60  ;;  %v11308_v60 = vpack.c.bf16 %v22464_v42, %v22464_v42  ;;  %v16100_v42 = vld [vmem:[%s23355_s15 + $0x10] sm:$0xf] }
0x2c40   :  { %19549 = vpow2.f32 %v11275_v55 }
0x2c42   :  { %v19548_v38 = vpop.eup %19547 }
0x2c43   :  { %v11268_v3 = vpop.xlane.xlu0 %11267  ;;  %v11287_v40 = vsel %vm846_vm2, %v19548_v38, 0.0 }
0x2c44   :  { %v11272_v18 = vsub.f32 %v11252_v10, %v11268_v3  ;;  %11288 = vadd.xlane.f32.xlu1 %v11287_v40  ;;  %v11307_v10 = vpack.c.bf16 %v22452_v63, %v22452_v63  ;;  %v11451_v40 = vsel %vm1086_vm3, %v11308_v60, 0 }
0x2c46   :  { %v11279_v6 = vmul.f32 1.442695, %v11272_v18  ;;  %v11405_v16 = vsel %vm1086_vm3, %v11307_v10, 0 }
0x2c48   :  { %19551 = vpow2.f32 %v11279_v6  ;;  %10363 = vadd.xlane.f32.xlu1 %v10362_v54  ;;  %v22509_v6 = vsel %vm1086_vm3, %v16100_v42, 0  ;;  %v16101_v54 = vld [vmem:[%s23355_s15 + $0x14] sm:$0xf] }
0x2c4a   :  { %v19550_v57 = vpop.eup %19549 }
0x2c4b   :  { %v11284_v21 = vsel %vm846_vm2, %v19550_v57, 0.0 }
0x2c4c   :  { %11285 = vadd.xlane.f32.xlu0 %v11284_v21 }
0x2c52   :  { %v19552_v4 = vpop.eup %19551 }
0x2c53   :  { %v11290_v19 = vsel %vm846_vm2, %v19552_v4, 0.0 }
0x2c54   :  { %11291 = vadd.xlane.f32.xlu0 %v11290_v19 }
0x2cc9   :  { %v11283_v13 = vpop.xlane.xlu1 %11282 }
0x2cca   :  { %19553 = vrcp.f32 %v11283_v13  ;;  %v16102_v13 = vld [vmem:[%s23355_s15 + $0x18] sm:$0xf] }
0x2cd1   :  { %v11289_v51 = vpop.xlane.xlu1 %11288 }
0x2cd2   :  { %19555 = vrcp.f32 %v11289_v51 }
0x2cd4   :  { %v19554_v30 = vpop.eup %19553 }
0x2cd5   :  { %v11297_v20 = vmul.f32 %v19554_v30, %v19546_v32  ;;  %v10364_v21 = vpop.xlane.xlu1 %10363 }
0x2cd7   :  { %v11301_v7 = vpack.c.bf16 %v11297_v20, %v11297_v20  ;;  %v22525_v20 = vsel %vm1086_vm3, %v16102_v13, 0 }
0x2cd9   :  { %18617 = vmatmul.mubr.msk.bf16.vlgmr.msra.gmra.mrb[164].mxu1 %vm846_vm2, %v11301_v7  ;;  %v11286_v33 = vpop.xlane.xlu0 %11285 }
0x2cda   :  { %18627 = vmatpush3.bf16.msra.mxu1 %v11405_v16  ;;  %18628 = vmatprep.mubr.msk.bf16.mxu1 %vm19653_vm1, %v19652_v5  ;;  %19557 = vrcp.f32 %v11286_v33 }
0x2cdb   :  { %18638 = vmatprep.subr.bf16.mxu1 %v19652_v5 }
0x2cdc   :  { %v19556_v11 = vpop.eup %19555 }
0x2cdd   :  { %v11299_v50 = vmul.f32 %v19556_v11, %v19548_v38 }
0x2cdf   :  { %v11303_v45 = vpack.c.bf16 %v11299_v50, %v11299_v50 }
0x2ce1   :  { %18629 = vmatmul.mubr.msk.bf16.vlgmr.msra.gmra.mrb[168].mxu1 %vm846_vm2, %v11303_v45  ;;  %v11292_v63 = vpop.xlane.xlu0 %11291 }
0x2ce2   :  { %19559 = vrcp.f32 %v11292_v63  ;;  %18640 = vmatprep.mubr.msk.bf16.mxu1 %vm19653_vm1, %v19652_v5  ;;  %18639 = vmatpush3.bf16.msra.mxu1 %v22509_v6 }
0x2ce3   :  { %18650 = vmatprep.subr.bf16.mxu1 %v19652_v5 }
0x2ce4   :  { %v19558_v32 = vpop.eup %19557 }
0x2ce5   :  { %v11298_v55 = vmul.f32 %v19558_v32, %v19550_v57  ;;  %v22517_v57 = vsel %vm1086_vm3, %v16101_v54, 0 }
0x2ce7   :  { %v11302_v3 = vpack.c.bf16 %v11298_v55, %v11298_v55 }
0x2ce9   :  { %18623 = vmatmul.mubr.msk.bf16.vlgmr.msra.gmra.mrb[180].mxu0 %vm846_vm2, %v11302_v3  ;;  %v16103_v3 = vld [vmem:[%s23355_s15 + $0x1c] sm:$0xf] }
0x2cea   :  { %18633 = vmatpush3.bf16.msra.mxu0 %v11451_v40  ;;  %18634 = vmatprep.mubr.msk.bf16.mxu0 %vm19653_vm1, %v19652_v5 }
0x2ceb   :  { %18644 = vmatprep.subr.bf16.mxu0 %v19652_v5 }
0x2cec   :  { %v19560_v38 = vpop.eup %19559 }
0x2ced   :  { %v11300_v31 = vmul.f32 %v19560_v38, %v19552_v4  ;;  %v10366_v4 = vmul.f32 0.03125, %v10364_v21 }
0x2cef   :  { %v11304_v18 = vpack.c.bf16 %v11300_v31, %v11300_v31  ;;  %v10368_v19 = vadd.f32 1e-06, %v10366_v4 }
0x2cf1   :  { %18635 = vmatmul.mubr.msk.bf16.vlgmr.msra.gmra.mrb[184].mxu0 %vm846_vm2, %v11304_v18  ;;  %19561 = vrsqrt.f32 %v10368_v19  ;;  %v22547_v18 = vsel %vm1086_vm3, %v16103_v3, 0 }
0x2cf2   :  { %18646 = vmatprep.mubr.msk.bf16.mxu0 %vm19653_vm1, %v19652_v5  ;;  %18645 = vmatpush3.bf16.msra.mxu0 %v22517_v57 }
0x2cf3   :  { %18656 = vmatprep.subr.bf16.mxu0 %v19652_v5 }
0x2cfb   :  { %v19562_v33 = vpop.eup %19561 }
0x2cfc   :  { %v10372_v50 = vmul.f32 %v19562_v33, %v22477_v9 }
0x2cfe   :  { %v10380_v55 = vmul.f32 %v22244_v25, %v10372_v50 }
0x2d00   :  { %v22543_v40 = vpack.c.bf16 %v10380_v55, %v10380_v55 }
0x2dac   :  { %v11349_v51 = vpop.f32.mrb[164].mxu1 }
0x2dad   :  { %v11493_v30 = vpack.c.bf16 %v11349_v51, %v11349_v51  ;;  %v18618_v10 = vpop.f32.mrb[165].mxu1 }
0x2dae   :  { %v11352_v7 = vpop.f32.mrb[166].mxu1 }
0x2daf   :  { %v18619_v16 = vpop.f32.mrb[167].mxu1  ;;  %18641 = vmatmul.mubr.msk.bf16.vlgmr.msra.gmra.mrb[172].mxu1 %vm846_vm2, %v11493_v30 }
0x2db0   :  { %18651 = vmatpush3.bf16.msra.mxu1 %v22525_v20  ;;  %18652 = vmatprep.mubr.msk.bf16.mxu1 %vm19653_vm1, %v19652_v5 }
0x2db1   :  { %18662 = vmatprep.subr.bf16.mxu1 %v19652_v5 }
0x2db4   :  { %v11441_v11 = vpop.f32.mrb[168].mxu1 }
0x2db5   :  { %v11495_v45 = vpack.c.bf16 %v11441_v11, %v11441_v11  ;;  %v18630_v63 = vpop.f32.mrb[169].mxu1 }
0x2db6   :  { %v11444_v32 = vpop.f32.mrb[170].mxu1 }
0x2db7   :  { %v18631_v60 = vpop.f32.mrb[171].mxu1  ;;  %18653 = vmatmul.mubr.msk.bf16.vlgmr.msra.gmra.mrb[176].mxu1 %vm846_vm2, %v11495_v45 }
0x2db8   :  { %18663 = vmatpush3.bf16.msra.mxu1 %v22216_v46  ;;  %18666 = vmatprep.mubr.msk.bf16.mxu1 %vm19653_vm1, %v19652_v5 }
0x2db9   :  { %18664 = vmatprep.subr.bf16.mxu1 %v19652_v5 }
0x2dbc   :  { %18665 = vmatpush3.bf16.msra.mxu1 %v22230_v36  ;;  %v11395_v38 = vpop.f32.mrb[180].mxu0 }
0x2dbd   :  { %18678 = vmatprep.subr.bf16.mxu1 %v19652_v5  ;;  %v11494_v31 = vpack.c.bf16 %v11395_v38, %v11395_v38  ;;  %v18624_v46 = vpop.f32.mrb[181].mxu0 }
0x2dbe   :  { %v11398_v42 = vpop.f32.mrb[182].mxu0 }
0x2dbf   :  { %18667 = vmatmul.mubr.msk.bf16.vlgmr.msra.gmra.mrb[180].mxu1 %vm132_vm0, %v22543_v40  ;;  %v18625_v25 = vpop.f32.mrb[183].mxu0  ;;  %18647 = vmatmul.mubr.msk.bf16.vlgmr.msra.gmra.mrb[188].mxu0 %vm846_vm2, %v11494_v31 }
0x2dc0   :  { %18679 = vmatpush3.bf16.msra.mxu1 %v22221_v47  ;;  %18657 = vmatpush3.bf16.msra.mxu0 %v22547_v18 }
0x2dc1   :  { %18680 = vmatprep.subr.bf16.mxu1 %v19652_v5  ;;  %18658 = vmatprep.mubr.msk.bf16.mxu0 %vm19653_vm1, %v19652_v5 }
0x2dc2   :  { %18682 = vmatprep.mubr.msk.bf16.mxu1 %vm19653_vm1, %v19652_v5  ;;  %18670 = vmatprep.subr.bf16.mxu0 %v19652_v5 }
0x2dc4   :  { %18681 = vmatpush3.bf16.msra.mxu1 %v22235_v53  ;;  %v11487_v36 = vpop.f32.mrb[184].mxu0 }
0x2dc5   :  { %18694 = vmatprep.subr.bf16.mxu1 %v19652_v5  ;;  %v11496_v54 = vpack.c.bf16 %v11487_v36, %v11487_v36  ;;  %v18636_v21 = vpop.f32.mrb[185].mxu0 }
0x2dc6   :  { %v11490_v47 = vpop.f32.mrb[186].mxu0 }
0x2dc7   :  { %18683 = vmatmul.mubr.msk.bf16.vlgmr.msra.gmra.mrb[184].mxu1 %vm132_vm0, %v22543_v40  ;;  %v18637_v4 = vpop.f32.mrb[187].mxu0  ;;  %18659 = vmatmul.mubr.msk.bf16.vlgmr.msra.gmra.mrb[192].mxu0 %vm846_vm2, %v11496_v54 }
0x2dc8   :  { %18695 = vmatpush3.bf16.msra.mxu1 %v22256_v12  ;;  %18671 = vmatpush3.bf16.msra.mxu0 %v22251_v17 }
0x2dc9   :  { %18696 = vmatprep.subr.bf16.mxu1 %v19652_v5  ;;  %18672 = vmatprep.subr.bf16.mxu0 %v19652_v5 }
0x2dca   :  { %18674 = vmatprep.mubr.msk.bf16.mxu0 %vm19653_vm1, %v19652_v5  ;;  %18698 = vmatprep.mubr.msk.bf16.mxu1 %vm19653_vm1, %v19652_v5 }
0x2dcc   :  { %18697 = vmatpush3.bf16.msra.mxu1 %v22274_v35  ;;  %18673 = vmatpush3.bf16.msra.mxu0 %v22269_v58 }
0x2dcd   :  { %18710 = vmatprep.subr.bf16.mxu1 %v19652_v5  ;;  %18686 = vmatprep.subr.bf16.mxu0 %v19652_v5 }
0x2dcf   :  { %18699 = vmatmul.mubr.msk.bf16.vlgmr.msra.gmra.mrb[188].mxu1 %vm132_vm0, %v22543_v40  ;;  %18675 = vmatmul.mubr.msk.bf16.vlgmr.msra.gmra.mrb[196].mxu0 %vm132_vm0, %v22543_v40 }
0x2dd0   :  { %18711 = vmatpush3.bf16.msra.mxu1 %v22292_v23  ;;  %18687 = vmatpush3.bf16.msra.mxu0 %v22287_v28 }
0x2dd1   :  { %18712 = vmatprep.subr.bf16.mxu1 %v19652_v5  ;;  %18688 = vmatprep.subr.bf16.mxu0 %v19652_v5 }
0x2dd2   :  { %18690 = vmatprep.mubr.msk.bf16.mxu0 %vm19653_vm1, %v19652_v5  ;;  %18714 = vmatprep.mubr.msk.bf16.mxu1 %vm19653_vm1, %v19652_v5 }
0x2dd4   :  { %18713 = vmatpush3.bf16.msra.mxu1 %v22310_v2  ;;  %18689 = vmatpush3.bf16.msra.mxu0 %v22305_v24 }
0x2dd5   :  { %18726 = vmatprep.subr.bf16.mxu1 %v19652_v5  ;;  %18702 = vmatprep.subr.bf16.mxu0 %v19652_v5 }
0x2dd7   :  { %18715 = vmatmul.mubr.msk.bf16.vlgmr.msra.gmra.mrb[192].mxu1 %vm132_vm0, %v22543_v40  ;;  %18691 = vmatmul.mubr.msk.bf16.vlgmr.msra.gmra.mrb[200].mxu0 %vm132_vm0, %v22543_v40 }
0x2dd8   :  { %18727 = vmatpush3.bf16.msra.mxu1 %v22328_v1  ;;  %18703 = vmatpush3.bf16.msra.mxu0 %v22323_v8 }
0x2dd9   :  { %18728 = vmatprep.subr.bf16.mxu1 %v19652_v5  ;;  %18704 = vmatprep.subr.bf16.mxu0 %v19652_v5 }
0x2dda   :  { %18706 = vmatprep.mubr.msk.bf16.mxu0 %vm19653_vm1, %v19652_v5  ;;  %18730 = vmatprep.mubr.msk.bf16.mxu1 %vm19653_vm1, %v19652_v5 }
0x2ddc   :  { %18729 = vmatpush3.bf16.msra.mxu1 %v22346_v29  ;;  %18705 = vmatpush3.bf16.msra.mxu0 %v22341_v49 }
0x2ddd   :  { %18742 = vmatprep.subr.bf16.mxu1 %v19652_v5  ;;  %18718 = vmatprep.subr.bf16.mxu0 %v19652_v5 }
0x2ddf   :  { %18731 = vmatmul.mubr.msk.bf16.vlgmr.msra.gmra.mrb[196].mxu1 %vm132_vm0, %v22543_v40  ;;  %18707 = vmatmul.mubr.msk.bf16.vlgmr.msra.gmra.mrb[204].mxu0 %vm132_vm0, %v22543_v40 }
0x2de0   :  { %18743 = vmatpush3.bf16.msra.mxu1 %v22364_v37  ;;  %18719 = vmatpush3.bf16.msra.mxu0 %v22359_v41 }
0x2de1   :  { %18744 = vmatprep.subr.bf16.mxu1 %v19652_v5  ;;  %18720 = vmatprep.subr.bf16.mxu0 %v19652_v5 }
0x2de2   :  { %18722 = vmatprep.mubr.msk.bf16.mxu0 %vm19653_vm1, %v19652_v5  ;;  %18746 = vmatprep.mubr.msk.bf16.mxu1 %vm19653_vm1, %v19652_v5 }
0x2de4   :  { %18745 = vmatpush3.bf16.msra.mxu1 %v22382_v48  ;;  %18721 = vmatpush3.bf16.msra.mxu0 %v22377_v39 }
0x2de5   :  { %18758 = vmatprep.subr.bf16.mxu1 %v19652_v5  ;;  %18734 = vmatprep.subr.bf16.mxu0 %v19652_v5 }
0x2de7   :  { %18747 = vmatmul.mubr.msk.bf16.vlgmr.msra.gmra.mrb[200].mxu1 %vm132_vm0, %v22543_v40  ;;  %18723 = vmatmul.mubr.msk.bf16.vlgmr.msra.gmra.mrb[208].mxu0 %vm132_vm0, %v22543_v40 }
0x2de8   :  { %18760 = vmatprep.mubr.msk.bf16.mxu1 %vm19653_vm1, %v19652_v5  ;;  %18735 = vmatpush3.bf16.msra.mxu0 %v22395_v22 }
0x2de9   :  { %18738 = vmatprep.mubr.msk.bf16.mxu0 %vm19653_vm1, %v19652_v5  ;;  %18736 = vmatprep.subr.bf16.mxu0 %v19652_v5 }
0x2dec   :  { %18737 = vmatpush3.bf16.msra.mxu0 %v22407_v34 }
0x2ded   :  { %18750 = vmatprep.subr.bf16.mxu0 %v19652_v5 }
0x2def   :  { %18739 = vmatmul.mubr.msk.bf16.vlgmr.msra.gmra.mrb[212].mxu0 %vm132_vm0, %v22543_v40 }
0x2df0   :  { %18751 = vmatpush3.bf16.msra.mxu0 %v22418_v14  ;;  %18754 = vmatprep.mubr.msk.bf16.mxu0 %vm19653_vm1, %v19652_v5 }
0x2df1   :  { %18752 = vmatprep.subr.bf16.mxu0 %v19652_v5 }
0x2df4   :  { %18753 = vmatpush3.bf16.msra.mxu0 %v22427_v43 }
0x2df5   :  { %18764 = vmatprep.subr.bf16.mxu0 %v19652_v5 }
0x2df7   :  { %18755 = vmatmul.mubr.msk.bf16.vlgmr.msra.gmra.mrb[216].mxu0 %vm132_vm0, %v22543_v40 }
0x2df8   :  { %18766 = vmatprep.mubr.msk.bf16.mxu0 %vm19653_vm1, %v19652_v5 }
0x2e82   :  { %v11537_v53 = vpop.f32.mrb[172].mxu1 }
0x2e83   :  { %v18642_v17 = vpop.f32.mrb[173].mxu1 }
0x2e84   :  { %v11540_v12 = vpop.f32.mrb[174].mxu1 }
0x2e85   :  { %v18643_v58 = vpop.f32.mrb[175].mxu1 }
0x2e8a   :  { %v11629_v35 = vpop.f32.mrb[176].mxu1 }
0x2e8b   :  { %v18654_v28 = vpop.f32.mrb[177].mxu1 }
0x2e8c   :  { %v11632_v23 = vpop.f32.mrb[178].mxu1 }
0x2e8d   :  { %v18655_v24 = vpop.f32.mrb[179].mxu1 }
0x2e92   :  { %v11722_v2 = vpop.f32.mrb[180].mxu1  ;;  %v11583_v8 = vpop.f32.mrb[188].mxu0 }
0x2e93   :  { %v18668_v1 = vpop.f32.mrb[181].mxu1  ;;  %v11681_v49 = vadd.f32 %v11583_v8, %v11537_v53  ;;  %v18648_v29 = vpop.f32.mrb[189].mxu0  ;;  %v12168_v38 = vpack.c.bf16 %v11722_v2, %v11722_v2 }
0x2e94   :  { %v11725_v41 = vpop.f32.mrb[182].mxu1  ;;  %v11586_v37 = vpop.f32.mrb[190].mxu0 }
0x2e95   :  { %v18669_v39 = vpop.f32.mrb[183].mxu1  ;;  %v18649_v48 = vpop.f32.mrb[191].mxu0  ;;  %v11682_v22 = vadd.f32 %v11681_v49, %v11629_v35 }
0x2e9a   :  { %v11802_v34 = vpop.f32.mrb[184].mxu1  ;;  %v11675_v14 = vpop.f32.mrb[192].mxu0 }
0x2e9b   :  { %v18684_v43 = vpop.f32.mrb[185].mxu1  ;;  %v22649_v19 = vadd.f32 %v11682_v22, %v11675_v14  ;;  %v18660_v13 = vpop.f32.mrb[193].mxu0  ;;  %v12170_v17 = vpack.c.bf16 %v11802_v34, %v11802_v34 }
0x2e9c   :  { %v11805_v51 = vpop.f32.mrb[186].mxu1  ;;  %v11678_v30 = vpop.f32.mrb[194].mxu0 }
0x2e9d   :  { %v18685_v10 = vpop.f32.mrb[187].mxu1  ;;  %v18661_v7 = vpop.f32.mrb[195].mxu0 }
0x2ea2   :  { %v11882_v16 = vpop.f32.mrb[188].mxu1  ;;  %v11762_v33 = vpop.f32.mrb[196].mxu0 }
0x2ea3   :  { %v12172_v11 = vpack.c.bf16 %v11882_v16, %v11882_v16  ;;  %v18700_v50 = vpop.f32.mrb[189].mxu1  ;;  %v18676_v45 = vpop.f32.mrb[197].mxu0  ;;  %v12169_v48 = vpack.c.bf16 %v11762_v33, %v11762_v33 }
0x2ea4   :  { %v11885_v63 = vpop.f32.mrb[190].mxu1  ;;  %v11765_v60 = vpop.f32.mrb[198].mxu0 }
0x2ea5   :  { %v12180_v32 = vsel %vm846_vm2, %v12172_v11, 0  ;;  %v18701_v55 = vpop.f32.mrb[191].mxu1  ;;  %v18677_v3 = vpop.f32.mrb[199].mxu0 }
0x2ea6   :  { %18759 = vmatpush3.bf16.xpose.msra.mxu1 %v12180_v32 }
0x2ea7   :  { %18770 = vmatprep.subr.bf16.mxu1 %v19652_v5 }
0x2eaa   :  { %v11962_v40 = vpop.f32.mrb[192].mxu1  ;;  %v11842_v31 = vpop.f32.mrb[200].mxu0 }
0x2eab   :  { %v12174_v46 = vpack.c.bf16 %v11962_v40, %v11962_v40  ;;  %v18716_v42 = vpop.f32.mrb[193].mxu1  ;;  %v18692_v25 = vpop.f32.mrb[201].mxu0  ;;  %v12171_v7 = vpack.c.bf16 %v11842_v31, %v11842_v31 }
0x2eac   :  { %v11965_v36 = vpop.f32.mrb[194].mxu1  ;;  %v11845_v21 = vpop.f32.mrb[202].mxu0 }
0x2ead   :  { %v12272_v54 = vsel %vm846_vm2, %v12174_v46, 0  ;;  %v18717_v47 = vpop.f32.mrb[195].mxu1  ;;  %18761 = vmatmul.mubr.msk.bf16.vlgmr.msra.gmra.mrb[204].mxu1 %vm846_vm2, %v12168_v38  ;;  %v18693_v4 = vpop.f32.mrb[203].mxu0 }
0x2eae   :  { %18771 = vmatpush3.bf16.xpose.msra.mxu1 %v12272_v54  ;;  %18772 = vmatprep.mubr.msk.bf16.mxu1 %vm19653_vm1, %v19652_v5 }
0x2eaf   :  { %18782 = vmatprep.subr.bf16.mxu1 %v19652_v5 }
0x2eb2   :  { %v12042_v53 = vpop.f32.mrb[196].mxu1  ;;  %v11922_v12 = vpop.f32.mrb[204].mxu0 }
0x2eb3   :  { %v12408_v58 = vpack.c.bf16 %v12042_v53, %v12042_v53  ;;  %v18732_v35 = vpop.f32.mrb[197].mxu1  ;;  %v12173_v28 = vpack.c.bf16 %v11922_v12, %v11922_v12  ;;  %v18708_v23 = vpop.f32.mrb[205].mxu0 }
0x2eb4   :  { %v12045_v24 = vpop.f32.mrb[198].mxu1  ;;  %v11925_v8 = vpop.f32.mrb[206].mxu0 }
0x2eb5   :  { %v12416_v2 = vsel %vm1086_vm3, %v12408_v58, 0  ;;  %v18733_v1 = vpop.f32.mrb[199].mxu1  ;;  %18773 = vmatmul.mubr.msk.bf16.vlgmr.msra.gmra.mrb[208].mxu1 %vm846_vm2, %v12170_v17  ;;  %v12226_v49 = vsel %vm846_vm2, %v12173_v28, 0  ;;  %v18709_v29 = vpop.f32.mrb[207].mxu0 }
0x2eb6   :  { %18783 = vmatpush3.bf16.msra.mxu1 %v12416_v2  ;;  %18784 = vmatprep.mubr.msk.bf16.mxu1 %vm19653_vm1, %v19652_v5 }
0x2eb7   :  { %18765 = vmatpush3.bf16.xpose.msra.mxu0 %v12226_v49  ;;  %18794 = vmatprep.subr.bf16.mxu1 %v19652_v5 }
0x2eb8   :  { %18776 = vmatprep.subr.bf16.mxu0 %v19652_v5 }
0x2eba   :  { %v22665_v41 = vpop.f32.mrb[200].mxu1  ;;  %v12002_v37 = vpop.f32.mrb[208].mxu0 }
0x2ebb   :  { %v18748_v39 = vpop.f32.mrb[201].mxu1  ;;  %v12175_v22 = vpack.c.bf16 %v12002_v37, %v12002_v37  ;;  %v18724_v34 = vpop.f32.mrb[209].mxu0 }
0x2ebc   :  { %v12125_v14 = vpop.f32.mrb[202].mxu1  ;;  %v12005_v43 = vpop.f32.mrb[210].mxu0 }
0x2ebd   :  { %v18749_v13 = vpop.f32.mrb[203].mxu1  ;;  %v12318_v51 = vsel %vm846_vm2, %v12175_v22, 0  ;;  %v18725_v30 = vpop.f32.mrb[211].mxu0  ;;  %v22690_v14 = vadd.f32 %v22649_v19, %v22206_v56 }
0x2ebe   :  { %18767 = vmatmul.mubr.msk.bf16.vlgmr.msra.gmra.mrb[220].mxu0 %vm846_vm2, %v12169_v48 }
0x2ebf   :  { %18777 = vmatpush3.bf16.xpose.msra.mxu0 %v12318_v51  ;;  %18778 = vmatprep.mubr.msk.bf16.mxu0 %vm19653_vm1, %v19652_v5  ;;  %v12779_v30 = vmul.f32 %v22690_v14, %v22690_v14 }
0x2ec0   :  { %18788 = vmatprep.subr.bf16.mxu0 %v19652_v5 }
0x2ec2   :  { %v12082_v10 = vpop.f32.mrb[212].mxu0 }
0x2ec3   :  { %v12409_v16 = vpack.c.bf16 %v12082_v10, %v12082_v10  ;;  %v18740_v33 = vpop.f32.mrb[213].mxu0 }
0x2ec4   :  { %v12085_v11 = vpop.f32.mrb[214].mxu0  ;;  %v12781_v33 = vsel %vm132_vm0, %v12779_v30, 0.0  ;;  %v22762_v30 = vld [vmem:[%s23356_s16 + $0x68] sm:$0xff]  }
0x2ec5   :  { %v12462_v50 = vsel %vm1086_vm3, %v12409_v16, 0  ;;  %v18741_v45 = vpop.f32.mrb[215].mxu0 }
0x2ec6   :  { %18779 = vmatmul.mubr.msk.bf16.vlgmr.msra.gmra.mrb[224].mxu0 %vm846_vm2, %v12171_v7 }
0x2ec7   :  { %18789 = vmatpush3.bf16.msra.mxu0 %v12462_v50  ;;  %18790 = vmatprep.mubr.msk.bf16.mxu0 %vm19653_vm1, %v19652_v5 }
0x2ec8   :  { %18800 = vmatprep.subr.bf16.mxu0 %v19652_v5 }
0x2eca   :  { %v22677_v63 = vpop.f32.mrb[216].mxu0 }
0x2ecb   :  { %v18756_v32 = vpop.f32.mrb[217].mxu0 }
0x2ecc   :  { %v12165_v60 = vpop.f32.mrb[218].mxu0 }
0x2ecd   :  { %v18757_v55 = vpop.f32.mrb[219].mxu0 }
0x2ece   :  { %v12410_v55 = vpack.c.bf16 %v22665_v41, %v22665_v41 }
0x2f80   :  { %v12216_v3 = vpop.f32.mrb[204].mxu1 }
0x2f81   :  { %v12217_v40 = vadd.f32 %v12216_v3, %v21543_v62  ;;  %v18762_v38 = vpop.f32.mrb[205].mxu1 }
0x2f82   :  { %v12219_v31 = vpop.f32.mrb[206].mxu1  ;;  %v12508_v38 = vsel %vm1086_vm3, %v12410_v55, 0  ;;  %v22831_v55 = vld [vmem:[%s23356_s16 + $0x78] sm:$0xff]  }
0x2f83   :  { %v18763_v46 = vpop.f32.mrb[207].mxu1  ;;  %v12360_v42 = vsel %vm846_vm2, %v12217_v40, -inf }
0x2f84   :  { %12361 = vmax.xlane.f32.xlu0 %v12360_v42 }
0x2f88   :  { %v12308_v25 = vpop.f32.mrb[208].mxu1 }
0x2f89   :  { %v12309_v36 = vadd.f32 %v12308_v25, %v21548_v61  ;;  %v18774_v54 = vpop.f32.mrb[209].mxu1 }
0x2f8a   :  { %v12311_v21 = vpop.f32.mrb[210].mxu1  ;;  %v12411_v54 = vpack.c.bf16 %v22677_v63, %v22677_v63 }
0x2f8b   :  { %v18775_v47 = vpop.f32.mrb[211].mxu1  ;;  %v12366_v4 = vsel %vm846_vm2, %v12309_v36, -inf }
0x2f8c   :  { %12367 = vmax.xlane.f32.xlu0 %v12366_v4  ;;  %v12554_v4 = vsel %vm1086_vm3, %v12411_v54, 0  ;;  %v22928_v54 = vld [vmem:[%s23357_s17 + $0xd8] sm:$0xff]  }
0x2f91   :  { %v12262_v53 = vpop.f32.mrb[220].mxu0 }
0x2f92   :  { %v12263_v17 = vadd.f32 %v12262_v53, %v21517_v26  ;;  %v18768_v12 = vpop.f32.mrb[221].mxu0 }
0x2f93   :  { %v12265_v62 = vpop.f32.mrb[222].mxu0 }
0x2f94   :  { %v18769_v58 = vpop.f32.mrb[223].mxu0  ;;  %v12363_v35 = vsel %vm846_vm2, %v12263_v17, -inf }
0x2f95   :  { %12364 = vmax.xlane.f32.xlu1 %v12363_v35 }
0x2f99   :  { %v12354_v28 = vpop.f32.mrb[224].mxu0 }
0x2f9a   :  { %v12355_v23 = vadd.f32 %v12354_v28, %v21529_v27  ;;  %v18780_v24 = vpop.f32.mrb[225].mxu0 }
0x2f9b   :  { %v12357_v61 = vpop.f32.mrb[226].mxu0 }
0x2f9c   :  { %v18781_v2 = vpop.f32.mrb[227].mxu0  ;;  %v12369_v8 = vsel %vm846_vm2, %v12355_v23, -inf }
0x2f9d   :  { %12370 = vmax.xlane.f32.xlu1 %v12369_v8  ;;  %v22730_v2 = vld [vmem:[%s23356_s16 + $0x40] sm:$0xff]  }
0x3011   :  { %v12362_v1 = vpop.xlane.xlu0 %12361 }
0x3012   :  { %v12372_v49 = vsub.f32 %v12217_v40, %v12362_v1 }
0x3014   :  { %v12376_v29 = vmul.f32 1.442695, %v12372_v49 }
0x3016   :  { %19563 = vpow2.f32 %v12376_v29 }
0x3019   :  { %v12368_v26 = vpop.xlane.xlu0 %12367 }
0x301a   :  { %v12374_v37 = vsub.f32 %v12309_v36, %v12368_v26 }
0x301c   :  { %v12380_v39 = vmul.f32 1.442695, %v12374_v37  ;;  %v22743_v37 = vld [vmem:[%s23356_s16 + $0x48] sm:$0xff]  }
0x301e   :  { %19565 = vpow2.f32 %v12380_v39 }
0x3020   :  { %v19564_v48 = vpop.eup %19563 }
0x3021   :  { %v12384_v22 = vsel %vm846_vm2, %v19564_v48, 0.0 }
0x3022   :  { %v12365_v34 = vpop.xlane.xlu1 %12364  ;;  %12385 = vadd.xlane.f32.xlu0 %v12384_v22 }
0x3023   :  { %v12373_v27 = vsub.f32 %v12263_v17, %v12365_v34 }
0x3025   :  { %v12378_v43 = vmul.f32 1.442695, %v12373_v27 }
0x3027   :  { %19567 = vpow2.f32 %v12378_v43 }
0x3028   :  { %v19566_v13 = vpop.eup %19565 }
0x3029   :  { %v12390_v51 = vsel %vm846_vm2, %v19566_v13, 0.0 }
0x302a   :  { %v12371_v10 = vpop.xlane.xlu1 %12370  ;;  %12391 = vadd.xlane.f32.xlu0 %v12390_v51 }
0x302b   :  { %v12375_v7 = vsub.f32 %v12355_v23, %v12371_v10  ;;  %v22775_v10 = vld [vmem:[%s23357_s17 + $0x80] sm:$0xff]  }
0x302d   :  { %v12382_v16 = vmul.f32 1.442695, %v12375_v7 }
0x302e   :  { %12782 = vadd.xlane.f32.xlu0 %v12781_v33 }
0x302f   :  { %19569 = vpow2.f32 %v12382_v16 }
0x3031   :  { %v19568_v11 = vpop.eup %19567 }
0x3032   :  { %v12387_v56 = vsel %vm846_vm2, %v19568_v11, 0.0 }
0x3033   :  { %12388 = vadd.xlane.f32.xlu1 %v12387_v56 }
0x3039   :  { %v19570_v19 = vpop.eup %19569 }
0x303a   :  { %v12393_v50 = vsel %vm846_vm2, %v19570_v19, 0.0 }
0x303b   :  { %12394 = vadd.xlane.f32.xlu1 %v12393_v50  ;;  %v22796_v50 = vld [vmem:[%s23356_s16 + $0x58] sm:$0xff]  }
0x30af   :  { %v12386_v45 = vpop.xlane.xlu0 %12385 }
0x30b0   :  { %19571 = vrcp.f32 %v12386_v45  ;;  %v22807_v45 = vld [vmem:[%s23357_s17 + $0xa0] sm:$0xff]  }
0x30b7   :  { %v12392_v32 = vpop.xlane.xlu0 %12391 }
0x30b8   :  { %19573 = vrcp.f32 %v12392_v32  ;;  %v22814_v32 = vld [vmem:[%s23356_s16 + $0x70] sm:$0xff]  }
0x30ba   :  { %v19572_v60 = vpop.eup %19571 }
0x30bb   :  { %v12400_v3 = vmul.f32 %v19572_v60, %v19564_v48  ;;  %v12783_v63 = vpop.xlane.xlu0 %12782  ;;  %v22753_v48 = vld [vmem:[%s23356_s16 + $0x60] sm:$0xff]   ;;  %v22824_v60 = vld [vmem:[%s23357_s17 + $0xa8] sm:$0xff]  }
0x30bc   :  { %v12787_v12 = vmul.f32 0.03125, %v12783_v63 }
0x30bd   :  { %v12404_v40 = vpack.c.bf16 %v12400_v3, %v12400_v3  ;;  %v22842_v3 = vld [vmem:[%s23357_s17 + $0xc0] sm:$0xff]  }
0x30be   :  { %v12789_v62 = vadd.f32 1e-06, %v12787_v12 }
0x30bf   :  { %18785 = vmatmul.mubr.msk.bf16.vlgmr.msra.gmra.mrb[212].mxu1 %vm846_vm2, %v12404_v40  ;;  %v22849_v40 = vld [vmem:[%s23357_s17 + $0x90] sm:$0xff]  }
0x30c0   :  { %18795 = vmatpush3.bf16.msra.mxu1 %v12508_v38  ;;  %v12389_v31 = vpop.xlane.xlu1 %12388  ;;  %18796 = vmatprep.mubr.msk.bf16.mxu1 %vm19653_vm1, %v19652_v5  ;;  %v22859_v38 = vld [vmem:[%s23357_s17 + $0xc8] sm:$0xff]  }
0x30c1   :  { %19575 = vrcp.f32 %v12389_v31  ;;  %18806 = vmatprep.subr.bf16.mxu1 %v19652_v5  ;;  %v22866_v31 = vld [vmem:[%s23357_s17 + $0x98] sm:$0xff]  }
0x30c2   :  { %v19574_v46 = vpop.eup %19573 }
0x30c3   :  { %v12402_v42 = vmul.f32 %v19574_v46, %v19566_v13  ;;  %v22877_v46 = vld [vmem:[%s23357_s17 + $0xe0] sm:$0xff]  }
0x30c5   :  { %v12406_v25 = vpack.c.bf16 %v12402_v42, %v12402_v42  ;;  %v22884_v42 = vld [vmem:[%s23357_s17 + $0xb0] sm:$0xff]  }
0x30c7   :  { %18797 = vmatmul.mubr.msk.bf16.vlgmr.msra.gmra.mrb[216].mxu1 %vm846_vm2, %v12406_v25  ;;  %v22895_v25 = vld [vmem:[%s23357_s17 + $0xe8] sm:$0xff]  }
0x30c8   :  { %v12395_v41 = vpop.xlane.xlu1 %12394  ;;  %18807 = vmatpush3.bf16.msra.mxu1 %v22509_v6  ;;  %18808 = vmatprep.mubr.msk.bf16.mxu1 %vm19653_vm1, %v19652_v5 }
0x30c9   :  { %19577 = vrcp.f32 %v12395_v41  ;;  %18818 = vmatprep.subr.bf16.mxu1 %v19652_v5  ;;  %v22902_v41 = vld [vmem:[%s23357_s17 + $0xb8] sm:$0xff]  }
0x30ca   :  { %19579 = vrsqrt.f32 %v12789_v62 }
0x30cb   :  { %v19576_v36 = vpop.eup %19575 }
0x30cc   :  { %v12401_v21 = vmul.f32 %v19576_v36, %v19568_v11  ;;  %v22914_v36 = vld [vmem:[%s23357_s17 + $0xd0] sm:$0xff]  }
0x30ce   :  { %v12405_v47 = vpack.c.bf16 %v12401_v21, %v12401_v21  ;;  %v22937_v21 = vld [vmem:[%s23357_s17 + $0xf0] sm:$0xff]  }
0x30d0   :  { %18791 = vmatmul.mubr.msk.bf16.vlgmr.msra.gmra.mrb[228].mxu0 %vm846_vm2, %v12405_v47  ;;  %v22946_v47 = vld [vmem:[%s23357_s17 + $0xf8] sm:$0xff]  }
0x30d1   :  { %18801 = vmatpush3.bf16.msra.mxu0 %v12554_v4  ;;  %18802 = vmatprep.mubr.msk.bf16.mxu0 %vm19653_vm1, %v19652_v5 }
0x30d2   :  { %18812 = vmatprep.subr.bf16.mxu0 %v19652_v5 }
0x30d3   :  { %v19578_v6 = vpop.eup %19577 }
0x30d4   :  { %v12403_v53 = vmul.f32 %v19578_v6, %v19570_v19  ;;  %v22789_v19 = vld [vmem:[%s23357_s17 + $0x88] sm:$0xff]  }
0x30d6   :  { %v12407_v17 = vpack.c.bf16 %v12403_v53, %v12403_v53 }
0x30d8   :  { %18803 = vmatmul.mubr.msk.bf16.vlgmr.msra.gmra.mrb[232].mxu0 %vm846_vm2, %v12407_v17 }
0x30d9   :  { %18813 = vmatpush3.bf16.msra.mxu0 %v22517_v57  ;;  %18814 = vmatprep.mubr.msk.bf16.mxu0 %vm19653_vm1, %v19652_v5  ;;  %v19580_v57 = vpop.eup %19579 }
0x30da   :  { %18824 = vmatprep.subr.bf16.mxu0 %v19652_v5  ;;  %v12793_v8 = vmul.f32 %v19580_v57, %v22690_v14 }
0x3192   :  { %v12452_v58 = vpop.f32.mrb[212].mxu1 }
0x3193   :  { %v12596_v35 = vpack.c.bf16 %v12452_v58, %v12452_v58  ;;  %v18786_v28 = vpop.f32.mrb[213].mxu1 }
0x3194   :  { %v12455_v23 = vpop.f32.mrb[214].mxu1 }
0x3195   :  { %v18787_v24 = vpop.f32.mrb[215].mxu1  ;;  %18809 = vmatmul.mubr.msk.bf16.vlgmr.msra.gmra.mrb[220].mxu1 %vm846_vm2, %v12596_v35 }
0x3196   :  { %18819 = vmatpush3.bf16.msra.mxu1 %v22525_v20  ;;  %18820 = vmatprep.mubr.msk.bf16.mxu1 %vm19653_vm1, %v19652_v5  ;;  %v22736_v20 = vld [vmem:[%s23353_s13 + $0x4] ss:$0 sm:$0xff] }
0x3197   :  { %18830 = vmatprep.subr.bf16.mxu1 %v19652_v5  ;;  %v12801_v39 = vmul.f32 %v22736_v20, %v12793_v8 }
0x3199   :  { %v12803_v22 = vpack.c.bf16 %v12801_v39, %v12801_v39 }
0x319a   :  { %v12544_v61 = vpop.f32.mrb[216].mxu1 }
0x319b   :  { %v12598_v1 = vpack.c.bf16 %v12544_v61, %v12544_v61  ;;  %v18798_v49 = vpop.f32.mrb[217].mxu1 }
0x319c   :  { %v12547_v29 = vpop.f32.mrb[218].mxu1 }
0x319d   :  { %v18799_v26 = vpop.f32.mrb[219].mxu1  ;;  %18821 = vmatmul.mubr.msk.bf16.vlgmr.msra.gmra.mrb[224].mxu1 %vm846_vm2, %v12598_v1 }
0x319e   :  { %18831 = vmatpush3.bf16.msra.mxu1 %v22730_v2  ;;  %18834 = vmatprep.mubr.msk.bf16.mxu1 %vm19653_vm1, %v19652_v5 }
0x319f   :  { %18832 = vmatprep.subr.bf16.mxu1 %v19652_v5 }
0x31a2   :  { %18833 = vmatpush3.bf16.msra.mxu1 %v22743_v37 }
0x31a3   :  { %v12498_v34 = vpop.f32.mrb[228].mxu0  ;;  %18846 = vmatprep.subr.bf16.mxu1 %v19652_v5 }
0x31a4   :  { %v12597_v27 = vpack.c.bf16 %v12498_v34, %v12498_v34  ;;  %v18792_v43 = vpop.f32.mrb[229].mxu0 }
0x31a5   :  { %v12501_v13 = vpop.f32.mrb[230].mxu0  ;;  %18835 = vmatmul.mubr.msk.bf16.vlgmr.msra.gmra.mrb[228].mxu1 %vm132_vm0, %v12803_v22 }
0x31a6   :  { %v18793_v51 = vpop.f32.mrb[231].mxu0  ;;  %18815 = vmatmul.mubr.msk.bf16.vlgmr.msra.gmra.mrb[236].mxu0 %vm846_vm2, %v12597_v27  ;;  %18847 = vmatpush3.bf16.msra.mxu1 %v22753_v48 }
0x31a7   :  { %18825 = vmatpush3.bf16.msra.mxu0 %v22547_v18  ;;  %18848 = vmatprep.subr.bf16.mxu1 %v19652_v5  ;;  %v22781_v18 = vld [vmem:[%s23356_s16 + $0x50] sm:$0xff]  }
0x31a8   :  { %18826 = vmatprep.mubr.msk.bf16.mxu0 %vm19653_vm1, %v19652_v5  ;;  %18850 = vmatprep.mubr.msk.bf16.mxu1 %vm19653_vm1, %v19652_v5 }
0x31a9   :  { %18838 = vmatprep.subr.bf16.mxu0 %v19652_v5 }
0x31aa   :  { %18849 = vmatpush3.bf16.msra.mxu1 %v22762_v30 }
0x31ab   :  { %v12590_v7 = vpop.f32.mrb[232].mxu0  ;;  %18862 = vmatprep.subr.bf16.mxu1 %v19652_v5 }
0x31ac   :  { %v12599_v16 = vpack.c.bf16 %v12590_v7, %v12590_v7  ;;  %v18804_v33 = vpop.f32.mrb[233].mxu0 }
0x31ad   :  { %v12593_v11 = vpop.f32.mrb[234].mxu0  ;;  %18851 = vmatmul.mubr.msk.bf16.vlgmr.msra.gmra.mrb[232].mxu1 %vm132_vm0, %v12803_v22 }
0x31ae   :  { %v18805_v56 = vpop.f32.mrb[235].mxu0  ;;  %18827 = vmatmul.mubr.msk.bf16.vlgmr.msra.gmra.mrb[240].mxu0 %vm846_vm2, %v12599_v16  ;;  %18863 = vmatpush3.bf16.msra.mxu1 %v22775_v10 }
0x31af   :  { %18839 = vmatpush3.bf16.msra.mxu0 %v22781_v18  ;;  %18864 = vmatprep.subr.bf16.mxu1 %v19652_v5 }
0x31b0   :  { %18840 = vmatprep.subr.bf16.mxu0 %v19652_v5  ;;  %18842 = vmatprep.mubr.msk.bf16.mxu0 %vm19653_vm1, %v19652_v5 }
0x31b1   :  { %18866 = vmatprep.mubr.msk.bf16.mxu1 %vm19653_vm1, %v19652_v5 }
0x31b2   :  { %18865 = vmatpush3.bf16.msra.mxu1 %v22789_v19 }
0x31b3   :  { %18841 = vmatpush3.bf16.msra.mxu0 %v22796_v50  ;;  %18878 = vmatprep.subr.bf16.mxu1 %v19652_v5 }
0x31b4   :  { %18854 = vmatprep.subr.bf16.mxu0 %v19652_v5 }
0x31b5   :  { %18867 = vmatmul.mubr.msk.bf16.vlgmr.msra.gmra.mrb[236].mxu1 %vm132_vm0, %v21665_v15 }
0x31b6   :  { %18843 = vmatmul.mubr.msk.bf16.vlgmr.msra.gmra.mrb[244].mxu0 %vm132_vm0, %v12803_v22  ;;  %18879 = vmatpush3.bf16.msra.mxu1 %v22807_v45 }
0x31b7   :  { %18855 = vmatpush3.bf16.msra.mxu0 %v22814_v32  ;;  %18880 = vmatprep.subr.bf16.mxu1 %v19652_v5 }
0x31b8   :  { %18856 = vmatprep.subr.bf16.mxu0 %v19652_v5  ;;  %18858 = vmatprep.mubr.msk.bf16.mxu0 %vm19653_vm1, %v19652_v5 }
0x31b9   :  { %18882 = vmatprep.mubr.msk.bf16.mxu1 %vm19653_vm1, %v19652_v5 }
0x31ba   :  { %18881 = vmatpush3.bf16.msra.mxu1 %v22824_v60 }
0x31bb   :  { %18857 = vmatpush3.bf16.msra.mxu0 %v22831_v55  ;;  %18894 = vmatprep.subr.bf16.mxu1 %v19652_v5 }
0x31bc   :  { %18870 = vmatprep.subr.bf16.mxu0 %v19652_v5 }
0x31bd   :  { %18883 = vmatmul.mubr.msk.bf16.vlgmr.msra.gmra.mrb[240].mxu1 %vm132_vm0, %v21665_v15 }
0x31be   :  { %18859 = vmatmul.mubr.msk.bf16.vlgmr.msra.gmra.mrb[248].mxu0 %vm132_vm0, %v12803_v22  ;;  %18895 = vmatpush3.bf16.msra.mxu1 %v22842_v3 }
0x31bf   :  { %18871 = vmatpush3.bf16.msra.mxu0 %v22849_v40  ;;  %18896 = vmatprep.subr.bf16.mxu1 %v19652_v5 }
0x31c0   :  { %18872 = vmatprep.subr.bf16.mxu0 %v19652_v5  ;;  %18874 = vmatprep.mubr.msk.bf16.mxu0 %vm19653_vm1, %v19652_v5 }
0x31c1   :  { %18898 = vmatprep.mubr.msk.bf16.mxu1 %vm19653_vm1, %v19652_v5 }
0x31c2   :  { %18897 = vmatpush3.bf16.msra.mxu1 %v22859_v38 }
0x31c3   :  { %18873 = vmatpush3.bf16.msra.mxu0 %v22866_v31  ;;  %18910 = vmatprep.subr.bf16.mxu1 %v19652_v5 }
0x31c4   :  { %18886 = vmatprep.subr.bf16.mxu0 %v19652_v5 }
0x31c5   :  { %18899 = vmatmul.mubr.msk.bf16.vlgmr.msra.gmra.mrb[244].mxu1 %vm132_vm0, %v21665_v15 }
0x31c6   :  { %18875 = vmatmul.mubr.msk.bf16.vlgmr.msra.gmra.mrb[252].mxu0 %vm132_vm0, %v21665_v15  ;;  %18911 = vmatpush3.bf16.msra.mxu1 %v22877_v46 }
0x31c7   :  { %18887 = vmatpush3.bf16.msra.mxu0 %v22884_v42  ;;  %18912 = vmatprep.subr.bf16.mxu1 %v19652_v5 }
0x31c8   :  { %18888 = vmatprep.subr.bf16.mxu0 %v19652_v5  ;;  %18890 = vmatprep.mubr.msk.bf16.mxu0 %vm19653_vm1, %v19652_v5 }
0x31c9   :  { %18914 = vmatprep.mubr.msk.bf16.mxu1 %vm19653_vm1, %v19652_v5 }
0x31ca   :  { %18913 = vmatpush3.bf16.msra.mxu1 %v22895_v25 }
0x31cb   :  { %18889 = vmatpush3.bf16.msra.mxu0 %v22902_v41  ;;  %18926 = vmatprep.subr.bf16.mxu1 %v19652_v5 }
0x31cc   :  { %18902 = vmatprep.subr.bf16.mxu0 %v19652_v5 }
0x31cd   :  { %18915 = vmatmul.mubr.msk.bf16.vlgmr.msra.gmra.mrb[248].mxu1 %vm132_vm0, %v21665_v15 }
0x31ce   :  { %18891 = vmatmul.mubr.msk.bf16.vlgmr.msra.gmra.mrb[0].mxu0 %vm132_vm0, %v21665_v15  ;;  %18928 = vmatprep.mubr.msk.bf16.mxu1 %vm19653_vm1, %v19652_v5 }
0x31cf   :  { %18903 = vmatpush3.bf16.msra.mxu0 %v22914_v36  ;;  %18906 = vmatprep.mubr.msk.bf16.mxu0 %vm19653_vm1, %v19652_v5 }
0x31d0   :  { %18904 = vmatprep.subr.bf16.mxu0 %v19652_v5 }
0x31d3   :  { %18905 = vmatpush3.bf16.msra.mxu0 %v22928_v54 }
0x31d4   :  { %18918 = vmatprep.subr.bf16.mxu0 %v19652_v5 }
0x31d6   :  { %18907 = vmatmul.mubr.msk.bf16.vlgmr.msra.gmra.mrb[4].mxu0 %vm132_vm0, %v21665_v15 }
0x31d7   :  { %18919 = vmatpush3.bf16.msra.mxu0 %v22937_v21  ;;  %18922 = vmatprep.mubr.msk.bf16.mxu0 %vm19653_vm1, %v19652_v5 }
0x31d8   :  { %18920 = vmatprep.subr.bf16.mxu0 %v19652_v5 }
0x31db   :  { %18921 = vmatpush3.bf16.msra.mxu0 %v22946_v47 }
0x31dc   :  { %18932 = vmatprep.subr.bf16.mxu0 %v19652_v5 }
0x31de   :  { %18923 = vmatmul.mubr.msk.bf16.vlgmr.msra.gmra.mrb[8].mxu0 %vm132_vm0, %v21665_v15 }
0x31df   :  { %18934 = vmatprep.mubr.msk.bf16.mxu0 %vm19653_vm1, %v19652_v5 }
0x3268   :  { %v12637_v4 = vpop.f32.mrb[220].mxu1 }
0x3269   :  { %v18810_v6 = vpop.f32.mrb[221].mxu1 }
0x326a   :  { %v12640_v53 = vpop.f32.mrb[222].mxu1 }
0x326b   :  { %v18811_v17 = vpop.f32.mrb[223].mxu1 }
0x3270   :  { %v12723_v63 = vpop.f32.mrb[224].mxu1 }
0x3271   :  { %v18822_v12 = vpop.f32.mrb[225].mxu1 }
0x3272   :  { %v12726_v62 = vpop.f32.mrb[226].mxu1 }
0x3273   :  { %v18823_v58 = vpop.f32.mrb[227].mxu1 }
0x3278   :  { %v12909_v35 = vpop.f32.mrb[228].mxu1 }
0x3279   :  { %v12680_v28 = vpop.f32.mrb[236].mxu0  ;;  %v18836_v23 = vpop.f32.mrb[229].mxu1  ;;  %v13487_v62 = vpack.c.bf16 %v12909_v35, %v12909_v35 }
0x327a   :  { %v12772_v24 = vadd.f32 %v12680_v28, %v12637_v4  ;;  %v18816_v57 = vpop.f32.mrb[237].mxu0  ;;  %v12912_v61 = vpop.f32.mrb[230].mxu1 }
0x327b   :  { %v12683_v8 = vpop.f32.mrb[238].mxu0  ;;  %v18837_v1 = vpop.f32.mrb[231].mxu1 }
0x327c   :  { %v18817_v15 = vpop.f32.mrb[239].mxu0  ;;  %v12773_v49 = vadd.f32 %v12772_v24, %v12723_v63 }
0x3280   :  { %v13013_v29 = vpop.f32.mrb[232].mxu1 }
0x3281   :  { %v12766_v26 = vpop.f32.mrb[240].mxu0  ;;  %v18852_v39 = vpop.f32.mrb[233].mxu1  ;;  %v13489_v35 = vpack.c.bf16 %v13013_v29, %v13013_v29 }
0x3282   :  { %v22957_v22 = vadd.f32 %v12773_v49, %v12766_v26  ;;  %v18828_v34 = vpop.f32.mrb[241].mxu0  ;;  %v13016_v27 = vpop.f32.mrb[234].mxu1 }
0x3283   :  { %v12769_v43 = vpop.f32.mrb[242].mxu0  ;;  %v18853_v13 = vpop.f32.mrb[235].mxu1 }
0x3284   :  { %v18829_v51 = vpop.f32.mrb[243].mxu0 }
0x3288   :  { %v13117_v7 = vpop.f32.mrb[236].mxu1 }
0x3289   :  { %v12961_v16 = vpop.f32.mrb[244].mxu0  ;;  %v13491_v33 = vpack.c.bf16 %v13117_v7, %v13117_v7  ;;  %v18868_v11 = vpop.f32.mrb[237].mxu1 }
0x328a   :  { %v18844_v56 = vpop.f32.mrb[245].mxu0  ;;  %v13120_v4 = vpop.f32.mrb[238].mxu1 }
0x328b   :  { %v13499_v6 = vsel %vm846_vm2, %v13491_v33, 0  ;;  %v12964_v53 = vpop.f32.mrb[246].mxu0  ;;  %v18869_v17 = vpop.f32.mrb[239].mxu1 }
0x328c   :  { %v18845_v63 = vpop.f32.mrb[247].mxu0  ;;  %18927 = vmatpush3.bf16.xpose.msra.mxu1 %v13499_v6  ;;  %v13488_v53 = vpack.c.bf16 %v12961_v16, %v12961_v16 }
0x328d   :  { %18938 = vmatprep.subr.bf16.mxu1 %v19652_v5 }
0x3290   :  { %v13221_v12 = vpop.f32.mrb[240].mxu1 }
0x3291   :  { %v13065_v58 = vpop.f32.mrb[248].mxu0  ;;  %v13493_v28 = vpack.c.bf16 %v13221_v12, %v13221_v12  ;;  %v18884_v23 = vpop.f32.mrb[241].mxu1 }
0x3292   :  { %v18860_v24 = vpop.f32.mrb[249].mxu0  ;;  %v13224_v57 = vpop.f32.mrb[242].mxu1 }
0x3293   :  { %v13591_v61 = vsel %vm846_vm2, %v13493_v28, 0  ;;  %v13068_v8 = vpop.f32.mrb[250].mxu0  ;;  %v18885_v1 = vpop.f32.mrb[243].mxu1  ;;  %18929 = vmatmul.mubr.msk.bf16.vlgmr.msra.gmra.mrb[252].mxu1 %vm846_vm2, %v13487_v62 }
0x3294   :  { %v18861_v15 = vpop.f32.mrb[251].mxu0  ;;  %18939 = vmatpush3.bf16.xpose.msra.mxu1 %v13591_v61  ;;  %18940 = vmatprep.mubr.msk.bf16.mxu1 %vm19653_vm1, %v19652_v5  ;;  %v13490_v61 = vpack.c.bf16 %v13065_v58, %v13065_v58 }
0x3295   :  { %18950 = vmatprep.subr.bf16.mxu1 %v19652_v5 }
0x3298   :  { %v13325_v49 = vpop.f32.mrb[244].mxu1 }
0x3299   :  { %v13169_v26 = vpop.f32.mrb[252].mxu0  ;;  %v13727_v39 = vpack.c.bf16 %v13325_v49, %v13325_v49  ;;  %v18900_v34 = vpop.f32.mrb[245].mxu1 }
0x329a   :  { %v13492_v27 = vpack.c.bf16 %v13169_v26, %v13169_v26  ;;  %v18876_v43 = vpop.f32.mrb[253].mxu0  ;;  %v13328_v13 = vpop.f32.mrb[246].mxu1 }
0x329b   :  { %v13735_v51 = vsel %vm1086_vm3, %v13727_v39, 0  ;;  %v13172_v7 = vpop.f32.mrb[254].mxu0  ;;  %v18901_v33 = vpop.f32.mrb[247].mxu1  ;;  %18941 = vmatmul.mubr.msk.bf16.vlgmr.msra.gmra.mrb[0].mxu1 %vm846_vm2, %v13489_v35 }
0x329c   :  { %v13545_v11 = vsel %vm846_vm2, %v13492_v27, 0  ;;  %v18877_v56 = vpop.f32.mrb[255].mxu0  ;;  %18951 = vmatpush3.bf16.msra.mxu1 %v13735_v51  ;;  %18952 = vmatprep.mubr.msk.bf16.mxu1 %vm19653_vm1, %v19652_v5 }
0x329d   :  { %18933 = vmatpush3.bf16.xpose.msra.mxu0 %v13545_v11  ;;  %18962 = vmatprep.subr.bf16.mxu1 %v19652_v5 }
0x329e   :  { %18944 = vmatprep.subr.bf16.mxu0 %v19652_v5 }
0x32a0   :  { %v22973_v29 = vpop.f32.mrb[248].mxu1 }
0x32a1   :  { %v13273_v4 = vpop.f32.mrb[0].mxu0  ;;  %v18916_v6 = vpop.f32.mrb[249].mxu1 }
0x32a2   :  { %v13494_v17 = vpack.c.bf16 %v13273_v4, %v13273_v4  ;;  %v18892_v63 = vpop.f32.mrb[1].mxu0  ;;  %v13432_v12 = vpop.f32.mrb[250].mxu1 }
0x32a3   :  { %v13276_v62 = vpop.f32.mrb[2].mxu0  ;;  %v18917_v28 = vpop.f32.mrb[251].mxu1 }
0x32a4   :  { %v13637_v23 = vsel %vm846_vm2, %v13494_v17, 0  ;;  %v18893_v24 = vpop.f32.mrb[3].mxu0  ;;  %18935 = vmatmul.mubr.msk.bf16.vlgmr.msra.gmra.mrb[12].mxu0 %vm846_vm2, %v13488_v53 }
0x32a5   :  { %18945 = vmatpush3.bf16.xpose.msra.mxu0 %v13637_v23  ;;  %18946 = vmatprep.mubr.msk.bf16.mxu0 %vm19653_vm1, %v19652_v5 }
0x32a6   :  { %18956 = vmatprep.subr.bf16.mxu0 %v19652_v5 }
0x32a9   :  { %v13377_v57 = vpop.f32.mrb[4].mxu0 }
0x32aa   :  { %v13728_v8 = vpack.c.bf16 %v13377_v57, %v13377_v57  ;;  %v18908_v16 = vpop.f32.mrb[5].mxu0 }
0x32ab   :  { %v13380_v1 = vpop.f32.mrb[6].mxu0 }
0x32ac   :  { %v13781_v15 = vsel %vm1086_vm3, %v13728_v8, 0  ;;  %v18909_v49 = vpop.f32.mrb[7].mxu0  ;;  %18947 = vmatmul.mubr.msk.bf16.vlgmr.msra.gmra.mrb[16].mxu0 %vm846_vm2, %v13490_v61 }
0x32ad   :  { %18957 = vmatpush3.bf16.msra.mxu0 %v13781_v15  ;;  %18958 = vmatprep.mubr.msk.bf16.mxu0 %vm19653_vm1, %v19652_v5 }
0x32ae   :  { %18968 = vmatprep.subr.bf16.mxu0 %v19652_v5 }
0x32b1   :  { %v22985_v35 = vpop.f32.mrb[8].mxu0 }
0x32b2   :  { %v18924_v26 = vpop.f32.mrb[9].mxu0 }
0x32b3   :  { %v13484_v39 = vpop.f32.mrb[10].mxu0 }
0x32b4   :  { %v18925_v34 = vpop.f32.mrb[11].mxu0 }
0x3366   :  { %v13535_v58 = vpop.f32.mrb[252].mxu1 }
0x3367   :  { %v13536_v27 = vadd.f32 %v13535_v58, %v20033_v0  ;;  %v18930_v43 = vpop.f32.mrb[253].mxu1 }
0x3368   :  { %v13538_v13 = vpop.f32.mrb[254].mxu1 }
0x3369   :  { %v18931_v51 = vpop.f32.mrb[255].mxu1  ;;  %v13679_v7 = vsel %vm846_vm2, %v13536_v27, -inf }
0x336a   :  { %13680 = vmax.xlane.f32.xlu1 %v13679_v7  ;;  %v22998_v7 = vadd.f32 %v22957_v22, %v22477_v9 }
0x336e   :  { %v13627_v33 = vpop.f32.mrb[0].mxu1 }
0x336f   :  { %v13628_v11 = vadd.f32 %v13627_v33, %v20033_v0  ;;  %v18942_v56 = vpop.f32.mrb[1].mxu1 }
0x3370   :  { %v13630_v4 = vpop.f32.mrb[2].mxu1 }
0x3371   :  { %v18943_v6 = vpop.f32.mrb[3].mxu1  ;;  %v13685_v53 = vsel %vm846_vm2, %v13628_v11, -inf }
0x3372   :  { %13686 = vmax.xlane.f32.xlu1 %v13685_v53 }
0x3377   :  { %v13581_v17 = vpop.f32.mrb[12].mxu0 }
0x3378   :  { %v13582_v63 = vadd.f32 %v13581_v17, %v20033_v0  ;;  %v18936_v12 = vpop.f32.mrb[13].mxu0 }
0x3379   :  { %v13584_v62 = vpop.f32.mrb[14].mxu0 }
0x337a   :  { %v18937_v28 = vpop.f32.mrb[15].mxu0  ;;  %v13682_v23 = vsel %vm846_vm2, %v13582_v63, -inf }
0x337b   :  { %13683 = vmax.xlane.f32.xlu0 %v13682_v23 }
0x337f   :  { %v13673_v24 = vpop.f32.mrb[16].mxu0 }
0x3380   :  { %v13674_v57 = vadd.f32 %v13673_v24, %v20033_v0  ;;  %v18948_v61 = vpop.f32.mrb[17].mxu0  ;;  %v13729_v24 = vpack.c.bf16 %v22973_v29, %v22973_v29 }
0x3381   :  { %v13676_v8 = vpop.f32.mrb[18].mxu0 }
0x3382   :  { %v18949_v16 = vpop.f32.mrb[19].mxu0  ;;  %v13688_v1 = vsel %vm846_vm2, %v13674_v57, -inf  ;;  %v13827_v8 = vsel %vm1086_vm3, %v13729_v24, 0 }
0x3383   :  { %13689 = vmax.xlane.f32.xlu0 %v13688_v1 }
0x33f7   :  { %v13681_v15 = vpop.xlane.xlu1 %13680 }
0x33f8   :  { %v13691_v49 = vsub.f32 %v13536_v27, %v13681_v15 }
0x33fa   :  { %v13695_v26 = vmul.f32 1.442695, %v13691_v49 }
0x33fc   :  { %19581 = vpow2.f32 %v13695_v26 }
0x33ff   :  { %v13687_v39 = vpop.xlane.xlu1 %13686 }
0x3400   :  { %v13693_v34 = vsub.f32 %v13628_v11, %v13687_v39  ;;  %v12780_v11 = vmul.f32 %v22998_v7, %v22998_v7  ;;  %v13730_v39 = vpack.c.bf16 %v22985_v35, %v22985_v35  ;;  %v16226_v35 = vld [vmem:[%s23358_s18 + $0x10] sm:$0xf] }
0x3402   :  { %v13699_v58 = vmul.f32 1.442695, %v13693_v34  ;;  %v12784_v17 = vsel %vm132_vm0, %v12780_v11, 0.0 }
0x3404   :  { %19583 = vpow2.f32 %v13699_v58 }
0x3406   :  { %v19582_v43 = vpop.eup %19581 }
0x3407   :  { %v13703_v13 = vsel %vm846_vm2, %v19582_v43, 0.0 }
0x3408   :  { %v13684_v51 = vpop.xlane.xlu0 %13683  ;;  %13704 = vadd.xlane.f32.xlu1 %v13703_v13 }
0x3409   :  { %v13692_v0 = vsub.f32 %v13582_v63, %v13684_v51 }
0x340b   :  { %v13697_v33 = vmul.f32 1.442695, %v13692_v0 }
0x340d   :  { %19585 = vpow2.f32 %v13697_v33  ;;  %v23030_v33 = vsel %vm1086_vm3, %v16226_v35, 0 }
0x340e   :  { %v19584_v56 = vpop.eup %19583 }
0x340f   :  { %v13709_v27 = vsel %vm846_vm2, %v19584_v56, 0.0 }
0x3410   :  { %v13690_v4 = vpop.xlane.xlu0 %13689  ;;  %13710 = vadd.xlane.f32.xlu1 %v13709_v27 }
0x3411   :  { %v13694_v6 = vsub.f32 %v13674_v57, %v13690_v4 }
0x3413   :  { %v13701_v53 = vmul.f32 1.442695, %v13694_v6 }
0x3414   :  { %12785 = vadd.xlane.f32.xlu1 %v12784_v17 }
0x3415   :  { %19587 = vpow2.f32 %v13701_v53  ;;  %v16228_v53 = vld [vmem:[%s23358_s18 + $0x18] sm:$0xf] }
0x3417   :  { %v19586_v63 = vpop.eup %19585 }
0x3418   :  { %v13706_v9 = vsel %vm846_vm2, %v19586_v63, 0.0 }
0x3419   :  { %13707 = vadd.xlane.f32.xlu0 %v13706_v9 }
0x341f   :  { %v19588_v22 = vpop.eup %19587 }
0x3420   :  { %v13712_v12 = vsel %vm846_vm2, %v19588_v22, 0.0 }
0x3421   :  { %13713 = vadd.xlane.f32.xlu0 %v13712_v12 }
0x3495   :  { %v13705_v62 = vpop.xlane.xlu1 %13704 }
0x3496   :  { %19589 = vrcp.f32 %v13705_v62 }
0x349d   :  { %v13711_v28 = vpop.xlane.xlu1 %13710 }
0x349e   :  { %19591 = vrcp.f32 %v13711_v28 }
0x34a0   :  { %v19590_v23 = vpop.eup %19589 }
0x34a1   :  { %v13719_v57 = vmul.f32 %v19590_v23, %v19582_v43  ;;  %v13873_v43 = vsel %vm1086_vm3, %v13730_v39, 0  ;;  %v12786_v11 = vpop.xlane.xlu1 %12785 }
0x34a2   :  { %v12788_v4 = vmul.f32 0.03125, %v12786_v11 }
0x34a3   :  { %v13723_v61 = vpack.c.bf16 %v13719_v57, %v13719_v57 }
0x34a4   :  { %v12790_v6 = vadd.f32 1e-06, %v12788_v4 }
0x34a5   :  { %18953 = vmatmul.mubr.msk.bf16.vlgmr.msra.gmra.mrb[4].mxu1 %vm846_vm2, %v13723_v61 }
0x34a6   :  { %18963 = vmatpush3.bf16.msra.mxu1 %v13827_v8  ;;  %v13708_v16 = vpop.xlane.xlu0 %13707  ;;  %18964 = vmatprep.mubr.msk.bf16.mxu1 %vm19653_vm1, %v19652_v5 }
0x34a7   :  { %19593 = vrcp.f32 %v13708_v16  ;;  %18974 = vmatprep.subr.bf16.mxu1 %v19652_v5 }
0x34a8   :  { %v19592_v1 = vpop.eup %19591 }
0x34a9   :  { %v13721_v15 = vmul.f32 %v19592_v1, %v19584_v56  ;;  %v16227_v56 = vld [vmem:[%s23358_s18 + $0x14] sm:$0xf] }
0x34aa   :  { %v23038_v27 = vsel %vm1086_vm3, %v16227_v56, 0 }
0x34ab   :  { %v13725_v49 = vpack.c.bf16 %v13721_v15, %v13721_v15  ;;  %v16229_v15 = vld [vmem:[%s23358_s18 + $0x1c] sm:$0xf]  ;;  %s19655_s18 = smov 1.0  }
0x34ad   :  { %18965 = vmatmul.mubr.msk.bf16.vlgmr.msra.gmra.mrb[8].mxu1 %vm846_vm2, %v13725_v49 }
0x34ae   :  { %v13714_v29 = vpop.xlane.xlu0 %13713  ;;  %18976 = vmatprep.mubr.msk.bf16.mxu1 %vm19653_vm1, %v19652_v5  ;;  %18975 = vmatpush3.bf16.msra.mxu1 %v23030_v33 }
0x34af   :  { %19595 = vrcp.f32 %v13714_v29  ;;  %18986 = vmatprep.subr.bf16.mxu1 %v19652_v5 }
0x34b0   :  { %19597 = vrsqrt.f32 %v12790_v6 }
0x34b1   :  { %v19594_v26 = vpop.eup %19593 }
0x34b2   :  { %v13720_v34 = vmul.f32 %v19594_v26, %v19586_v63 }
0x34b4   :  { %v13724_v58 = vpack.c.bf16 %v13720_v34, %v13720_v34 }
0x34b6   :  { %18959 = vmatmul.mubr.msk.bf16.vlgmr.msra.gmra.mrb[20].mxu0 %vm846_vm2, %v13724_v58 }
0x34b7   :  { %18969 = vmatpush3.bf16.msra.mxu0 %v13873_v43  ;;  %18970 = vmatprep.mubr.msk.bf16.mxu0 %vm19653_vm1, %v19652_v5 }
0x34b8   :  { %18980 = vmatprep.subr.bf16.mxu0 %v19652_v5 }
0x34b9   :  { %v19596_v13 = vpop.eup %19595 }
0x34ba   :  { %v13722_v51 = vmul.f32 %v19596_v13, %v19588_v22  ;;  %v23046_v22 = vsel %vm1086_vm3, %v16228_v53, 0  ;;  %v19598_v28 = vpop.eup %19597 }
0x34bb   :  { %v12794_v24 = vmul.f32 %v19598_v28, %v22998_v7 }
0x34bc   :  { %v13726_v0 = vpack.c.bf16 %v13722_v51, %v13722_v51 }
0x34bd   :  { %v12802_v1 = vmul.f32 %v22736_v20, %v12794_v24 }
0x34be   :  { %18971 = vmatmul.mubr.msk.bf16.vlgmr.msra.gmra.mrb[24].mxu0 %vm846_vm2, %v13726_v0 }
0x34bf   :  { %18982 = vmatprep.mubr.msk.bf16.mxu0 %vm19653_vm1, %v19652_v5  ;;  %18981 = vmatpush3.bf16.msra.mxu0 %v23038_v27  ;;  %v14106_v49 = vpack.c.bf16 %v12802_v1, %v12802_v1 }
0x34c0   :  { %18992 = vmatprep.subr.bf16.mxu0 %v19652_v5 }
0x3578   :  { %v13771_v17 = vpop.f32.mrb[4].mxu1 }
0x3579   :  { %v13915_v63 = vpack.c.bf16 %v13771_v17, %v13771_v17  ;;  %v18954_v9 = vpop.f32.mrb[5].mxu1 }
0x357a   :  { %v13774_v12 = vpop.f32.mrb[6].mxu1 }
0x357b   :  { %v18955_v62 = vpop.f32.mrb[7].mxu1  ;;  %18977 = vmatmul.mubr.msk.bf16.vlgmr.msra.gmra.mrb[12].mxu1 %vm846_vm2, %v13915_v63 }
0x357c   :  { %18987 = vmatpush3.bf16.msra.mxu1 %v23046_v22  ;;  %18988 = vmatprep.mubr.msk.bf16.mxu1 %vm19653_vm1, %v19652_v5 }
0x357d   :  { %18998 = vmatprep.subr.bf16.mxu1 %v19652_v5 }
0x3580   :  { %v13863_v23 = vpop.f32.mrb[8].mxu1 }
0x3581   :  { %v13917_v57 = vpack.c.bf16 %v13863_v23, %v13863_v23  ;;  %v18966_v61 = vpop.f32.mrb[9].mxu1 }
0x3582   :  { %v13866_v8 = vpop.f32.mrb[10].mxu1 }
0x3583   :  { %v18967_v16 = vpop.f32.mrb[11].mxu1  ;;  %18989 = vmatmul.mubr.msk.bf16.vlgmr.msra.gmra.mrb[16].mxu1 %vm846_vm2, %v13917_v57 }
0x3584   :  { %18999 = vmatpush3.bf16.msra.mxu1 %v22730_v2  ;;  %19002 = vmatprep.mubr.msk.bf16.mxu1 %vm19653_vm1, %v19652_v5  ;;  %v23066_v2 = vsel %vm1086_vm3, %v16229_v15, 0 }
0x3585   :  { %19000 = vmatprep.subr.bf16.mxu1 %v19652_v5 }
0x3588   :  { %19001 = vmatpush3.bf16.msra.mxu1 %v22743_v37 }
0x3589   :  { %v13817_v29 = vpop.f32.mrb[20].mxu0  ;;  %19014 = vmatprep.subr.bf16.mxu1 %v19652_v5 }
0x358a   :  { %v13916_v26 = vpack.c.bf16 %v13817_v29, %v13817_v29  ;;  %v18960_v39 = vpop.f32.mrb[21].mxu0 }
0x358b   :  { %v13820_v34 = vpop.f32.mrb[22].mxu0  ;;  %19003 = vmatmul.mubr.msk.bf16.vlgmr.msra.gmra.mrb[20].mxu1 %vm132_vm0, %v14106_v49 }
0x358c   :  { %v18961_v20 = vpop.f32.mrb[23].mxu0  ;;  %18983 = vmatmul.mubr.msk.bf16.vlgmr.msra.gmra.mrb[28].mxu0 %vm846_vm2, %v13916_v26  ;;  %19015 = vmatpush3.bf16.msra.mxu1 %v22753_v48 }
0x358d   :  { %18993 = vmatpush3.bf16.msra.mxu0 %v23066_v2  ;;  %19016 = vmatprep.subr.bf16.mxu1 %v19652_v5 }
0x358e   :  { %18994 = vmatprep.mubr.msk.bf16.mxu0 %vm19653_vm1, %v19652_v5  ;;  %19018 = vmatprep.mubr.msk.bf16.mxu1 %vm19653_vm1, %v19652_v5 }
0x358f   :  { %19006 = vmatprep.subr.bf16.mxu0 %v19652_v5 }
0x3590   :  { %19017 = vmatpush3.bf16.msra.mxu1 %v22762_v30 }
0x3591   :  { %v13909_v37 = vpop.f32.mrb[24].mxu0  ;;  %19030 = vmatprep.subr.bf16.mxu1 %v19652_v5 }
0x3592   :  { %v13918_v58 = vpack.c.bf16 %v13909_v37, %v13909_v37  ;;  %v18972_v43 = vpop.f32.mrb[25].mxu0 }
0x3593   :  { %v13912_v48 = vpop.f32.mrb[26].mxu0  ;;  %19019 = vmatmul.mubr.msk.bf16.vlgmr.msra.gmra.mrb[24].mxu1 %vm132_vm0, %v14106_v49 }
0x3594   :  { %v18973_v13 = vpop.f32.mrb[27].mxu0  ;;  %18995 = vmatmul.mubr.msk.bf16.vlgmr.msra.gmra.mrb[32].mxu0 %vm846_vm2, %v13918_v58  ;;  %19031 = vmatpush3.bf16.msra.mxu1 %v22775_v10 }
0x3595   :  { %19007 = vmatpush3.bf16.msra.mxu0 %v22781_v18  ;;  %19032 = vmatprep.subr.bf16.mxu1 %v19652_v5 }
0x3596   :  { %19008 = vmatprep.subr.bf16.mxu0 %v19652_v5  ;;  %19010 = vmatprep.mubr.msk.bf16.mxu0 %vm19653_vm1, %v19652_v5 }
0x3597   :  { %19034 = vmatprep.mubr.msk.bf16.mxu1 %vm19653_vm1, %v19652_v5 }
0x3598   :  { %19033 = vmatpush3.bf16.msra.mxu1 %v22789_v19 }
0x3599   :  { %19009 = vmatpush3.bf16.msra.mxu0 %v22796_v50  ;;  %19046 = vmatprep.subr.bf16.mxu1 %v19652_v5 }
0x359a   :  { %19022 = vmatprep.subr.bf16.mxu0 %v19652_v5 }
0x359b   :  { %19035 = vmatmul.mubr.msk.bf16.vlgmr.msra.gmra.mrb[28].mxu1 %vm132_vm0, %v21976_v44 }
0x359c   :  { %19011 = vmatmul.mubr.msk.bf16.vlgmr.msra.gmra.mrb[36].mxu0 %vm132_vm0, %v14106_v49  ;;  %19047 = vmatpush3.bf16.msra.mxu1 %v22807_v45 }
0x359d   :  { %19023 = vmatpush3.bf16.msra.mxu0 %v22814_v32  ;;  %19048 = vmatprep.subr.bf16.mxu1 %v19652_v5 }
0x359e   :  { %19024 = vmatprep.subr.bf16.mxu0 %v19652_v5  ;;  %19026 = vmatprep.mubr.msk.bf16.mxu0 %vm19653_vm1, %v19652_v5 }
0x359f   :  { %19050 = vmatprep.mubr.msk.bf16.mxu1 %vm19653_vm1, %v19652_v5 }
0x35a0   :  { %19049 = vmatpush3.bf16.msra.mxu1 %v22824_v60 }
0x35a1   :  { %19025 = vmatpush3.bf16.msra.mxu0 %v22831_v55  ;;  %19062 = vmatprep.subr.bf16.mxu1 %v19652_v5 }
0x35a2   :  { %19038 = vmatprep.subr.bf16.mxu0 %v19652_v5 }
0x35a3   :  { %19051 = vmatmul.mubr.msk.bf16.vlgmr.msra.gmra.mrb[32].mxu1 %vm132_vm0, %v21976_v44 }
0x35a4   :  { %19027 = vmatmul.mubr.msk.bf16.vlgmr.msra.gmra.mrb[40].mxu0 %vm132_vm0, %v14106_v49  ;;  %19063 = vmatpush3.bf16.msra.mxu1 %v22842_v3 }
0x35a5   :  { %19039 = vmatpush3.bf16.msra.mxu0 %v22849_v40  ;;  %19064 = vmatprep.subr.bf16.mxu1 %v19652_v5 }
0x35a6   :  { %19040 = vmatprep.subr.bf16.mxu0 %v19652_v5  ;;  %19042 = vmatprep.mubr.msk.bf16.mxu0 %vm19653_vm1, %v19652_v5 }
0x35a7   :  { %19066 = vmatprep.mubr.msk.bf16.mxu1 %vm19653_vm1, %v19652_v5 }
0x35a8   :  { %19065 = vmatpush3.bf16.msra.mxu1 %v22859_v38 }
0x35a9   :  { %19041 = vmatpush3.bf16.msra.mxu0 %v22866_v31  ;;  %19078 = vmatprep.subr.bf16.mxu1 %v19652_v5 }
0x35aa   :  { %19054 = vmatprep.subr.bf16.mxu0 %v19652_v5 }
0x35ab   :  { %19067 = vmatmul.mubr.msk.bf16.vlgmr.msra.gmra.mrb[36].mxu1 %vm132_vm0, %v21976_v44 }
0x35ac   :  { %19043 = vmatmul.mubr.msk.bf16.vlgmr.msra.gmra.mrb[44].mxu0 %vm132_vm0, %v21976_v44  ;;  %19079 = vmatpush3.bf16.msra.mxu1 %v22877_v46 }
0x35ad   :  { %19055 = vmatpush3.bf16.msra.mxu0 %v22884_v42  ;;  %19080 = vmatprep.subr.bf16.mxu1 %v19652_v5 }
0x35ae   :  { %19056 = vmatprep.subr.bf16.mxu0 %v19652_v5  ;;  %19058 = vmatprep.mubr.msk.bf16.mxu0 %vm19653_vm1, %v19652_v5 }
0x35af   :  { %19082 = vmatprep.mubr.msk.bf16.mxu1 %vm19653_vm1, %v19652_v5 }
0x35b0   :  { %19081 = vmatpush3.bf16.msra.mxu1 %v22895_v25 }
0x35b1   :  { %19057 = vmatpush3.bf16.msra.mxu0 %v22902_v41  ;;  %19094 = vmatprep.subr.bf16.mxu1 %v19652_v5 }
0x35b2   :  { %19070 = vmatprep.subr.bf16.mxu0 %v19652_v5 }
0x35b3   :  { %19083 = vmatmul.mubr.msk.bf16.vlgmr.msra.gmra.mrb[40].mxu1 %vm132_vm0, %v21976_v44 }
0x35b4   :  { %19059 = vmatmul.mubr.msk.bf16.vlgmr.msra.gmra.mrb[48].mxu0 %vm132_vm0, %v21976_v44  ;;  %19096 = vmatprep.mubr.msk.bf16.mxu1 %vm19653_vm1, %v19652_v5 }
0x35b5   :  { %19071 = vmatpush3.bf16.msra.mxu0 %v22914_v36  ;;  %19074 = vmatprep.mubr.msk.bf16.mxu0 %vm19653_vm1, %v19652_v5 }
0x35b6   :  { %19072 = vmatprep.subr.bf16.mxu0 %v19652_v5 }
0x35b9   :  { %19073 = vmatpush3.bf16.msra.mxu0 %v22928_v54 }
0x35ba   :  { %19086 = vmatprep.subr.bf16.mxu0 %v19652_v5 }
0x35bc   :  { %19075 = vmatmul.mubr.msk.bf16.vlgmr.msra.gmra.mrb[52].mxu0 %vm132_vm0, %v21976_v44 }
0x35bd   :  { %19087 = vmatpush3.bf16.msra.mxu0 %v22937_v21  ;;  %19090 = vmatprep.mubr.msk.bf16.mxu0 %vm19653_vm1, %v19652_v5 }
0x35be   :  { %19088 = vmatprep.subr.bf16.mxu0 %v19652_v5 }
0x35c1   :  { %19089 = vmatpush3.bf16.msra.mxu0 %v22946_v47 }
0x35c2   :  { %19100 = vmatprep.subr.bf16.mxu0 %v19652_v5 }
0x35c4   :  { %19091 = vmatmul.mubr.msk.bf16.vlgmr.msra.gmra.mrb[56].mxu0 %vm132_vm0, %v21976_v44 }
0x35c5   :  { %19102 = vmatprep.mubr.msk.bf16.mxu0 %vm19653_vm1, %v19652_v5 }
0x364e   :  { %v13959_v30 = vpop.f32.mrb[12].mxu1 }
0x364f   :  { %v18978_v10 = vpop.f32.mrb[13].mxu1 }
0x3650   :  { %v13962_v18 = vpop.f32.mrb[14].mxu1 }
0x3651   :  { %v18979_v19 = vpop.f32.mrb[15].mxu1 }
0x3656   :  { %v14051_v50 = vpop.f32.mrb[16].mxu1 }
0x3657   :  { %v18990_v45 = vpop.f32.mrb[17].mxu1 }
0x3658   :  { %v14054_v32 = vpop.f32.mrb[18].mxu1 }
0x3659   :  { %v18991_v60 = vpop.f32.mrb[19].mxu1 }
0x365e   :  { %v14144_v55 = vpop.f32.mrb[20].mxu1 }
0x365f   :  { %v14005_v3 = vpop.f32.mrb[28].mxu0  ;;  %v19004_v40 = vpop.f32.mrb[21].mxu1  ;;  %v14590_v57 = vpack.c.bf16 %v14144_v55, %v14144_v55 }
0x3660   :  { %v14103_v38 = vadd.f32 %v14005_v3, %v13959_v30  ;;  %v18984_v31 = vpop.f32.mrb[29].mxu0  ;;  %v14147_v46 = vpop.f32.mrb[22].mxu1 }
0x3661   :  { %v14008_v42 = vpop.f32.mrb[30].mxu0  ;;  %v19005_v25 = vpop.f32.mrb[23].mxu1 }
0x3662   :  { %v18985_v44 = vpop.f32.mrb[31].mxu0  ;;  %v14104_v41 = vadd.f32 %v14103_v38, %v14051_v50 }
0x3666   :  { %v14224_v36 = vpop.f32.mrb[24].mxu1 }
0x3667   :  { %v14097_v54 = vpop.f32.mrb[32].mxu0  ;;  %v19020_v21 = vpop.f32.mrb[25].mxu1  ;;  %v14592_v20 = vpack.c.bf16 %v14224_v36, %v14224_v36 }
0x3668   :  { %v23164_v47 = vadd.f32 %v14104_v41, %v14097_v54  ;;  %v18996_v51 = vpop.f32.mrb[33].mxu0  ;;  %v14227_v0 = vpop.f32.mrb[26].mxu1 }
0x3669   :  { %v14100_v35 = vpop.f32.mrb[34].mxu0  ;;  %v19021_v56 = vpop.f32.mrb[27].mxu1 }
0x366a   :  { %v18997_v11 = vpop.f32.mrb[35].mxu0 }
0x366e   :  { %v14304_v4 = vpop.f32.mrb[28].mxu1 }
0x366f   :  { %v14184_v6 = vpop.f32.mrb[36].mxu0  ;;  %v14594_v53 = vpack.c.bf16 %v14304_v4, %v14304_v4  ;;  %v19036_v17 = vpop.f32.mrb[29].mxu1 }
0x3670   :  { %v19012_v63 = vpop.f32.mrb[37].mxu0  ;;  %v14307_v9 = vpop.f32.mrb[30].mxu1  ;;  %v14591_v3 = vpack.c.bf16 %v14184_v6, %v14184_v6 }
0x3671   :  { %v14602_v12 = vsel %vm846_vm2, %v14594_v53, 0  ;;  %v14187_v62 = vpop.f32.mrb[38].mxu0  ;;  %v19037_v28 = vpop.f32.mrb[31].mxu1 }
0x3672   :  { %v19013_v23 = vpop.f32.mrb[39].mxu0  ;;  %19095 = vmatpush3.bf16.xpose.msra.mxu1 %v14602_v12 }
0x3673   :  { %19106 = vmatprep.subr.bf16.mxu1 %v19652_v5 }
0x3676   :  { %v14384_v24 = vpop.f32.mrb[32].mxu1 }
0x3677   :  { %v14264_v61 = vpop.f32.mrb[40].mxu0  ;;  %v14596_v8 = vpack.c.bf16 %v14384_v24, %v14384_v24  ;;  %v19052_v16 = vpop.f32.mrb[33].mxu1 }
0x3678   :  { %v19028_v1 = vpop.f32.mrb[41].mxu0  ;;  %v14387_v15 = vpop.f32.mrb[34].mxu1  ;;  %v14593_v36 = vpack.c.bf16 %v14264_v61, %v14264_v61 }
0x3679   :  { %v14694_v49 = vsel %vm846_vm2, %v14596_v8, 0  ;;  %v14267_v29 = vpop.f32.mrb[42].mxu0  ;;  %v19053_v26 = vpop.f32.mrb[35].mxu1  ;;  %19097 = vmatmul.mubr.msk.bf16.vlgmr.msra.gmra.mrb[44].mxu1 %vm846_vm2, %v14590_v57 }
0x367a   :  { %v19029_v39 = vpop.f32.mrb[43].mxu0  ;;  %19107 = vmatpush3.bf16.xpose.msra.mxu1 %v14694_v49  ;;  %19108 = vmatprep.mubr.msk.bf16.mxu1 %vm19653_vm1, %v19652_v5 }
0x367b   :  { %19118 = vmatprep.subr.bf16.mxu1 %v19652_v5 }
0x367e   :  { %v14464_v34 = vpop.f32.mrb[36].mxu1 }
0x367f   :  { %v14344_v37 = vpop.f32.mrb[44].mxu0  ;;  %v14830_v58 = vpack.c.bf16 %v14464_v34, %v14464_v34  ;;  %v19068_v43 = vpop.f32.mrb[37].mxu1 }
0x3680   :  { %v14595_v48 = vpack.c.bf16 %v14344_v37, %v14344_v37  ;;  %v19044_v13 = vpop.f32.mrb[45].mxu0  ;;  %v14467_v30 = vpop.f32.mrb[38].mxu1 }
0x3681   :  { %v14838_v10 = vsel %vm1086_vm3, %v14830_v58, 0  ;;  %v14347_v18 = vpop.f32.mrb[46].mxu0  ;;  %v19069_v19 = vpop.f32.mrb[39].mxu1  ;;  %19109 = vmatmul.mubr.msk.bf16.vlgmr.msra.gmra.mrb[48].mxu1 %vm846_vm2, %v14592_v20 }
0x3682   :  { %v14648_v50 = vsel %vm846_vm2, %v14595_v48, 0  ;;  %v19045_v45 = vpop.f32.mrb[47].mxu0  ;;  %19119 = vmatpush3.bf16.msra.mxu1 %v14838_v10  ;;  %19120 = vmatprep.mubr.msk.bf16.mxu1 %vm19653_vm1, %v19652_v5 }
0x3683   :  { %19101 = vmatpush3.bf16.xpose.msra.mxu0 %v14648_v50  ;;  %19130 = vmatprep.subr.bf16.mxu1 %v19652_v5 }
0x3684   :  { %19112 = vmatprep.subr.bf16.mxu0 %v19652_v5 }
0x3686   :  { %v23180_v32 = vpop.f32.mrb[40].mxu1 }
0x3687   :  { %v14424_v60 = vpop.f32.mrb[48].mxu0  ;;  %v19084_v55 = vpop.f32.mrb[41].mxu1 }
0x3688   :  { %v14597_v40 = vpack.c.bf16 %v14424_v60, %v14424_v60  ;;  %v19060_v38 = vpop.f32.mrb[49].mxu0  ;;  %v14547_v31 = vpop.f32.mrb[42].mxu1  ;;  %v23205_v55 = vadd.f32 %v23164_v47, %v22690_v14 }
0x3689   :  { %v14427_v46 = vpop.f32.mrb[50].mxu0  ;;  %v19085_v42 = vpop.f32.mrb[43].mxu1 }
0x368a   :  { %v14740_v25 = vsel %vm846_vm2, %v14597_v40, 0  ;;  %v19061_v44 = vpop.f32.mrb[51].mxu0  ;;  %19103 = vmatmul.mubr.msk.bf16.vlgmr.msra.gmra.mrb[60].mxu0 %vm846_vm2, %v14591_v3  ;;  %v15201_v31 = vmul.f32 %v23205_v55, %v23205_v55 }
0x368b   :  { %19113 = vmatpush3.bf16.xpose.msra.mxu0 %v14740_v25  ;;  %19114 = vmatprep.mubr.msk.bf16.mxu0 %vm19653_vm1, %v19652_v5 }
0x368c   :  { %19124 = vmatprep.subr.bf16.mxu0 %v19652_v5  ;;  %v15203_v44 = vsel %vm132_vm0, %v15201_v31, 0.0 }
0x368f   :  { %v14504_v41 = vpop.f32.mrb[52].mxu0 }
0x3690   :  { %v14831_v54 = vpack.c.bf16 %v14504_v41, %v14504_v41  ;;  %v19076_v21 = vpop.f32.mrb[53].mxu0 }
0x3691   :  { %v14507_v51 = vpop.f32.mrb[54].mxu0 }
0x3692   :  { %v14884_v0 = vsel %vm1086_vm3, %v14831_v54, 0  ;;  %v19077_v35 = vpop.f32.mrb[55].mxu0  ;;  %19115 = vmatmul.mubr.msk.bf16.vlgmr.msra.gmra.mrb[64].mxu0 %vm846_vm2, %v14593_v36 }
0x3693   :  { %19125 = vmatpush3.bf16.msra.mxu0 %v14884_v0  ;;  %19126 = vmatprep.mubr.msk.bf16.mxu0 %vm19653_vm1, %v19652_v5  ;;  %v14832_v0 = vpack.c.bf16 %v23180_v32, %v23180_v32 }
0x3694   :  { %19136 = vmatprep.subr.bf16.mxu0 %v19652_v5 }
0x3697   :  { %v23192_v56 = vpop.f32.mrb[56].mxu0 }
0x3698   :  { %v19092_v11 = vpop.f32.mrb[57].mxu0 }
0x3699   :  { %v14587_v4 = vpop.f32.mrb[58].mxu0 }
0x369a   :  { %v19093_v6 = vpop.f32.mrb[59].mxu0  ;;  %v14930_v4 = vsel %vm1086_vm3, %v14832_v0, 0  ;;  %v19374_v0 = vld [vmem:[%s23359_s19 + $0x18] sm:$0xff]  }
0x374c   :  { %v14638_v53 = vpop.f32.mrb[44].mxu1 }
0x374d   :  { %v14639_v17 = vadd.f32 %v14638_v53, %v20297_v52  ;;  %v19098_v63 = vpop.f32.mrb[45].mxu1 }
0x374e   :  { %v14641_v9 = vpop.f32.mrb[46].mxu1 }
0x374f   :  { %v19099_v12 = vpop.f32.mrb[47].mxu1  ;;  %v14782_v62 = vsel %vm846_vm2, %v14639_v17, -inf }
0x3750   :  { %14783 = vmax.xlane.f32.xlu0 %v14782_v62  ;;  %v14833_v12 = vpack.c.bf16 %v23192_v56, %v23192_v56 }
0x3754   :  { %v14730_v28 = vpop.f32.mrb[48].mxu1 }
0x3755   :  { %v14731_v23 = vadd.f32 %v14730_v28, %v20297_v52  ;;  %v19110_v24 = vpop.f32.mrb[49].mxu1 }
0x3756   :  { %v14733_v57 = vpop.f32.mrb[50].mxu1 }
0x3757   :  { %v19111_v61 = vpop.f32.mrb[51].mxu1  ;;  %v14788_v8 = vsel %vm846_vm2, %v14731_v23, -inf }
0x3758   :  { %14789 = vmax.xlane.f32.xlu0 %v14788_v8 }
0x375d   :  { %v14684_v16 = vpop.f32.mrb[60].mxu0 }
0x375e   :  { %v14685_v1 = vadd.f32 %v14684_v16, %v20297_v52  ;;  %v19104_v15 = vpop.f32.mrb[61].mxu0 }
0x375f   :  { %v14687_v49 = vpop.f32.mrb[62].mxu0 }
0x3760   :  { %v19105_v29 = vpop.f32.mrb[63].mxu0  ;;  %v14785_v26 = vsel %vm846_vm2, %v14685_v1, -inf }
0x3761   :  { %14786 = vmax.xlane.f32.xlu1 %v14785_v26 }
0x3765   :  { %v14776_v39 = vpop.f32.mrb[64].mxu0 }
0x3766   :  { %v14777_v34 = vadd.f32 %v14776_v39, %v20297_v52  ;;  %v19116_v20 = vpop.f32.mrb[65].mxu0 }
0x3767   :  { %v14779_v37 = vpop.f32.mrb[66].mxu0 }
0x3768   :  { %v19117_v58 = vpop.f32.mrb[67].mxu0  ;;  %v14791_v43 = vsel %vm846_vm2, %v14777_v34, -inf }
0x3769   :  { %14792 = vmax.xlane.f32.xlu1 %v14791_v43 }
0x37dd   :  { %v14784_v48 = vpop.xlane.xlu0 %14783 }
0x37de   :  { %v14794_v13 = vsub.f32 %v14639_v17, %v14784_v48 }
0x37e0   :  { %v14798_v30 = vmul.f32 1.442695, %v14794_v13 }
0x37e2   :  { %19599 = vpow2.f32 %v14798_v30 }
0x37e5   :  { %v14790_v10 = vpop.xlane.xlu0 %14789 }
0x37e6   :  { %v14796_v18 = vsub.f32 %v14731_v23, %v14790_v10  ;;  %v14976_v23 = vsel %vm1086_vm3, %v14833_v12, 0 }
0x37e8   :  { %v14802_v19 = vmul.f32 1.442695, %v14796_v18 }
0x37ea   :  { %19601 = vpow2.f32 %v14802_v19 }
0x37ec   :  { %v19600_v50 = vpop.eup %19599 }
0x37ed   :  { %v14806_v45 = vsel %vm846_vm2, %v19600_v50, 0.0 }
0x37ee   :  { %v14787_v60 = vpop.xlane.xlu1 %14786  ;;  %14807 = vadd.xlane.f32.xlu0 %v14806_v45 }
0x37ef   :  { %v14795_v52 = vsub.f32 %v14685_v1, %v14787_v60 }
0x37f1   :  { %v14800_v3 = vmul.f32 1.442695, %v14795_v52 }
0x37f3   :  { %19603 = vpow2.f32 %v14800_v3 }
0x37f4   :  { %v19602_v40 = vpop.eup %19601 }
0x37f5   :  { %v14812_v38 = vsel %vm846_vm2, %v19602_v40, 0.0 }
0x37f6   :  { %v14793_v46 = vpop.xlane.xlu1 %14792  ;;  %14813 = vadd.xlane.f32.xlu0 %v14812_v38 }
0x37f7   :  { %v14797_v42 = vsub.f32 %v14777_v34, %v14793_v46 }
0x37f9   :  { %v14804_v25 = vmul.f32 1.442695, %v14797_v42 }
0x37fa   :  { %15204 = vadd.xlane.f32.xlu0 %v15203_v44 }
0x37fb   :  { %19605 = vpow2.f32 %v14804_v25 }
0x37fd   :  { %v19604_v41 = vpop.eup %19603 }
0x37fe   :  { %v14809_v14 = vsel %vm846_vm2, %v19604_v41, 0.0 }
0x37ff   :  { %14810 = vadd.xlane.f32.xlu1 %v14809_v14 }
0x3805   :  { %v19606_v47 = vpop.eup %19605 }
0x3806   :  { %v14815_v36 = vsel %vm846_vm2, %v19606_v47, 0.0 }
0x3807   :  { %14816 = vadd.xlane.f32.xlu1 %v14815_v36 }
0x387b   :  { %v14808_v54 = vpop.xlane.xlu0 %14807 }
0x387c   :  { %19607 = vrcp.f32 %v14808_v54 }
0x3883   :  { %v14814_v21 = vpop.xlane.xlu0 %14813 }
0x3884   :  { %19609 = vrcp.f32 %v14814_v21 }
0x3886   :  { %v19608_v51 = vpop.eup %19607 }
0x3887   :  { %v14822_v35 = vmul.f32 %v19608_v51, %v19600_v50  ;;  %v19373_v51 = vld [vmem:[%s23359_s19 + $0x10] sm:$0xff]  }
0x3889   :  { %v14826_v11 = vpack.c.bf16 %v14822_v35, %v14822_v35  ;;  %v19376_v35 = vld [vmem:[%s23360_s20 + $0x28] sm:$0xff]  }
0x388b   :  { %19121 = vmatmul.mubr.msk.bf16.vlgmr.msra.gmra.mrb[52].mxu1 %vm846_vm2, %v14826_v11  ;;  %v15205_v11 = vpop.xlane.xlu0 %15204 }
0x388c   :  { %19131 = vmatpush3.bf16.msra.mxu1 %v14930_v4  ;;  %v14811_v6 = vpop.xlane.xlu1 %14810  ;;  %19132 = vmatprep.mubr.msk.bf16.mxu1 %vm19653_vm1, %v19652_v5  ;;  %v15209_v4 = vmul.f32 0.03125, %v15205_v11 }
0x388d   :  { %19611 = vrcp.f32 %v14811_v6  ;;  %19142 = vmatprep.subr.bf16.mxu1 %v19652_v5 }
0x388e   :  { %v19610_v53 = vpop.eup %19609  ;;  %v15211_v6 = vadd.f32 1e-06, %v15209_v4 }
0x388f   :  { %v14824_v17 = vmul.f32 %v19610_v53, %v19602_v40 }
0x3891   :  { %v14828_v63 = vpack.c.bf16 %v14824_v17, %v14824_v17 }
0x3893   :  { %19133 = vmatmul.mubr.msk.bf16.vlgmr.msra.gmra.mrb[56].mxu1 %vm846_vm2, %v14828_v63 }
0x3894   :  { %v14817_v32 = vpop.xlane.xlu1 %14816  ;;  %19143 = vmatpush3.bf16.msra.mxu1 %v23030_v33  ;;  %19144 = vmatprep.mubr.msk.bf16.mxu1 %vm19653_vm1, %v19652_v5 }
0x3895   :  { %19613 = vrcp.f32 %v14817_v32  ;;  %19154 = vmatprep.subr.bf16.mxu1 %v19652_v5 }
0x3896   :  { %19615 = vrsqrt.f32 %v15211_v6  ;;  %v15483_v6 = vld [vmem:[%s23346_s6 + $0x8] sm:$0xff] }
0x3897   :  { %v19612_v9 = vpop.eup %19611  ;;  %vm15525_vm9 = vcmp.ne.s32.totalorder %v15483_v6, 4294967196 }
0x3898   :  { %v14823_v62 = vmul.f32 %v19612_v9, %v19604_v41 }
0x389a   :  { %v14827_v28 = vpack.c.bf16 %v14823_v62, %v14823_v62  ;;  %v16303_v62 = vld [vmem:[%s23353_s13 + $0x5] ss:$0 sm:$0xff] }
0x389c   :  { %19127 = vmatmul.mubr.msk.bf16.vlgmr.msra.gmra.mrb[68].mxu0 %vm846_vm2, %v14827_v28 }
0x389d   :  { %19137 = vmatpush3.bf16.msra.mxu0 %v14976_v23  ;;  %19138 = vmatprep.mubr.msk.bf16.mxu0 %vm19653_vm1, %v19652_v5 }
0x389e   :  { %19148 = vmatprep.subr.bf16.mxu0 %v19652_v5 }
0x389f   :  { %v19614_v33 = vpop.eup %19613 }
0x38a0   :  { %v14825_v24 = vmul.f32 %v19614_v33, %v19606_v47  ;;  %v19616_v32 = vpop.eup %19615 }
0x38a1   :  { %v15215_v9 = vmul.f32 %v19616_v32, %v23205_v55 }
0x38a2   :  { %v14829_v57 = vpack.c.bf16 %v14825_v24, %v14825_v24 }
0x38a3   :  { %v15223_v23 = vmul.f32 %v16303_v62, %v15215_v9 }
0x38a4   :  { %19139 = vmatmul.mubr.msk.bf16.vlgmr.msra.gmra.mrb[72].mxu0 %vm846_vm2, %v14829_v57  ;;  %v19377_v57 = vld [vmem:[%s23360_s20 + $0x30] sm:$0xff]  }
0x38a5   :  { %19149 = vmatpush3.bf16.msra.mxu0 %v23038_v27  ;;  %19150 = vmatprep.mubr.msk.bf16.mxu0 %vm19653_vm1, %v19652_v5 }
0x38a6   :  { %19160 = vmatprep.subr.bf16.mxu0 %v19652_v5 }
0x395e   :  { %v14874_v56 = vpop.f32.mrb[52].mxu1 }
0x395f   :  { %v15018_v61 = vpack.c.bf16 %v14874_v56, %v14874_v56  ;;  %v19122_v8 = vpop.f32.mrb[53].mxu1  ;;  %v19378_v56 = vld [vmem:[%s23360_s20 + $0x38] sm:$0xff]  }
0x3960   :  { %v14877_v16 = vpop.f32.mrb[54].mxu1 }
0x3961   :  { %v19123_v1 = vpop.f32.mrb[55].mxu1  ;;  %19145 = vmatmul.mubr.msk.bf16.vlgmr.msra.gmra.mrb[60].mxu1 %vm846_vm2, %v15018_v61 }
0x3962   :  { %19155 = vmatpush3.bf16.msra.mxu1 %v23046_v22  ;;  %19156 = vmatprep.mubr.msk.bf16.mxu1 %vm19653_vm1, %v19652_v5 }
0x3963   :  { %19166 = vmatprep.subr.bf16.mxu1 %v19652_v5 }
0x3966   :  { %v14966_v27 = vpop.f32.mrb[56].mxu1 }
0x3967   :  { %v15020_v15 = vpack.c.bf16 %v14966_v27, %v14966_v27  ;;  %v19134_v49 = vpop.f32.mrb[57].mxu1 }
0x3968   :  { %v14969_v29 = vpop.f32.mrb[58].mxu1 }
0x3969   :  { %v19135_v26 = vpop.f32.mrb[59].mxu1  ;;  %19157 = vmatmul.mubr.msk.bf16.vlgmr.msra.gmra.mrb[64].mxu1 %vm846_vm2, %v15020_v15  ;;  %v19379_v29 = vld [vmem:[%s23347_s7] sm:$0xff]  }
0x396a   :  { %19170 = vmatprep.mubr.msk.bf16.mxu1 %vm19653_vm1, %v19652_v5  ;;  %19167 = vmatpush3.bf16.msra.mxu1 %v19373_v51  ;;  %v15430_v26 = vsel %vm132_vm0, %v19379_v29, 0 }
0x396b   :  { %19168 = vmatprep.subr.bf16.mxu1 %v19652_v5 }
0x396e   :  { %19169 = vmatpush3.bf16.msra.mxu1 %v19374_v0 }
0x396f   :  { %v14920_v39 = vpop.f32.mrb[68].mxu0  ;;  %19186 = vmatprep.subr.bf16.mxu1 %v19652_v5 }
0x3970   :  { %v15019_v34 = vpack.c.bf16 %v14920_v39, %v14920_v39  ;;  %v19128_v20 = vpop.f32.mrb[69].mxu0 }
0x3971   :  { %v14923_v37 = vpop.f32.mrb[70].mxu0 }
0x3972   :  { %v19129_v22 = vpop.f32.mrb[71].mxu0  ;;  %19151 = vmatmul.mubr.msk.bf16.vlgmr.msra.gmra.mrb[76].mxu0 %vm846_vm2, %v15019_v34 }
0x3973   :  { %19161 = vmatpush3.bf16.msra.mxu0 %v23066_v2  ;;  %19162 = vmatprep.mubr.msk.bf16.mxu0 %vm19653_vm1, %v19652_v5 }
0x3974   :  { %19174 = vmatprep.subr.bf16.mxu0 %v19652_v5 }
0x3977   :  { %v15012_v58 = vpop.f32.mrb[72].mxu0 }
0x3978   :  { %v15021_v43 = vpack.c.bf16 %v15012_v58, %v15012_v58  ;;  %v19140_v48 = vpop.f32.mrb[73].mxu0 }
0x3979   :  { %v15015_v13 = vpop.f32.mrb[74].mxu0 }
0x397a   :  { %v19141_v30 = vpop.f32.mrb[75].mxu0  ;;  %19163 = vmatmul.mubr.msk.bf16.vlgmr.msra.gmra.mrb[80].mxu0 %vm846_vm2, %v15021_v43 }
0x397b   :  { %19182 = vmatprep.mubr.msk.bf16.mxu0 %vm19653_vm1, %v19652_v5 }
0x3a34   :  { %v15059_v10 = vpop.f32.mrb[60].mxu1 }
0x3a35   :  { %v19146_v18 = vpop.f32.mrb[61].mxu1 }
0x3a36   :  { %v15062_v19 = vpop.f32.mrb[62].mxu1 }
0x3a37   :  { %v19147_v50 = vpop.f32.mrb[63].mxu1 }
0x3a38   :  { %v19382_v50 = vld [vmem:[%s23347_s7 + $0x18] sm:$0xff]  }
0x3a3c   :  { %v15145_v2 = vpop.f32.mrb[64].mxu1 }
0x3a3d   :  { %v19158_v45 = vpop.f32.mrb[65].mxu1 }
0x3a3e   :  { %v15148_v60 = vpop.f32.mrb[66].mxu1 }
0x3a3f   :  { %v19159_v52 = vpop.f32.mrb[67].mxu1 }
0x3a45   :  { %v15102_v3 = vpop.f32.mrb[76].mxu0 }
0x3a46   :  { %v15194_v40 = vadd.f32 %v15102_v3, %v15059_v10  ;;  %v19152_v38 = vpop.f32.mrb[77].mxu0  ;;  %v19380_v10 = vld [vmem:[%s23347_s7 + $0x8] sm:$0xff]  }
0x3a47   :  { %v15105_v31 = vpop.f32.mrb[78].mxu0  ;;  %v15433_v18 = vsel %vm132_vm0, %v19380_v10, 0 }
0x3a48   :  { %v19153_v46 = vpop.f32.mrb[79].mxu0  ;;  %v15195_v42 = vadd.f32 %v15194_v40, %v15145_v2  ;;  %v15439_v2 = vsel %vm132_vm0, %v19382_v50, 0 }
0x3a49   :  { %v16325_v46 = vld [vmem:[%s23353_s13 + $0x6] ss:$0 sm:$0xff] }
0x3a4d   :  { %v15188_v25 = vpop.f32.mrb[80].mxu0 }
0x3a4e   :  { %v15196_v44 = vadd.f32 %v15195_v42, %v15188_v25  ;;  %v19164_v41 = vpop.f32.mrb[81].mxu0 }
0x3a4f   :  { %v15191_v14 = vpop.f32.mrb[82].mxu0 }
0x3a50   :  { %v15198_v47 = vadd.f32 %v15196_v44, %v22998_v7  ;;  %v19165_v36 = vpop.f32.mrb[83].mxu0  ;;  %v19375_v7 = vld [vmem:[%s23360_s20 + $0x20] sm:$0xff]  }
0x3a51   :  { %19175 = vmatpush3.bf16.msra.mxu0 %v19375_v7 }
0x3a52   :  { %v15202_v54 = vmul.f32 %v15198_v47, %v15198_v47  ;;  %19176 = vmatprep.subr.bf16.mxu0 %v19652_v5 }
0x3a54   :  { %v15206_v21 = vsel %vm132_vm0, %v15202_v54, 0.0 }
0x3a55   :  { %15207 = vadd.xlane.f32.xlu1 %v15206_v21  ;;  %19177 = vmatpush3.bf16.msra.mxu0 %v19376_v35  ;;  %v19654_v21 = vmov 0  }
0x3a56   :  { %19178 = vmatprep.subr.bf16.mxu0 %v19652_v5  ;;  %19210 = vset.pattern.permute.xlu1 %v19654_v21 }
0x3a57   :  { %19209 = vset.pattern.permute.xlu0 %v19654_v21 }
0x3a59   :  { %19179 = vmatpush3.bf16.msra.mxu0 %v19377_v57 }
0x3a5a   :  { %19180 = vmatprep.subr.bf16.mxu0 %v19652_v5 }
0x3a5d   :  { %19181 = vmatpush3.bf16.msra.mxu0 %v19378_v56 }
0x3ae2   :  { %v15208_v53 = vpop.xlane.xlu1 %15207 }
0x3ae3   :  { %v15210_v17 = vmul.f32 0.03125, %v15208_v53  ;;  %v15482_v53 = vld [vmem:[%s23346_s6] sm:$0xff] }
0x3ae4   :  { %vm15524_vm8 = vcmp.ne.s32.totalorder %v15482_v53, 4294967196 }
0x3ae5   :  { %v15212_v63 = vadd.f32 1e-06, %v15210_v17 }
0x3ae7   :  { %19617 = vrsqrt.f32 %v15212_v63 }
0x3af1   :  { %v19618_v12 = vpop.eup %19617 }
0x3af2   :  { %v15216_v28 = vmul.f32 %v19618_v12, %v15198_v47 }
0x3af4   :  { %v15224_v33 = vmul.f32 %v16303_v62, %v15216_v28 }
0x3af6   :  { %v15230_v24 = vpack.c.bf16 %v15224_v33, %v15223_v23 }
0x3af8   :  { %19171 = vmatmul.mubr.msk.bf16.vlgmr.msra.gmra.mrb[68].mxu1 %vm132_vm0, %v15230_v24 }
0x3af9   :  { %19194 = vmatprep.mubr.msk.bf16.mxu1 %vm19653_vm1, %v19652_v5  ;;  %19187 = vmatpush3.bf16.xpose.msra.mxu1 %v15430_v26 }
0x3afa   :  { %19188 = vmatprep.subr.bf16.mxu1 %v19652_v5 }
0x3b01   :  { %19189 = vmatpush3.bf16.xpose.msra.mxu1 %v15433_v18 }
0x3b02   :  { %19190 = vmatprep.subr.bf16.mxu1 %v19652_v5 }
0x3bcb   :  { %v15280_v61 = vpop.f32.mrb[68].mxu1 }
0x3bcc   :  { %v19172_v8 = vpop.f32.mrb[69].mxu1  ;;  %v15287_v1 = vmax.f32 %v15280_v61, 0.0 }
0x3bcd   :  { %v15283_v16 = vpop.f32.mrb[70].mxu1 }
0x3bce   :  { %v15288_v27 = vmax.f32 %v15283_v16, 0.0  ;;  %v19173_v15 = vpop.f32.mrb[71].mxu1 }
0x3bd0   :  { %v15298_v49 = vpack.c.bf16 %v15288_v27, %v15287_v1 }
0x3bd2   :  { %19183 = vmatmul.mubr.msk.bf16.vlgmr.msra.gmra.mrb[84].mxu0 %vm2674_vm4, %v15298_v49 }
0x3ca5   :  { %v15360_v39 = vpop.f32.mrb[84].mxu0 }
0x3ca6   :  { %v15367_v34 = vadd.f32 %v15360_v39, %v23205_v55  ;;  %v19184_v20 = vpop.f32.mrb[85].mxu0  ;;  %v19381_v55 = vld [vmem:[%s23347_s7 + $0x10] sm:$0xff]  }
0x3ca7   :  { %v15363_v37 = vpop.f32.mrb[86].mxu0  ;;  %v15436_v19 = vsel %vm132_vm0, %v19381_v55, 0  ;;  %v16331_v20 = vsel %vm15524_vm8, 1.0, %v19652_v5 }
0x3ca8   :  { %v15371_v22 = vmul.f32 %v15367_v34, %v15367_v34  ;;  %v15368_v58 = vadd.f32 %v15363_v37, %v15198_v47  ;;  %v19185_v43 = vpop.f32.mrb[87].mxu0  ;;  %19191 = vmatpush3.bf16.xpose.msra.mxu1 %v15436_v19  ;;  %v15547_v10 = vsel %vm15534_vm10, %v16331_v20, 0.0 }
0x3ca9   :  { %19192 = vmatprep.subr.bf16.mxu1 %v19652_v5 }
0x3caa   :  { %v15372_v48 = vmul.f32 %v15368_v58, %v15368_v58  ;;  %v15373_v13 = vsel %vm132_vm0, %v15371_v22, 0.0 }
0x3cab   :  { %15374 = vadd.xlane.f32.xlu0 %v15373_v13 }
0x3cac   :  { %v15376_v30 = vsel %vm132_vm0, %v15372_v48, 0.0 }
0x3cad   :  { %15377 = vadd.xlane.f32.xlu1 %v15376_v30 }
0x3cb0   :  { %19193 = vmatpush3.bf16.xpose.msra.mxu1 %v15439_v2 }
0x3d38   :  { %v15375_v45 = vpop.xlane.xlu0 %15374 }
0x3d39   :  { %v15379_v60 = vmul.f32 0.03125, %v15375_v45 }
0x3d3a   :  { %v15378_v52 = vpop.xlane.xlu1 %15377 }
0x3d3b   :  { %v15381_v3 = vadd.f32 1e-06, %v15379_v60  ;;  %v15380_v40 = vmul.f32 0.03125, %v15378_v52 }
0x3d3d   :  { %19619 = vrsqrt.f32 %v15381_v3  ;;  %v15382_v38 = vadd.f32 1e-06, %v15380_v40 }
0x3d3f   :  { %19621 = vrsqrt.f32 %v15382_v38 }
0x3d47   :  { %v19620_v31 = vpop.eup %19619 }
0x3d48   :  { %v15385_v42 = vmul.f32 %v19620_v31, %v15367_v34 }
0x3d49   :  { %v19622_v25 = vpop.eup %19621 }
0x3d4a   :  { %v15393_v44 = vmul.f32 %v16325_v46, %v15385_v42  ;;  %v15386_v41 = vmul.f32 %v19622_v25, %v15368_v58  ;;  %v16332_v58 = vsel %vm15525_vm9, 1.0, %v19652_v5 }
0x3d4b   :  { %v15548_v55 = vsel %vm15534_vm10, %v16332_v58, 0.0 }
0x3d4c   :  { %v15394_v14 = vmul.f32 %v16325_v46, %v15386_v41  ;;  %v15395_v47 = vmul.f32 0.17677669, %v15393_v44  ;;  %v15549_v2 = vadd.f32 %v15548_v55, %v15547_v10 }
0x3d4e   :  { %v15396_v36 = vmul.f32 0.17677669, %v15394_v14 }
0x3d50   :  { %v15397_v54 = vpack.c.bf16 %v15396_v36, %v15395_v47 }
0x3d52   :  { %19195 = vmatmul.mubr.msk.bf16.vlgmr.msra.gmra.mrb[72].mxu1 %vm132_vm0, %v15397_v54 }
0x3e25   :  { %v15475_v51 = vpop.f32.mrb[72].mxu1 }
0x3e26   :  { %v19196_v0 = vpop.f32.mrb[73].mxu1  ;;  %v15484_v7 = vsel %vm2674_vm4, %v15475_v51, -inf }
0x3e27   :  { %15485 = vmax.xlane.f32.xlu0 %v15484_v7  ;;  %v15478_v35 = vpop.f32.mrb[74].mxu1 }
0x3e28   :  { %v19197_v11 = vpop.f32.mrb[75].mxu1  ;;  %v15487_v4 = vsel %vm2674_vm4, %v15478_v35, -inf }
0x3e29   :  { %15488 = vmax.xlane.f32.xlu1 %v15487_v4 }
0x3e3a   :  { %15512 = vperm.xlu1 %19210, %v15483_v6  }
0x3e3d   :  { %15509 = vperm.xlu0 %19209, %v15482_v53  }
0x3eb4   :  { %v15486_v17 = vpop.xlane.xlu0 %15485 }
0x3eb5   :  { %v15490_v63 = vsub.f32 %v15475_v51, %v15486_v17 }
0x3eb6   :  { %v15489_v32 = vpop.xlane.xlu1 %15488 }
0x3eb7   :  { %v15492_v9 = vmul.f32 1.442695, %v15490_v63  ;;  %v15491_v12 = vsub.f32 %v15478_v35, %v15489_v32 }
0x3eb9   :  { %19623 = vpow2.f32 %v15492_v9  ;;  %v15494_v62 = vmul.f32 1.442695, %v15491_v12 }
0x3eba   :  { %v15513_v33 = vpop.permute.xlu1 %15512 }
0x3ebb   :  { %19625 = vpow2.f32 %v15494_v62  ;;  %vm15515_vm7 = vcmp.eq.s32.totalorder %v21240_v59, %v15513_v33 }
0x3ebc   :  { %v15510_v28 = vpop.permute.xlu0 %15509  ;;  %v15517_v16 = vsel %vm15515_vm7, %v15478_v35, 0.0 }
0x3ebd   :  { %vm15514_vm6 = vcmp.eq.s32.totalorder %v21240_v59, %v15510_v28  ;;  %v15521_v1 = vsel %vm2674_vm4, %v15517_v16, 0.0 }
0x3ebe   :  { %v15516_v56 = vsel %vm15514_vm6, %v15475_v51, 0.0 }
0x3ebf   :  { %v15518_v8 = vsel %vm2674_vm4, %v15516_v56, 0.0 }
0x3ec3   :  { %v19624_v23 = vpop.eup %19623 }
0x3ec4   :  { %v15496_v24 = vsel %vm2674_vm4, %v19624_v23, 0.0 }
0x3ec5   :  { %v19626_v57 = vpop.eup %19625  ;;  %15497 = vadd.xlane.f32.xlu1 %v15496_v24 }
0x3ec6   :  { %v15499_v61 = vsel %vm2674_vm4, %v19626_v57, 0.0 }
0x3ec7   :  { %15500 = vadd.xlane.f32.xlu0 %v15499_v61 }
0x3ec9   :  { %15519 = vadd.xlane.f32.xlu1 %v15518_v8 }
0x3ecd   :  { %15522 = vadd.xlane.f32.xlu1 %v15521_v1 }
0x3f52   :  { %v15498_v27 = vpop.xlane.xlu1 %15497 }
0x3f53   :  { %19627 = vlog2.f32 %v15498_v27 }
0x3f54   :  { %v15501_v15 = vpop.xlane.xlu0 %15500 }
0x3f55   :  { %19629 = vlog2.f32 %v15501_v15 }
0x3f56   :  { %v15520_v29 = vpop.xlane.xlu1 %15519 }
0x3f5a   :  { %v15523_v43 = vpop.xlane.xlu1 %15522 }
0x3f5d   :  { %v19628_v49 = vpop.eup %19627 }
0x3f5e   :  { %v15503_v26 = vmul.f32 0.6931472, %v19628_v49 }
0x3f5f   :  { %v19630_v39 = vpop.eup %19629 }
0x3f60   :  { %v15505_v59 = vmul.f32 0.6931472, %v19630_v39  ;;  %v15506_v34 = vadd.f32 %v15503_v26, %v15486_v17 }
0x3f62   :  { %v15530_v37 = vsub.f32 %v15506_v34, %v15520_v29  ;;  %v15507_v22 = vadd.f32 %v15505_v59, %v15489_v32 }
0x3f64   :  { %v15532_v48 = vmul.f32 %v16331_v20, %v15530_v37  ;;  %v15531_v13 = vsub.f32 %v15507_v22, %v15523_v43 }
0x3f66   :  { %v15533_v30 = vmul.f32 %v16332_v58, %v15531_v13  ;;  %v15535_v18 = vsel %vm15534_vm10, %v15532_v48, 0.0 }
0x3f68   :  { %v15536_v19 = vsel %vm15534_vm10, %v15533_v30, 0.0 }
0x3f69   :  { %v15537_v50 = vadd.f32 %v15536_v19, %v15535_v18 }
0x3f6b   :  { %15538 = vadd.xlane.f32.xlu1 %v15537_v50 }
0x3f6f   :  { %15550 = vadd.xlane.f32.xlu1 %v15549_v2 }
0x3ff8   :  { %v15539_v45 = vpop.xlane.xlu1 %15538 }
0x3ff9   :  { %v15540_v60 = vrot.slane %v15539_v45, 4 }
0x3ffb   :  { %v15541_v52 = vadd.f32 %v15540_v60, %v15539_v45 }
0x3ffc   :  { %v15551_v3 = vpop.xlane.xlu1 %15550 }
0x3ffd   :  { %v15542_v40 = vrot.slane %v15541_v52, 2  ;;  %v15552_v38 = vrot.slane %v15551_v3, 4 }
0x3fff   :  { %v15553_v5 = vadd.f32 %v15552_v38, %v15551_v3  ;;  %v15543_v31 = vadd.f32 %v15542_v40, %v15541_v52 }
0x4001   :  { %v15554_v46 = vrot.slane %v15553_v5, 2  ;;  %v15544_v42 = vrot.slane %v15543_v31, 1 }
0x4003   :  { %v15555_v25 = vadd.f32 %v15554_v46, %v15553_v5  ;;  %v15545_v44 = vadd.f32 %v15544_v42, %v15543_v31 }
0x4005   :  { %19198 = vpush %v15545_v44  ;;  %v15556_v41 = vrot.slane %v15555_v25, 1 }
0x4007   :  { %v15557_v14 = vadd.f32 %v15556_v41, %v15555_v25 }
0x4009   :  { %19200 = vpush %v15557_v14 }
0x4036   :  { %s19199_s6 = spop %19198 }
0x403a   :  { %s19201_s25 = spop %19200 }
0x403b   :  { %s15559_s27 = smax.f32 %s19655_s18, %s19201_s25 }
0x403c   :  { %v15560_v47 = vstv %s15559_s27 }
0x403d   :  { %19631 = vrcp.f32 %v15560_v47 }
0x4047   :  { %v19632_v36 = vpop.eup %19631 }
0x4048   :  { %19202 = vpush %v19632_v36 }
0x4079   :  { %s19203_s9 = spop %19202 }
0x407a   :  { %s15563_s3 = smul.f32 %s19203_s9, %s19199_s6 }
0x407c   :  { %15565 = sst [smem:[#allocation2]] %s15563_s3 }
0x407d   :  { %19649 = shalt.err (!%p19646_p2)
}
0x407e   :  { %s19656_s4 = smov [#allocation2]  }
0x407f   :  { %15573 = dma.smem_to_hbm %s19656_s4, 16, %s23361_s21, [#allocation3]  }
0x4080   :  { %19650 = dma.done.wait [#allocation3], 16  }
0x4081   :  { %19651 = vsyncadd [#allocation3], 4294967280 }
0x4082   :  { %15577 = sfence }
0x4083   :  { %15578 = vsyncpa [#allocation3], 1 }

</bundles_post_ra>
